<compile_context>
chip_gen: v6e
topology: v6e:2x2x1
jax: 0.10.0
libtpu: 0.0.40
codegen_flags: <defaults>
</compile_context>

<pallas_src>
import jax
import jax.numpy as jnp
import numpy as np
from jax import lax
from jax.experimental import pallas as pl
from jax.experimental.pallas import tpu as pltpu

N_CH = 16      # conv output channels == im2col patch taps (4*4)
HW = 196       # 14*14 conv output positions
HID_PAD = 128  # Linear hidden dim 100 padded to a full lane width
OUT_PAD = 128  # 10 logits padded to a full lane width


# ---------------------------------------------------------------------------
# Fused Pallas kernel: conv(+ReLU) -> Linear(3136,100)(+ReLU) -> Linear(100,10)
# ---------------------------------------------------------------------------
def mnist_fused_kernel(p_ref, wc_ref, bc_ref, w2_ref, b2_ref, w3_ref, b3_ref,
                       o_ref):
    """Refs:
       p_ref : [16, TB, 196] f32 (im2col planes, VMEM)
       wc_ref: [16, 16] f32 (SMEM)   bc_ref: [16] f32 (SMEM)
       w2_ref: [16, 196, 128] bf16   b2_ref: [1, 128] f32
       w3_ref: [128, 128] bf16       b3_ref: [1, 128] f32
       o_ref : [TB, 128] f32
    """
    tb = o_ref.shape[0]

    h = jnp.zeros((tb, HID_PAD), jnp.float32)
    # Static unroll over conv output channels: lets the scheduler overlap the
    # VPU tap-sum of channel c+1 with the MXU matmul of channel c.
    for c in range(N_CH):
        # Conv channel c on the VPU: bias + 16-tap weighted sum of the planes.
        a = jnp.full((tb, HW), bc_ref[c], dtype=jnp.float32)
        for k in range(N_CH):                       # static unroll: 16 MACs
            a = a + wc_ref[c, k] * p_ref[k]
        a = jnp.maximum(a, 0.0)                     # ReLU; stays on-chip
        # Channel-c slice of the first Linear layer on the MXU (f32 accum).
        h = h + jnp.dot(a.astype(jnp.bfloat16), w2_ref[c],
                        preferred_element_type=jnp.float32)

    h = jnp.maximum(h + b2_ref[...], 0.0)           # Linear-2 bias + ReLU
    o_ref[...] = jnp.dot(h.astype(jnp.bfloat16), w3_ref[...],
                         preferred_element_type=jnp.float32) + b3_ref[...]


# ---------------------------------------------------------------------------
# Plain-JAX glue: im2col planes + one-time parameter re-layout
# ---------------------------------------------------------------------------
def _im2col_planes(x):
    """x: [B, 1, 28, 28] -> planes [16, B, 196]; plane index = kh*4 + kw."""
    xp = jnp.pad(x[:, 0], ((0, 0), (1, 1), (1, 1)))            # [B, 30, 30]
    planes = jnp.stack([xp[:, kh:kh + 28:2, kw:kw + 28:2]
                        for kh in range(4) for kw in range(4)], axis=0)
    return planes.reshape(N_CH, x.shape[0], HW)


def prepare_params(params):
    """One-time re-layout of PyTorch-shaped params (hoisted out of the forward).

    conv weight -> [c, kh*4+kw]; l2 weight -> per-channel [16, 196, 128]
    (preserving torch's C-major flatten c*196 + hw); 100/10 dims padded to 128;
    matmul weights cast to bf16.
    """
    wc, bc, w2, b2, w3, b3 = params
    wc_mat = wc.reshape(N_CH, N_CH)                                  # [c, tap]
    w2_3d = w2.reshape(100, N_CH, HW).transpose(1, 2, 0)             # [c, hw, o]
    w2_3d = jnp.pad(w2_3d, ((0, 0), (0, 0), (0, HID_PAD - 100)))
    b2p = jnp.pad(b2, (0, HID_PAD - 100)).reshape(1, HID_PAD)
    w3p = jnp.pad(w3.T, ((0, HID_PAD - 100), (0, OUT_PAD - 10)))     # [128,128]
    b3p = jnp.pad(b3, (0, OUT_PAD - 10)).reshape(1, OUT_PAD)
    return (wc_mat, bc, w2_3d.astype(jnp.bfloat16), b2p,
            w3p.astype(jnp.bfloat16), b3p)


@jax.jit
def mnist_cnn_forward(x, prepared):
    """Pallas implementation of Mnist_CNN.forward; x is NCHW [B, 1, 28, 28]."""
    wc_mat, bc, w2_3d, b2p, w3p, b3p = prepared
    B = x.shape[0]
    planes = _im2col_planes(x)                       # [16, B, 196] f32

    TB = B if B <= 128 else 128                      # batch tile
    grid = (pl.cdiv(B, TB),)

    out = pl.pallas_call(
        mnist_fused_kernel,
        out_shape=jax.ShapeDtypeStruct((B, OUT_PAD), jnp.float32),
        grid=grid,
        in_specs=[
            pl.BlockSpec((N_CH, TB, HW), lambda i: (0, i, 0)),        # planes
            pl.BlockSpec(memory_space=pltpu.MemorySpace.SMEM),        # conv W
            pl.BlockSpec(memory_space=pltpu.MemorySpace.SMEM),        # conv b
            pl.BlockSpec((N_CH, HW, HID_PAD), lambda i: (0, 0, 0)),   # l2 W
            pl.BlockSpec((1, HID_PAD), lambda i: (0, 0)),             # l2 b
            pl.BlockSpec((HID_PAD, OUT_PAD), lambda i: (0, 0)),       # l3 W
            pl.BlockSpec((1, OUT_PAD), lambda i: (0, 0)),             # l3 b
        ],
        out_specs=pl.BlockSpec((TB, OUT_PAD), lambda i: (i, 0)),
        compiler_params=pltpu.CompilerParams(
            dimension_semantics=("parallel",)),
    )(planes, wc_mat, bc, w2_3d, b2p, w3p, b3p)
    return out[:, :10]


# ---------------------------------------------------------------------------
# Deterministic params + pure-JAX reference (mirrors the PyTorch forward)
# ---------------------------------------------------------------------------
def init_params(key):
    k1, k2, k3, k4, k5, k6 = jax.random.split(key, 6)
    wc = 0.1 * jax.random.normal(k1, (16, 1, 4, 4), jnp.float32)        # l1.weight
    bc = 0.1 * jax.random.normal(k2, (16,), jnp.float32)                # l1.bias
    w2 = 0.02 * jax.random.normal(k3, (100, 16 * 14 * 14), jnp.float32) # l2.weight
    b2 = 0.02 * jax.random.normal(k4, (100,), jnp.float32)              # l2.bias
    w3 = 0.1 * jax.random.normal(k5, (10, 100), jnp.float32)            # l3.weight
    b3 = 0.1 * jax.random.normal(k6, (10,), jnp.float32)                # l3.bias
    return wc, bc, w2, b2, w3, b3


def reference_forward(x, params):
    wc, bc, w2, b2, w3, b3 = params
    conv = lax.conv_general_dilated(
        x, wc, window_strides=(2, 2), padding=((1, 1), (1, 1)),
        dimension_numbers=("NCHW", "OIHW", "NCHW"))
    conv = jnp.maximum(conv + bc[None, :, None, None], 0.0)
    flat = conv.reshape(x.shape[0], -1)              # flatten(out)
    h = jnp.maximum(flat @ w2.T + b2, 0.0)
    return h @ w3.T + b3


if __name__ == "__main__":
    key = jax.random.PRNGKey(0)
    kx, kp = jax.random.split(key)

    # MNIST geometry is fixed by the architecture (l2 expects 16*14*14 inputs).
    x = jax.random.normal(kx, (2, 1, 28, 28), jnp.float32)
    params = init_params(kp)
    prepared = prepare_params(params)                # one-time weight re-layout

    out = jax.block_until_ready(mnist_cnn_forward(x, prepared))
    ref = jax.block_until_ready(reference_forward(x, params))

    # bf16 matmul operands with f32 accumulation -> agreement well inside 2e-2.
    np.testing.assert_allclose(np.asarray(out), np.asarray(ref),
                               rtol=2e-2, atol=2e-2)
    print("KERNEL_OK")
</pallas_src>

<mosaic_0001>
module attributes {stable_mosaic.version = 11 : i64} {
  func.func @mnist_fused_kernel(%arg0: i32, %arg1: memref<16x2x196xf32, #tpu.memory_space<vmem>>, %arg2: memref<16x16xf32, #tpu.memory_space<smem>>, %arg3: memref<16xf32, #tpu.memory_space<smem>>, %arg4: memref<16x196x128xbf16, #tpu.memory_space<vmem>>, %arg5: memref<1x128xf32, #tpu.memory_space<vmem>>, %arg6: memref<128x128xbf16, #tpu.memory_space<vmem>>, %arg7: memref<1x128xf32, #tpu.memory_space<vmem>>, %arg8: memref<2x128xf32, #tpu.memory_space<vmem>>) attributes {dimension_semantics = [#tpu.dimension_semantics<parallel>], iteration_bounds = array<i64: 1>, scalar_prefetch = 0 : i64, scratch_operands = 0 : i64, tpu.core_type = #tpu.core_type<tc>, window_params = [{transform_indices = @transform_0, window_bounds = array<i64: 16, 2, 196>}, {transform_indices = @transform_1, window_bounds = array<i64: 16, 16>}, {transform_indices = @transform_2, window_bounds = array<i64: 16>}, {pipeline_mode = #tpu.pipeline_mode<synchronous>, transform_indices = @transform_3, window_bounds = array<i64: 16, 196, 128>}, {pipeline_mode = #tpu.pipeline_mode<synchronous>, transform_indices = @transform_4, window_bounds = array<i64: 1, 128>}, {pipeline_mode = #tpu.pipeline_mode<synchronous>, transform_indices = @transform_5, window_bounds = array<i64: 128, 128>}, {pipeline_mode = #tpu.pipeline_mode<synchronous>, transform_indices = @transform_6, window_bounds = array<i64: 1, 128>}, {transform_indices = @transform_7, window_bounds = array<i64: 2, 128>}]} {
    %cst = arith.constant 0.000000e+00 : f32
    %0 = vector.broadcast %cst : f32 to vector<2x128xf32>
    %c0 = arith.constant 0 : index
    %1 = memref.load %arg3[%c0] : memref<16xf32, #tpu.memory_space<smem>>
    %2 = vector.broadcast %1 : f32 to vector<2x196xf32>
    %c0_0 = arith.constant 0 : index
    %c0_1 = arith.constant 0 : index
    %3 = memref.load %arg2[%c0_0, %c0_1] : memref<16x16xf32, #tpu.memory_space<smem>>
    %c0_2 = arith.constant 0 : index
    %c0_3 = arith.constant 0 : index
    %c0_4 = arith.constant 0 : index
    %4 = vector.load %arg1[%c0_2, %c0_3, %c0_4] : memref<16x2x196xf32, #tpu.memory_space<vmem>>, vector<1x2x196xf32>
    %5 = vector.shape_cast %4 : vector<1x2x196xf32> to vector<2x196xf32>
    %6 = vector.broadcast %3 : f32 to vector<2x196xf32>
    %7 = arith.mulf %6, %5 : vector<2x196xf32>
    %8 = arith.addf %2, %7 : vector<2x196xf32>
    %c0_5 = arith.constant 0 : index
    %c1 = arith.constant 1 : index
    %9 = memref.load %arg2[%c0_5, %c1] : memref<16x16xf32, #tpu.memory_space<smem>>
    %c1_6 = arith.constant 1 : index
    %c0_7 = arith.constant 0 : index
    %c0_8 = arith.constant 0 : index
    %10 = vector.load %arg1[%c1_6, %c0_7, %c0_8] : memref<16x2x196xf32, #tpu.memory_space<vmem>>, vector<1x2x196xf32>
    %11 = vector.shape_cast %10 : vector<1x2x196xf32> to vector<2x196xf32>
    %12 = vector.broadcast %9 : f32 to vector<2x196xf32>
    %13 = arith.mulf %12, %11 : vector<2x196xf32>
    %14 = arith.addf %8, %13 : vector<2x196xf32>
    %c0_9 = arith.constant 0 : index
    %c2 = arith.constant 2 : index
    %15 = memref.load %arg2[%c0_9, %c2] : memref<16x16xf32, #tpu.memory_space<smem>>
    %c2_10 = arith.constant 2 : index
    %c0_11 = arith.constant 0 : index
    %c0_12 = arith.constant 0 : index
    %16 = vector.load %arg1[%c2_10, %c0_11, %c0_12] : memref<16x2x196xf32, #tpu.memory_space<vmem>>, vector<1x2x196xf32>
    %17 = vector.shape_cast %16 : vector<1x2x196xf32> to vector<2x196xf32>
    %18 = vector.broadcast %15 : f32 to vector<2x196xf32>
    %19 = arith.mulf %18, %17 : vector<2x196xf32>
    %20 = arith.addf %14, %19 : vector<2x196xf32>
    %c0_13 = arith.constant 0 : index
    %c3 = arith.constant 3 : index
    %21 = memref.load %arg2[%c0_13, %c3] : memref<16x16xf32, #tpu.memory_space<smem>>
    %c3_14 = arith.constant 3 : index
    %c0_15 = arith.constant 0 : index
    %c0_16 = arith.constant 0 : index
    %22 = vector.load %arg1[%c3_14, %c0_15, %c0_16] : memref<16x2x196xf32, #tpu.memory_space<vmem>>, vector<1x2x196xf32>
    %23 = vector.shape_cast %22 : vector<1x2x196xf32> to vector<2x196xf32>
    %24 = vector.broadcast %21 : f32 to vector<2x196xf32>
    %25 = arith.mulf %24, %23 : vector<2x196xf32>
    %26 = arith.addf %20, %25 : vector<2x196xf32>
    %c0_17 = arith.constant 0 : index
    %c4 = arith.constant 4 : index
    %27 = memref.load %arg2[%c0_17, %c4] : memref<16x16xf32, #tpu.memory_space<smem>>
    %c4_18 = arith.constant 4 : index
    %c0_19 = arith.constant 0 : index
    %c0_20 = arith.constant 0 : index
    %28 = vector.load %arg1[%c4_18, %c0_19, %c0_20] : memref<16x2x196xf32, #tpu.memory_space<vmem>>, vector<1x2x196xf32>
    %29 = vector.shape_cast %28 : vector<1x2x196xf32> to vector<2x196xf32>
    %30 = vector.broadcast %27 : f32 to vector<2x196xf32>
    %31 = arith.mulf %30, %29 : vector<2x196xf32>
    %32 = arith.addf %26, %31 : vector<2x196xf32>
    %c0_21 = arith.constant 0 : index
    %c5 = arith.constant 5 : index
    %33 = memref.load %arg2[%c0_21, %c5] : memref<16x16xf32, #tpu.memory_space<smem>>
    %c5_22 = arith.constant 5 : index
    %c0_23 = arith.constant 0 : index
    %c0_24 = arith.constant 0 : index
    %34 = vector.load %arg1[%c5_22, %c0_23, %c0_24] : memref<16x2x196xf32, #tpu.memory_space<vmem>>, vector<1x2x196xf32>
    %35 = vector.shape_cast %34 : vector<1x2x196xf32> to vector<2x196xf32>
    %36 = vector.broadcast %33 : f32 to vector<2x196xf32>
    %37 = arith.mulf %36, %35 : vector<2x196xf32>
    %38 = arith.addf %32, %37 : vector<2x196xf32>
    %c0_25 = arith.constant 0 : index
    %c6 = arith.constant 6 : index
    %39 = memref.load %arg2[%c0_25, %c6] : memref<16x16xf32, #tpu.memory_space<smem>>
    %c6_26 = arith.constant 6 : index
    %c0_27 = arith.constant 0 : index
    %c0_28 = arith.constant 0 : index
    %40 = vector.load %arg1[%c6_26, %c0_27, %c0_28] : memref<16x2x196xf32, #tpu.memory_space<vmem>>, vector<1x2x196xf32>
    %41 = vector.shape_cast %40 : vector<1x2x196xf32> to vector<2x196xf32>
    %42 = vector.broadcast %39 : f32 to vector<2x196xf32>
    %43 = arith.mulf %42, %41 : vector<2x196xf32>
    %44 = arith.addf %38, %43 : vector<2x196xf32>
    %c0_29 = arith.constant 0 : index
    %c7 = arith.constant 7 : index
    %45 = memref.load %arg2[%c0_29, %c7] : memref<16x16xf32, #tpu.memory_space<smem>>
    %c7_30 = arith.constant 7 : index
    %c0_31 = arith.constant 0 : index
    %c0_32 = arith.constant 0 : index
    %46 = vector.load %arg1[%c7_30, %c0_31, %c0_32] : memref<16x2x196xf32, #tpu.memory_space<vmem>>, vector<1x2x196xf32>
    %47 = vector.shape_cast %46 : vector<1x2x196xf32> to vector<2x196xf32>
    %48 = vector.broadcast %45 : f32 to vector<2x196xf32>
    %49 = arith.mulf %48, %47 : vector<2x196xf32>
    %50 = arith.addf %44, %49 : vector<2x196xf32>
    %c0_33 = arith.constant 0 : index
    %c8 = arith.constant 8 : index
    %51 = memref.load %arg2[%c0_33, %c8] : memref<16x16xf32, #tpu.memory_space<smem>>
    %c8_34 = arith.constant 8 : index
    %c0_35 = arith.constant 0 : index
    %c0_36 = arith.constant 0 : index
    %52 = vector.load %arg1[%c8_34, %c0_35, %c0_36] : memref<16x2x196xf32, #tpu.memory_space<vmem>>, vector<1x2x196xf32>
    %53 = vector.shape_cast %52 : vector<1x2x196xf32> to vector<2x196xf32>
    %54 = vector.broadcast %51 : f32 to vector<2x196xf32>
    %55 = arith.mulf %54, %53 : vector<2x196xf32>
    %56 = arith.addf %50, %55 : vector<2x196xf32>
    %c0_37 = arith.constant 0 : index
    %c9 = arith.constant 9 : index
    %57 = memref.load %arg2[%c0_37, %c9] : memref<16x16xf32, #tpu.memory_space<smem>>
    %c9_38 = arith.constant 9 : index
    %c0_39 = arith.constant 0 : index
    %c0_40 = arith.constant 0 : index
    %58 = vector.load %arg1[%c9_38, %c0_39, %c0_40] : memref<16x2x196xf32, #tpu.memory_space<vmem>>, vector<1x2x196xf32>
    %59 = vector.shape_cast %58 : vector<1x2x196xf32> to vector<2x196xf32>
    %60 = vector.broadcast %57 : f32 to vector<2x196xf32>
    %61 = arith.mulf %60, %59 : vector<2x196xf32>
    %62 = arith.addf %56, %61 : vector<2x196xf32>
    %c0_41 = arith.constant 0 : index
    %c10 = arith.constant 10 : index
    %63 = memref.load %arg2[%c0_41, %c10] : memref<16x16xf32, #tpu.memory_space<smem>>
    %c10_42 = arith.constant 10 : index
    %c0_43 = arith.constant 0 : index
    %c0_44 = arith.constant 0 : index
    %64 = vector.load %arg1[%c10_42, %c0_43, %c0_44] : memref<16x2x196xf32, #tpu.memory_space<vmem>>, vector<1x2x196xf32>
    %65 = vector.shape_cast %64 : vector<1x2x196xf32> to vector<2x196xf32>
    %66 = vector.broadcast %63 : f32 to vector<2x196xf32>
    %67 = arith.mulf %66, %65 : vector<2x196xf32>
    %68 = arith.addf %62, %67 : vector<2x196xf32>
    %c0_45 = arith.constant 0 : index
    %c11 = arith.constant 11 : index
    %69 = memref.load %arg2[%c0_45, %c11] : memref<16x16xf32, #tpu.memory_space<smem>>
    %c11_46 = arith.constant 11 : index
    %c0_47 = arith.constant 0 : index
    %c0_48 = arith.constant 0 : index
    %70 = vector.load %arg1[%c11_46, %c0_47, %c0_48] : memref<16x2x196xf32, #tpu.memory_space<vmem>>, vector<1x2x196xf32>
    %71 = vector.shape_cast %70 : vector<1x2x196xf32> to vector<2x196xf32>
    %72 = vector.broadcast %69 : f32 to vector<2x196xf32>
    %73 = arith.mulf %72, %71 : vector<2x196xf32>
    %74 = arith.addf %68, %73 : vector<2x196xf32>
    %c0_49 = arith.constant 0 : index
    %c12 = arith.constant 12 : index
    %75 = memref.load %arg2[%c0_49, %c12] : memref<16x16xf32, #tpu.memory_space<smem>>
    %c12_50 = arith.constant 12 : index
    %c0_51 = arith.constant 0 : index
    %c0_52 = arith.constant 0 : index
    %76 = vector.load %arg1[%c12_50, %c0_51, %c0_52] : memref<16x2x196xf32, #tpu.memory_space<vmem>>, vector<1x2x196xf32>
    %77 = vector.shape_cast %76 : vector<1x2x196xf32> to vector<2x196xf32>
    %78 = vector.broadcast %75 : f32 to vector<2x196xf32>
    %79 = arith.mulf %78, %77 : vector<2x196xf32>
    %80 = arith.addf %74, %79 : vector<2x196xf32>
    %c0_53 = arith.constant 0 : index
    %c13 = arith.constant 13 : index
    %81 = memref.load %arg2[%c0_53, %c13] : memref<16x16xf32, #tpu.memory_space<smem>>
    %c13_54 = arith.constant 13 : index
    %c0_55 = arith.constant 0 : index
    %c0_56 = arith.constant 0 : index
    %82 = vector.load %arg1[%c13_54, %c0_55, %c0_56] : memref<16x2x196xf32, #tpu.memory_space<vmem>>, vector<1x2x196xf32>
    %83 = vector.shape_cast %82 : vector<1x2x196xf32> to vector<2x196xf32>
    %84 = vector.broadcast %81 : f32 to vector<2x196xf32>
    %85 = arith.mulf %84, %83 : vector<2x196xf32>
    %86 = arith.addf %80, %85 : vector<2x196xf32>
    %c0_57 = arith.constant 0 : index
    %c14 = arith.constant 14 : index
    %87 = memref.load %arg2[%c0_57, %c14] : memref<16x16xf32, #tpu.memory_space<smem>>
    %c14_58 = arith.constant 14 : index
    %c0_59 = arith.constant 0 : index
    %c0_60 = arith.constant 0 : index
    %88 = vector.load %arg1[%c14_58, %c0_59, %c0_60] : memref<16x2x196xf32, #tpu.memory_space<vmem>>, vector<1x2x196xf32>
    %89 = vector.shape_cast %88 : vector<1x2x196xf32> to vector<2x196xf32>
    %90 = vector.broadcast %87 : f32 to vector<2x196xf32>
    %91 = arith.mulf %90, %89 : vector<2x196xf32>
    %92 = arith.addf %86, %91 : vector<2x196xf32>
    %c0_61 = arith.constant 0 : index
    %c15 = arith.constant 15 : index
    %93 = memref.load %arg2[%c0_61, %c15] : memref<16x16xf32, #tpu.memory_space<smem>>
    %c15_62 = arith.constant 15 : index
    %c0_63 = arith.constant 0 : index
    %c0_64 = arith.constant 0 : index
    %94 = vector.load %arg1[%c15_62, %c0_63, %c0_64] : memref<16x2x196xf32, #tpu.memory_space<vmem>>, vector<1x2x196xf32>
    %95 = vector.shape_cast %94 : vector<1x2x196xf32> to vector<2x196xf32>
    %96 = vector.broadcast %93 : f32 to vector<2x196xf32>
    %97 = arith.mulf %96, %95 : vector<2x196xf32>
    %98 = arith.addf %92, %97 : vector<2x196xf32>
    %cst_65 = arith.constant 0.000000e+00 : f32
    %99 = vector.broadcast %cst_65 : f32 to vector<2x196xf32>
    %100 = arith.maximumf %98, %99 : vector<2x196xf32>
    %101 = arith.truncf %100 : vector<2x196xf32> to vector<2x196xbf16>
    %c0_66 = arith.constant 0 : index
    %c0_67 = arith.constant 0 : index
    %c0_68 = arith.constant 0 : index
    %102 = vector.load %arg4[%c0_66, %c0_67, %c0_68] : memref<16x196x128xbf16, #tpu.memory_space<vmem>>, vector<1x196x128xbf16>
    %103 = vector.shape_cast %102 : vector<1x196x128xbf16> to vector<196x128xbf16>
    %cst_69 = arith.constant dense<0.000000e+00> : vector<2x128xf32>
    %104 = tpu.matmul %101, %103, %cst_69 {dimension_numbers = #tpu.dot_dimension_numbers<[1], [0], [0], [1], [0, 0, 1, 1], [], []>} : vector<2x196xbf16>, vector<196x128xbf16>, vector<2x128xf32> -> vector<2x128xf32>
    %105 = arith.addf %0, %104 : vector<2x128xf32>
    %c1_70 = arith.constant 1 : index
    %106 = memref.load %arg3[%c1_70] : memref<16xf32, #tpu.memory_space<smem>>
    %107 = vector.broadcast %106 : f32 to vector<2x196xf32>
    %c1_71 = arith.constant 1 : index
    %c0_72 = arith.constant 0 : index
    %108 = memref.load %arg2[%c1_71, %c0_72] : memref<16x16xf32, #tpu.memory_space<smem>>
    %c0_73 = arith.constant 0 : index
    %c0_74 = arith.constant 0 : index
    %c0_75 = arith.constant 0 : index
    %109 = vector.load %arg1[%c0_73, %c0_74, %c0_75] : memref<16x2x196xf32, #tpu.memory_space<vmem>>, vector<1x2x196xf32>
    %110 = vector.shape_cast %109 : vector<1x2x196xf32> to vector<2x196xf32>
    %111 = vector.broadcast %108 : f32 to vector<2x196xf32>
    %112 = arith.mulf %111, %110 : vector<2x196xf32>
    %113 = arith.addf %107, %112 : vector<2x196xf32>
    %c1_76 = arith.constant 1 : index
    %c1_77 = arith.constant 1 : index
    %114 = memref.load %arg2[%c1_76, %c1_77] : memref<16x16xf32, #tpu.memory_space<smem>>
    %c1_78 = arith.constant 1 : index
    %c0_79 = arith.constant 0 : index
    %c0_80 = arith.constant 0 : index
    %115 = vector.load %arg1[%c1_78, %c0_79, %c0_80] : memref<16x2x196xf32, #tpu.memory_space<vmem>>, vector<1x2x196xf32>
    %116 = vector.shape_cast %115 : vector<1x2x196xf32> to vector<2x196xf32>
    %117 = vector.broadcast %114 : f32 to vector<2x196xf32>
    %118 = arith.mulf %117, %116 : vector<2x196xf32>
    %119 = arith.addf %113, %118 : vector<2x196xf32>
    %c1_81 = arith.constant 1 : index
    %c2_82 = arith.constant 2 : index
    %120 = memref.load %arg2[%c1_81, %c2_82] : memref<16x16xf32, #tpu.memory_space<smem>>
    %c2_83 = arith.constant 2 : index
    %c0_84 = arith.constant 0 : index
    %c0_85 = arith.constant 0 : index
    %121 = vector.load %arg1[%c2_83, %c0_84, %c0_85] : memref<16x2x196xf32, #tpu.memory_space<vmem>>, vector<1x2x196xf32>
    %122 = vector.shape_cast %121 : vector<1x2x196xf32> to vector<2x196xf32>
    %123 = vector.broadcast %120 : f32 to vector<2x196xf32>
    %124 = arith.mulf %123, %122 : vector<2x196xf32>
    %125 = arith.addf %119, %124 : vector<2x196xf32>
    %c1_86 = arith.constant 1 : index
    %c3_87 = arith.constant 3 : index
    %126 = memref.load %arg2[%c1_86, %c3_87] : memref<16x16xf32, #tpu.memory_space<smem>>
    %c3_88 = arith.constant 3 : index
    %c0_89 = arith.constant 0 : index
    %c0_90 = arith.constant 0 : index
    %127 = vector.load %arg1[%c3_88, %c0_89, %c0_90] : memref<16x2x196xf32, #tpu.memory_space<vmem>>, vector<1x2x196xf32>
    %128 = vector.shape_cast %127 : vector<1x2x196xf32> to vector<2x196xf32>
    %129 = vector.broadcast %126 : f32 to vector<2x196xf32>
    %130 = arith.mulf %129, %128 : vector<2x196xf32>
    %131 = arith.addf %125, %130 : vector<2x196xf32>
    %c1_91 = arith.constant 1 : index
    %c4_92 = arith.constant 4 : index
    %132 = memref.load %arg2[%c1_91, %c4_92] : memref<16x16xf32, #tpu.memory_space<smem>>
    %c4_93 = arith.constant 4 : index
    %c0_94 = arith.constant 0 : index
    %c0_95 = arith.constant 0 : index
    %133 = vector.load %arg1[%c4_93, %c0_94, %c0_95] : memref<16x2x196xf32, #tpu.memory_space<vmem>>, vector<1x2x196xf32>
    %134 = vector.shape_cast %133 : vector<1x2x196xf32> to vector<2x196xf32>
    %135 = vector.broadcast %132 : f32 to vector<2x196xf32>
    %136 = arith.mulf %135, %134 : vector<2x196xf32>
    %137 = arith.addf %131, %136 : vector<2x196xf32>
    %c1_96 = arith.constant 1 : index
    %c5_97 = arith.constant 5 : index
    %138 = memref.load %arg2[%c1_96, %c5_97] : memref<16x16xf32, #tpu.memory_space<smem>>
    %c5_98 = arith.constant 5 : index
    %c0_99 = arith.constant 0 : index
    %c0_100 = arith.constant 0 : index
    %139 = vector.load %arg1[%c5_98, %c0_99, %c0_100] : memref<16x2x196xf32, #tpu.memory_space<vmem>>, vector<1x2x196xf32>
    %140 = vector.shape_cast %139 : vector<1x2x196xf32> to vector<2x196xf32>
    %141 = vector.broadcast %138 : f32 to vector<2x196xf32>
    %142 = arith.mulf %141, %140 : vector<2x196xf32>
    %143 = arith.addf %137, %142 : vector<2x196xf32>
    %c1_101 = arith.constant 1 : index
    %c6_102 = arith.constant 6 : index
    %144 = memref.load %arg2[%c1_101, %c6_102] : memref<16x16xf32, #tpu.memory_space<smem>>
    %c6_103 = arith.constant 6 : index
    %c0_104 = arith.constant 0 : index
    %c0_105 = arith.constant 0 : index
    %145 = vector.load %arg1[%c6_103, %c0_104, %c0_105] : memref<16x2x196xf32, #tpu.memory_space<vmem>>, vector<1x2x196xf32>
    %146 = vector.shape_cast %145 : vector<1x2x196xf32> to vector<2x196xf32>
    %147 = vector.broadcast %144 : f32 to vector<2x196xf32>
    %148 = arith.mulf %147, %146 : vector<2x196xf32>
    %149 = arith.addf %143, %148 : vector<2x196xf32>
    %c1_106 = arith.constant 1 : index
    %c7_107 = arith.constant 7 : index
    %150 = memref.load %arg2[%c1_106, %c7_107] : memref<16x16xf32, #tpu.memory_space<smem>>
    %c7_108 = arith.constant 7 : index
    %c0_109 = arith.constant 0 : index
    %c0_110 = arith.constant 0 : index
    %151 = vector.load %arg1[%c7_108, %c0_109, %c0_110] : memref<16x2x196xf32, #tpu.memory_space<vmem>>, vector<1x2x196xf32>
    %152 = vector.shape_cast %151 : vector<1x2x196xf32> to vector<2x196xf32>
    %153 = vector.broadcast %150 : f32 to vector<2x196xf32>
    %154 = arith.mulf %153, %152 : vector<2x196xf32>
    %155 = arith.addf %149, %154 : vector<2x196xf32>
    %c1_111 = arith.constant 1 : index
    %c8_112 = arith.constant 8 : index
    %156 = memref.load %arg2[%c1_111, %c8_112] : memref<16x16xf32, #tpu.memory_space<smem>>
    %c8_113 = arith.constant 8 : index
    %c0_114 = arith.constant 0 : index
    %c0_115 = arith.constant 0 : index
    %157 = vector.load %arg1[%c8_113, %c0_114, %c0_115] : memref<16x2x196xf32, #tpu.memory_space<vmem>>, vector<1x2x196xf32>
    %158 = vector.shape_cast %157 : vector<1x2x196xf32> to vector<2x196xf32>
    %159 = vector.broadcast %156 : f32 to vector<2x196xf32>
    %160 = arith.mulf %159, %158 : vector<2x196xf32>
    %161 = arith.addf %155, %160 : vector<2x196xf32>
    %c1_116 = arith.constant 1 : index
    %c9_117 = arith.constant 9 : index
    %162 = memref.load %arg2[%c1_116, %c9_117] : memref<16x16xf32, #tpu.memory_space<smem>>
    %c9_118 = arith.constant 9 : index
    %c0_119 = arith.constant 0 : index
    %c0_120 = arith.constant 0 : index
    %163 = vector.load %arg1[%c9_118, %c0_119, %c0_120] : memref<16x2x196xf32, #tpu.memory_space<vmem>>, vector<1x2x196xf32>
    %164 = vector.shape_cast %163 : vector<1x2x196xf32> to vector<2x196xf32>
    %165 = vector.broadcast %162 : f32 to vector<2x196xf32>
    %166 = arith.mulf %165, %164 : vector<2x196xf32>
    %167 = arith.addf %161, %166 : vector<2x196xf32>
    %c1_121 = arith.constant 1 : index
    %c10_122 = arith.constant 10 : index
    %168 = memref.load %arg2[%c1_121, %c10_122] : memref<16x16xf32, #tpu.memory_space<smem>>
    %c10_123 = arith.constant 10 : index
    %c0_124 = arith.constant 0 : index
    %c0_125 = arith.constant 0 : index
    %169 = vector.load %arg1[%c10_123, %c0_124, %c0_125] : memref<16x2x196xf32, #tpu.memory_space<vmem>>, vector<1x2x196xf32>
    %170 = vector.shape_cast %169 : vector<1x2x196xf32> to vector<2x196xf32>
    %171 = vector.broadcast %168 : f32 to vector<2x196xf32>
    %172 = arith.mulf %171, %170 : vector<2x196xf32>
    %173 = arith.addf %167, %172 : vector<2x196xf32>
    %c1_126 = arith.constant 1 : index
    %c11_127 = arith.constant 11 : index
    %174 = memref.load %arg2[%c1_126, %c11_127] : memref<16x16xf32, #tpu.memory_space<smem>>
    %c11_128 = arith.constant 11 : index
    %c0_129 = arith.constant 0 : index
    %c0_130 = arith.constant 0 : index
    %175 = vector.load %arg1[%c11_128, %c0_129, %c0_130] : memref<16x2x196xf32, #tpu.memory_space<vmem>>, vector<1x2x196xf32>
    %176 = vector.shape_cast %175 : vector<1x2x196xf32> to vector<2x196xf32>
    %177 = vector.broadcast %174 : f32 to vector<2x196xf32>
    %178 = arith.mulf %177, %176 : vector<2x196xf32>
    %179 = arith.addf %173, %178 : vector<2x196xf32>
    %c1_131 = arith.constant 1 : index
    %c12_132 = arith.constant 12 : index
    %180 = memref.load %arg2[%c1_131, %c12_132] : memref<16x16xf32, #tpu.memory_space<smem>>
    %c12_133 = arith.constant 12 : index
    %c0_134 = arith.constant 0 : index
    %c0_135 = arith.constant 0 : index
    %181 = vector.load %arg1[%c12_133, %c0_134, %c0_135] : memref<16x2x196xf32, #tpu.memory_space<vmem>>, vector<1x2x196xf32>
    %182 = vector.shape_cast %181 : vector<1x2x196xf32> to vector<2x196xf32>
    %183 = vector.broadcast %180 : f32 to vector<2x196xf32>
    %184 = arith.mulf %183, %182 : vector<2x196xf32>
    %185 = arith.addf %179, %184 : vector<2x196xf32>
    %c1_136 = arith.constant 1 : index
    %c13_137 = arith.constant 13 : index
    %186 = memref.load %arg2[%c1_136, %c13_137] : memref<16x16xf32, #tpu.memory_space<smem>>
    %c13_138 = arith.constant 13 : index
    %c0_139 = arith.constant 0 : index
    %c0_140 = arith.constant 0 : index
    %187 = vector.load %arg1[%c13_138, %c0_139, %c0_140] : memref<16x2x196xf32, #tpu.memory_space<vmem>>, vector<1x2x196xf32>
    %188 = vector.shape_cast %187 : vector<1x2x196xf32> to vector<2x196xf32>
    %189 = vector.broadcast %186 : f32 to vector<2x196xf32>
    %190 = arith.mulf %189, %188 : vector<2x196xf32>
    %191 = arith.addf %185, %190 : vector<2x196xf32>
    %c1_141 = arith.constant 1 : index
    %c14_142 = arith.constant 14 : index
    %192 = memref.load %arg2[%c1_141, %c14_142] : memref<16x16xf32, #tpu.memory_space<smem>>
    %c14_143 = arith.constant 14 : index
    %c0_144 = arith.constant 0 : index
    %c0_145 = arith.constant 0 : index
    %193 = vector.load %arg1[%c14_143, %c0_144, %c0_145] : memref<16x2x196xf32, #tpu.memory_space<vmem>>, vector<1x2x196xf32>
    %194 = vector.shape_cast %193 : vector<1x2x196xf32> to vector<2x196xf32>
    %195 = vector.broadcast %192 : f32 to vector<2x196xf32>
    %196 = arith.mulf %195, %194 : vector<2x196xf32>
    %197 = arith.addf %191, %196 : vector<2x196xf32>
    %c1_146 = arith.constant 1 : index
    %c15_147 = arith.constant 15 : index
    %198 = memref.load %arg2[%c1_146, %c15_147] : memref<16x16xf32, #tpu.memory_space<smem>>
    %c15_148 = arith.constant 15 : index
    %c0_149 = arith.constant 0 : index
    %c0_150 = arith.constant 0 : index
    %199 = vector.load %arg1[%c15_148, %c0_149, %c0_150] : memref<16x2x196xf32, #tpu.memory_space<vmem>>, vector<1x2x196xf32>
    %200 = vector.shape_cast %199 : vector<1x2x196xf32> to vector<2x196xf32>
    %201 = vector.broadcast %198 : f32 to vector<2x196xf32>
    %202 = arith.mulf %201, %200 : vector<2x196xf32>
    %203 = arith.addf %197, %202 : vector<2x196xf32>
    %cst_151 = arith.constant 0.000000e+00 : f32
    %204 = vector.broadcast %cst_151 : f32 to vector<2x196xf32>
    %205 = arith.maximumf %203, %204 : vector<2x196xf32>
    %206 = arith.truncf %205 : vector<2x196xf32> to vector<2x196xbf16>
    %c1_152 = arith.constant 1 : index
    %c0_153 = arith.constant 0 : index
    %c0_154 = arith.constant 0 : index
    %207 = vector.load %arg4[%c1_152, %c0_153, %c0_154] : memref<16x196x128xbf16, #tpu.memory_space<vmem>>, vector<1x196x128xbf16>
    %208 = vector.shape_cast %207 : vector<1x196x128xbf16> to vector<196x128xbf16>
    %cst_155 = arith.constant dense<0.000000e+00> : vector<2x128xf32>
    %209 = tpu.matmul %206, %208, %cst_155 {dimension_numbers = #tpu.dot_dimension_numbers<[1], [0], [0], [1], [0, 0, 1, 1], [], []>} : vector<2x196xbf16>, vector<196x128xbf16>, vector<2x128xf32> -> vector<2x128xf32>
    %210 = arith.addf %105, %209 : vector<2x128xf32>
    %c2_156 = arith.constant 2 : index
    %211 = memref.load %arg3[%c2_156] : memref<16xf32, #tpu.memory_space<smem>>
    %212 = vector.broadcast %211 : f32 to vector<2x196xf32>
    %c2_157 = arith.constant 2 : index
    %c0_158 = arith.constant 0 : index
    %213 = memref.load %arg2[%c2_157, %c0_158] : memref<16x16xf32, #tpu.memory_space<smem>>
    %c0_159 = arith.constant 0 : index
    %c0_160 = arith.constant 0 : index
    %c0_161 = arith.constant 0 : index
    %214 = vector.load %arg1[%c0_159, %c0_160, %c0_161] : memref<16x2x196xf32, #tpu.memory_space<vmem>>, vector<1x2x196xf32>
    %215 = vector.shape_cast %214 : vector<1x2x196xf32> to vector<2x196xf32>
    %216 = vector.broadcast %213 : f32 to vector<2x196xf32>
    %217 = arith.mulf %216, %215 : vector<2x196xf32>
    %218 = arith.addf %212, %217 : vector<2x196xf32>
    %c2_162 = arith.constant 2 : index
    %c1_163 = arith.constant 1 : index
    %219 = memref.load %arg2[%c2_162, %c1_163] : memref<16x16xf32, #tpu.memory_space<smem>>
    %c1_164 = arith.constant 1 : index
    %c0_165 = arith.constant 0 : index
    %c0_166 = arith.constant 0 : index
    %220 = vector.load %arg1[%c1_164, %c0_165, %c0_166] : memref<16x2x196xf32, #tpu.memory_space<vmem>>, vector<1x2x196xf32>
    %221 = vector.shape_cast %220 : vector<1x2x196xf32> to vector<2x196xf32>
    %222 = vector.broadcast %219 : f32 to vector<2x196xf32>
    %223 = arith.mulf %222, %221 : vector<2x196xf32>
    %224 = arith.addf %218, %223 : vector<2x196xf32>
    %c2_167 = arith.constant 2 : index
    %c2_168 = arith.constant 2 : index
    %225 = memref.load %arg2[%c2_167, %c2_168] : memref<16x16xf32, #tpu.memory_space<smem>>
    %c2_169 = arith.constant 2 : index
    %c0_170 = arith.constant 0 : index
    %c0_171 = arith.constant 0 : index
    %226 = vector.load %arg1[%c2_169, %c0_170, %c0_171] : memref<16x2x196xf32, #tpu.memory_space<vmem>>, vector<1x2x196xf32>
    %227 = vector.shape_cast %226 : vector<1x2x196xf32> to vector<2x196xf32>
    %228 = vector.broadcast %225 : f32 to vector<2x196xf32>
    %229 = arith.mulf %228, %227 : vector<2x196xf32>
    %230 = arith.addf %224, %229 : vector<2x196xf32>
    %c2_172 = arith.constant 2 : index
    %c3_173 = arith.constant 3 : index
    %231 = memref.load %arg2[%c2_172, %c3_173] : memref<16x16xf32, #tpu.memory_space<smem>>
    %c3_174 = arith.constant 3 : index
    %c0_175 = arith.constant 0 : index
    %c0_176 = arith.constant 0 : index
    %232 = vector.load %arg1[%c3_174, %c0_175, %c0_176] : memref<16x2x196xf32, #tpu.memory_space<vmem>>, vector<1x2x196xf32>
    %233 = vector.shape_cast %232 : vector<1x2x196xf32> to vector<2x196xf32>
    %234 = vector.broadcast %231 : f32 to vector<2x196xf32>
    %235 = arith.mulf %234, %233 : vector<2x196xf32>
    %236 = arith.addf %230, %235 : vector<2x196xf32>
    %c2_177 = arith.constant 2 : index
    %c4_178 = arith.constant 4 : index
    %237 = memref.load %arg2[%c2_177, %c4_178] : memref<16x16xf32, #tpu.memory_space<smem>>
    %c4_179 = arith.constant 4 : index
    %c0_180 = arith.constant 0 : index
    %c0_181 = arith.constant 0 : index
    %238 = vector.load %arg1[%c4_179, %c0_180, %c0_181] : memref<16x2x196xf32, #tpu.memory_space<vmem>>, vector<1x2x196xf32>
    %239 = vector.shape_cast %238 : vector<1x2x196xf32> to vector<2x196xf32>
    %240 = vector.broadcast %237 : f32 to vector<2x196xf32>
    %241 = arith.mulf %240, %239 : vector<2x196xf32>
    %242 = arith.addf %236, %241 : vector<2x196xf32>
    %c2_182 = arith.constant 2 : index
    %c5_183 = arith.constant 5 : index
    %243 = memref.load %arg2[%c2_182, %c5_183] : memref<16x16xf32, #tpu.memory_space<smem>>
    %c5_184 = arith.constant 5 : index
    %c0_185 = arith.constant 0 : index
    %c0_186 = arith.constant 0 : index
    %244 = vector.load %arg1[%c5_184, %c0_185, %c0_186] : memref<16x2x196xf32, #tpu.memory_space<vmem>>, vector<1x2x196xf32>
    %245 = vector.shape_cast %244 : vector<1x2x196xf32> to vector<2x196xf32>
    %246 = vector.broadcast %243 : f32 to vector<2x196xf32>
    %247 = arith.mulf %246, %245 : vector<2x196xf32>
    %248 = arith.addf %242, %247 : vector<2x196xf32>
    %c2_187 = arith.constant 2 : index
    %c6_188 = arith.constant 6 : index
    %249 = memref.load %arg2[%c2_187, %c6_188] : memref<16x16xf32, #tpu.memory_space<smem>>
    %c6_189 = arith.constant 6 : index
    %c0_190 = arith.constant 0 : index
    %c0_191 = arith.constant 0 : index
    %250 = vector.load %arg1[%c6_189, %c0_190, %c0_191] : memref<16x2x196xf32, #tpu.memory_space<vmem>>, vector<1x2x196xf32>
    %251 = vector.shape_cast %250 : vector<1x2x196xf32> to vector<2x196xf32>
    %252 = vector.broadcast %249 : f32 to vector<2x196xf32>
    %253 = arith.mulf %252, %251 : vector<2x196xf32>
    %254 = arith.addf %248, %253 : vector<2x196xf32>
    %c2_192 = arith.constant 2 : index
    %c7_193 = arith.constant 7 : index
    %255 = memref.load %arg2[%c2_192, %c7_193] : memref<16x16xf32, #tpu.memory_space<smem>>
    %c7_194 = arith.constant 7 : index
    %c0_195 = arith.constant 0 : index
    %c0_196 = arith.constant 0 : index
    %256 = vector.load %arg1[%c7_194, %c0_195, %c0_196] : memref<16x2x196xf32, #tpu.memory_space<vmem>>, vector<1x2x196xf32>
    %257 = vector.shape_cast %256 : vector<1x2x196xf32> to vector<2x196xf32>
    %258 = vector.broadcast %255 : f32 to vector<2x196xf32>
    %259 = arith.mulf %258, %257 : vector<2x196xf32>
    %260 = arith.addf %254, %259 : vector<2x196xf32>
    %c2_197 = arith.constant 2 : index
    %c8_198 = arith.constant 8 : index
    %261 = memref.load %arg2[%c2_197, %c8_198] : memref<16x16xf32, #tpu.memory_space<smem>>
    %c8_199 = arith.constant 8 : index
    %c0_200 = arith.constant 0 : index
    %c0_201 = arith.constant 0 : index
    %262 = vector.load %arg1[%c8_199, %c0_200, %c0_201] : memref<16x2x196xf32, #tpu.memory_space<vmem>>, vector<1x2x196xf32>
    %263 = vector.shape_cast %262 : vector<1x2x196xf32> to vector<2x196xf32>
    %264 = vector.broadcast %261 : f32 to vector<2x196xf32>
    %265 = arith.mulf %264, %263 : vector<2x196xf32>
    %266 = arith.addf %260, %265 : vector<2x196xf32>
    %c2_202 = arith.constant 2 : index
    %c9_203 = arith.constant 9 : index
    %267 = memref.load %arg2[%c2_202, %c9_203] : memref<16x16xf32, #tpu.memory_space<smem>>
    %c9_204 = arith.constant 9 : index
    %c0_205 = arith.constant 0 : index
    %c0_206 = arith.constant 0 : index
    %268 = vector.load %arg1[%c9_204, %c0_205, %c0_206] : memref<16x2x196xf32, #tpu.memory_space<vmem>>, vector<1x2x196xf32>
    %269 = vector.shape_cast %268 : vector<1x2x196xf32> to vector<2x196xf32>
    %270 = vector.broadcast %267 : f32 to vector<2x196xf32>
    %271 = arith.mulf %270, %269 : vector<2x196xf32>
    %272 = arith.addf %266, %271 : vector<2x196xf32>
    %c2_207 = arith.constant 2 : index
    %c10_208 = arith.constant 10 : index
    %273 = memref.load %arg2[%c2_207, %c10_208] : memref<16x16xf32, #tpu.memory_space<smem>>
    %c10_209 = arith.constant 10 : index
    %c0_210 = arith.constant 0 : index
    %c0_211 = arith.constant 0 : index
    %274 = vector.load %arg1[%c10_209, %c0_210, %c0_211] : memref<16x2x196xf32, #tpu.memory_space<vmem>>, vector<1x2x196xf32>
    %275 = vector.shape_cast %274 : vector<1x2x196xf32> to vector<2x196xf32>
    %276 = vector.broadcast %273 : f32 to vector<2x196xf32>
    %277 = arith.mulf %276, %275 : vector<2x196xf32>
    %278 = arith.addf %272, %277 : vector<2x196xf32>
    %c2_212 = arith.constant 2 : index
    %c11_213 = arith.constant 11 : index
    %279 = memref.load %arg2[%c2_212, %c11_213] : memref<16x16xf32, #tpu.memory_space<smem>>
    %c11_214 = arith.constant 11 : index
    %c0_215 = arith.constant 0 : index
    %c0_216 = arith.constant 0 : index
    %280 = vector.load %arg1[%c11_214, %c0_215, %c0_216] : memref<16x2x196xf32, #tpu.memory_space<vmem>>, vector<1x2x196xf32>
    %281 = vector.shape_cast %280 : vector<1x2x196xf32> to vector<2x196xf32>
    %282 = vector.broadcast %279 : f32 to vector<2x196xf32>
    %283 = arith.mulf %282, %281 : vector<2x196xf32>
    %284 = arith.addf %278, %283 : vector<2x196xf32>
    %c2_217 = arith.constant 2 : index
    %c12_218 = arith.constant 12 : index
    %285 = memref.load %arg2[%c2_217, %c12_218] : memref<16x16xf32, #tpu.memory_space<smem>>
    %c12_219 = arith.constant 12 : index
    %c0_220 = arith.constant 0 : index
    %c0_221 = arith.constant 0 : index
    %286 = vector.load %arg1[%c12_219, %c0_220, %c0_221] : memref<16x2x196xf32, #tpu.memory_space<vmem>>, vector<1x2x196xf32>
    %287 = vector.shape_cast %286 : vector<1x2x196xf32> to vector<2x196xf32>
    %288 = vector.broadcast %285 : f32 to vector<2x196xf32>
    %289 = arith.mulf %288, %287 : vector<2x196xf32>
    %290 = arith.addf %284, %289 : vector<2x196xf32>
    %c2_222 = arith.constant 2 : index
    %c13_223 = arith.constant 13 : index
    %291 = memref.load %arg2[%c2_222, %c13_223] : memref<16x16xf32, #tpu.memory_space<smem>>
    %c13_224 = arith.constant 13 : index
    %c0_225 = arith.constant 0 : index
    %c0_226 = arith.constant 0 : index
    %292 = vector.load %arg1[%c13_224, %c0_225, %c0_226] : memref<16x2x196xf32, #tpu.memory_space<vmem>>, vector<1x2x196xf32>
    %293 = vector.shape_cast %292 : vector<1x2x196xf32> to vector<2x196xf32>
    %294 = vector.broadcast %291 : f32 to vector<2x196xf32>
    %295 = arith.mulf %294, %293 : vector<2x196xf32>
    %296 = arith.addf %290, %295 : vector<2x196xf32>
    %c2_227 = arith.constant 2 : index
    %c14_228 = arith.constant 14 : index
    %297 = memref.load %arg2[%c2_227, %c14_228] : memref<16x16xf32, #tpu.memory_space<smem>>
    %c14_229 = arith.constant 14 : index
    %c0_230 = arith.constant 0 : index
    %c0_231 = arith.constant 0 : index
    %298 = vector.load %arg1[%c14_229, %c0_230, %c0_231] : memref<16x2x196xf32, #tpu.memory_space<vmem>>, vector<1x2x196xf32>
    %299 = vector.shape_cast %298 : vector<1x2x196xf32> to vector<2x196xf32>
    %300 = vector.broadcast %297 : f32 to vector<2x196xf32>
    %301 = arith.mulf %300, %299 : vector<2x196xf32>
    %302 = arith.addf %296, %301 : vector<2x196xf32>
    %c2_232 = arith.constant 2 : index
    %c15_233 = arith.constant 15 : index
    %303 = memref.load %arg2[%c2_232, %c15_233] : memref<16x16xf32, #tpu.memory_space<smem>>
    %c15_234 = arith.constant 15 : index
    %c0_235 = arith.constant 0 : index
    %c0_236 = arith.constant 0 : index
    %304 = vector.load %arg1[%c15_234, %c0_235, %c0_236] : memref<16x2x196xf32, #tpu.memory_space<vmem>>, vector<1x2x196xf32>
    %305 = vector.shape_cast %304 : vector<1x2x196xf32> to vector<2x196xf32>
    %306 = vector.broadcast %303 : f32 to vector<2x196xf32>
    %307 = arith.mulf %306, %305 : vector<2x196xf32>
    %308 = arith.addf %302, %307 : vector<2x196xf32>
    %cst_237 = arith.constant 0.000000e+00 : f32
    %309 = vector.broadcast %cst_237 : f32 to vector<2x196xf32>
    %310 = arith.maximumf %308, %309 : vector<2x196xf32>
    %311 = arith.truncf %310 : vector<2x196xf32> to vector<2x196xbf16>
    %c2_238 = arith.constant 2 : index
    %c0_239 = arith.constant 0 : index
    %c0_240 = arith.constant 0 : index
    %312 = vector.load %arg4[%c2_238, %c0_239, %c0_240] : memref<16x196x128xbf16, #tpu.memory_space<vmem>>, vector<1x196x128xbf16>
    %313 = vector.shape_cast %312 : vector<1x196x128xbf16> to vector<196x128xbf16>
    %cst_241 = arith.constant dense<0.000000e+00> : vector<2x128xf32>
    %314 = tpu.matmul %311, %313, %cst_241 {dimension_numbers = #tpu.dot_dimension_numbers<[1], [0], [0], [1], [0, 0, 1, 1], [], []>} : vector<2x196xbf16>, vector<196x128xbf16>, vector<2x128xf32> -> vector<2x128xf32>
    %315 = arith.addf %210, %314 : vector<2x128xf32>
    %c3_242 = arith.constant 3 : index
    %316 = memref.load %arg3[%c3_242] : memref<16xf32, #tpu.memory_space<smem>>
    %317 = vector.broadcast %316 : f32 to vector<2x196xf32>
    %c3_243 = arith.constant 3 : index
    %c0_244 = arith.constant 0 : index
    %318 = memref.load %arg2[%c3_243, %c0_244] : memref<16x16xf32, #tpu.memory_space<smem>>
    %c0_245 = arith.constant 0 : index
    %c0_246 = arith.constant 0 : index
    %c0_247 = arith.constant 0 : index
    %319 = vector.load %arg1[%c0_245, %c0_246, %c0_247] : memref<16x2x196xf32, #tpu.memory_space<vmem>>, vector<1x2x196xf32>
    %320 = vector.shape_cast %319 : vector<1x2x196xf32> to vector<2x196xf32>
    %321 = vector.broadcast %318 : f32 to vector<2x196xf32>
    %322 = arith.mulf %321, %320 : vector<2x196xf32>
    %323 = arith.addf %317, %322 : vector<2x196xf32>
    %c3_248 = arith.constant 3 : index
    %c1_249 = arith.constant 1 : index
    %324 = memref.load %arg2[%c3_248, %c1_249] : memref<16x16xf32, #tpu.memory_space<smem>>
    %c1_250 = arith.constant 1 : index
    %c0_251 = arith.constant 0 : index
    %c0_252 = arith.constant 0 : index
    %325 = vector.load %arg1[%c1_250, %c0_251, %c0_252] : memref<16x2x196xf32, #tpu.memory_space<vmem>>, vector<1x2x196xf32>
    %326 = vector.shape_cast %325 : vector<1x2x196xf32> to vector<2x196xf32>
    %327 = vector.broadcast %324 : f32 to vector<2x196xf32>
    %328 = arith.mulf %327, %326 : vector<2x196xf32>
    %329 = arith.addf %323, %328 : vector<2x196xf32>
    %c3_253 = arith.constant 3 : index
    %c2_254 = arith.constant 2 : index
    %330 = memref.load %arg2[%c3_253, %c2_254] : memref<16x16xf32, #tpu.memory_space<smem>>
    %c2_255 = arith.constant 2 : index
    %c0_256 = arith.constant 0 : index
    %c0_257 = arith.constant 0 : index
    %331 = vector.load %arg1[%c2_255, %c0_256, %c0_257] : memref<16x2x196xf32, #tpu.memory_space<vmem>>, vector<1x2x196xf32>
    %332 = vector.shape_cast %331 : vector<1x2x196xf32> to vector<2x196xf32>
    %333 = vector.broadcast %330 : f32 to vector<2x196xf32>
    %334 = arith.mulf %333, %332 : vector<2x196xf32>
    %335 = arith.addf %329, %334 : vector<2x196xf32>
    %c3_258 = arith.constant 3 : index
    %c3_259 = arith.constant 3 : index
    %336 = memref.load %arg2[%c3_258, %c3_259] : memref<16x16xf32, #tpu.memory_space<smem>>
    %c3_260 = arith.constant 3 : index
    %c0_261 = arith.constant 0 : index
    %c0_262 = arith.constant 0 : index
    %337 = vector.load %arg1[%c3_260, %c0_261, %c0_262] : memref<16x2x196xf32, #tpu.memory_space<vmem>>, vector<1x2x196xf32>
    %338 = vector.shape_cast %337 : vector<1x2x196xf32> to vector<2x196xf32>
    %339 = vector.broadcast %336 : f32 to vector<2x196xf32>
    %340 = arith.mulf %339, %338 : vector<2x196xf32>
    %341 = arith.addf %335, %340 : vector<2x196xf32>
    %c3_263 = arith.constant 3 : index
    %c4_264 = arith.constant 4 : index
    %342 = memref.load %arg2[%c3_263, %c4_264] : memref<16x16xf32, #tpu.memory_space<smem>>
    %c4_265 = arith.constant 4 : index
    %c0_266 = arith.constant 0 : index
    %c0_267 = arith.constant 0 : index
    %343 = vector.load %arg1[%c4_265, %c0_266, %c0_267] : memref<16x2x196xf32, #tpu.memory_space<vmem>>, vector<1x2x196xf32>
    %344 = vector.shape_cast %343 : vector<1x2x196xf32> to vector<2x196xf32>
    %345 = vector.broadcast %342 : f32 to vector<2x196xf32>
    %346 = arith.mulf %345, %344 : vector<2x196xf32>
    %347 = arith.addf %341, %346 : vector<2x196xf32>
    %c3_268 = arith.constant 3 : index
    %c5_269 = arith.constant 5 : index
    %348 = memref.load %arg2[%c3_268, %c5_269] : memref<16x16xf32, #tpu.memory_space<smem>>
    %c5_270 = arith.constant 5 : index
    %c0_271 = arith.constant 0 : index
    %c0_272 = arith.constant 0 : index
    %349 = vector.load %arg1[%c5_270, %c0_271, %c0_272] : memref<16x2x196xf32, #tpu.memory_space<vmem>>, vector<1x2x196xf32>
    %350 = vector.shape_cast %349 : vector<1x2x196xf32> to vector<2x196xf32>
    %351 = vector.broadcast %348 : f32 to vector<2x196xf32>
    %352 = arith.mulf %351, %350 : vector<2x196xf32>
    %353 = arith.addf %347, %352 : vector<2x196xf32>
    %c3_273 = arith.constant 3 : index
    %c6_274 = arith.constant 6 : index
    %354 = memref.load %arg2[%c3_273, %c6_274] : memref<16x16xf32, #tpu.memory_space<smem>>
    %c6_275 = arith.constant 6 : index
    %c0_276 = arith.constant 0 : index
    %c0_277 = arith.constant 0 : index
    %355 = vector.load %arg1[%c6_275, %c0_276, %c0_277] : memref<16x2x196xf32, #tpu.memory_space<vmem>>, vector<1x2x196xf32>
    %356 = vector.shape_cast %355 : vector<1x2x196xf32> to vector<2x196xf32>
    %357 = vector.broadcast %354 : f32 to vector<2x196xf32>
    %358 = arith.mulf %357, %356 : vector<2x196xf32>
    %359 = arith.addf %353, %358 : vector<2x196xf32>
    %c3_278 = arith.constant 3 : index
    %c7_279 = arith.constant 7 : index
    %360 = memref.load %arg2[%c3_278, %c7_279] : memref<16x16xf32, #tpu.memory_space<smem>>
    %c7_280 = arith.constant 7 : index
    %c0_281 = arith.constant 0 : index
    %c0_282 = arith.constant 0 : index
    %361 = vector.load %arg1[%c7_280, %c0_281, %c0_282] : memref<16x2x196xf32, #tpu.memory_space<vmem>>, vector<1x2x196xf32>
    %362 = vector.shape_cast %361 : vector<1x2x196xf32> to vector<2x196xf32>
    %363 = vector.broadcast %360 : f32 to vector<2x196xf32>
    %364 = arith.mulf %363, %362 : vector<2x196xf32>
    %365 = arith.addf %359, %364 : vector<2x196xf32>
    %c3_283 = arith.constant 3 : index
    %c8_284 = arith.constant 8 : index
    %366 = memref.load %arg2[%c3_283, %c8_284] : memref<16x16xf32, #tpu.memory_space<smem>>
    %c8_285 = arith.constant 8 : index
    %c0_286 = arith.constant 0 : index
    %c0_287 = arith.constant 0 : index
    %367 = vector.load %arg1[%c8_285, %c0_286, %c0_287] : memref<16x2x196xf32, #tpu.memory_space<vmem>>, vector<1x2x196xf32>
    %368 = vector.shape_cast %367 : vector<1x2x196xf32> to vector<2x196xf32>
    %369 = vector.broadcast %366 : f32 to vector<2x196xf32>
    %370 = arith.mulf %369, %368 : vector<2x196xf32>
    %371 = arith.addf %365, %370 : vector<2x196xf32>
    %c3_288 = arith.constant 3 : index
    %c9_289 = arith.constant 9 : index
    %372 = memref.load %arg2[%c3_288, %c9_289] : memref<16x16xf32, #tpu.memory_space<smem>>
    %c9_290 = arith.constant 9 : index
    %c0_291 = arith.constant 0 : index
    %c0_292 = arith.constant 0 : index
    %373 = vector.load %arg1[%c9_290, %c0_291, %c0_292] : memref<16x2x196xf32, #tpu.memory_space<vmem>>, vector<1x2x196xf32>
    %374 = vector.shape_cast %373 : vector<1x2x196xf32> to vector<2x196xf32>
    %375 = vector.broadcast %372 : f32 to vector<2x196xf32>
    %376 = arith.mulf %375, %374 : vector<2x196xf32>
    %377 = arith.addf %371, %376 : vector<2x196xf32>
    %c3_293 = arith.constant 3 : index
    %c10_294 = arith.constant 10 : index
    %378 = memref.load %arg2[%c3_293, %c10_294] : memref<16x16xf32, #tpu.memory_space<smem>>
    %c10_295 = arith.constant 10 : index
    %c0_296 = arith.constant 0 : index
    %c0_297 = arith.constant 0 : index
    %379 = vector.load %arg1[%c10_295, %c0_296, %c0_297] : memref<16x2x196xf32, #tpu.memory_space<vmem>>, vector<1x2x196xf32>
    %380 = vector.shape_cast %379 : vector<1x2x196xf32> to vector<2x196xf32>
    %381 = vector.broadcast %378 : f32 to vector<2x196xf32>
    %382 = arith.mulf %381, %380 : vector<2x196xf32>
    %383 = arith.addf %377, %382 : vector<2x196xf32>
    %c3_298 = arith.constant 3 : index
    %c11_299 = arith.constant 11 : index
    %384 = memref.load %arg2[%c3_298, %c11_299] : memref<16x16xf32, #tpu.memory_space<smem>>
    %c11_300 = arith.constant 11 : index
    %c0_301 = arith.constant 0 : index
    %c0_302 = arith.constant 0 : index
    %385 = vector.load %arg1[%c11_300, %c0_301, %c0_302] : memref<16x2x196xf32, #tpu.memory_space<vmem>>, vector<1x2x196xf32>
    %386 = vector.shape_cast %385 : vector<1x2x196xf32> to vector<2x196xf32>
    %387 = vector.broadcast %384 : f32 to vector<2x196xf32>
    %388 = arith.mulf %387, %386 : vector<2x196xf32>
    %389 = arith.addf %383, %388 : vector<2x196xf32>
    %c3_303 = arith.constant 3 : index
    %c12_304 = arith.constant 12 : index
    %390 = memref.load %arg2[%c3_303, %c12_304] : memref<16x16xf32, #tpu.memory_space<smem>>
    %c12_305 = arith.constant 12 : index
    %c0_306 = arith.constant 0 : index
    %c0_307 = arith.constant 0 : index
    %391 = vector.load %arg1[%c12_305, %c0_306, %c0_307] : memref<16x2x196xf32, #tpu.memory_space<vmem>>, vector<1x2x196xf32>
    %392 = vector.shape_cast %391 : vector<1x2x196xf32> to vector<2x196xf32>
    %393 = vector.broadcast %390 : f32 to vector<2x196xf32>
    %394 = arith.mulf %393, %392 : vector<2x196xf32>
    %395 = arith.addf %389, %394 : vector<2x196xf32>
    %c3_308 = arith.constant 3 : index
    %c13_309 = arith.constant 13 : index
    %396 = memref.load %arg2[%c3_308, %c13_309] : memref<16x16xf32, #tpu.memory_space<smem>>
    %c13_310 = arith.constant 13 : index
    %c0_311 = arith.constant 0 : index
    %c0_312 = arith.constant 0 : index
    %397 = vector.load %arg1[%c13_310, %c0_311, %c0_312] : memref<16x2x196xf32, #tpu.memory_space<vmem>>, vector<1x2x196xf32>
    %398 = vector.shape_cast %397 : vector<1x2x196xf32> to vector<2x196xf32>
    %399 = vector.broadcast %396 : f32 to vector<2x196xf32>
    %400 = arith.mulf %399, %398 : vector<2x196xf32>
    %401 = arith.addf %395, %400 : vector<2x196xf32>
    %c3_313 = arith.constant 3 : index
    %c14_314 = arith.constant 14 : index
    %402 = memref.load %arg2[%c3_313, %c14_314] : memref<16x16xf32, #tpu.memory_space<smem>>
    %c14_315 = arith.constant 14 : index
    %c0_316 = arith.constant 0 : index
    %c0_317 = arith.constant 0 : index
    %403 = vector.load %arg1[%c14_315, %c0_316, %c0_317] : memref<16x2x196xf32, #tpu.memory_space<vmem>>, vector<1x2x196xf32>
    %404 = vector.shape_cast %403 : vector<1x2x196xf32> to vector<2x196xf32>
    %405 = vector.broadcast %402 : f32 to vector<2x196xf32>
    %406 = arith.mulf %405, %404 : vector<2x196xf32>
    %407 = arith.addf %401, %406 : vector<2x196xf32>
    %c3_318 = arith.constant 3 : index
    %c15_319 = arith.constant 15 : index
    %408 = memref.load %arg2[%c3_318, %c15_319] : memref<16x16xf32, #tpu.memory_space<smem>>
    %c15_320 = arith.constant 15 : index
    %c0_321 = arith.constant 0 : index
    %c0_322 = arith.constant 0 : index
    %409 = vector.load %arg1[%c15_320, %c0_321, %c0_322] : memref<16x2x196xf32, #tpu.memory_space<vmem>>, vector<1x2x196xf32>
    %410 = vector.shape_cast %409 : vector<1x2x196xf32> to vector<2x196xf32>
    %411 = vector.broadcast %408 : f32 to vector<2x196xf32>
    %412 = arith.mulf %411, %410 : vector<2x196xf32>
    %413 = arith.addf %407, %412 : vector<2x196xf32>
    %cst_323 = arith.constant 0.000000e+00 : f32
    %414 = vector.broadcast %cst_323 : f32 to vector<2x196xf32>
    %415 = arith.maximumf %413, %414 : vector<2x196xf32>
    %416 = arith.truncf %415 : vector<2x196xf32> to vector<2x196xbf16>
    %c3_324 = arith.constant 3 : index
    %c0_325 = arith.constant 0 : index
    %c0_326 = arith.constant 0 : index
    %417 = vector.load %arg4[%c3_324, %c0_325, %c0_326] : memref<16x196x128xbf16, #tpu.memory_space<vmem>>, vector<1x196x128xbf16>
    %418 = vector.shape_cast %417 : vector<1x196x128xbf16> to vector<196x128xbf16>
    %cst_327 = arith.constant dense<0.000000e+00> : vector<2x128xf32>
    %419 = tpu.matmul %416, %418, %cst_327 {dimension_numbers = #tpu.dot_dimension_numbers<[1], [0], [0], [1], [0, 0, 1, 1], [], []>} : vector<2x196xbf16>, vector<196x128xbf16>, vector<2x128xf32> -> vector<2x128xf32>
    %420 = arith.addf %315, %419 : vector<2x128xf32>
    %c4_328 = arith.constant 4 : index
    %421 = memref.load %arg3[%c4_328] : memref<16xf32, #tpu.memory_space<smem>>
    %422 = vector.broadcast %421 : f32 to vector<2x196xf32>
    %c4_329 = arith.constant 4 : index
    %c0_330 = arith.constant 0 : index
    %423 = memref.load %arg2[%c4_329, %c0_330] : memref<16x16xf32, #tpu.memory_space<smem>>
    %c0_331 = arith.constant 0 : index
    %c0_332 = arith.constant 0 : index
    %c0_333 = arith.constant 0 : index
    %424 = vector.load %arg1[%c0_331, %c0_332, %c0_333] : memref<16x2x196xf32, #tpu.memory_space<vmem>>, vector<1x2x196xf32>
    %425 = vector.shape_cast %424 : vector<1x2x196xf32> to vector<2x196xf32>
    %426 = vector.broadcast %423 : f32 to vector<2x196xf32>
    %427 = arith.mulf %426, %425 : vector<2x196xf32>
    %428 = arith.addf %422, %427 : vector<2x196xf32>
    %c4_334 = arith.constant 4 : index
    %c1_335 = arith.constant 1 : index
    %429 = memref.load %arg2[%c4_334, %c1_335] : memref<16x16xf32, #tpu.memory_space<smem>>
    %c1_336 = arith.constant 1 : index
    %c0_337 = arith.constant 0 : index
    %c0_338 = arith.constant 0 : index
    %430 = vector.load %arg1[%c1_336, %c0_337, %c0_338] : memref<16x2x196xf32, #tpu.memory_space<vmem>>, vector<1x2x196xf32>
    %431 = vector.shape_cast %430 : vector<1x2x196xf32> to vector<2x196xf32>
    %432 = vector.broadcast %429 : f32 to vector<2x196xf32>
    %433 = arith.mulf %432, %431 : vector<2x196xf32>
    %434 = arith.addf %428, %433 : vector<2x196xf32>
    %c4_339 = arith.constant 4 : index
    %c2_340 = arith.constant 2 : index
    %435 = memref.load %arg2[%c4_339, %c2_340] : memref<16x16xf32, #tpu.memory_space<smem>>
    %c2_341 = arith.constant 2 : index
    %c0_342 = arith.constant 0 : index
    %c0_343 = arith.constant 0 : index
    %436 = vector.load %arg1[%c2_341, %c0_342, %c0_343] : memref<16x2x196xf32, #tpu.memory_space<vmem>>, vector<1x2x196xf32>
    %437 = vector.shape_cast %436 : vector<1x2x196xf32> to vector<2x196xf32>
    %438 = vector.broadcast %435 : f32 to vector<2x196xf32>
    %439 = arith.mulf %438, %437 : vector<2x196xf32>
    %440 = arith.addf %434, %439 : vector<2x196xf32>
    %c4_344 = arith.constant 4 : index
    %c3_345 = arith.constant 3 : index
    %441 = memref.load %arg2[%c4_344, %c3_345] : memref<16x16xf32, #tpu.memory_space<smem>>
    %c3_346 = arith.constant 3 : index
    %c0_347 = arith.constant 0 : index
    %c0_348 = arith.constant 0 : index
    %442 = vector.load %arg1[%c3_346, %c0_347, %c0_348] : memref<16x2x196xf32, #tpu.memory_space<vmem>>, vector<1x2x196xf32>
    %443 = vector.shape_cast %442 : vector<1x2x196xf32> to vector<2x196xf32>
    %444 = vector.broadcast %441 : f32 to vector<2x196xf32>
    %445 = arith.mulf %444, %443 : vector<2x196xf32>
    %446 = arith.addf %440, %445 : vector<2x196xf32>
    %c4_349 = arith.constant 4 : index
    %c4_350 = arith.constant 4 : index
    %447 = memref.load %arg2[%c4_349, %c4_350] : memref<16x16xf32, #tpu.memory_space<smem>>
    %c4_351 = arith.constant 4 : index
    %c0_352 = arith.constant 0 : index
    %c0_353 = arith.constant 0 : index
    %448 = vector.load %arg1[%c4_351, %c0_352, %c0_353] : memref<16x2x196xf32, #tpu.memory_space<vmem>>, vector<1x2x196xf32>
    %449 = vector.shape_cast %448 : vector<1x2x196xf32> to vector<2x196xf32>
    %450 = vector.broadcast %447 : f32 to vector<2x196xf32>
    %451 = arith.mulf %450, %449 : vector<2x196xf32>
    %452 = arith.addf %446, %451 : vector<2x196xf32>
    %c4_354 = arith.constant 4 : index
    %c5_355 = arith.constant 5 : index
    %453 = memref.load %arg2[%c4_354, %c5_355] : memref<16x16xf32, #tpu.memory_space<smem>>
    %c5_356 = arith.constant 5 : index
    %c0_357 = arith.constant 0 : index
    %c0_358 = arith.constant 0 : index
    %454 = vector.load %arg1[%c5_356, %c0_357, %c0_358] : memref<16x2x196xf32, #tpu.memory_space<vmem>>, vector<1x2x196xf32>
    %455 = vector.shape_cast %454 : vector<1x2x196xf32> to vector<2x196xf32>
    %456 = vector.broadcast %453 : f32 to vector<2x196xf32>
    %457 = arith.mulf %456, %455 : vector<2x196xf32>
    %458 = arith.addf %452, %457 : vector<2x196xf32>
    %c4_359 = arith.constant 4 : index
    %c6_360 = arith.constant 6 : index
    %459 = memref.load %arg2[%c4_359, %c6_360] : memref<16x16xf32, #tpu.memory_space<smem>>
    %c6_361 = arith.constant 6 : index
    %c0_362 = arith.constant 0 : index
    %c0_363 = arith.constant 0 : index
    %460 = vector.load %arg1[%c6_361, %c0_362, %c0_363] : memref<16x2x196xf32, #tpu.memory_space<vmem>>, vector<1x2x196xf32>
    %461 = vector.shape_cast %460 : vector<1x2x196xf32> to vector<2x196xf32>
    %462 = vector.broadcast %459 : f32 to vector<2x196xf32>
    %463 = arith.mulf %462, %461 : vector<2x196xf32>
    %464 = arith.addf %458, %463 : vector<2x196xf32>
    %c4_364 = arith.constant 4 : index
    %c7_365 = arith.constant 7 : index
    %465 = memref.load %arg2[%c4_364, %c7_365] : memref<16x16xf32, #tpu.memory_space<smem>>
    %c7_366 = arith.constant 7 : index
    %c0_367 = arith.constant 0 : index
    %c0_368 = arith.constant 0 : index
    %466 = vector.load %arg1[%c7_366, %c0_367, %c0_368] : memref<16x2x196xf32, #tpu.memory_space<vmem>>, vector<1x2x196xf32>
    %467 = vector.shape_cast %466 : vector<1x2x196xf32> to vector<2x196xf32>
    %468 = vector.broadcast %465 : f32 to vector<2x196xf32>
    %469 = arith.mulf %468, %467 : vector<2x196xf32>
    %470 = arith.addf %464, %469 : vector<2x196xf32>
    %c4_369 = arith.constant 4 : index
    %c8_370 = arith.constant 8 : index
    %471 = memref.load %arg2[%c4_369, %c8_370] : memref<16x16xf32, #tpu.memory_space<smem>>
    %c8_371 = arith.constant 8 : index
    %c0_372 = arith.constant 0 : index
    %c0_373 = arith.constant 0 : index
    %472 = vector.load %arg1[%c8_371, %c0_372, %c0_373] : memref<16x2x196xf32, #tpu.memory_space<vmem>>, vector<1x2x196xf32>
    %473 = vector.shape_cast %472 : vector<1x2x196xf32> to vector<2x196xf32>
    %474 = vector.broadcast %471 : f32 to vector<2x196xf32>
    %475 = arith.mulf %474, %473 : vector<2x196xf32>
    %476 = arith.addf %470, %475 : vector<2x196xf32>
    %c4_374 = arith.constant 4 : index
    %c9_375 = arith.constant 9 : index
    %477 = memref.load %arg2[%c4_374, %c9_375] : memref<16x16xf32, #tpu.memory_space<smem>>
    %c9_376 = arith.constant 9 : index
    %c0_377 = arith.constant 0 : index
    %c0_378 = arith.constant 0 : index
    %478 = vector.load %arg1[%c9_376, %c0_377, %c0_378] : memref<16x2x196xf32, #tpu.memory_space<vmem>>, vector<1x2x196xf32>
    %479 = vector.shape_cast %478 : vector<1x2x196xf32> to vector<2x196xf32>
    %480 = vector.broadcast %477 : f32 to vector<2x196xf32>
    %481 = arith.mulf %480, %479 : vector<2x196xf32>
    %482 = arith.addf %476, %481 : vector<2x196xf32>
    %c4_379 = arith.constant 4 : index
    %c10_380 = arith.constant 10 : index
    %483 = memref.load %arg2[%c4_379, %c10_380] : memref<16x16xf32, #tpu.memory_space<smem>>
    %c10_381 = arith.constant 10 : index
    %c0_382 = arith.constant 0 : index
    %c0_383 = arith.constant 0 : index
    %484 = vector.load %arg1[%c10_381, %c0_382, %c0_383] : memref<16x2x196xf32, #tpu.memory_space<vmem>>, vector<1x2x196xf32>
    %485 = vector.shape_cast %484 : vector<1x2x196xf32> to vector<2x196xf32>
    %486 = vector.broadcast %483 : f32 to vector<2x196xf32>
    %487 = arith.mulf %486, %485 : vector<2x196xf32>
    %488 = arith.addf %482, %487 : vector<2x196xf32>
    %c4_384 = arith.constant 4 : index
    %c11_385 = arith.constant 11 : index
    %489 = memref.load %arg2[%c4_384, %c11_385] : memref<16x16xf32, #tpu.memory_space<smem>>
    %c11_386 = arith.constant 11 : index
    %c0_387 = arith.constant 0 : index
    %c0_388 = arith.constant 0 : index
    %490 = vector.load %arg1[%c11_386, %c0_387, %c0_388] : memref<16x2x196xf32, #tpu.memory_space<vmem>>, vector<1x2x196xf32>
    %491 = vector.shape_cast %490 : vector<1x2x196xf32> to vector<2x196xf32>
    %492 = vector.broadcast %489 : f32 to vector<2x196xf32>
    %493 = arith.mulf %492, %491 : vector<2x196xf32>
    %494 = arith.addf %488, %493 : vector<2x196xf32>
    %c4_389 = arith.constant 4 : index
    %c12_390 = arith.constant 12 : index
    %495 = memref.load %arg2[%c4_389, %c12_390] : memref<16x16xf32, #tpu.memory_space<smem>>
    %c12_391 = arith.constant 12 : index
    %c0_392 = arith.constant 0 : index
    %c0_393 = arith.constant 0 : index
    %496 = vector.load %arg1[%c12_391, %c0_392, %c0_393] : memref<16x2x196xf32, #tpu.memory_space<vmem>>, vector<1x2x196xf32>
    %497 = vector.shape_cast %496 : vector<1x2x196xf32> to vector<2x196xf32>
    %498 = vector.broadcast %495 : f32 to vector<2x196xf32>
    %499 = arith.mulf %498, %497 : vector<2x196xf32>
    %500 = arith.addf %494, %499 : vector<2x196xf32>
    %c4_394 = arith.constant 4 : index
    %c13_395 = arith.constant 13 : index
    %501 = memref.load %arg2[%c4_394, %c13_395] : memref<16x16xf32, #tpu.memory_space<smem>>
    %c13_396 = arith.constant 13 : index
    %c0_397 = arith.constant 0 : index
    %c0_398 = arith.constant 0 : index
    %502 = vector.load %arg1[%c13_396, %c0_397, %c0_398] : memref<16x2x196xf32, #tpu.memory_space<vmem>>, vector<1x2x196xf32>
    %503 = vector.shape_cast %502 : vector<1x2x196xf32> to vector<2x196xf32>
    %504 = vector.broadcast %501 : f32 to vector<2x196xf32>
    %505 = arith.mulf %504, %503 : vector<2x196xf32>
    %506 = arith.addf %500, %505 : vector<2x196xf32>
    %c4_399 = arith.constant 4 : index
    %c14_400 = arith.constant 14 : index
    %507 = memref.load %arg2[%c4_399, %c14_400] : memref<16x16xf32, #tpu.memory_space<smem>>
    %c14_401 = arith.constant 14 : index
    %c0_402 = arith.constant 0 : index
    %c0_403 = arith.constant 0 : index
    %508 = vector.load %arg1[%c14_401, %c0_402, %c0_403] : memref<16x2x196xf32, #tpu.memory_space<vmem>>, vector<1x2x196xf32>
    %509 = vector.shape_cast %508 : vector<1x2x196xf32> to vector<2x196xf32>
    %510 = vector.broadcast %507 : f32 to vector<2x196xf32>
    %511 = arith.mulf %510, %509 : vector<2x196xf32>
    %512 = arith.addf %506, %511 : vector<2x196xf32>
    %c4_404 = arith.constant 4 : index
    %c15_405 = arith.constant 15 : index
    %513 = memref.load %arg2[%c4_404, %c15_405] : memref<16x16xf32, #tpu.memory_space<smem>>
    %c15_406 = arith.constant 15 : index
    %c0_407 = arith.constant 0 : index
    %c0_408 = arith.constant 0 : index
    %514 = vector.load %arg1[%c15_406, %c0_407, %c0_408] : memref<16x2x196xf32, #tpu.memory_space<vmem>>, vector<1x2x196xf32>
    %515 = vector.shape_cast %514 : vector<1x2x196xf32> to vector<2x196xf32>
    %516 = vector.broadcast %513 : f32 to vector<2x196xf32>
    %517 = arith.mulf %516, %515 : vector<2x196xf32>
    %518 = arith.addf %512, %517 : vector<2x196xf32>
    %cst_409 = arith.constant 0.000000e+00 : f32
    %519 = vector.broadcast %cst_409 : f32 to vector<2x196xf32>
    %520 = arith.maximumf %518, %519 : vector<2x196xf32>
    %521 = arith.truncf %520 : vector<2x196xf32> to vector<2x196xbf16>
    %c4_410 = arith.constant 4 : index
    %c0_411 = arith.constant 0 : index
    %c0_412 = arith.constant 0 : index
    %522 = vector.load %arg4[%c4_410, %c0_411, %c0_412] : memref<16x196x128xbf16, #tpu.memory_space<vmem>>, vector<1x196x128xbf16>
    %523 = vector.shape_cast %522 : vector<1x196x128xbf16> to vector<196x128xbf16>
    %cst_413 = arith.constant dense<0.000000e+00> : vector<2x128xf32>
    %524 = tpu.matmul %521, %523, %cst_413 {dimension_numbers = #tpu.dot_dimension_numbers<[1], [0], [0], [1], [0, 0, 1, 1], [], []>} : vector<2x196xbf16>, vector<196x128xbf16>, vector<2x128xf32> -> vector<2x128xf32>
    %525 = arith.addf %420, %524 : vector<2x128xf32>
    %c5_414 = arith.constant 5 : index
    %526 = memref.load %arg3[%c5_414] : memref<16xf32, #tpu.memory_space<smem>>
    %527 = vector.broadcast %526 : f32 to vector<2x196xf32>
    %c5_415 = arith.constant 5 : index
    %c0_416 = arith.constant 0 : index
    %528 = memref.load %arg2[%c5_415, %c0_416] : memref<16x16xf32, #tpu.memory_space<smem>>
    %c0_417 = arith.constant 0 : index
    %c0_418 = arith.constant 0 : index
    %c0_419 = arith.constant 0 : index
    %529 = vector.load %arg1[%c0_417, %c0_418, %c0_419] : memref<16x2x196xf32, #tpu.memory_space<vmem>>, vector<1x2x196xf32>
    %530 = vector.shape_cast %529 : vector<1x2x196xf32> to vector<2x196xf32>
    %531 = vector.broadcast %528 : f32 to vector<2x196xf32>
    %532 = arith.mulf %531, %530 : vector<2x196xf32>
    %533 = arith.addf %527, %532 : vector<2x196xf32>
    %c5_420 = arith.constant 5 : index
    %c1_421 = arith.constant 1 : index
    %534 = memref.load %arg2[%c5_420, %c1_421] : memref<16x16xf32, #tpu.memory_space<smem>>
    %c1_422 = arith.constant 1 : index
    %c0_423 = arith.constant 0 : index
    %c0_424 = arith.constant 0 : index
    %535 = vector.load %arg1[%c1_422, %c0_423, %c0_424] : memref<16x2x196xf32, #tpu.memory_space<vmem>>, vector<1x2x196xf32>
    %536 = vector.shape_cast %535 : vector<1x2x196xf32> to vector<2x196xf32>
    %537 = vector.broadcast %534 : f32 to vector<2x196xf32>
    %538 = arith.mulf %537, %536 : vector<2x196xf32>
    %539 = arith.addf %533, %538 : vector<2x196xf32>
    %c5_425 = arith.constant 5 : index
    %c2_426 = arith.constant 2 : index
    %540 = memref.load %arg2[%c5_425, %c2_426] : memref<16x16xf32, #tpu.memory_space<smem>>
    %c2_427 = arith.constant 2 : index
    %c0_428 = arith.constant 0 : index
    %c0_429 = arith.constant 0 : index
    %541 = vector.load %arg1[%c2_427, %c0_428, %c0_429] : memref<16x2x196xf32, #tpu.memory_space<vmem>>, vector<1x2x196xf32>
    %542 = vector.shape_cast %541 : vector<1x2x196xf32> to vector<2x196xf32>
    %543 = vector.broadcast %540 : f32 to vector<2x196xf32>
    %544 = arith.mulf %543, %542 : vector<2x196xf32>
    %545 = arith.addf %539, %544 : vector<2x196xf32>
    %c5_430 = arith.constant 5 : index
    %c3_431 = arith.constant 3 : index
    %546 = memref.load %arg2[%c5_430, %c3_431] : memref<16x16xf32, #tpu.memory_space<smem>>
    %c3_432 = arith.constant 3 : index
    %c0_433 = arith.constant 0 : index
    %c0_434 = arith.constant 0 : index
    %547 = vector.load %arg1[%c3_432, %c0_433, %c0_434] : memref<16x2x196xf32, #tpu.memory_space<vmem>>, vector<1x2x196xf32>
    %548 = vector.shape_cast %547 : vector<1x2x196xf32> to vector<2x196xf32>
    %549 = vector.broadcast %546 : f32 to vector<2x196xf32>
    %550 = arith.mulf %549, %548 : vector<2x196xf32>
    %551 = arith.addf %545, %550 : vector<2x196xf32>
    %c5_435 = arith.constant 5 : index
    %c4_436 = arith.constant 4 : index
    %552 = memref.load %arg2[%c5_435, %c4_436] : memref<16x16xf32, #tpu.memory_space<smem>>
    %c4_437 = arith.constant 4 : index
    %c0_438 = arith.constant 0 : index
    %c0_439 = arith.constant 0 : index
    %553 = vector.load %arg1[%c4_437, %c0_438, %c0_439] : memref<16x2x196xf32, #tpu.memory_space<vmem>>, vector<1x2x196xf32>
    %554 = vector.shape_cast %553 : vector<1x2x196xf32> to vector<2x196xf32>
    %555 = vector.broadcast %552 : f32 to vector<2x196xf32>
    %556 = arith.mulf %555, %554 : vector<2x196xf32>
    %557 = arith.addf %551, %556 : vector<2x196xf32>
    %c5_440 = arith.constant 5 : index
    %c5_441 = arith.constant 5 : index
    %558 = memref.load %arg2[%c5_440, %c5_441] : memref<16x16xf32, #tpu.memory_space<smem>>
    %c5_442 = arith.constant 5 : index
    %c0_443 = arith.constant 0 : index
    %c0_444 = arith.constant 0 : index
    %559 = vector.load %arg1[%c5_442, %c0_443, %c0_444] : memref<16x2x196xf32, #tpu.memory_space<vmem>>, vector<1x2x196xf32>
    %560 = vector.shape_cast %559 : vector<1x2x196xf32> to vector<2x196xf32>
    %561 = vector.broadcast %558 : f32 to vector<2x196xf32>
    %562 = arith.mulf %561, %560 : vector<2x196xf32>
    %563 = arith.addf %557, %562 : vector<2x196xf32>
    %c5_445 = arith.constant 5 : index
    %c6_446 = arith.constant 6 : index
    %564 = memref.load %arg2[%c5_445, %c6_446] : memref<16x16xf32, #tpu.memory_space<smem>>
    %c6_447 = arith.constant 6 : index
    %c0_448 = arith.constant 0 : index
    %c0_449 = arith.constant 0 : index
    %565 = vector.load %arg1[%c6_447, %c0_448, %c0_449] : memref<16x2x196xf32, #tpu.memory_space<vmem>>, vector<1x2x196xf32>
    %566 = vector.shape_cast %565 : vector<1x2x196xf32> to vector<2x196xf32>
    %567 = vector.broadcast %564 : f32 to vector<2x196xf32>
    %568 = arith.mulf %567, %566 : vector<2x196xf32>
    %569 = arith.addf %563, %568 : vector<2x196xf32>
    %c5_450 = arith.constant 5 : index
    %c7_451 = arith.constant 7 : index
    %570 = memref.load %arg2[%c5_450, %c7_451] : memref<16x16xf32, #tpu.memory_space<smem>>
    %c7_452 = arith.constant 7 : index
    %c0_453 = arith.constant 0 : index
    %c0_454 = arith.constant 0 : index
    %571 = vector.load %arg1[%c7_452, %c0_453, %c0_454] : memref<16x2x196xf32, #tpu.memory_space<vmem>>, vector<1x2x196xf32>
    %572 = vector.shape_cast %571 : vector<1x2x196xf32> to vector<2x196xf32>
    %573 = vector.broadcast %570 : f32 to vector<2x196xf32>
    %574 = arith.mulf %573, %572 : vector<2x196xf32>
    %575 = arith.addf %569, %574 : vector<2x196xf32>
    %c5_455 = arith.constant 5 : index
    %c8_456 = arith.constant 8 : index
    %576 = memref.load %arg2[%c5_455, %c8_456] : memref<16x16xf32, #tpu.memory_space<smem>>
    %c8_457 = arith.constant 8 : index
    %c0_458 = arith.constant 0 : index
    %c0_459 = arith.constant 0 : index
    %577 = vector.load %arg1[%c8_457, %c0_458, %c0_459] : memref<16x2x196xf32, #tpu.memory_space<vmem>>, vector<1x2x196xf32>
    %578 = vector.shape_cast %577 : vector<1x2x196xf32> to vector<2x196xf32>
    %579 = vector.broadcast %576 : f32 to vector<2x196xf32>
    %580 = arith.mulf %579, %578 : vector<2x196xf32>
    %581 = arith.addf %575, %580 : vector<2x196xf32>
    %c5_460 = arith.constant 5 : index
    %c9_461 = arith.constant 9 : index
    %582 = memref.load %arg2[%c5_460, %c9_461] : memref<16x16xf32, #tpu.memory_space<smem>>
    %c9_462 = arith.constant 9 : index
    %c0_463 = arith.constant 0 : index
    %c0_464 = arith.constant 0 : index
    %583 = vector.load %arg1[%c9_462, %c0_463, %c0_464] : memref<16x2x196xf32, #tpu.memory_space<vmem>>, vector<1x2x196xf32>
    %584 = vector.shape_cast %583 : vector<1x2x196xf32> to vector<2x196xf32>
    %585 = vector.broadcast %582 : f32 to vector<2x196xf32>
    %586 = arith.mulf %585, %584 : vector<2x196xf32>
    %587 = arith.addf %581, %586 : vector<2x196xf32>
    %c5_465 = arith.constant 5 : index
    %c10_466 = arith.constant 10 : index
    %588 = memref.load %arg2[%c5_465, %c10_466] : memref<16x16xf32, #tpu.memory_space<smem>>
    %c10_467 = arith.constant 10 : index
    %c0_468 = arith.constant 0 : index
    %c0_469 = arith.constant 0 : index
    %589 = vector.load %arg1[%c10_467, %c0_468, %c0_469] : memref<16x2x196xf32, #tpu.memory_space<vmem>>, vector<1x2x196xf32>
    %590 = vector.shape_cast %589 : vector<1x2x196xf32> to vector<2x196xf32>
    %591 = vector.broadcast %588 : f32 to vector<2x196xf32>
    %592 = arith.mulf %591, %590 : vector<2x196xf32>
    %593 = arith.addf %587, %592 : vector<2x196xf32>
    %c5_470 = arith.constant 5 : index
    %c11_471 = arith.constant 11 : index
    %594 = memref.load %arg2[%c5_470, %c11_471] : memref<16x16xf32, #tpu.memory_space<smem>>
    %c11_472 = arith.constant 11 : index
    %c0_473 = arith.constant 0 : index
    %c0_474 = arith.constant 0 : index
    %595 = vector.load %arg1[%c11_472, %c0_473, %c0_474] : memref<16x2x196xf32, #tpu.memory_space<vmem>>, vector<1x2x196xf32>
    %596 = vector.shape_cast %595 : vector<1x2x196xf32> to vector<2x196xf32>
    %597 = vector.broadcast %594 : f32 to vector<2x196xf32>
    %598 = arith.mulf %597, %596 : vector<2x196xf32>
    %599 = arith.addf %593, %598 : vector<2x196xf32>
    %c5_475 = arith.constant 5 : index
    %c12_476 = arith.constant 12 : index
    %600 = memref.load %arg2[%c5_475, %c12_476] : memref<16x16xf32, #tpu.memory_space<smem>>
    %c12_477 = arith.constant 12 : index
    %c0_478 = arith.constant 0 : index
    %c0_479 = arith.constant 0 : index
    %601 = vector.load %arg1[%c12_477, %c0_478, %c0_479] : memref<16x2x196xf32, #tpu.memory_space<vmem>>, vector<1x2x196xf32>
    %602 = vector.shape_cast %601 : vector<1x2x196xf32> to vector<2x196xf32>
    %603 = vector.broadcast %600 : f32 to vector<2x196xf32>
    %604 = arith.mulf %603, %602 : vector<2x196xf32>
    %605 = arith.addf %599, %604 : vector<2x196xf32>
    %c5_480 = arith.constant 5 : index
    %c13_481 = arith.constant 13 : index
    %606 = memref.load %arg2[%c5_480, %c13_481] : memref<16x16xf32, #tpu.memory_space<smem>>
    %c13_482 = arith.constant 13 : index
    %c0_483 = arith.constant 0 : index
    %c0_484 = arith.constant 0 : index
    %607 = vector.load %arg1[%c13_482, %c0_483, %c0_484] : memref<16x2x196xf32, #tpu.memory_space<vmem>>, vector<1x2x196xf32>
    %608 = vector.shape_cast %607 : vector<1x2x196xf32> to vector<2x196xf32>
    %609 = vector.broadcast %606 : f32 to vector<2x196xf32>
    %610 = arith.mulf %609, %608 : vector<2x196xf32>
    %611 = arith.addf %605, %610 : vector<2x196xf32>
    %c5_485 = arith.constant 5 : index
    %c14_486 = arith.constant 14 : index
    %612 = memref.load %arg2[%c5_485, %c14_486] : memref<16x16xf32, #tpu.memory_space<smem>>
    %c14_487 = arith.constant 14 : index
    %c0_488 = arith.constant 0 : index
    %c0_489 = arith.constant 0 : index
    %613 = vector.load %arg1[%c14_487, %c0_488, %c0_489] : memref<16x2x196xf32, #tpu.memory_space<vmem>>, vector<1x2x196xf32>
    %614 = vector.shape_cast %613 : vector<1x2x196xf32> to vector<2x196xf32>
    %615 = vector.broadcast %612 : f32 to vector<2x196xf32>
    %616 = arith.mulf %615, %614 : vector<2x196xf32>
    %617 = arith.addf %611, %616 : vector<2x196xf32>
    %c5_490 = arith.constant 5 : index
    %c15_491 = arith.constant 15 : index
    %618 = memref.load %arg2[%c5_490, %c15_491] : memref<16x16xf32, #tpu.memory_space<smem>>
    %c15_492 = arith.constant 15 : index
    %c0_493 = arith.constant 0 : index
    %c0_494 = arith.constant 0 : index
    %619 = vector.load %arg1[%c15_492, %c0_493, %c0_494] : memref<16x2x196xf32, #tpu.memory_space<vmem>>, vector<1x2x196xf32>
    %620 = vector.shape_cast %619 : vector<1x2x196xf32> to vector<2x196xf32>
    %621 = vector.broadcast %618 : f32 to vector<2x196xf32>
    %622 = arith.mulf %621, %620 : vector<2x196xf32>
    %623 = arith.addf %617, %622 : vector<2x196xf32>
    %cst_495 = arith.constant 0.000000e+00 : f32
    %624 = vector.broadcast %cst_495 : f32 to vector<2x196xf32>
    %625 = arith.maximumf %623, %624 : vector<2x196xf32>
    %626 = arith.truncf %625 : vector<2x196xf32> to vector<2x196xbf16>
    %c5_496 = arith.constant 5 : index
    %c0_497 = arith.constant 0 : index
    %c0_498 = arith.constant 0 : index
    %627 = vector.load %arg4[%c5_496, %c0_497, %c0_498] : memref<16x196x128xbf16, #tpu.memory_space<vmem>>, vector<1x196x128xbf16>
    %628 = vector.shape_cast %627 : vector<1x196x128xbf16> to vector<196x128xbf16>
    %cst_499 = arith.constant dense<0.000000e+00> : vector<2x128xf32>
    %629 = tpu.matmul %626, %628, %cst_499 {dimension_numbers = #tpu.dot_dimension_numbers<[1], [0], [0], [1], [0, 0, 1, 1], [], []>} : vector<2x196xbf16>, vector<196x128xbf16>, vector<2x128xf32> -> vector<2x128xf32>
    %630 = arith.addf %525, %629 : vector<2x128xf32>
    %c6_500 = arith.constant 6 : index
    %631 = memref.load %arg3[%c6_500] : memref<16xf32, #tpu.memory_space<smem>>
    %632 = vector.broadcast %631 : f32 to vector<2x196xf32>
    %c6_501 = arith.constant 6 : index
    %c0_502 = arith.constant 0 : index
    %633 = memref.load %arg2[%c6_501, %c0_502] : memref<16x16xf32, #tpu.memory_space<smem>>
    %c0_503 = arith.constant 0 : index
    %c0_504 = arith.constant 0 : index
    %c0_505 = arith.constant 0 : index
    %634 = vector.load %arg1[%c0_503, %c0_504, %c0_505] : memref<16x2x196xf32, #tpu.memory_space<vmem>>, vector<1x2x196xf32>
    %635 = vector.shape_cast %634 : vector<1x2x196xf32> to vector<2x196xf32>
    %636 = vector.broadcast %633 : f32 to vector<2x196xf32>
    %637 = arith.mulf %636, %635 : vector<2x196xf32>
    %638 = arith.addf %632, %637 : vector<2x196xf32>
    %c6_506 = arith.constant 6 : index
    %c1_507 = arith.constant 1 : index
    %639 = memref.load %arg2[%c6_506, %c1_507] : memref<16x16xf32, #tpu.memory_space<smem>>
    %c1_508 = arith.constant 1 : index
    %c0_509 = arith.constant 0 : index
    %c0_510 = arith.constant 0 : index
    %640 = vector.load %arg1[%c1_508, %c0_509, %c0_510] : memref<16x2x196xf32, #tpu.memory_space<vmem>>, vector<1x2x196xf32>
    %641 = vector.shape_cast %640 : vector<1x2x196xf32> to vector<2x196xf32>
    %642 = vector.broadcast %639 : f32 to vector<2x196xf32>
    %643 = arith.mulf %642, %641 : vector<2x196xf32>
    %644 = arith.addf %638, %643 : vector<2x196xf32>
    %c6_511 = arith.constant 6 : index
    %c2_512 = arith.constant 2 : index
    %645 = memref.load %arg2[%c6_511, %c2_512] : memref<16x16xf32, #tpu.memory_space<smem>>
    %c2_513 = arith.constant 2 : index
    %c0_514 = arith.constant 0 : index
    %c0_515 = arith.constant 0 : index
    %646 = vector.load %arg1[%c2_513, %c0_514, %c0_515] : memref<16x2x196xf32, #tpu.memory_space<vmem>>, vector<1x2x196xf32>
    %647 = vector.shape_cast %646 : vector<1x2x196xf32> to vector<2x196xf32>
    %648 = vector.broadcast %645 : f32 to vector<2x196xf32>
    %649 = arith.mulf %648, %647 : vector<2x196xf32>
    %650 = arith.addf %644, %649 : vector<2x196xf32>
    %c6_516 = arith.constant 6 : index
    %c3_517 = arith.constant 3 : index
    %651 = memref.load %arg2[%c6_516, %c3_517] : memref<16x16xf32, #tpu.memory_space<smem>>
    %c3_518 = arith.constant 3 : index
    %c0_519 = arith.constant 0 : index
    %c0_520 = arith.constant 0 : index
    %652 = vector.load %arg1[%c3_518, %c0_519, %c0_520] : memref<16x2x196xf32, #tpu.memory_space<vmem>>, vector<1x2x196xf32>
    %653 = vector.shape_cast %652 : vector<1x2x196xf32> to vector<2x196xf32>
    %654 = vector.broadcast %651 : f32 to vector<2x196xf32>
    %655 = arith.mulf %654, %653 : vector<2x196xf32>
    %656 = arith.addf %650, %655 : vector<2x196xf32>
    %c6_521 = arith.constant 6 : index
    %c4_522 = arith.constant 4 : index
    %657 = memref.load %arg2[%c6_521, %c4_522] : memref<16x16xf32, #tpu.memory_space<smem>>
    %c4_523 = arith.constant 4 : index
    %c0_524 = arith.constant 0 : index
    %c0_525 = arith.constant 0 : index
    %658 = vector.load %arg1[%c4_523, %c0_524, %c0_525] : memref<16x2x196xf32, #tpu.memory_space<vmem>>, vector<1x2x196xf32>
    %659 = vector.shape_cast %658 : vector<1x2x196xf32> to vector<2x196xf32>
    %660 = vector.broadcast %657 : f32 to vector<2x196xf32>
    %661 = arith.mulf %660, %659 : vector<2x196xf32>
    %662 = arith.addf %656, %661 : vector<2x196xf32>
    %c6_526 = arith.constant 6 : index
    %c5_527 = arith.constant 5 : index
    %663 = memref.load %arg2[%c6_526, %c5_527] : memref<16x16xf32, #tpu.memory_space<smem>>
    %c5_528 = arith.constant 5 : index
    %c0_529 = arith.constant 0 : index
    %c0_530 = arith.constant 0 : index
    %664 = vector.load %arg1[%c5_528, %c0_529, %c0_530] : memref<16x2x196xf32, #tpu.memory_space<vmem>>, vector<1x2x196xf32>
    %665 = vector.shape_cast %664 : vector<1x2x196xf32> to vector<2x196xf32>
    %666 = vector.broadcast %663 : f32 to vector<2x196xf32>
    %667 = arith.mulf %666, %665 : vector<2x196xf32>
    %668 = arith.addf %662, %667 : vector<2x196xf32>
    %c6_531 = arith.constant 6 : index
    %c6_532 = arith.constant 6 : index
    %669 = memref.load %arg2[%c6_531, %c6_532] : memref<16x16xf32, #tpu.memory_space<smem>>
    %c6_533 = arith.constant 6 : index
    %c0_534 = arith.constant 0 : index
    %c0_535 = arith.constant 0 : index
    %670 = vector.load %arg1[%c6_533, %c0_534, %c0_535] : memref<16x2x196xf32, #tpu.memory_space<vmem>>, vector<1x2x196xf32>
    %671 = vector.shape_cast %670 : vector<1x2x196xf32> to vector<2x196xf32>
    %672 = vector.broadcast %669 : f32 to vector<2x196xf32>
    %673 = arith.mulf %672, %671 : vector<2x196xf32>
    %674 = arith.addf %668, %673 : vector<2x196xf32>
    %c6_536 = arith.constant 6 : index
    %c7_537 = arith.constant 7 : index
    %675 = memref.load %arg2[%c6_536, %c7_537] : memref<16x16xf32, #tpu.memory_space<smem>>
    %c7_538 = arith.constant 7 : index
    %c0_539 = arith.constant 0 : index
    %c0_540 = arith.constant 0 : index
    %676 = vector.load %arg1[%c7_538, %c0_539, %c0_540] : memref<16x2x196xf32, #tpu.memory_space<vmem>>, vector<1x2x196xf32>
    %677 = vector.shape_cast %676 : vector<1x2x196xf32> to vector<2x196xf32>
    %678 = vector.broadcast %675 : f32 to vector<2x196xf32>
    %679 = arith.mulf %678, %677 : vector<2x196xf32>
    %680 = arith.addf %674, %679 : vector<2x196xf32>
    %c6_541 = arith.constant 6 : index
    %c8_542 = arith.constant 8 : index
    %681 = memref.load %arg2[%c6_541, %c8_542] : memref<16x16xf32, #tpu.memory_space<smem>>
    %c8_543 = arith.constant 8 : index
    %c0_544 = arith.constant 0 : index
    %c0_545 = arith.constant 0 : index
    %682 = vector.load %arg1[%c8_543, %c0_544, %c0_545] : memref<16x2x196xf32, #tpu.memory_space<vmem>>, vector<1x2x196xf32>
    %683 = vector.shape_cast %682 : vector<1x2x196xf32> to vector<2x196xf32>
    %684 = vector.broadcast %681 : f32 to vector<2x196xf32>
    %685 = arith.mulf %684, %683 : vector<2x196xf32>
    %686 = arith.addf %680, %685 : vector<2x196xf32>
    %c6_546 = arith.constant 6 : index
    %c9_547 = arith.constant 9 : index
    %687 = memref.load %arg2[%c6_546, %c9_547] : memref<16x16xf32, #tpu.memory_space<smem>>
    %c9_548 = arith.constant 9 : index
    %c0_549 = arith.constant 0 : index
    %c0_550 = arith.constant 0 : index
    %688 = vector.load %arg1[%c9_548, %c0_549, %c0_550] : memref<16x2x196xf32, #tpu.memory_space<vmem>>, vector<1x2x196xf32>
    %689 = vector.shape_cast %688 : vector<1x2x196xf32> to vector<2x196xf32>
    %690 = vector.broadcast %687 : f32 to vector<2x196xf32>
    %691 = arith.mulf %690, %689 : vector<2x196xf32>
    %692 = arith.addf %686, %691 : vector<2x196xf32>
    %c6_551 = arith.constant 6 : index
    %c10_552 = arith.constant 10 : index
    %693 = memref.load %arg2[%c6_551, %c10_552] : memref<16x16xf32, #tpu.memory_space<smem>>
    %c10_553 = arith.constant 10 : index
    %c0_554 = arith.constant 0 : index
    %c0_555 = arith.constant 0 : index
    %694 = vector.load %arg1[%c10_553, %c0_554, %c0_555] : memref<16x2x196xf32, #tpu.memory_space<vmem>>, vector<1x2x196xf32>
    %695 = vector.shape_cast %694 : vector<1x2x196xf32> to vector<2x196xf32>
    %696 = vector.broadcast %693 : f32 to vector<2x196xf32>
    %697 = arith.mulf %696, %695 : vector<2x196xf32>
    %698 = arith.addf %692, %697 : vector<2x196xf32>
    %c6_556 = arith.constant 6 : index
    %c11_557 = arith.constant 11 : index
    %699 = memref.load %arg2[%c6_556, %c11_557] : memref<16x16xf32, #tpu.memory_space<smem>>
    %c11_558 = arith.constant 11 : index
    %c0_559 = arith.constant 0 : index
    %c0_560 = arith.constant 0 : index
    %700 = vector.load %arg1[%c11_558, %c0_559, %c0_560] : memref<16x2x196xf32, #tpu.memory_space<vmem>>, vector<1x2x196xf32>
    %701 = vector.shape_cast %700 : vector<1x2x196xf32> to vector<2x196xf32>
    %702 = vector.broadcast %699 : f32 to vector<2x196xf32>
    %703 = arith.mulf %702, %701 : vector<2x196xf32>
    %704 = arith.addf %698, %703 : vector<2x196xf32>
    %c6_561 = arith.constant 6 : index
    %c12_562 = arith.constant 12 : index
    %705 = memref.load %arg2[%c6_561, %c12_562] : memref<16x16xf32, #tpu.memory_space<smem>>
    %c12_563 = arith.constant 12 : index
    %c0_564 = arith.constant 0 : index
    %c0_565 = arith.constant 0 : index
    %706 = vector.load %arg1[%c12_563, %c0_564, %c0_565] : memref<16x2x196xf32, #tpu.memory_space<vmem>>, vector<1x2x196xf32>
    %707 = vector.shape_cast %706 : vector<1x2x196xf32> to vector<2x196xf32>
    %708 = vector.broadcast %705 : f32 to vector<2x196xf32>
    %709 = arith.mulf %708, %707 : vector<2x196xf32>
    %710 = arith.addf %704, %709 : vector<2x196xf32>
    %c6_566 = arith.constant 6 : index
    %c13_567 = arith.constant 13 : index
    %711 = memref.load %arg2[%c6_566, %c13_567] : memref<16x16xf32, #tpu.memory_space<smem>>
    %c13_568 = arith.constant 13 : index
    %c0_569 = arith.constant 0 : index
    %c0_570 = arith.constant 0 : index
    %712 = vector.load %arg1[%c13_568, %c0_569, %c0_570] : memref<16x2x196xf32, #tpu.memory_space<vmem>>, vector<1x2x196xf32>
    %713 = vector.shape_cast %712 : vector<1x2x196xf32> to vector<2x196xf32>
    %714 = vector.broadcast %711 : f32 to vector<2x196xf32>
    %715 = arith.mulf %714, %713 : vector<2x196xf32>
    %716 = arith.addf %710, %715 : vector<2x196xf32>
    %c6_571 = arith.constant 6 : index
    %c14_572 = arith.constant 14 : index
    %717 = memref.load %arg2[%c6_571, %c14_572] : memref<16x16xf32, #tpu.memory_space<smem>>
    %c14_573 = arith.constant 14 : index
    %c0_574 = arith.constant 0 : index
    %c0_575 = arith.constant 0 : index
    %718 = vector.load %arg1[%c14_573, %c0_574, %c0_575] : memref<16x2x196xf32, #tpu.memory_space<vmem>>, vector<1x2x196xf32>
    %719 = vector.shape_cast %718 : vector<1x2x196xf32> to vector<2x196xf32>
    %720 = vector.broadcast %717 : f32 to vector<2x196xf32>
    %721 = arith.mulf %720, %719 : vector<2x196xf32>
    %722 = arith.addf %716, %721 : vector<2x196xf32>
    %c6_576 = arith.constant 6 : index
    %c15_577 = arith.constant 15 : index
    %723 = memref.load %arg2[%c6_576, %c15_577] : memref<16x16xf32, #tpu.memory_space<smem>>
    %c15_578 = arith.constant 15 : index
    %c0_579 = arith.constant 0 : index
    %c0_580 = arith.constant 0 : index
    %724 = vector.load %arg1[%c15_578, %c0_579, %c0_580] : memref<16x2x196xf32, #tpu.memory_space<vmem>>, vector<1x2x196xf32>
    %725 = vector.shape_cast %724 : vector<1x2x196xf32> to vector<2x196xf32>
    %726 = vector.broadcast %723 : f32 to vector<2x196xf32>
    %727 = arith.mulf %726, %725 : vector<2x196xf32>
    %728 = arith.addf %722, %727 : vector<2x196xf32>
    %cst_581 = arith.constant 0.000000e+00 : f32
    %729 = vector.broadcast %cst_581 : f32 to vector<2x196xf32>
    %730 = arith.maximumf %728, %729 : vector<2x196xf32>
    %731 = arith.truncf %730 : vector<2x196xf32> to vector<2x196xbf16>
    %c6_582 = arith.constant 6 : index
    %c0_583 = arith.constant 0 : index
    %c0_584 = arith.constant 0 : index
    %732 = vector.load %arg4[%c6_582, %c0_583, %c0_584] : memref<16x196x128xbf16, #tpu.memory_space<vmem>>, vector<1x196x128xbf16>
    %733 = vector.shape_cast %732 : vector<1x196x128xbf16> to vector<196x128xbf16>
    %cst_585 = arith.constant dense<0.000000e+00> : vector<2x128xf32>
    %734 = tpu.matmul %731, %733, %cst_585 {dimension_numbers = #tpu.dot_dimension_numbers<[1], [0], [0], [1], [0, 0, 1, 1], [], []>} : vector<2x196xbf16>, vector<196x128xbf16>, vector<2x128xf32> -> vector<2x128xf32>
    %735 = arith.addf %630, %734 : vector<2x128xf32>
    %c7_586 = arith.constant 7 : index
    %736 = memref.load %arg3[%c7_586] : memref<16xf32, #tpu.memory_space<smem>>
    %737 = vector.broadcast %736 : f32 to vector<2x196xf32>
    %c7_587 = arith.constant 7 : index
    %c0_588 = arith.constant 0 : index
    %738 = memref.load %arg2[%c7_587, %c0_588] : memref<16x16xf32, #tpu.memory_space<smem>>
    %c0_589 = arith.constant 0 : index
    %c0_590 = arith.constant 0 : index
    %c0_591 = arith.constant 0 : index
    %739 = vector.load %arg1[%c0_589, %c0_590, %c0_591] : memref<16x2x196xf32, #tpu.memory_space<vmem>>, vector<1x2x196xf32>
    %740 = vector.shape_cast %739 : vector<1x2x196xf32> to vector<2x196xf32>
    %741 = vector.broadcast %738 : f32 to vector<2x196xf32>
    %742 = arith.mulf %741, %740 : vector<2x196xf32>
    %743 = arith.addf %737, %742 : vector<2x196xf32>
    %c7_592 = arith.constant 7 : index
    %c1_593 = arith.constant 1 : index
    %744 = memref.load %arg2[%c7_592, %c1_593] : memref<16x16xf32, #tpu.memory_space<smem>>
    %c1_594 = arith.constant 1 : index
    %c0_595 = arith.constant 0 : index
    %c0_596 = arith.constant 0 : index
    %745 = vector.load %arg1[%c1_594, %c0_595, %c0_596] : memref<16x2x196xf32, #tpu.memory_space<vmem>>, vector<1x2x196xf32>
    %746 = vector.shape_cast %745 : vector<1x2x196xf32> to vector<2x196xf32>
    %747 = vector.broadcast %744 : f32 to vector<2x196xf32>
    %748 = arith.mulf %747, %746 : vector<2x196xf32>
    %749 = arith.addf %743, %748 : vector<2x196xf32>
    %c7_597 = arith.constant 7 : index
    %c2_598 = arith.constant 2 : index
    %750 = memref.load %arg2[%c7_597, %c2_598] : memref<16x16xf32, #tpu.memory_space<smem>>
    %c2_599 = arith.constant 2 : index
    %c0_600 = arith.constant 0 : index
    %c0_601 = arith.constant 0 : index
    %751 = vector.load %arg1[%c2_599, %c0_600, %c0_601] : memref<16x2x196xf32, #tpu.memory_space<vmem>>, vector<1x2x196xf32>
    %752 = vector.shape_cast %751 : vector<1x2x196xf32> to vector<2x196xf32>
    %753 = vector.broadcast %750 : f32 to vector<2x196xf32>
    %754 = arith.mulf %753, %752 : vector<2x196xf32>
    %755 = arith.addf %749, %754 : vector<2x196xf32>
    %c7_602 = arith.constant 7 : index
    %c3_603 = arith.constant 3 : index
    %756 = memref.load %arg2[%c7_602, %c3_603] : memref<16x16xf32, #tpu.memory_space<smem>>
    %c3_604 = arith.constant 3 : index
    %c0_605 = arith.constant 0 : index
    %c0_606 = arith.constant 0 : index
    %757 = vector.load %arg1[%c3_604, %c0_605, %c0_606] : memref<16x2x196xf32, #tpu.memory_space<vmem>>, vector<1x2x196xf32>
    %758 = vector.shape_cast %757 : vector<1x2x196xf32> to vector<2x196xf32>
    %759 = vector.broadcast %756 : f32 to vector<2x196xf32>
    %760 = arith.mulf %759, %758 : vector<2x196xf32>
    %761 = arith.addf %755, %760 : vector<2x196xf32>
    %c7_607 = arith.constant 7 : index
    %c4_608 = arith.constant 4 : index
    %762 = memref.load %arg2[%c7_607, %c4_608] : memref<16x16xf32, #tpu.memory_space<smem>>
    %c4_609 = arith.constant 4 : index
    %c0_610 = arith.constant 0 : index
    %c0_611 = arith.constant 0 : index
    %763 = vector.load %arg1[%c4_609, %c0_610, %c0_611] : memref<16x2x196xf32, #tpu.memory_space<vmem>>, vector<1x2x196xf32>
    %764 = vector.shape_cast %763 : vector<1x2x196xf32> to vector<2x196xf32>
    %765 = vector.broadcast %762 : f32 to vector<2x196xf32>
    %766 = arith.mulf %765, %764 : vector<2x196xf32>
    %767 = arith.addf %761, %766 : vector<2x196xf32>
    %c7_612 = arith.constant 7 : index
    %c5_613 = arith.constant 5 : index
    %768 = memref.load %arg2[%c7_612, %c5_613] : memref<16x16xf32, #tpu.memory_space<smem>>
    %c5_614 = arith.constant 5 : index
    %c0_615 = arith.constant 0 : index
    %c0_616 = arith.constant 0 : index
    %769 = vector.load %arg1[%c5_614, %c0_615, %c0_616] : memref<16x2x196xf32, #tpu.memory_space<vmem>>, vector<1x2x196xf32>
    %770 = vector.shape_cast %769 : vector<1x2x196xf32> to vector<2x196xf32>
    %771 = vector.broadcast %768 : f32 to vector<2x196xf32>
    %772 = arith.mulf %771, %770 : vector<2x196xf32>
    %773 = arith.addf %767, %772 : vector<2x196xf32>
    %c7_617 = arith.constant 7 : index
    %c6_618 = arith.constant 6 : index
    %774 = memref.load %arg2[%c7_617, %c6_618] : memref<16x16xf32, #tpu.memory_space<smem>>
    %c6_619 = arith.constant 6 : index
    %c0_620 = arith.constant 0 : index
    %c0_621 = arith.constant 0 : index
    %775 = vector.load %arg1[%c6_619, %c0_620, %c0_621] : memref<16x2x196xf32, #tpu.memory_space<vmem>>, vector<1x2x196xf32>
    %776 = vector.shape_cast %775 : vector<1x2x196xf32> to vector<2x196xf32>
    %777 = vector.broadcast %774 : f32 to vector<2x196xf32>
    %778 = arith.mulf %777, %776 : vector<2x196xf32>
    %779 = arith.addf %773, %778 : vector<2x196xf32>
    %c7_622 = arith.constant 7 : index
    %c7_623 = arith.constant 7 : index
    %780 = memref.load %arg2[%c7_622, %c7_623] : memref<16x16xf32, #tpu.memory_space<smem>>
    %c7_624 = arith.constant 7 : index
    %c0_625 = arith.constant 0 : index
    %c0_626 = arith.constant 0 : index
    %781 = vector.load %arg1[%c7_624, %c0_625, %c0_626] : memref<16x2x196xf32, #tpu.memory_space<vmem>>, vector<1x2x196xf32>
    %782 = vector.shape_cast %781 : vector<1x2x196xf32> to vector<2x196xf32>
    %783 = vector.broadcast %780 : f32 to vector<2x196xf32>
    %784 = arith.mulf %783, %782 : vector<2x196xf32>
    %785 = arith.addf %779, %784 : vector<2x196xf32>
    %c7_627 = arith.constant 7 : index
    %c8_628 = arith.constant 8 : index
    %786 = memref.load %arg2[%c7_627, %c8_628] : memref<16x16xf32, #tpu.memory_space<smem>>
    %c8_629 = arith.constant 8 : index
    %c0_630 = arith.constant 0 : index
    %c0_631 = arith.constant 0 : index
    %787 = vector.load %arg1[%c8_629, %c0_630, %c0_631] : memref<16x2x196xf32, #tpu.memory_space<vmem>>, vector<1x2x196xf32>
    %788 = vector.shape_cast %787 : vector<1x2x196xf32> to vector<2x196xf32>
    %789 = vector.broadcast %786 : f32 to vector<2x196xf32>
    %790 = arith.mulf %789, %788 : vector<2x196xf32>
    %791 = arith.addf %785, %790 : vector<2x196xf32>
    %c7_632 = arith.constant 7 : index
    %c9_633 = arith.constant 9 : index
    %792 = memref.load %arg2[%c7_632, %c9_633] : memref<16x16xf32, #tpu.memory_space<smem>>
    %c9_634 = arith.constant 9 : index
    %c0_635 = arith.constant 0 : index
    %c0_636 = arith.constant 0 : index
    %793 = vector.load %arg1[%c9_634, %c0_635, %c0_636] : memref<16x2x196xf32, #tpu.memory_space<vmem>>, vector<1x2x196xf32>
    %794 = vector.shape_cast %793 : vector<1x2x196xf32> to vector<2x196xf32>
    %795 = vector.broadcast %792 : f32 to vector<2x196xf32>
    %796 = arith.mulf %795, %794 : vector<2x196xf32>
    %797 = arith.addf %791, %796 : vector<2x196xf32>
    %c7_637 = arith.constant 7 : index
    %c10_638 = arith.constant 10 : index
    %798 = memref.load %arg2[%c7_637, %c10_638] : memref<16x16xf32, #tpu.memory_space<smem>>
    %c10_639 = arith.constant 10 : index
    %c0_640 = arith.constant 0 : index
    %c0_641 = arith.constant 0 : index
    %799 = vector.load %arg1[%c10_639, %c0_640, %c0_641] : memref<16x2x196xf32, #tpu.memory_space<vmem>>, vector<1x2x196xf32>
    %800 = vector.shape_cast %799 : vector<1x2x196xf32> to vector<2x196xf32>
    %801 = vector.broadcast %798 : f32 to vector<2x196xf32>
    %802 = arith.mulf %801, %800 : vector<2x196xf32>
    %803 = arith.addf %797, %802 : vector<2x196xf32>
    %c7_642 = arith.constant 7 : index
    %c11_643 = arith.constant 11 : index
    %804 = memref.load %arg2[%c7_642, %c11_643] : memref<16x16xf32, #tpu.memory_space<smem>>
    %c11_644 = arith.constant 11 : index
    %c0_645 = arith.constant 0 : index
    %c0_646 = arith.constant 0 : index
    %805 = vector.load %arg1[%c11_644, %c0_645, %c0_646] : memref<16x2x196xf32, #tpu.memory_space<vmem>>, vector<1x2x196xf32>
    %806 = vector.shape_cast %805 : vector<1x2x196xf32> to vector<2x196xf32>
    %807 = vector.broadcast %804 : f32 to vector<2x196xf32>
    %808 = arith.mulf %807, %806 : vector<2x196xf32>
    %809 = arith.addf %803, %808 : vector<2x196xf32>
    %c7_647 = arith.constant 7 : index
    %c12_648 = arith.constant 12 : index
    %810 = memref.load %arg2[%c7_647, %c12_648] : memref<16x16xf32, #tpu.memory_space<smem>>
    %c12_649 = arith.constant 12 : index
    %c0_650 = arith.constant 0 : index
    %c0_651 = arith.constant 0 : index
    %811 = vector.load %arg1[%c12_649, %c0_650, %c0_651] : memref<16x2x196xf32, #tpu.memory_space<vmem>>, vector<1x2x196xf32>
    %812 = vector.shape_cast %811 : vector<1x2x196xf32> to vector<2x196xf32>
    %813 = vector.broadcast %810 : f32 to vector<2x196xf32>
    %814 = arith.mulf %813, %812 : vector<2x196xf32>
    %815 = arith.addf %809, %814 : vector<2x196xf32>
    %c7_652 = arith.constant 7 : index
    %c13_653 = arith.constant 13 : index
    %816 = memref.load %arg2[%c7_652, %c13_653] : memref<16x16xf32, #tpu.memory_space<smem>>
    %c13_654 = arith.constant 13 : index
    %c0_655 = arith.constant 0 : index
    %c0_656 = arith.constant 0 : index
    %817 = vector.load %arg1[%c13_654, %c0_655, %c0_656] : memref<16x2x196xf32, #tpu.memory_space<vmem>>, vector<1x2x196xf32>
    %818 = vector.shape_cast %817 : vector<1x2x196xf32> to vector<2x196xf32>
    %819 = vector.broadcast %816 : f32 to vector<2x196xf32>
    %820 = arith.mulf %819, %818 : vector<2x196xf32>
    %821 = arith.addf %815, %820 : vector<2x196xf32>
    %c7_657 = arith.constant 7 : index
    %c14_658 = arith.constant 14 : index
    %822 = memref.load %arg2[%c7_657, %c14_658] : memref<16x16xf32, #tpu.memory_space<smem>>
    %c14_659 = arith.constant 14 : index
    %c0_660 = arith.constant 0 : index
    %c0_661 = arith.constant 0 : index
    %823 = vector.load %arg1[%c14_659, %c0_660, %c0_661] : memref<16x2x196xf32, #tpu.memory_space<vmem>>, vector<1x2x196xf32>
    %824 = vector.shape_cast %823 : vector<1x2x196xf32> to vector<2x196xf32>
    %825 = vector.broadcast %822 : f32 to vector<2x196xf32>
    %826 = arith.mulf %825, %824 : vector<2x196xf32>
    %827 = arith.addf %821, %826 : vector<2x196xf32>
    %c7_662 = arith.constant 7 : index
    %c15_663 = arith.constant 15 : index
    %828 = memref.load %arg2[%c7_662, %c15_663] : memref<16x16xf32, #tpu.memory_space<smem>>
    %c15_664 = arith.constant 15 : index
    %c0_665 = arith.constant 0 : index
    %c0_666 = arith.constant 0 : index
    %829 = vector.load %arg1[%c15_664, %c0_665, %c0_666] : memref<16x2x196xf32, #tpu.memory_space<vmem>>, vector<1x2x196xf32>
    %830 = vector.shape_cast %829 : vector<1x2x196xf32> to vector<2x196xf32>
    %831 = vector.broadcast %828 : f32 to vector<2x196xf32>
    %832 = arith.mulf %831, %830 : vector<2x196xf32>
    %833 = arith.addf %827, %832 : vector<2x196xf32>
    %cst_667 = arith.constant 0.000000e+00 : f32
    %834 = vector.broadcast %cst_667 : f32 to vector<2x196xf32>
    %835 = arith.maximumf %833, %834 : vector<2x196xf32>
    %836 = arith.truncf %835 : vector<2x196xf32> to vector<2x196xbf16>
    %c7_668 = arith.constant 7 : index
    %c0_669 = arith.constant 0 : index
    %c0_670 = arith.constant 0 : index
    %837 = vector.load %arg4[%c7_668, %c0_669, %c0_670] : memref<16x196x128xbf16, #tpu.memory_space<vmem>>, vector<1x196x128xbf16>
    %838 = vector.shape_cast %837 : vector<1x196x128xbf16> to vector<196x128xbf16>
    %cst_671 = arith.constant dense<0.000000e+00> : vector<2x128xf32>
    %839 = tpu.matmul %836, %838, %cst_671 {dimension_numbers = #tpu.dot_dimension_numbers<[1], [0], [0], [1], [0, 0, 1, 1], [], []>} : vector<2x196xbf16>, vector<196x128xbf16>, vector<2x128xf32> -> vector<2x128xf32>
    %840 = arith.addf %735, %839 : vector<2x128xf32>
    %c8_672 = arith.constant 8 : index
    %841 = memref.load %arg3[%c8_672] : memref<16xf32, #tpu.memory_space<smem>>
    %842 = vector.broadcast %841 : f32 to vector<2x196xf32>
    %c8_673 = arith.constant 8 : index
    %c0_674 = arith.constant 0 : index
    %843 = memref.load %arg2[%c8_673, %c0_674] : memref<16x16xf32, #tpu.memory_space<smem>>
    %c0_675 = arith.constant 0 : index
    %c0_676 = arith.constant 0 : index
    %c0_677 = arith.constant 0 : index
    %844 = vector.load %arg1[%c0_675, %c0_676, %c0_677] : memref<16x2x196xf32, #tpu.memory_space<vmem>>, vector<1x2x196xf32>
    %845 = vector.shape_cast %844 : vector<1x2x196xf32> to vector<2x196xf32>
    %846 = vector.broadcast %843 : f32 to vector<2x196xf32>
    %847 = arith.mulf %846, %845 : vector<2x196xf32>
    %848 = arith.addf %842, %847 : vector<2x196xf32>
    %c8_678 = arith.constant 8 : index
    %c1_679 = arith.constant 1 : index
    %849 = memref.load %arg2[%c8_678, %c1_679] : memref<16x16xf32, #tpu.memory_space<smem>>
    %c1_680 = arith.constant 1 : index
    %c0_681 = arith.constant 0 : index
    %c0_682 = arith.constant 0 : index
    %850 = vector.load %arg1[%c1_680, %c0_681, %c0_682] : memref<16x2x196xf32, #tpu.memory_space<vmem>>, vector<1x2x196xf32>
    %851 = vector.shape_cast %850 : vector<1x2x196xf32> to vector<2x196xf32>
    %852 = vector.broadcast %849 : f32 to vector<2x196xf32>
    %853 = arith.mulf %852, %851 : vector<2x196xf32>
    %854 = arith.addf %848, %853 : vector<2x196xf32>
    %c8_683 = arith.constant 8 : index
    %c2_684 = arith.constant 2 : index
    %855 = memref.load %arg2[%c8_683, %c2_684] : memref<16x16xf32, #tpu.memory_space<smem>>
    %c2_685 = arith.constant 2 : index
    %c0_686 = arith.constant 0 : index
    %c0_687 = arith.constant 0 : index
    %856 = vector.load %arg1[%c2_685, %c0_686, %c0_687] : memref<16x2x196xf32, #tpu.memory_space<vmem>>, vector<1x2x196xf32>
    %857 = vector.shape_cast %856 : vector<1x2x196xf32> to vector<2x196xf32>
    %858 = vector.broadcast %855 : f32 to vector<2x196xf32>
    %859 = arith.mulf %858, %857 : vector<2x196xf32>
    %860 = arith.addf %854, %859 : vector<2x196xf32>
    %c8_688 = arith.constant 8 : index
    %c3_689 = arith.constant 3 : index
    %861 = memref.load %arg2[%c8_688, %c3_689] : memref<16x16xf32, #tpu.memory_space<smem>>
    %c3_690 = arith.constant 3 : index
    %c0_691 = arith.constant 0 : index
    %c0_692 = arith.constant 0 : index
    %862 = vector.load %arg1[%c3_690, %c0_691, %c0_692] : memref<16x2x196xf32, #tpu.memory_space<vmem>>, vector<1x2x196xf32>
    %863 = vector.shape_cast %862 : vector<1x2x196xf32> to vector<2x196xf32>
    %864 = vector.broadcast %861 : f32 to vector<2x196xf32>
    %865 = arith.mulf %864, %863 : vector<2x196xf32>
    %866 = arith.addf %860, %865 : vector<2x196xf32>
    %c8_693 = arith.constant 8 : index
    %c4_694 = arith.constant 4 : index
    %867 = memref.load %arg2[%c8_693, %c4_694] : memref<16x16xf32, #tpu.memory_space<smem>>
    %c4_695 = arith.constant 4 : index
    %c0_696 = arith.constant 0 : index
    %c0_697 = arith.constant 0 : index
    %868 = vector.load %arg1[%c4_695, %c0_696, %c0_697] : memref<16x2x196xf32, #tpu.memory_space<vmem>>, vector<1x2x196xf32>
    %869 = vector.shape_cast %868 : vector<1x2x196xf32> to vector<2x196xf32>
    %870 = vector.broadcast %867 : f32 to vector<2x196xf32>
    %871 = arith.mulf %870, %869 : vector<2x196xf32>
    %872 = arith.addf %866, %871 : vector<2x196xf32>
    %c8_698 = arith.constant 8 : index
    %c5_699 = arith.constant 5 : index
    %873 = memref.load %arg2[%c8_698, %c5_699] : memref<16x16xf32, #tpu.memory_space<smem>>
    %c5_700 = arith.constant 5 : index
    %c0_701 = arith.constant 0 : index
    %c0_702 = arith.constant 0 : index
    %874 = vector.load %arg1[%c5_700, %c0_701, %c0_702] : memref<16x2x196xf32, #tpu.memory_space<vmem>>, vector<1x2x196xf32>
    %875 = vector.shape_cast %874 : vector<1x2x196xf32> to vector<2x196xf32>
    %876 = vector.broadcast %873 : f32 to vector<2x196xf32>
    %877 = arith.mulf %876, %875 : vector<2x196xf32>
    %878 = arith.addf %872, %877 : vector<2x196xf32>
    %c8_703 = arith.constant 8 : index
    %c6_704 = arith.constant 6 : index
    %879 = memref.load %arg2[%c8_703, %c6_704] : memref<16x16xf32, #tpu.memory_space<smem>>
    %c6_705 = arith.constant 6 : index
    %c0_706 = arith.constant 0 : index
    %c0_707 = arith.constant 0 : index
    %880 = vector.load %arg1[%c6_705, %c0_706, %c0_707] : memref<16x2x196xf32, #tpu.memory_space<vmem>>, vector<1x2x196xf32>
    %881 = vector.shape_cast %880 : vector<1x2x196xf32> to vector<2x196xf32>
    %882 = vector.broadcast %879 : f32 to vector<2x196xf32>
    %883 = arith.mulf %882, %881 : vector<2x196xf32>
    %884 = arith.addf %878, %883 : vector<2x196xf32>
    %c8_708 = arith.constant 8 : index
    %c7_709 = arith.constant 7 : index
    %885 = memref.load %arg2[%c8_708, %c7_709] : memref<16x16xf32, #tpu.memory_space<smem>>
    %c7_710 = arith.constant 7 : index
    %c0_711 = arith.constant 0 : index
    %c0_712 = arith.constant 0 : index
    %886 = vector.load %arg1[%c7_710, %c0_711, %c0_712] : memref<16x2x196xf32, #tpu.memory_space<vmem>>, vector<1x2x196xf32>
    %887 = vector.shape_cast %886 : vector<1x2x196xf32> to vector<2x196xf32>
    %888 = vector.broadcast %885 : f32 to vector<2x196xf32>
    %889 = arith.mulf %888, %887 : vector<2x196xf32>
    %890 = arith.addf %884, %889 : vector<2x196xf32>
    %c8_713 = arith.constant 8 : index
    %c8_714 = arith.constant 8 : index
    %891 = memref.load %arg2[%c8_713, %c8_714] : memref<16x16xf32, #tpu.memory_space<smem>>
    %c8_715 = arith.constant 8 : index
    %c0_716 = arith.constant 0 : index
    %c0_717 = arith.constant 0 : index
    %892 = vector.load %arg1[%c8_715, %c0_716, %c0_717] : memref<16x2x196xf32, #tpu.memory_space<vmem>>, vector<1x2x196xf32>
    %893 = vector.shape_cast %892 : vector<1x2x196xf32> to vector<2x196xf32>
    %894 = vector.broadcast %891 : f32 to vector<2x196xf32>
    %895 = arith.mulf %894, %893 : vector<2x196xf32>
    %896 = arith.addf %890, %895 : vector<2x196xf32>
    %c8_718 = arith.constant 8 : index
    %c9_719 = arith.constant 9 : index
    %897 = memref.load %arg2[%c8_718, %c9_719] : memref<16x16xf32, #tpu.memory_space<smem>>
    %c9_720 = arith.constant 9 : index
    %c0_721 = arith.constant 0 : index
    %c0_722 = arith.constant 0 : index
    %898 = vector.load %arg1[%c9_720, %c0_721, %c0_722] : memref<16x2x196xf32, #tpu.memory_space<vmem>>, vector<1x2x196xf32>
    %899 = vector.shape_cast %898 : vector<1x2x196xf32> to vector<2x196xf32>
    %900 = vector.broadcast %897 : f32 to vector<2x196xf32>
    %901 = arith.mulf %900, %899 : vector<2x196xf32>
    %902 = arith.addf %896, %901 : vector<2x196xf32>
    %c8_723 = arith.constant 8 : index
    %c10_724 = arith.constant 10 : index
    %903 = memref.load %arg2[%c8_723, %c10_724] : memref<16x16xf32, #tpu.memory_space<smem>>
    %c10_725 = arith.constant 10 : index
    %c0_726 = arith.constant 0 : index
    %c0_727 = arith.constant 0 : index
    %904 = vector.load %arg1[%c10_725, %c0_726, %c0_727] : memref<16x2x196xf32, #tpu.memory_space<vmem>>, vector<1x2x196xf32>
    %905 = vector.shape_cast %904 : vector<1x2x196xf32> to vector<2x196xf32>
    %906 = vector.broadcast %903 : f32 to vector<2x196xf32>
    %907 = arith.mulf %906, %905 : vector<2x196xf32>
    %908 = arith.addf %902, %907 : vector<2x196xf32>
    %c8_728 = arith.constant 8 : index
    %c11_729 = arith.constant 11 : index
    %909 = memref.load %arg2[%c8_728, %c11_729] : memref<16x16xf32, #tpu.memory_space<smem>>
    %c11_730 = arith.constant 11 : index
    %c0_731 = arith.constant 0 : index
    %c0_732 = arith.constant 0 : index
    %910 = vector.load %arg1[%c11_730, %c0_731, %c0_732] : memref<16x2x196xf32, #tpu.memory_space<vmem>>, vector<1x2x196xf32>
    %911 = vector.shape_cast %910 : vector<1x2x196xf32> to vector<2x196xf32>
    %912 = vector.broadcast %909 : f32 to vector<2x196xf32>
    %913 = arith.mulf %912, %911 : vector<2x196xf32>
    %914 = arith.addf %908, %913 : vector<2x196xf32>
    %c8_733 = arith.constant 8 : index
    %c12_734 = arith.constant 12 : index
    %915 = memref.load %arg2[%c8_733, %c12_734] : memref<16x16xf32, #tpu.memory_space<smem>>
    %c12_735 = arith.constant 12 : index
    %c0_736 = arith.constant 0 : index
    %c0_737 = arith.constant 0 : index
    %916 = vector.load %arg1[%c12_735, %c0_736, %c0_737] : memref<16x2x196xf32, #tpu.memory_space<vmem>>, vector<1x2x196xf32>
    %917 = vector.shape_cast %916 : vector<1x2x196xf32> to vector<2x196xf32>
    %918 = vector.broadcast %915 : f32 to vector<2x196xf32>
    %919 = arith.mulf %918, %917 : vector<2x196xf32>
    %920 = arith.addf %914, %919 : vector<2x196xf32>
    %c8_738 = arith.constant 8 : index
    %c13_739 = arith.constant 13 : index
    %921 = memref.load %arg2[%c8_738, %c13_739] : memref<16x16xf32, #tpu.memory_space<smem>>
    %c13_740 = arith.constant 13 : index
    %c0_741 = arith.constant 0 : index
    %c0_742 = arith.constant 0 : index
    %922 = vector.load %arg1[%c13_740, %c0_741, %c0_742] : memref<16x2x196xf32, #tpu.memory_space<vmem>>, vector<1x2x196xf32>
    %923 = vector.shape_cast %922 : vector<1x2x196xf32> to vector<2x196xf32>
    %924 = vector.broadcast %921 : f32 to vector<2x196xf32>
    %925 = arith.mulf %924, %923 : vector<2x196xf32>
    %926 = arith.addf %920, %925 : vector<2x196xf32>
    %c8_743 = arith.constant 8 : index
    %c14_744 = arith.constant 14 : index
    %927 = memref.load %arg2[%c8_743, %c14_744] : memref<16x16xf32, #tpu.memory_space<smem>>
    %c14_745 = arith.constant 14 : index
    %c0_746 = arith.constant 0 : index
    %c0_747 = arith.constant 0 : index
    %928 = vector.load %arg1[%c14_745, %c0_746, %c0_747] : memref<16x2x196xf32, #tpu.memory_space<vmem>>, vector<1x2x196xf32>
    %929 = vector.shape_cast %928 : vector<1x2x196xf32> to vector<2x196xf32>
    %930 = vector.broadcast %927 : f32 to vector<2x196xf32>
    %931 = arith.mulf %930, %929 : vector<2x196xf32>
    %932 = arith.addf %926, %931 : vector<2x196xf32>
    %c8_748 = arith.constant 8 : index
    %c15_749 = arith.constant 15 : index
    %933 = memref.load %arg2[%c8_748, %c15_749] : memref<16x16xf32, #tpu.memory_space<smem>>
    %c15_750 = arith.constant 15 : index
    %c0_751 = arith.constant 0 : index
    %c0_752 = arith.constant 0 : index
    %934 = vector.load %arg1[%c15_750, %c0_751, %c0_752] : memref<16x2x196xf32, #tpu.memory_space<vmem>>, vector<1x2x196xf32>
    %935 = vector.shape_cast %934 : vector<1x2x196xf32> to vector<2x196xf32>
    %936 = vector.broadcast %933 : f32 to vector<2x196xf32>
    %937 = arith.mulf %936, %935 : vector<2x196xf32>
    %938 = arith.addf %932, %937 : vector<2x196xf32>
    %cst_753 = arith.constant 0.000000e+00 : f32
    %939 = vector.broadcast %cst_753 : f32 to vector<2x196xf32>
    %940 = arith.maximumf %938, %939 : vector<2x196xf32>
    %941 = arith.truncf %940 : vector<2x196xf32> to vector<2x196xbf16>
    %c8_754 = arith.constant 8 : index
    %c0_755 = arith.constant 0 : index
    %c0_756 = arith.constant 0 : index
    %942 = vector.load %arg4[%c8_754, %c0_755, %c0_756] : memref<16x196x128xbf16, #tpu.memory_space<vmem>>, vector<1x196x128xbf16>
    %943 = vector.shape_cast %942 : vector<1x196x128xbf16> to vector<196x128xbf16>
    %cst_757 = arith.constant dense<0.000000e+00> : vector<2x128xf32>
    %944 = tpu.matmul %941, %943, %cst_757 {dimension_numbers = #tpu.dot_dimension_numbers<[1], [0], [0], [1], [0, 0, 1, 1], [], []>} : vector<2x196xbf16>, vector<196x128xbf16>, vector<2x128xf32> -> vector<2x128xf32>
    %945 = arith.addf %840, %944 : vector<2x128xf32>
    %c9_758 = arith.constant 9 : index
    %946 = memref.load %arg3[%c9_758] : memref<16xf32, #tpu.memory_space<smem>>
    %947 = vector.broadcast %946 : f32 to vector<2x196xf32>
    %c9_759 = arith.constant 9 : index
    %c0_760 = arith.constant 0 : index
    %948 = memref.load %arg2[%c9_759, %c0_760] : memref<16x16xf32, #tpu.memory_space<smem>>
    %c0_761 = arith.constant 0 : index
    %c0_762 = arith.constant 0 : index
    %c0_763 = arith.constant 0 : index
    %949 = vector.load %arg1[%c0_761, %c0_762, %c0_763] : memref<16x2x196xf32, #tpu.memory_space<vmem>>, vector<1x2x196xf32>
    %950 = vector.shape_cast %949 : vector<1x2x196xf32> to vector<2x196xf32>
    %951 = vector.broadcast %948 : f32 to vector<2x196xf32>
    %952 = arith.mulf %951, %950 : vector<2x196xf32>
    %953 = arith.addf %947, %952 : vector<2x196xf32>
    %c9_764 = arith.constant 9 : index
    %c1_765 = arith.constant 1 : index
    %954 = memref.load %arg2[%c9_764, %c1_765] : memref<16x16xf32, #tpu.memory_space<smem>>
    %c1_766 = arith.constant 1 : index
    %c0_767 = arith.constant 0 : index
    %c0_768 = arith.constant 0 : index
    %955 = vector.load %arg1[%c1_766, %c0_767, %c0_768] : memref<16x2x196xf32, #tpu.memory_space<vmem>>, vector<1x2x196xf32>
    %956 = vector.shape_cast %955 : vector<1x2x196xf32> to vector<2x196xf32>
    %957 = vector.broadcast %954 : f32 to vector<2x196xf32>
    %958 = arith.mulf %957, %956 : vector<2x196xf32>
    %959 = arith.addf %953, %958 : vector<2x196xf32>
    %c9_769 = arith.constant 9 : index
    %c2_770 = arith.constant 2 : index
    %960 = memref.load %arg2[%c9_769, %c2_770] : memref<16x16xf32, #tpu.memory_space<smem>>
    %c2_771 = arith.constant 2 : index
    %c0_772 = arith.constant 0 : index
    %c0_773 = arith.constant 0 : index
    %961 = vector.load %arg1[%c2_771, %c0_772, %c0_773] : memref<16x2x196xf32, #tpu.memory_space<vmem>>, vector<1x2x196xf32>
    %962 = vector.shape_cast %961 : vector<1x2x196xf32> to vector<2x196xf32>
    %963 = vector.broadcast %960 : f32 to vector<2x196xf32>
    %964 = arith.mulf %963, %962 : vector<2x196xf32>
    %965 = arith.addf %959, %964 : vector<2x196xf32>
    %c9_774 = arith.constant 9 : index
    %c3_775 = arith.constant 3 : index
    %966 = memref.load %arg2[%c9_774, %c3_775] : memref<16x16xf32, #tpu.memory_space<smem>>
    %c3_776 = arith.constant 3 : index
    %c0_777 = arith.constant 0 : index
    %c0_778 = arith.constant 0 : index
    %967 = vector.load %arg1[%c3_776, %c0_777, %c0_778] : memref<16x2x196xf32, #tpu.memory_space<vmem>>, vector<1x2x196xf32>
    %968 = vector.shape_cast %967 : vector<1x2x196xf32> to vector<2x196xf32>
    %969 = vector.broadcast %966 : f32 to vector<2x196xf32>
    %970 = arith.mulf %969, %968 : vector<2x196xf32>
    %971 = arith.addf %965, %970 : vector<2x196xf32>
    %c9_779 = arith.constant 9 : index
    %c4_780 = arith.constant 4 : index
    %972 = memref.load %arg2[%c9_779, %c4_780] : memref<16x16xf32, #tpu.memory_space<smem>>
    %c4_781 = arith.constant 4 : index
    %c0_782 = arith.constant 0 : index
    %c0_783 = arith.constant 0 : index
    %973 = vector.load %arg1[%c4_781, %c0_782, %c0_783] : memref<16x2x196xf32, #tpu.memory_space<vmem>>, vector<1x2x196xf32>
    %974 = vector.shape_cast %973 : vector<1x2x196xf32> to vector<2x196xf32>
    %975 = vector.broadcast %972 : f32 to vector<2x196xf32>
    %976 = arith.mulf %975, %974 : vector<2x196xf32>
    %977 = arith.addf %971, %976 : vector<2x196xf32>
    %c9_784 = arith.constant 9 : index
    %c5_785 = arith.constant 5 : index
    %978 = memref.load %arg2[%c9_784, %c5_785] : memref<16x16xf32, #tpu.memory_space<smem>>
    %c5_786 = arith.constant 5 : index
    %c0_787 = arith.constant 0 : index
    %c0_788 = arith.constant 0 : index
    %979 = vector.load %arg1[%c5_786, %c0_787, %c0_788] : memref<16x2x196xf32, #tpu.memory_space<vmem>>, vector<1x2x196xf32>
    %980 = vector.shape_cast %979 : vector<1x2x196xf32> to vector<2x196xf32>
    %981 = vector.broadcast %978 : f32 to vector<2x196xf32>
    %982 = arith.mulf %981, %980 : vector<2x196xf32>
    %983 = arith.addf %977, %982 : vector<2x196xf32>
    %c9_789 = arith.constant 9 : index
    %c6_790 = arith.constant 6 : index
    %984 = memref.load %arg2[%c9_789, %c6_790] : memref<16x16xf32, #tpu.memory_space<smem>>
    %c6_791 = arith.constant 6 : index
    %c0_792 = arith.constant 0 : index
    %c0_793 = arith.constant 0 : index
    %985 = vector.load %arg1[%c6_791, %c0_792, %c0_793] : memref<16x2x196xf32, #tpu.memory_space<vmem>>, vector<1x2x196xf32>
    %986 = vector.shape_cast %985 : vector<1x2x196xf32> to vector<2x196xf32>
    %987 = vector.broadcast %984 : f32 to vector<2x196xf32>
    %988 = arith.mulf %987, %986 : vector<2x196xf32>
    %989 = arith.addf %983, %988 : vector<2x196xf32>
    %c9_794 = arith.constant 9 : index
    %c7_795 = arith.constant 7 : index
    %990 = memref.load %arg2[%c9_794, %c7_795] : memref<16x16xf32, #tpu.memory_space<smem>>
    %c7_796 = arith.constant 7 : index
    %c0_797 = arith.constant 0 : index
    %c0_798 = arith.constant 0 : index
    %991 = vector.load %arg1[%c7_796, %c0_797, %c0_798] : memref<16x2x196xf32, #tpu.memory_space<vmem>>, vector<1x2x196xf32>
    %992 = vector.shape_cast %991 : vector<1x2x196xf32> to vector<2x196xf32>
    %993 = vector.broadcast %990 : f32 to vector<2x196xf32>
    %994 = arith.mulf %993, %992 : vector<2x196xf32>
    %995 = arith.addf %989, %994 : vector<2x196xf32>
    %c9_799 = arith.constant 9 : index
    %c8_800 = arith.constant 8 : index
    %996 = memref.load %arg2[%c9_799, %c8_800] : memref<16x16xf32, #tpu.memory_space<smem>>
    %c8_801 = arith.constant 8 : index
    %c0_802 = arith.constant 0 : index
    %c0_803 = arith.constant 0 : index
    %997 = vector.load %arg1[%c8_801, %c0_802, %c0_803] : memref<16x2x196xf32, #tpu.memory_space<vmem>>, vector<1x2x196xf32>
    %998 = vector.shape_cast %997 : vector<1x2x196xf32> to vector<2x196xf32>
    %999 = vector.broadcast %996 : f32 to vector<2x196xf32>
    %1000 = arith.mulf %999, %998 : vector<2x196xf32>
    %1001 = arith.addf %995, %1000 : vector<2x196xf32>
    %c9_804 = arith.constant 9 : index
    %c9_805 = arith.constant 9 : index
    %1002 = memref.load %arg2[%c9_804, %c9_805] : memref<16x16xf32, #tpu.memory_space<smem>>
    %c9_806 = arith.constant 9 : index
    %c0_807 = arith.constant 0 : index
    %c0_808 = arith.constant 0 : index
    %1003 = vector.load %arg1[%c9_806, %c0_807, %c0_808] : memref<16x2x196xf32, #tpu.memory_space<vmem>>, vector<1x2x196xf32>
    %1004 = vector.shape_cast %1003 : vector<1x2x196xf32> to vector<2x196xf32>
    %1005 = vector.broadcast %1002 : f32 to vector<2x196xf32>
    %1006 = arith.mulf %1005, %1004 : vector<2x196xf32>
    %1007 = arith.addf %1001, %1006 : vector<2x196xf32>
    %c9_809 = arith.constant 9 : index
    %c10_810 = arith.constant 10 : index
    %1008 = memref.load %arg2[%c9_809, %c10_810] : memref<16x16xf32, #tpu.memory_space<smem>>
    %c10_811 = arith.constant 10 : index
    %c0_812 = arith.constant 0 : index
    %c0_813 = arith.constant 0 : index
    %1009 = vector.load %arg1[%c10_811, %c0_812, %c0_813] : memref<16x2x196xf32, #tpu.memory_space<vmem>>, vector<1x2x196xf32>
    %1010 = vector.shape_cast %1009 : vector<1x2x196xf32> to vector<2x196xf32>
    %1011 = vector.broadcast %1008 : f32 to vector<2x196xf32>
    %1012 = arith.mulf %1011, %1010 : vector<2x196xf32>
    %1013 = arith.addf %1007, %1012 : vector<2x196xf32>
    %c9_814 = arith.constant 9 : index
    %c11_815 = arith.constant 11 : index
    %1014 = memref.load %arg2[%c9_814, %c11_815] : memref<16x16xf32, #tpu.memory_space<smem>>
    %c11_816 = arith.constant 11 : index
    %c0_817 = arith.constant 0 : index
    %c0_818 = arith.constant 0 : index
    %1015 = vector.load %arg1[%c11_816, %c0_817, %c0_818] : memref<16x2x196xf32, #tpu.memory_space<vmem>>, vector<1x2x196xf32>
    %1016 = vector.shape_cast %1015 : vector<1x2x196xf32> to vector<2x196xf32>
    %1017 = vector.broadcast %1014 : f32 to vector<2x196xf32>
    %1018 = arith.mulf %1017, %1016 : vector<2x196xf32>
    %1019 = arith.addf %1013, %1018 : vector<2x196xf32>
    %c9_819 = arith.constant 9 : index
    %c12_820 = arith.constant 12 : index
    %1020 = memref.load %arg2[%c9_819, %c12_820] : memref<16x16xf32, #tpu.memory_space<smem>>
    %c12_821 = arith.constant 12 : index
    %c0_822 = arith.constant 0 : index
    %c0_823 = arith.constant 0 : index
    %1021 = vector.load %arg1[%c12_821, %c0_822, %c0_823] : memref<16x2x196xf32, #tpu.memory_space<vmem>>, vector<1x2x196xf32>
    %1022 = vector.shape_cast %1021 : vector<1x2x196xf32> to vector<2x196xf32>
    %1023 = vector.broadcast %1020 : f32 to vector<2x196xf32>
    %1024 = arith.mulf %1023, %1022 : vector<2x196xf32>
    %1025 = arith.addf %1019, %1024 : vector<2x196xf32>
    %c9_824 = arith.constant 9 : index
    %c13_825 = arith.constant 13 : index
    %1026 = memref.load %arg2[%c9_824, %c13_825] : memref<16x16xf32, #tpu.memory_space<smem>>
    %c13_826 = arith.constant 13 : index
    %c0_827 = arith.constant 0 : index
    %c0_828 = arith.constant 0 : index
    %1027 = vector.load %arg1[%c13_826, %c0_827, %c0_828] : memref<16x2x196xf32, #tpu.memory_space<vmem>>, vector<1x2x196xf32>
    %1028 = vector.shape_cast %1027 : vector<1x2x196xf32> to vector<2x196xf32>
    %1029 = vector.broadcast %1026 : f32 to vector<2x196xf32>
    %1030 = arith.mulf %1029, %1028 : vector<2x196xf32>
    %1031 = arith.addf %1025, %1030 : vector<2x196xf32>
    %c9_829 = arith.constant 9 : index
    %c14_830 = arith.constant 14 : index
    %1032 = memref.load %arg2[%c9_829, %c14_830] : memref<16x16xf32, #tpu.memory_space<smem>>
    %c14_831 = arith.constant 14 : index
    %c0_832 = arith.constant 0 : index
    %c0_833 = arith.constant 0 : index
    %1033 = vector.load %arg1[%c14_831, %c0_832, %c0_833] : memref<16x2x196xf32, #tpu.memory_space<vmem>>, vector<1x2x196xf32>
    %1034 = vector.shape_cast %1033 : vector<1x2x196xf32> to vector<2x196xf32>
    %1035 = vector.broadcast %1032 : f32 to vector<2x196xf32>
    %1036 = arith.mulf %1035, %1034 : vector<2x196xf32>
    %1037 = arith.addf %1031, %1036 : vector<2x196xf32>
    %c9_834 = arith.constant 9 : index
    %c15_835 = arith.constant 15 : index
    %1038 = memref.load %arg2[%c9_834, %c15_835] : memref<16x16xf32, #tpu.memory_space<smem>>
    %c15_836 = arith.constant 15 : index
    %c0_837 = arith.constant 0 : index
    %c0_838 = arith.constant 0 : index
    %1039 = vector.load %arg1[%c15_836, %c0_837, %c0_838] : memref<16x2x196xf32, #tpu.memory_space<vmem>>, vector<1x2x196xf32>
    %1040 = vector.shape_cast %1039 : vector<1x2x196xf32> to vector<2x196xf32>
    %1041 = vector.broadcast %1038 : f32 to vector<2x196xf32>
    %1042 = arith.mulf %1041, %1040 : vector<2x196xf32>
    %1043 = arith.addf %1037, %1042 : vector<2x196xf32>
    %cst_839 = arith.constant 0.000000e+00 : f32
    %1044 = vector.broadcast %cst_839 : f32 to vector<2x196xf32>
    %1045 = arith.maximumf %1043, %1044 : vector<2x196xf32>
    %1046 = arith.truncf %1045 : vector<2x196xf32> to vector<2x196xbf16>
    %c9_840 = arith.constant 9 : index
    %c0_841 = arith.constant 0 : index
    %c0_842 = arith.constant 0 : index
    %1047 = vector.load %arg4[%c9_840, %c0_841, %c0_842] : memref<16x196x128xbf16, #tpu.memory_space<vmem>>, vector<1x196x128xbf16>
    %1048 = vector.shape_cast %1047 : vector<1x196x128xbf16> to vector<196x128xbf16>
    %cst_843 = arith.constant dense<0.000000e+00> : vector<2x128xf32>
    %1049 = tpu.matmul %1046, %1048, %cst_843 {dimension_numbers = #tpu.dot_dimension_numbers<[1], [0], [0], [1], [0, 0, 1, 1], [], []>} : vector<2x196xbf16>, vector<196x128xbf16>, vector<2x128xf32> -> vector<2x128xf32>
    %1050 = arith.addf %945, %1049 : vector<2x128xf32>
    %c10_844 = arith.constant 10 : index
    %1051 = memref.load %arg3[%c10_844] : memref<16xf32, #tpu.memory_space<smem>>
    %1052 = vector.broadcast %1051 : f32 to vector<2x196xf32>
    %c10_845 = arith.constant 10 : index
    %c0_846 = arith.constant 0 : index
    %1053 = memref.load %arg2[%c10_845, %c0_846] : memref<16x16xf32, #tpu.memory_space<smem>>
    %c0_847 = arith.constant 0 : index
    %c0_848 = arith.constant 0 : index
    %c0_849 = arith.constant 0 : index
    %1054 = vector.load %arg1[%c0_847, %c0_848, %c0_849] : memref<16x2x196xf32, #tpu.memory_space<vmem>>, vector<1x2x196xf32>
    %1055 = vector.shape_cast %1054 : vector<1x2x196xf32> to vector<2x196xf32>
    %1056 = vector.broadcast %1053 : f32 to vector<2x196xf32>
    %1057 = arith.mulf %1056, %1055 : vector<2x196xf32>
    %1058 = arith.addf %1052, %1057 : vector<2x196xf32>
    %c10_850 = arith.constant 10 : index
    %c1_851 = arith.constant 1 : index
    %1059 = memref.load %arg2[%c10_850, %c1_851] : memref<16x16xf32, #tpu.memory_space<smem>>
    %c1_852 = arith.constant 1 : index
    %c0_853 = arith.constant 0 : index
    %c0_854 = arith.constant 0 : index
    %1060 = vector.load %arg1[%c1_852, %c0_853, %c0_854] : memref<16x2x196xf32, #tpu.memory_space<vmem>>, vector<1x2x196xf32>
    %1061 = vector.shape_cast %1060 : vector<1x2x196xf32> to vector<2x196xf32>
    %1062 = vector.broadcast %1059 : f32 to vector<2x196xf32>
    %1063 = arith.mulf %1062, %1061 : vector<2x196xf32>
    %1064 = arith.addf %1058, %1063 : vector<2x196xf32>
    %c10_855 = arith.constant 10 : index
    %c2_856 = arith.constant 2 : index
    %1065 = memref.load %arg2[%c10_855, %c2_856] : memref<16x16xf32, #tpu.memory_space<smem>>
    %c2_857 = arith.constant 2 : index
    %c0_858 = arith.constant 0 : index
    %c0_859 = arith.constant 0 : index
    %1066 = vector.load %arg1[%c2_857, %c0_858, %c0_859] : memref<16x2x196xf32, #tpu.memory_space<vmem>>, vector<1x2x196xf32>
    %1067 = vector.shape_cast %1066 : vector<1x2x196xf32> to vector<2x196xf32>
    %1068 = vector.broadcast %1065 : f32 to vector<2x196xf32>
    %1069 = arith.mulf %1068, %1067 : vector<2x196xf32>
    %1070 = arith.addf %1064, %1069 : vector<2x196xf32>
    %c10_860 = arith.constant 10 : index
    %c3_861 = arith.constant 3 : index
    %1071 = memref.load %arg2[%c10_860, %c3_861] : memref<16x16xf32, #tpu.memory_space<smem>>
    %c3_862 = arith.constant 3 : index
    %c0_863 = arith.constant 0 : index
    %c0_864 = arith.constant 0 : index
    %1072 = vector.load %arg1[%c3_862, %c0_863, %c0_864] : memref<16x2x196xf32, #tpu.memory_space<vmem>>, vector<1x2x196xf32>
    %1073 = vector.shape_cast %1072 : vector<1x2x196xf32> to vector<2x196xf32>
    %1074 = vector.broadcast %1071 : f32 to vector<2x196xf32>
    %1075 = arith.mulf %1074, %1073 : vector<2x196xf32>
    %1076 = arith.addf %1070, %1075 : vector<2x196xf32>
    %c10_865 = arith.constant 10 : index
    %c4_866 = arith.constant 4 : index
    %1077 = memref.load %arg2[%c10_865, %c4_866] : memref<16x16xf32, #tpu.memory_space<smem>>
    %c4_867 = arith.constant 4 : index
    %c0_868 = arith.constant 0 : index
    %c0_869 = arith.constant 0 : index
    %1078 = vector.load %arg1[%c4_867, %c0_868, %c0_869] : memref<16x2x196xf32, #tpu.memory_space<vmem>>, vector<1x2x196xf32>
    %1079 = vector.shape_cast %1078 : vector<1x2x196xf32> to vector<2x196xf32>
    %1080 = vector.broadcast %1077 : f32 to vector<2x196xf32>
    %1081 = arith.mulf %1080, %1079 : vector<2x196xf32>
    %1082 = arith.addf %1076, %1081 : vector<2x196xf32>
    %c10_870 = arith.constant 10 : index
    %c5_871 = arith.constant 5 : index
    %1083 = memref.load %arg2[%c10_870, %c5_871] : memref<16x16xf32, #tpu.memory_space<smem>>
    %c5_872 = arith.constant 5 : index
    %c0_873 = arith.constant 0 : index
    %c0_874 = arith.constant 0 : index
    %1084 = vector.load %arg1[%c5_872, %c0_873, %c0_874] : memref<16x2x196xf32, #tpu.memory_space<vmem>>, vector<1x2x196xf32>
    %1085 = vector.shape_cast %1084 : vector<1x2x196xf32> to vector<2x196xf32>
    %1086 = vector.broadcast %1083 : f32 to vector<2x196xf32>
    %1087 = arith.mulf %1086, %1085 : vector<2x196xf32>
    %1088 = arith.addf %1082, %1087 : vector<2x196xf32>
    %c10_875 = arith.constant 10 : index
    %c6_876 = arith.constant 6 : index
    %1089 = memref.load %arg2[%c10_875, %c6_876] : memref<16x16xf32, #tpu.memory_space<smem>>
    %c6_877 = arith.constant 6 : index
    %c0_878 = arith.constant 0 : index
    %c0_879 = arith.constant 0 : index
    %1090 = vector.load %arg1[%c6_877, %c0_878, %c0_879] : memref<16x2x196xf32, #tpu.memory_space<vmem>>, vector<1x2x196xf32>
    %1091 = vector.shape_cast %1090 : vector<1x2x196xf32> to vector<2x196xf32>
    %1092 = vector.broadcast %1089 : f32 to vector<2x196xf32>
    %1093 = arith.mulf %1092, %1091 : vector<2x196xf32>
    %1094 = arith.addf %1088, %1093 : vector<2x196xf32>
    %c10_880 = arith.constant 10 : index
    %c7_881 = arith.constant 7 : index
    %1095 = memref.load %arg2[%c10_880, %c7_881] : memref<16x16xf32, #tpu.memory_space<smem>>
    %c7_882 = arith.constant 7 : index
    %c0_883 = arith.constant 0 : index
    %c0_884 = arith.constant 0 : index
    %1096 = vector.load %arg1[%c7_882, %c0_883, %c0_884] : memref<16x2x196xf32, #tpu.memory_space<vmem>>, vector<1x2x196xf32>
    %1097 = vector.shape_cast %1096 : vector<1x2x196xf32> to vector<2x196xf32>
    %1098 = vector.broadcast %1095 : f32 to vector<2x196xf32>
    %1099 = arith.mulf %1098, %1097 : vector<2x196xf32>
    %1100 = arith.addf %1094, %1099 : vector<2x196xf32>
    %c10_885 = arith.constant 10 : index
    %c8_886 = arith.constant 8 : index
    %1101 = memref.load %arg2[%c10_885, %c8_886] : memref<16x16xf32, #tpu.memory_space<smem>>
    %c8_887 = arith.constant 8 : index
    %c0_888 = arith.constant 0 : index
    %c0_889 = arith.constant 0 : index
    %1102 = vector.load %arg1[%c8_887, %c0_888, %c0_889] : memref<16x2x196xf32, #tpu.memory_space<vmem>>, vector<1x2x196xf32>
    %1103 = vector.shape_cast %1102 : vector<1x2x196xf32> to vector<2x196xf32>
    %1104 = vector.broadcast %1101 : f32 to vector<2x196xf32>
    %1105 = arith.mulf %1104, %1103 : vector<2x196xf32>
    %1106 = arith.addf %1100, %1105 : vector<2x196xf32>
    %c10_890 = arith.constant 10 : index
    %c9_891 = arith.constant 9 : index
    %1107 = memref.load %arg2[%c10_890, %c9_891] : memref<16x16xf32, #tpu.memory_space<smem>>
    %c9_892 = arith.constant 9 : index
    %c0_893 = arith.constant 0 : index
    %c0_894 = arith.constant 0 : index
    %1108 = vector.load %arg1[%c9_892, %c0_893, %c0_894] : memref<16x2x196xf32, #tpu.memory_space<vmem>>, vector<1x2x196xf32>
    %1109 = vector.shape_cast %1108 : vector<1x2x196xf32> to vector<2x196xf32>
    %1110 = vector.broadcast %1107 : f32 to vector<2x196xf32>
    %1111 = arith.mulf %1110, %1109 : vector<2x196xf32>
    %1112 = arith.addf %1106, %1111 : vector<2x196xf32>
    %c10_895 = arith.constant 10 : index
    %c10_896 = arith.constant 10 : index
    %1113 = memref.load %arg2[%c10_895, %c10_896] : memref<16x16xf32, #tpu.memory_space<smem>>
    %c10_897 = arith.constant 10 : index
    %c0_898 = arith.constant 0 : index
    %c0_899 = arith.constant 0 : index
    %1114 = vector.load %arg1[%c10_897, %c0_898, %c0_899] : memref<16x2x196xf32, #tpu.memory_space<vmem>>, vector<1x2x196xf32>
    %1115 = vector.shape_cast %1114 : vector<1x2x196xf32> to vector<2x196xf32>
    %1116 = vector.broadcast %1113 : f32 to vector<2x196xf32>
    %1117 = arith.mulf %1116, %1115 : vector<2x196xf32>
    %1118 = arith.addf %1112, %1117 : vector<2x196xf32>
    %c10_900 = arith.constant 10 : index
    %c11_901 = arith.constant 11 : index
    %1119 = memref.load %arg2[%c10_900, %c11_901] : memref<16x16xf32, #tpu.memory_space<smem>>
    %c11_902 = arith.constant 11 : index
    %c0_903 = arith.constant 0 : index
    %c0_904 = arith.constant 0 : index
    %1120 = vector.load %arg1[%c11_902, %c0_903, %c0_904] : memref<16x2x196xf32, #tpu.memory_space<vmem>>, vector<1x2x196xf32>
    %1121 = vector.shape_cast %1120 : vector<1x2x196xf32> to vector<2x196xf32>
    %1122 = vector.broadcast %1119 : f32 to vector<2x196xf32>
    %1123 = arith.mulf %1122, %1121 : vector<2x196xf32>
    %1124 = arith.addf %1118, %1123 : vector<2x196xf32>
    %c10_905 = arith.constant 10 : index
    %c12_906 = arith.constant 12 : index
    %1125 = memref.load %arg2[%c10_905, %c12_906] : memref<16x16xf32, #tpu.memory_space<smem>>
    %c12_907 = arith.constant 12 : index
    %c0_908 = arith.constant 0 : index
    %c0_909 = arith.constant 0 : index
    %1126 = vector.load %arg1[%c12_907, %c0_908, %c0_909] : memref<16x2x196xf32, #tpu.memory_space<vmem>>, vector<1x2x196xf32>
    %1127 = vector.shape_cast %1126 : vector<1x2x196xf32> to vector<2x196xf32>
    %1128 = vector.broadcast %1125 : f32 to vector<2x196xf32>
    %1129 = arith.mulf %1128, %1127 : vector<2x196xf32>
    %1130 = arith.addf %1124, %1129 : vector<2x196xf32>
    %c10_910 = arith.constant 10 : index
    %c13_911 = arith.constant 13 : index
    %1131 = memref.load %arg2[%c10_910, %c13_911] : memref<16x16xf32, #tpu.memory_space<smem>>
    %c13_912 = arith.constant 13 : index
    %c0_913 = arith.constant 0 : index
    %c0_914 = arith.constant 0 : index
    %1132 = vector.load %arg1[%c13_912, %c0_913, %c0_914] : memref<16x2x196xf32, #tpu.memory_space<vmem>>, vector<1x2x196xf32>
    %1133 = vector.shape_cast %1132 : vector<1x2x196xf32> to vector<2x196xf32>
    %1134 = vector.broadcast %1131 : f32 to vector<2x196xf32>
    %1135 = arith.mulf %1134, %1133 : vector<2x196xf32>
    %1136 = arith.addf %1130, %1135 : vector<2x196xf32>
    %c10_915 = arith.constant 10 : index
    %c14_916 = arith.constant 14 : index
    %1137 = memref.load %arg2[%c10_915, %c14_916] : memref<16x16xf32, #tpu.memory_space<smem>>
    %c14_917 = arith.constant 14 : index
    %c0_918 = arith.constant 0 : index
    %c0_919 = arith.constant 0 : index
    %1138 = vector.load %arg1[%c14_917, %c0_918, %c0_919] : memref<16x2x196xf32, #tpu.memory_space<vmem>>, vector<1x2x196xf32>
    %1139 = vector.shape_cast %1138 : vector<1x2x196xf32> to vector<2x196xf32>
    %1140 = vector.broadcast %1137 : f32 to vector<2x196xf32>
    %1141 = arith.mulf %1140, %1139 : vector<2x196xf32>
    %1142 = arith.addf %1136, %1141 : vector<2x196xf32>
    %c10_920 = arith.constant 10 : index
    %c15_921 = arith.constant 15 : index
    %1143 = memref.load %arg2[%c10_920, %c15_921] : memref<16x16xf32, #tpu.memory_space<smem>>
    %c15_922 = arith.constant 15 : index
    %c0_923 = arith.constant 0 : index
    %c0_924 = arith.constant 0 : index
    %1144 = vector.load %arg1[%c15_922, %c0_923, %c0_924] : memref<16x2x196xf32, #tpu.memory_space<vmem>>, vector<1x2x196xf32>
    %1145 = vector.shape_cast %1144 : vector<1x2x196xf32> to vector<2x196xf32>
    %1146 = vector.broadcast %1143 : f32 to vector<2x196xf32>
    %1147 = arith.mulf %1146, %1145 : vector<2x196xf32>
    %1148 = arith.addf %1142, %1147 : vector<2x196xf32>
    %cst_925 = arith.constant 0.000000e+00 : f32
    %1149 = vector.broadcast %cst_925 : f32 to vector<2x196xf32>
    %1150 = arith.maximumf %1148, %1149 : vector<2x196xf32>
    %1151 = arith.truncf %1150 : vector<2x196xf32> to vector<2x196xbf16>
    %c10_926 = arith.constant 10 : index
    %c0_927 = arith.constant 0 : index
    %c0_928 = arith.constant 0 : index
    %1152 = vector.load %arg4[%c10_926, %c0_927, %c0_928] : memref<16x196x128xbf16, #tpu.memory_space<vmem>>, vector<1x196x128xbf16>
    %1153 = vector.shape_cast %1152 : vector<1x196x128xbf16> to vector<196x128xbf16>
    %cst_929 = arith.constant dense<0.000000e+00> : vector<2x128xf32>
    %1154 = tpu.matmul %1151, %1153, %cst_929 {dimension_numbers = #tpu.dot_dimension_numbers<[1], [0], [0], [1], [0, 0, 1, 1], [], []>} : vector<2x196xbf16>, vector<196x128xbf16>, vector<2x128xf32> -> vector<2x128xf32>
    %1155 = arith.addf %1050, %1154 : vector<2x128xf32>
    %c11_930 = arith.constant 11 : index
    %1156 = memref.load %arg3[%c11_930] : memref<16xf32, #tpu.memory_space<smem>>
    %1157 = vector.broadcast %1156 : f32 to vector<2x196xf32>
    %c11_931 = arith.constant 11 : index
    %c0_932 = arith.constant 0 : index
    %1158 = memref.load %arg2[%c11_931, %c0_932] : memref<16x16xf32, #tpu.memory_space<smem>>
    %c0_933 = arith.constant 0 : index
    %c0_934 = arith.constant 0 : index
    %c0_935 = arith.constant 0 : index
    %1159 = vector.load %arg1[%c0_933, %c0_934, %c0_935] : memref<16x2x196xf32, #tpu.memory_space<vmem>>, vector<1x2x196xf32>
    %1160 = vector.shape_cast %1159 : vector<1x2x196xf32> to vector<2x196xf32>
    %1161 = vector.broadcast %1158 : f32 to vector<2x196xf32>
    %1162 = arith.mulf %1161, %1160 : vector<2x196xf32>
    %1163 = arith.addf %1157, %1162 : vector<2x196xf32>
    %c11_936 = arith.constant 11 : index
    %c1_937 = arith.constant 1 : index
    %1164 = memref.load %arg2[%c11_936, %c1_937] : memref<16x16xf32, #tpu.memory_space<smem>>
    %c1_938 = arith.constant 1 : index
    %c0_939 = arith.constant 0 : index
    %c0_940 = arith.constant 0 : index
    %1165 = vector.load %arg1[%c1_938, %c0_939, %c0_940] : memref<16x2x196xf32, #tpu.memory_space<vmem>>, vector<1x2x196xf32>
    %1166 = vector.shape_cast %1165 : vector<1x2x196xf32> to vector<2x196xf32>
    %1167 = vector.broadcast %1164 : f32 to vector<2x196xf32>
    %1168 = arith.mulf %1167, %1166 : vector<2x196xf32>
    %1169 = arith.addf %1163, %1168 : vector<2x196xf32>
    %c11_941 = arith.constant 11 : index
    %c2_942 = arith.constant 2 : index
    %1170 = memref.load %arg2[%c11_941, %c2_942] : memref<16x16xf32, #tpu.memory_space<smem>>
    %c2_943 = arith.constant 2 : index
    %c0_944 = arith.constant 0 : index
    %c0_945 = arith.constant 0 : index
    %1171 = vector.load %arg1[%c2_943, %c0_944, %c0_945] : memref<16x2x196xf32, #tpu.memory_space<vmem>>, vector<1x2x196xf32>
    %1172 = vector.shape_cast %1171 : vector<1x2x196xf32> to vector<2x196xf32>
    %1173 = vector.broadcast %1170 : f32 to vector<2x196xf32>
    %1174 = arith.mulf %1173, %1172 : vector<2x196xf32>
    %1175 = arith.addf %1169, %1174 : vector<2x196xf32>
    %c11_946 = arith.constant 11 : index
    %c3_947 = arith.constant 3 : index
    %1176 = memref.load %arg2[%c11_946, %c3_947] : memref<16x16xf32, #tpu.memory_space<smem>>
    %c3_948 = arith.constant 3 : index
    %c0_949 = arith.constant 0 : index
    %c0_950 = arith.constant 0 : index
    %1177 = vector.load %arg1[%c3_948, %c0_949, %c0_950] : memref<16x2x196xf32, #tpu.memory_space<vmem>>, vector<1x2x196xf32>
    %1178 = vector.shape_cast %1177 : vector<1x2x196xf32> to vector<2x196xf32>
    %1179 = vector.broadcast %1176 : f32 to vector<2x196xf32>
    %1180 = arith.mulf %1179, %1178 : vector<2x196xf32>
    %1181 = arith.addf %1175, %1180 : vector<2x196xf32>
    %c11_951 = arith.constant 11 : index
    %c4_952 = arith.constant 4 : index
    %1182 = memref.load %arg2[%c11_951, %c4_952] : memref<16x16xf32, #tpu.memory_space<smem>>
    %c4_953 = arith.constant 4 : index
    %c0_954 = arith.constant 0 : index
    %c0_955 = arith.constant 0 : index
    %1183 = vector.load %arg1[%c4_953, %c0_954, %c0_955] : memref<16x2x196xf32, #tpu.memory_space<vmem>>, vector<1x2x196xf32>
    %1184 = vector.shape_cast %1183 : vector<1x2x196xf32> to vector<2x196xf32>
    %1185 = vector.broadcast %1182 : f32 to vector<2x196xf32>
    %1186 = arith.mulf %1185, %1184 : vector<2x196xf32>
    %1187 = arith.addf %1181, %1186 : vector<2x196xf32>
    %c11_956 = arith.constant 11 : index
    %c5_957 = arith.constant 5 : index
    %1188 = memref.load %arg2[%c11_956, %c5_957] : memref<16x16xf32, #tpu.memory_space<smem>>
    %c5_958 = arith.constant 5 : index
    %c0_959 = arith.constant 0 : index
    %c0_960 = arith.constant 0 : index
    %1189 = vector.load %arg1[%c5_958, %c0_959, %c0_960] : memref<16x2x196xf32, #tpu.memory_space<vmem>>, vector<1x2x196xf32>
    %1190 = vector.shape_cast %1189 : vector<1x2x196xf32> to vector<2x196xf32>
    %1191 = vector.broadcast %1188 : f32 to vector<2x196xf32>
    %1192 = arith.mulf %1191, %1190 : vector<2x196xf32>
    %1193 = arith.addf %1187, %1192 : vector<2x196xf32>
    %c11_961 = arith.constant 11 : index
    %c6_962 = arith.constant 6 : index
    %1194 = memref.load %arg2[%c11_961, %c6_962] : memref<16x16xf32, #tpu.memory_space<smem>>
    %c6_963 = arith.constant 6 : index
    %c0_964 = arith.constant 0 : index
    %c0_965 = arith.constant 0 : index
    %1195 = vector.load %arg1[%c6_963, %c0_964, %c0_965] : memref<16x2x196xf32, #tpu.memory_space<vmem>>, vector<1x2x196xf32>
    %1196 = vector.shape_cast %1195 : vector<1x2x196xf32> to vector<2x196xf32>
    %1197 = vector.broadcast %1194 : f32 to vector<2x196xf32>
    %1198 = arith.mulf %1197, %1196 : vector<2x196xf32>
    %1199 = arith.addf %1193, %1198 : vector<2x196xf32>
    %c11_966 = arith.constant 11 : index
    %c7_967 = arith.constant 7 : index
    %1200 = memref.load %arg2[%c11_966, %c7_967] : memref<16x16xf32, #tpu.memory_space<smem>>
    %c7_968 = arith.constant 7 : index
    %c0_969 = arith.constant 0 : index
    %c0_970 = arith.constant 0 : index
    %1201 = vector.load %arg1[%c7_968, %c0_969, %c0_970] : memref<16x2x196xf32, #tpu.memory_space<vmem>>, vector<1x2x196xf32>
    %1202 = vector.shape_cast %1201 : vector<1x2x196xf32> to vector<2x196xf32>
    %1203 = vector.broadcast %1200 : f32 to vector<2x196xf32>
    %1204 = arith.mulf %1203, %1202 : vector<2x196xf32>
    %1205 = arith.addf %1199, %1204 : vector<2x196xf32>
    %c11_971 = arith.constant 11 : index
    %c8_972 = arith.constant 8 : index
    %1206 = memref.load %arg2[%c11_971, %c8_972] : memref<16x16xf32, #tpu.memory_space<smem>>
    %c8_973 = arith.constant 8 : index
    %c0_974 = arith.constant 0 : index
    %c0_975 = arith.constant 0 : index
    %1207 = vector.load %arg1[%c8_973, %c0_974, %c0_975] : memref<16x2x196xf32, #tpu.memory_space<vmem>>, vector<1x2x196xf32>
    %1208 = vector.shape_cast %1207 : vector<1x2x196xf32> to vector<2x196xf32>
    %1209 = vector.broadcast %1206 : f32 to vector<2x196xf32>
    %1210 = arith.mulf %1209, %1208 : vector<2x196xf32>
    %1211 = arith.addf %1205, %1210 : vector<2x196xf32>
    %c11_976 = arith.constant 11 : index
    %c9_977 = arith.constant 9 : index
    %1212 = memref.load %arg2[%c11_976, %c9_977] : memref<16x16xf32, #tpu.memory_space<smem>>
    %c9_978 = arith.constant 9 : index
    %c0_979 = arith.constant 0 : index
    %c0_980 = arith.constant 0 : index
    %1213 = vector.load %arg1[%c9_978, %c0_979, %c0_980] : memref<16x2x196xf32, #tpu.memory_space<vmem>>, vector<1x2x196xf32>
    %1214 = vector.shape_cast %1213 : vector<1x2x196xf32> to vector<2x196xf32>
    %1215 = vector.broadcast %1212 : f32 to vector<2x196xf32>
    %1216 = arith.mulf %1215, %1214 : vector<2x196xf32>
    %1217 = arith.addf %1211, %1216 : vector<2x196xf32>
    %c11_981 = arith.constant 11 : index
    %c10_982 = arith.constant 10 : index
    %1218 = memref.load %arg2[%c11_981, %c10_982] : memref<16x16xf32, #tpu.memory_space<smem>>
    %c10_983 = arith.constant 10 : index
    %c0_984 = arith.constant 0 : index
    %c0_985 = arith.constant 0 : index
    %1219 = vector.load %arg1[%c10_983, %c0_984, %c0_985] : memref<16x2x196xf32, #tpu.memory_space<vmem>>, vector<1x2x196xf32>
    %1220 = vector.shape_cast %1219 : vector<1x2x196xf32> to vector<2x196xf32>
    %1221 = vector.broadcast %1218 : f32 to vector<2x196xf32>
    %1222 = arith.mulf %1221, %1220 : vector<2x196xf32>
    %1223 = arith.addf %1217, %1222 : vector<2x196xf32>
    %c11_986 = arith.constant 11 : index
    %c11_987 = arith.constant 11 : index
    %1224 = memref.load %arg2[%c11_986, %c11_987] : memref<16x16xf32, #tpu.memory_space<smem>>
    %c11_988 = arith.constant 11 : index
    %c0_989 = arith.constant 0 : index
    %c0_990 = arith.constant 0 : index
    %1225 = vector.load %arg1[%c11_988, %c0_989, %c0_990] : memref<16x2x196xf32, #tpu.memory_space<vmem>>, vector<1x2x196xf32>
    %1226 = vector.shape_cast %1225 : vector<1x2x196xf32> to vector<2x196xf32>
    %1227 = vector.broadcast %1224 : f32 to vector<2x196xf32>
    %1228 = arith.mulf %1227, %1226 : vector<2x196xf32>
    %1229 = arith.addf %1223, %1228 : vector<2x196xf32>
    %c11_991 = arith.constant 11 : index
    %c12_992 = arith.constant 12 : index
    %1230 = memref.load %arg2[%c11_991, %c12_992] : memref<16x16xf32, #tpu.memory_space<smem>>
    %c12_993 = arith.constant 12 : index
    %c0_994 = arith.constant 0 : index
    %c0_995 = arith.constant 0 : index
    %1231 = vector.load %arg1[%c12_993, %c0_994, %c0_995] : memref<16x2x196xf32, #tpu.memory_space<vmem>>, vector<1x2x196xf32>
    %1232 = vector.shape_cast %1231 : vector<1x2x196xf32> to vector<2x196xf32>
    %1233 = vector.broadcast %1230 : f32 to vector<2x196xf32>
    %1234 = arith.mulf %1233, %1232 : vector<2x196xf32>
    %1235 = arith.addf %1229, %1234 : vector<2x196xf32>
    %c11_996 = arith.constant 11 : index
    %c13_997 = arith.constant 13 : index
    %1236 = memref.load %arg2[%c11_996, %c13_997] : memref<16x16xf32, #tpu.memory_space<smem>>
    %c13_998 = arith.constant 13 : index
    %c0_999 = arith.constant 0 : index
    %c0_1000 = arith.constant 0 : index
    %1237 = vector.load %arg1[%c13_998, %c0_999, %c0_1000] : memref<16x2x196xf32, #tpu.memory_space<vmem>>, vector<1x2x196xf32>
    %1238 = vector.shape_cast %1237 : vector<1x2x196xf32> to vector<2x196xf32>
    %1239 = vector.broadcast %1236 : f32 to vector<2x196xf32>
    %1240 = arith.mulf %1239, %1238 : vector<2x196xf32>
    %1241 = arith.addf %1235, %1240 : vector<2x196xf32>
    %c11_1001 = arith.constant 11 : index
    %c14_1002 = arith.constant 14 : index
    %1242 = memref.load %arg2[%c11_1001, %c14_1002] : memref<16x16xf32, #tpu.memory_space<smem>>
    %c14_1003 = arith.constant 14 : index
    %c0_1004 = arith.constant 0 : index
    %c0_1005 = arith.constant 0 : index
    %1243 = vector.load %arg1[%c14_1003, %c0_1004, %c0_1005] : memref<16x2x196xf32, #tpu.memory_space<vmem>>, vector<1x2x196xf32>
    %1244 = vector.shape_cast %1243 : vector<1x2x196xf32> to vector<2x196xf32>
    %1245 = vector.broadcast %1242 : f32 to vector<2x196xf32>
    %1246 = arith.mulf %1245, %1244 : vector<2x196xf32>
    %1247 = arith.addf %1241, %1246 : vector<2x196xf32>
    %c11_1006 = arith.constant 11 : index
    %c15_1007 = arith.constant 15 : index
    %1248 = memref.load %arg2[%c11_1006, %c15_1007] : memref<16x16xf32, #tpu.memory_space<smem>>
    %c15_1008 = arith.constant 15 : index
    %c0_1009 = arith.constant 0 : index
    %c0_1010 = arith.constant 0 : index
    %1249 = vector.load %arg1[%c15_1008, %c0_1009, %c0_1010] : memref<16x2x196xf32, #tpu.memory_space<vmem>>, vector<1x2x196xf32>
    %1250 = vector.shape_cast %1249 : vector<1x2x196xf32> to vector<2x196xf32>
    %1251 = vector.broadcast %1248 : f32 to vector<2x196xf32>
    %1252 = arith.mulf %1251, %1250 : vector<2x196xf32>
    %1253 = arith.addf %1247, %1252 : vector<2x196xf32>
    %cst_1011 = arith.constant 0.000000e+00 : f32
    %1254 = vector.broadcast %cst_1011 : f32 to vector<2x196xf32>
    %1255 = arith.maximumf %1253, %1254 : vector<2x196xf32>
    %1256 = arith.truncf %1255 : vector<2x196xf32> to vector<2x196xbf16>
    %c11_1012 = arith.constant 11 : index
    %c0_1013 = arith.constant 0 : index
    %c0_1014 = arith.constant 0 : index
    %1257 = vector.load %arg4[%c11_1012, %c0_1013, %c0_1014] : memref<16x196x128xbf16, #tpu.memory_space<vmem>>, vector<1x196x128xbf16>
    %1258 = vector.shape_cast %1257 : vector<1x196x128xbf16> to vector<196x128xbf16>
    %cst_1015 = arith.constant dense<0.000000e+00> : vector<2x128xf32>
    %1259 = tpu.matmul %1256, %1258, %cst_1015 {dimension_numbers = #tpu.dot_dimension_numbers<[1], [0], [0], [1], [0, 0, 1, 1], [], []>} : vector<2x196xbf16>, vector<196x128xbf16>, vector<2x128xf32> -> vector<2x128xf32>
    %1260 = arith.addf %1155, %1259 : vector<2x128xf32>
    %c12_1016 = arith.constant 12 : index
    %1261 = memref.load %arg3[%c12_1016] : memref<16xf32, #tpu.memory_space<smem>>
    %1262 = vector.broadcast %1261 : f32 to vector<2x196xf32>
    %c12_1017 = arith.constant 12 : index
    %c0_1018 = arith.constant 0 : index
    %1263 = memref.load %arg2[%c12_1017, %c0_1018] : memref<16x16xf32, #tpu.memory_space<smem>>
    %c0_1019 = arith.constant 0 : index
    %c0_1020 = arith.constant 0 : index
    %c0_1021 = arith.constant 0 : index
    %1264 = vector.load %arg1[%c0_1019, %c0_1020, %c0_1021] : memref<16x2x196xf32, #tpu.memory_space<vmem>>, vector<1x2x196xf32>
    %1265 = vector.shape_cast %1264 : vector<1x2x196xf32> to vector<2x196xf32>
    %1266 = vector.broadcast %1263 : f32 to vector<2x196xf32>
    %1267 = arith.mulf %1266, %1265 : vector<2x196xf32>
    %1268 = arith.addf %1262, %1267 : vector<2x196xf32>
    %c12_1022 = arith.constant 12 : index
    %c1_1023 = arith.constant 1 : index
    %1269 = memref.load %arg2[%c12_1022, %c1_1023] : memref<16x16xf32, #tpu.memory_space<smem>>
    %c1_1024 = arith.constant 1 : index
    %c0_1025 = arith.constant 0 : index
    %c0_1026 = arith.constant 0 : index
    %1270 = vector.load %arg1[%c1_1024, %c0_1025, %c0_1026] : memref<16x2x196xf32, #tpu.memory_space<vmem>>, vector<1x2x196xf32>
    %1271 = vector.shape_cast %1270 : vector<1x2x196xf32> to vector<2x196xf32>
    %1272 = vector.broadcast %1269 : f32 to vector<2x196xf32>
    %1273 = arith.mulf %1272, %1271 : vector<2x196xf32>
    %1274 = arith.addf %1268, %1273 : vector<2x196xf32>
    %c12_1027 = arith.constant 12 : index
    %c2_1028 = arith.constant 2 : index
    %1275 = memref.load %arg2[%c12_1027, %c2_1028] : memref<16x16xf32, #tpu.memory_space<smem>>
    %c2_1029 = arith.constant 2 : index
    %c0_1030 = arith.constant 0 : index
    %c0_1031 = arith.constant 0 : index
    %1276 = vector.load %arg1[%c2_1029, %c0_1030, %c0_1031] : memref<16x2x196xf32, #tpu.memory_space<vmem>>, vector<1x2x196xf32>
    %1277 = vector.shape_cast %1276 : vector<1x2x196xf32> to vector<2x196xf32>
    %1278 = vector.broadcast %1275 : f32 to vector<2x196xf32>
    %1279 = arith.mulf %1278, %1277 : vector<2x196xf32>
    %1280 = arith.addf %1274, %1279 : vector<2x196xf32>
    %c12_1032 = arith.constant 12 : index
    %c3_1033 = arith.constant 3 : index
    %1281 = memref.load %arg2[%c12_1032, %c3_1033] : memref<16x16xf32, #tpu.memory_space<smem>>
    %c3_1034 = arith.constant 3 : index
    %c0_1035 = arith.constant 0 : index
    %c0_1036 = arith.constant 0 : index
    %1282 = vector.load %arg1[%c3_1034, %c0_1035, %c0_1036] : memref<16x2x196xf32, #tpu.memory_space<vmem>>, vector<1x2x196xf32>
    %1283 = vector.shape_cast %1282 : vector<1x2x196xf32> to vector<2x196xf32>
    %1284 = vector.broadcast %1281 : f32 to vector<2x196xf32>
    %1285 = arith.mulf %1284, %1283 : vector<2x196xf32>
    %1286 = arith.addf %1280, %1285 : vector<2x196xf32>
    %c12_1037 = arith.constant 12 : index
    %c4_1038 = arith.constant 4 : index
    %1287 = memref.load %arg2[%c12_1037, %c4_1038] : memref<16x16xf32, #tpu.memory_space<smem>>
    %c4_1039 = arith.constant 4 : index
    %c0_1040 = arith.constant 0 : index
    %c0_1041 = arith.constant 0 : index
    %1288 = vector.load %arg1[%c4_1039, %c0_1040, %c0_1041] : memref<16x2x196xf32, #tpu.memory_space<vmem>>, vector<1x2x196xf32>
    %1289 = vector.shape_cast %1288 : vector<1x2x196xf32> to vector<2x196xf32>
    %1290 = vector.broadcast %1287 : f32 to vector<2x196xf32>
    %1291 = arith.mulf %1290, %1289 : vector<2x196xf32>
    %1292 = arith.addf %1286, %1291 : vector<2x196xf32>
    %c12_1042 = arith.constant 12 : index
    %c5_1043 = arith.constant 5 : index
    %1293 = memref.load %arg2[%c12_1042, %c5_1043] : memref<16x16xf32, #tpu.memory_space<smem>>
    %c5_1044 = arith.constant 5 : index
    %c0_1045 = arith.constant 0 : index
    %c0_1046 = arith.constant 0 : index
    %1294 = vector.load %arg1[%c5_1044, %c0_1045, %c0_1046] : memref<16x2x196xf32, #tpu.memory_space<vmem>>, vector<1x2x196xf32>
    %1295 = vector.shape_cast %1294 : vector<1x2x196xf32> to vector<2x196xf32>
    %1296 = vector.broadcast %1293 : f32 to vector<2x196xf32>
    %1297 = arith.mulf %1296, %1295 : vector<2x196xf32>
    %1298 = arith.addf %1292, %1297 : vector<2x196xf32>
    %c12_1047 = arith.constant 12 : index
    %c6_1048 = arith.constant 6 : index
    %1299 = memref.load %arg2[%c12_1047, %c6_1048] : memref<16x16xf32, #tpu.memory_space<smem>>
    %c6_1049 = arith.constant 6 : index
    %c0_1050 = arith.constant 0 : index
    %c0_1051 = arith.constant 0 : index
    %1300 = vector.load %arg1[%c6_1049, %c0_1050, %c0_1051] : memref<16x2x196xf32, #tpu.memory_space<vmem>>, vector<1x2x196xf32>
    %1301 = vector.shape_cast %1300 : vector<1x2x196xf32> to vector<2x196xf32>
    %1302 = vector.broadcast %1299 : f32 to vector<2x196xf32>
    %1303 = arith.mulf %1302, %1301 : vector<2x196xf32>
    %1304 = arith.addf %1298, %1303 : vector<2x196xf32>
    %c12_1052 = arith.constant 12 : index
    %c7_1053 = arith.constant 7 : index
    %1305 = memref.load %arg2[%c12_1052, %c7_1053] : memref<16x16xf32, #tpu.memory_space<smem>>
    %c7_1054 = arith.constant 7 : index
    %c0_1055 = arith.constant 0 : index
    %c0_1056 = arith.constant 0 : index
    %1306 = vector.load %arg1[%c7_1054, %c0_1055, %c0_1056] : memref<16x2x196xf32, #tpu.memory_space<vmem>>, vector<1x2x196xf32>
    %1307 = vector.shape_cast %1306 : vector<1x2x196xf32> to vector<2x196xf32>
    %1308 = vector.broadcast %1305 : f32 to vector<2x196xf32>
    %1309 = arith.mulf %1308, %1307 : vector<2x196xf32>
    %1310 = arith.addf %1304, %1309 : vector<2x196xf32>
    %c12_1057 = arith.constant 12 : index
    %c8_1058 = arith.constant 8 : index
    %1311 = memref.load %arg2[%c12_1057, %c8_1058] : memref<16x16xf32, #tpu.memory_space<smem>>
    %c8_1059 = arith.constant 8 : index
    %c0_1060 = arith.constant 0 : index
    %c0_1061 = arith.constant 0 : index
    %1312 = vector.load %arg1[%c8_1059, %c0_1060, %c0_1061] : memref<16x2x196xf32, #tpu.memory_space<vmem>>, vector<1x2x196xf32>
    %1313 = vector.shape_cast %1312 : vector<1x2x196xf32> to vector<2x196xf32>
    %1314 = vector.broadcast %1311 : f32 to vector<2x196xf32>
    %1315 = arith.mulf %1314, %1313 : vector<2x196xf32>
    %1316 = arith.addf %1310, %1315 : vector<2x196xf32>
    %c12_1062 = arith.constant 12 : index
    %c9_1063 = arith.constant 9 : index
    %1317 = memref.load %arg2[%c12_1062, %c9_1063] : memref<16x16xf32, #tpu.memory_space<smem>>
    %c9_1064 = arith.constant 9 : index
    %c0_1065 = arith.constant 0 : index
    %c0_1066 = arith.constant 0 : index
    %1318 = vector.load %arg1[%c9_1064, %c0_1065, %c0_1066] : memref<16x2x196xf32, #tpu.memory_space<vmem>>, vector<1x2x196xf32>
    %1319 = vector.shape_cast %1318 : vector<1x2x196xf32> to vector<2x196xf32>
    %1320 = vector.broadcast %1317 : f32 to vector<2x196xf32>
    %1321 = arith.mulf %1320, %1319 : vector<2x196xf32>
    %1322 = arith.addf %1316, %1321 : vector<2x196xf32>
    %c12_1067 = arith.constant 12 : index
    %c10_1068 = arith.constant 10 : index
    %1323 = memref.load %arg2[%c12_1067, %c10_1068] : memref<16x16xf32, #tpu.memory_space<smem>>
    %c10_1069 = arith.constant 10 : index
    %c0_1070 = arith.constant 0 : index
    %c0_1071 = arith.constant 0 : index
    %1324 = vector.load %arg1[%c10_1069, %c0_1070, %c0_1071] : memref<16x2x196xf32, #tpu.memory_space<vmem>>, vector<1x2x196xf32>
    %1325 = vector.shape_cast %1324 : vector<1x2x196xf32> to vector<2x196xf32>
    %1326 = vector.broadcast %1323 : f32 to vector<2x196xf32>
    %1327 = arith.mulf %1326, %1325 : vector<2x196xf32>
    %1328 = arith.addf %1322, %1327 : vector<2x196xf32>
    %c12_1072 = arith.constant 12 : index
    %c11_1073 = arith.constant 11 : index
    %1329 = memref.load %arg2[%c12_1072, %c11_1073] : memref<16x16xf32, #tpu.memory_space<smem>>
    %c11_1074 = arith.constant 11 : index
    %c0_1075 = arith.constant 0 : index
    %c0_1076 = arith.constant 0 : index
    %1330 = vector.load %arg1[%c11_1074, %c0_1075, %c0_1076] : memref<16x2x196xf32, #tpu.memory_space<vmem>>, vector<1x2x196xf32>
    %1331 = vector.shape_cast %1330 : vector<1x2x196xf32> to vector<2x196xf32>
    %1332 = vector.broadcast %1329 : f32 to vector<2x196xf32>
    %1333 = arith.mulf %1332, %1331 : vector<2x196xf32>
    %1334 = arith.addf %1328, %1333 : vector<2x196xf32>
    %c12_1077 = arith.constant 12 : index
    %c12_1078 = arith.constant 12 : index
    %1335 = memref.load %arg2[%c12_1077, %c12_1078] : memref<16x16xf32, #tpu.memory_space<smem>>
    %c12_1079 = arith.constant 12 : index
    %c0_1080 = arith.constant 0 : index
    %c0_1081 = arith.constant 0 : index
    %1336 = vector.load %arg1[%c12_1079, %c0_1080, %c0_1081] : memref<16x2x196xf32, #tpu.memory_space<vmem>>, vector<1x2x196xf32>
    %1337 = vector.shape_cast %1336 : vector<1x2x196xf32> to vector<2x196xf32>
    %1338 = vector.broadcast %1335 : f32 to vector<2x196xf32>
    %1339 = arith.mulf %1338, %1337 : vector<2x196xf32>
    %1340 = arith.addf %1334, %1339 : vector<2x196xf32>
    %c12_1082 = arith.constant 12 : index
    %c13_1083 = arith.constant 13 : index
    %1341 = memref.load %arg2[%c12_1082, %c13_1083] : memref<16x16xf32, #tpu.memory_space<smem>>
    %c13_1084 = arith.constant 13 : index
    %c0_1085 = arith.constant 0 : index
    %c0_1086 = arith.constant 0 : index
    %1342 = vector.load %arg1[%c13_1084, %c0_1085, %c0_1086] : memref<16x2x196xf32, #tpu.memory_space<vmem>>, vector<1x2x196xf32>
    %1343 = vector.shape_cast %1342 : vector<1x2x196xf32> to vector<2x196xf32>
    %1344 = vector.broadcast %1341 : f32 to vector<2x196xf32>
    %1345 = arith.mulf %1344, %1343 : vector<2x196xf32>
    %1346 = arith.addf %1340, %1345 : vector<2x196xf32>
    %c12_1087 = arith.constant 12 : index
    %c14_1088 = arith.constant 14 : index
    %1347 = memref.load %arg2[%c12_1087, %c14_1088] : memref<16x16xf32, #tpu.memory_space<smem>>
    %c14_1089 = arith.constant 14 : index
    %c0_1090 = arith.constant 0 : index
    %c0_1091 = arith.constant 0 : index
    %1348 = vector.load %arg1[%c14_1089, %c0_1090, %c0_1091] : memref<16x2x196xf32, #tpu.memory_space<vmem>>, vector<1x2x196xf32>
    %1349 = vector.shape_cast %1348 : vector<1x2x196xf32> to vector<2x196xf32>
    %1350 = vector.broadcast %1347 : f32 to vector<2x196xf32>
    %1351 = arith.mulf %1350, %1349 : vector<2x196xf32>
    %1352 = arith.addf %1346, %1351 : vector<2x196xf32>
    %c12_1092 = arith.constant 12 : index
    %c15_1093 = arith.constant 15 : index
    %1353 = memref.load %arg2[%c12_1092, %c15_1093] : memref<16x16xf32, #tpu.memory_space<smem>>
    %c15_1094 = arith.constant 15 : index
    %c0_1095 = arith.constant 0 : index
    %c0_1096 = arith.constant 0 : index
    %1354 = vector.load %arg1[%c15_1094, %c0_1095, %c0_1096] : memref<16x2x196xf32, #tpu.memory_space<vmem>>, vector<1x2x196xf32>
    %1355 = vector.shape_cast %1354 : vector<1x2x196xf32> to vector<2x196xf32>
    %1356 = vector.broadcast %1353 : f32 to vector<2x196xf32>
    %1357 = arith.mulf %1356, %1355 : vector<2x196xf32>
    %1358 = arith.addf %1352, %1357 : vector<2x196xf32>
    %cst_1097 = arith.constant 0.000000e+00 : f32
    %1359 = vector.broadcast %cst_1097 : f32 to vector<2x196xf32>
    %1360 = arith.maximumf %1358, %1359 : vector<2x196xf32>
    %1361 = arith.truncf %1360 : vector<2x196xf32> to vector<2x196xbf16>
    %c12_1098 = arith.constant 12 : index
    %c0_1099 = arith.constant 0 : index
    %c0_1100 = arith.constant 0 : index
    %1362 = vector.load %arg4[%c12_1098, %c0_1099, %c0_1100] : memref<16x196x128xbf16, #tpu.memory_space<vmem>>, vector<1x196x128xbf16>
    %1363 = vector.shape_cast %1362 : vector<1x196x128xbf16> to vector<196x128xbf16>
    %cst_1101 = arith.constant dense<0.000000e+00> : vector<2x128xf32>
    %1364 = tpu.matmul %1361, %1363, %cst_1101 {dimension_numbers = #tpu.dot_dimension_numbers<[1], [0], [0], [1], [0, 0, 1, 1], [], []>} : vector<2x196xbf16>, vector<196x128xbf16>, vector<2x128xf32> -> vector<2x128xf32>
    %1365 = arith.addf %1260, %1364 : vector<2x128xf32>
    %c13_1102 = arith.constant 13 : index
    %1366 = memref.load %arg3[%c13_1102] : memref<16xf32, #tpu.memory_space<smem>>
    %1367 = vector.broadcast %1366 : f32 to vector<2x196xf32>
    %c13_1103 = arith.constant 13 : index
    %c0_1104 = arith.constant 0 : index
    %1368 = memref.load %arg2[%c13_1103, %c0_1104] : memref<16x16xf32, #tpu.memory_space<smem>>
    %c0_1105 = arith.constant 0 : index
    %c0_1106 = arith.constant 0 : index
    %c0_1107 = arith.constant 0 : index
    %1369 = vector.load %arg1[%c0_1105, %c0_1106, %c0_1107] : memref<16x2x196xf32, #tpu.memory_space<vmem>>, vector<1x2x196xf32>
    %1370 = vector.shape_cast %1369 : vector<1x2x196xf32> to vector<2x196xf32>
    %1371 = vector.broadcast %1368 : f32 to vector<2x196xf32>
    %1372 = arith.mulf %1371, %1370 : vector<2x196xf32>
    %1373 = arith.addf %1367, %1372 : vector<2x196xf32>
    %c13_1108 = arith.constant 13 : index
    %c1_1109 = arith.constant 1 : index
    %1374 = memref.load %arg2[%c13_1108, %c1_1109] : memref<16x16xf32, #tpu.memory_space<smem>>
    %c1_1110 = arith.constant 1 : index
    %c0_1111 = arith.constant 0 : index
    %c0_1112 = arith.constant 0 : index
    %1375 = vector.load %arg1[%c1_1110, %c0_1111, %c0_1112] : memref<16x2x196xf32, #tpu.memory_space<vmem>>, vector<1x2x196xf32>
    %1376 = vector.shape_cast %1375 : vector<1x2x196xf32> to vector<2x196xf32>
    %1377 = vector.broadcast %1374 : f32 to vector<2x196xf32>
    %1378 = arith.mulf %1377, %1376 : vector<2x196xf32>
    %1379 = arith.addf %1373, %1378 : vector<2x196xf32>
    %c13_1113 = arith.constant 13 : index
    %c2_1114 = arith.constant 2 : index
    %1380 = memref.load %arg2[%c13_1113, %c2_1114] : memref<16x16xf32, #tpu.memory_space<smem>>
    %c2_1115 = arith.constant 2 : index
    %c0_1116 = arith.constant 0 : index
    %c0_1117 = arith.constant 0 : index
    %1381 = vector.load %arg1[%c2_1115, %c0_1116, %c0_1117] : memref<16x2x196xf32, #tpu.memory_space<vmem>>, vector<1x2x196xf32>
    %1382 = vector.shape_cast %1381 : vector<1x2x196xf32> to vector<2x196xf32>
    %1383 = vector.broadcast %1380 : f32 to vector<2x196xf32>
    %1384 = arith.mulf %1383, %1382 : vector<2x196xf32>
    %1385 = arith.addf %1379, %1384 : vector<2x196xf32>
    %c13_1118 = arith.constant 13 : index
    %c3_1119 = arith.constant 3 : index
    %1386 = memref.load %arg2[%c13_1118, %c3_1119] : memref<16x16xf32, #tpu.memory_space<smem>>
    %c3_1120 = arith.constant 3 : index
    %c0_1121 = arith.constant 0 : index
    %c0_1122 = arith.constant 0 : index
    %1387 = vector.load %arg1[%c3_1120, %c0_1121, %c0_1122] : memref<16x2x196xf32, #tpu.memory_space<vmem>>, vector<1x2x196xf32>
    %1388 = vector.shape_cast %1387 : vector<1x2x196xf32> to vector<2x196xf32>
    %1389 = vector.broadcast %1386 : f32 to vector<2x196xf32>
    %1390 = arith.mulf %1389, %1388 : vector<2x196xf32>
    %1391 = arith.addf %1385, %1390 : vector<2x196xf32>
    %c13_1123 = arith.constant 13 : index
    %c4_1124 = arith.constant 4 : index
    %1392 = memref.load %arg2[%c13_1123, %c4_1124] : memref<16x16xf32, #tpu.memory_space<smem>>
    %c4_1125 = arith.constant 4 : index
    %c0_1126 = arith.constant 0 : index
    %c0_1127 = arith.constant 0 : index
    %1393 = vector.load %arg1[%c4_1125, %c0_1126, %c0_1127] : memref<16x2x196xf32, #tpu.memory_space<vmem>>, vector<1x2x196xf32>
    %1394 = vector.shape_cast %1393 : vector<1x2x196xf32> to vector<2x196xf32>
    %1395 = vector.broadcast %1392 : f32 to vector<2x196xf32>
    %1396 = arith.mulf %1395, %1394 : vector<2x196xf32>
    %1397 = arith.addf %1391, %1396 : vector<2x196xf32>
    %c13_1128 = arith.constant 13 : index
    %c5_1129 = arith.constant 5 : index
    %1398 = memref.load %arg2[%c13_1128, %c5_1129] : memref<16x16xf32, #tpu.memory_space<smem>>
    %c5_1130 = arith.constant 5 : index
    %c0_1131 = arith.constant 0 : index
    %c0_1132 = arith.constant 0 : index
    %1399 = vector.load %arg1[%c5_1130, %c0_1131, %c0_1132] : memref<16x2x196xf32, #tpu.memory_space<vmem>>, vector<1x2x196xf32>
    %1400 = vector.shape_cast %1399 : vector<1x2x196xf32> to vector<2x196xf32>
    %1401 = vector.broadcast %1398 : f32 to vector<2x196xf32>
    %1402 = arith.mulf %1401, %1400 : vector<2x196xf32>
    %1403 = arith.addf %1397, %1402 : vector<2x196xf32>
    %c13_1133 = arith.constant 13 : index
    %c6_1134 = arith.constant 6 : index
    %1404 = memref.load %arg2[%c13_1133, %c6_1134] : memref<16x16xf32, #tpu.memory_space<smem>>
    %c6_1135 = arith.constant 6 : index
    %c0_1136 = arith.constant 0 : index
    %c0_1137 = arith.constant 0 : index
    %1405 = vector.load %arg1[%c6_1135, %c0_1136, %c0_1137] : memref<16x2x196xf32, #tpu.memory_space<vmem>>, vector<1x2x196xf32>
    %1406 = vector.shape_cast %1405 : vector<1x2x196xf32> to vector<2x196xf32>
    %1407 = vector.broadcast %1404 : f32 to vector<2x196xf32>
    %1408 = arith.mulf %1407, %1406 : vector<2x196xf32>
    %1409 = arith.addf %1403, %1408 : vector<2x196xf32>
    %c13_1138 = arith.constant 13 : index
    %c7_1139 = arith.constant 7 : index
    %1410 = memref.load %arg2[%c13_1138, %c7_1139] : memref<16x16xf32, #tpu.memory_space<smem>>
    %c7_1140 = arith.constant 7 : index
    %c0_1141 = arith.constant 0 : index
    %c0_1142 = arith.constant 0 : index
    %1411 = vector.load %arg1[%c7_1140, %c0_1141, %c0_1142] : memref<16x2x196xf32, #tpu.memory_space<vmem>>, vector<1x2x196xf32>
    %1412 = vector.shape_cast %1411 : vector<1x2x196xf32> to vector<2x196xf32>
    %1413 = vector.broadcast %1410 : f32 to vector<2x196xf32>
    %1414 = arith.mulf %1413, %1412 : vector<2x196xf32>
    %1415 = arith.addf %1409, %1414 : vector<2x196xf32>
    %c13_1143 = arith.constant 13 : index
    %c8_1144 = arith.constant 8 : index
    %1416 = memref.load %arg2[%c13_1143, %c8_1144] : memref<16x16xf32, #tpu.memory_space<smem>>
    %c8_1145 = arith.constant 8 : index
    %c0_1146 = arith.constant 0 : index
    %c0_1147 = arith.constant 0 : index
    %1417 = vector.load %arg1[%c8_1145, %c0_1146, %c0_1147] : memref<16x2x196xf32, #tpu.memory_space<vmem>>, vector<1x2x196xf32>
    %1418 = vector.shape_cast %1417 : vector<1x2x196xf32> to vector<2x196xf32>
    %1419 = vector.broadcast %1416 : f32 to vector<2x196xf32>
    %1420 = arith.mulf %1419, %1418 : vector<2x196xf32>
    %1421 = arith.addf %1415, %1420 : vector<2x196xf32>
    %c13_1148 = arith.constant 13 : index
    %c9_1149 = arith.constant 9 : index
    %1422 = memref.load %arg2[%c13_1148, %c9_1149] : memref<16x16xf32, #tpu.memory_space<smem>>
    %c9_1150 = arith.constant 9 : index
    %c0_1151 = arith.constant 0 : index
    %c0_1152 = arith.constant 0 : index
    %1423 = vector.load %arg1[%c9_1150, %c0_1151, %c0_1152] : memref<16x2x196xf32, #tpu.memory_space<vmem>>, vector<1x2x196xf32>
    %1424 = vector.shape_cast %1423 : vector<1x2x196xf32> to vector<2x196xf32>
    %1425 = vector.broadcast %1422 : f32 to vector<2x196xf32>
    %1426 = arith.mulf %1425, %1424 : vector<2x196xf32>
    %1427 = arith.addf %1421, %1426 : vector<2x196xf32>
    %c13_1153 = arith.constant 13 : index
    %c10_1154 = arith.constant 10 : index
    %1428 = memref.load %arg2[%c13_1153, %c10_1154] : memref<16x16xf32, #tpu.memory_space<smem>>
    %c10_1155 = arith.constant 10 : index
    %c0_1156 = arith.constant 0 : index
    %c0_1157 = arith.constant 0 : index
    %1429 = vector.load %arg1[%c10_1155, %c0_1156, %c0_1157] : memref<16x2x196xf32, #tpu.memory_space<vmem>>, vector<1x2x196xf32>
    %1430 = vector.shape_cast %1429 : vector<1x2x196xf32> to vector<2x196xf32>
    %1431 = vector.broadcast %1428 : f32 to vector<2x196xf32>
    %1432 = arith.mulf %1431, %1430 : vector<2x196xf32>
    %1433 = arith.addf %1427, %1432 : vector<2x196xf32>
    %c13_1158 = arith.constant 13 : index
    %c11_1159 = arith.constant 11 : index
    %1434 = memref.load %arg2[%c13_1158, %c11_1159] : memref<16x16xf32, #tpu.memory_space<smem>>
    %c11_1160 = arith.constant 11 : index
    %c0_1161 = arith.constant 0 : index
    %c0_1162 = arith.constant 0 : index
    %1435 = vector.load %arg1[%c11_1160, %c0_1161, %c0_1162] : memref<16x2x196xf32, #tpu.memory_space<vmem>>, vector<1x2x196xf32>
    %1436 = vector.shape_cast %1435 : vector<1x2x196xf32> to vector<2x196xf32>
    %1437 = vector.broadcast %1434 : f32 to vector<2x196xf32>
    %1438 = arith.mulf %1437, %1436 : vector<2x196xf32>
    %1439 = arith.addf %1433, %1438 : vector<2x196xf32>
    %c13_1163 = arith.constant 13 : index
    %c12_1164 = arith.constant 12 : index
    %1440 = memref.load %arg2[%c13_1163, %c12_1164] : memref<16x16xf32, #tpu.memory_space<smem>>
    %c12_1165 = arith.constant 12 : index
    %c0_1166 = arith.constant 0 : index
    %c0_1167 = arith.constant 0 : index
    %1441 = vector.load %arg1[%c12_1165, %c0_1166, %c0_1167] : memref<16x2x196xf32, #tpu.memory_space<vmem>>, vector<1x2x196xf32>
    %1442 = vector.shape_cast %1441 : vector<1x2x196xf32> to vector<2x196xf32>
    %1443 = vector.broadcast %1440 : f32 to vector<2x196xf32>
    %1444 = arith.mulf %1443, %1442 : vector<2x196xf32>
    %1445 = arith.addf %1439, %1444 : vector<2x196xf32>
    %c13_1168 = arith.constant 13 : index
    %c13_1169 = arith.constant 13 : index
    %1446 = memref.load %arg2[%c13_1168, %c13_1169] : memref<16x16xf32, #tpu.memory_space<smem>>
    %c13_1170 = arith.constant 13 : index
    %c0_1171 = arith.constant 0 : index
    %c0_1172 = arith.constant 0 : index
    %1447 = vector.load %arg1[%c13_1170, %c0_1171, %c0_1172] : memref<16x2x196xf32, #tpu.memory_space<vmem>>, vector<1x2x196xf32>
    %1448 = vector.shape_cast %1447 : vector<1x2x196xf32> to vector<2x196xf32>
    %1449 = vector.broadcast %1446 : f32 to vector<2x196xf32>
    %1450 = arith.mulf %1449, %1448 : vector<2x196xf32>
    %1451 = arith.addf %1445, %1450 : vector<2x196xf32>
    %c13_1173 = arith.constant 13 : index
    %c14_1174 = arith.constant 14 : index
    %1452 = memref.load %arg2[%c13_1173, %c14_1174] : memref<16x16xf32, #tpu.memory_space<smem>>
    %c14_1175 = arith.constant 14 : index
    %c0_1176 = arith.constant 0 : index
    %c0_1177 = arith.constant 0 : index
    %1453 = vector.load %arg1[%c14_1175, %c0_1176, %c0_1177] : memref<16x2x196xf32, #tpu.memory_space<vmem>>, vector<1x2x196xf32>
    %1454 = vector.shape_cast %1453 : vector<1x2x196xf32> to vector<2x196xf32>
    %1455 = vector.broadcast %1452 : f32 to vector<2x196xf32>
    %1456 = arith.mulf %1455, %1454 : vector<2x196xf32>
    %1457 = arith.addf %1451, %1456 : vector<2x196xf32>
    %c13_1178 = arith.constant 13 : index
    %c15_1179 = arith.constant 15 : index
    %1458 = memref.load %arg2[%c13_1178, %c15_1179] : memref<16x16xf32, #tpu.memory_space<smem>>
    %c15_1180 = arith.constant 15 : index
    %c0_1181 = arith.constant 0 : index
    %c0_1182 = arith.constant 0 : index
    %1459 = vector.load %arg1[%c15_1180, %c0_1181, %c0_1182] : memref<16x2x196xf32, #tpu.memory_space<vmem>>, vector<1x2x196xf32>
    %1460 = vector.shape_cast %1459 : vector<1x2x196xf32> to vector<2x196xf32>
    %1461 = vector.broadcast %1458 : f32 to vector<2x196xf32>
    %1462 = arith.mulf %1461, %1460 : vector<2x196xf32>
    %1463 = arith.addf %1457, %1462 : vector<2x196xf32>
    %cst_1183 = arith.constant 0.000000e+00 : f32
    %1464 = vector.broadcast %cst_1183 : f32 to vector<2x196xf32>
    %1465 = arith.maximumf %1463, %1464 : vector<2x196xf32>
    %1466 = arith.truncf %1465 : vector<2x196xf32> to vector<2x196xbf16>
    %c13_1184 = arith.constant 13 : index
    %c0_1185 = arith.constant 0 : index
    %c0_1186 = arith.constant 0 : index
    %1467 = vector.load %arg4[%c13_1184, %c0_1185, %c0_1186] : memref<16x196x128xbf16, #tpu.memory_space<vmem>>, vector<1x196x128xbf16>
    %1468 = vector.shape_cast %1467 : vector<1x196x128xbf16> to vector<196x128xbf16>
    %cst_1187 = arith.constant dense<0.000000e+00> : vector<2x128xf32>
    %1469 = tpu.matmul %1466, %1468, %cst_1187 {dimension_numbers = #tpu.dot_dimension_numbers<[1], [0], [0], [1], [0, 0, 1, 1], [], []>} : vector<2x196xbf16>, vector<196x128xbf16>, vector<2x128xf32> -> vector<2x128xf32>
    %1470 = arith.addf %1365, %1469 : vector<2x128xf32>
    %c14_1188 = arith.constant 14 : index
    %1471 = memref.load %arg3[%c14_1188] : memref<16xf32, #tpu.memory_space<smem>>
    %1472 = vector.broadcast %1471 : f32 to vector<2x196xf32>
    %c14_1189 = arith.constant 14 : index
    %c0_1190 = arith.constant 0 : index
    %1473 = memref.load %arg2[%c14_1189, %c0_1190] : memref<16x16xf32, #tpu.memory_space<smem>>
    %c0_1191 = arith.constant 0 : index
    %c0_1192 = arith.constant 0 : index
    %c0_1193 = arith.constant 0 : index
    %1474 = vector.load %arg1[%c0_1191, %c0_1192, %c0_1193] : memref<16x2x196xf32, #tpu.memory_space<vmem>>, vector<1x2x196xf32>
    %1475 = vector.shape_cast %1474 : vector<1x2x196xf32> to vector<2x196xf32>
    %1476 = vector.broadcast %1473 : f32 to vector<2x196xf32>
    %1477 = arith.mulf %1476, %1475 : vector<2x196xf32>
    %1478 = arith.addf %1472, %1477 : vector<2x196xf32>
    %c14_1194 = arith.constant 14 : index
    %c1_1195 = arith.constant 1 : index
    %1479 = memref.load %arg2[%c14_1194, %c1_1195] : memref<16x16xf32, #tpu.memory_space<smem>>
    %c1_1196 = arith.constant 1 : index
    %c0_1197 = arith.constant 0 : index
    %c0_1198 = arith.constant 0 : index
    %1480 = vector.load %arg1[%c1_1196, %c0_1197, %c0_1198] : memref<16x2x196xf32, #tpu.memory_space<vmem>>, vector<1x2x196xf32>
    %1481 = vector.shape_cast %1480 : vector<1x2x196xf32> to vector<2x196xf32>
    %1482 = vector.broadcast %1479 : f32 to vector<2x196xf32>
    %1483 = arith.mulf %1482, %1481 : vector<2x196xf32>
    %1484 = arith.addf %1478, %1483 : vector<2x196xf32>
    %c14_1199 = arith.constant 14 : index
    %c2_1200 = arith.constant 2 : index
    %1485 = memref.load %arg2[%c14_1199, %c2_1200] : memref<16x16xf32, #tpu.memory_space<smem>>
    %c2_1201 = arith.constant 2 : index
    %c0_1202 = arith.constant 0 : index
    %c0_1203 = arith.constant 0 : index
    %1486 = vector.load %arg1[%c2_1201, %c0_1202, %c0_1203] : memref<16x2x196xf32, #tpu.memory_space<vmem>>, vector<1x2x196xf32>
    %1487 = vector.shape_cast %1486 : vector<1x2x196xf32> to vector<2x196xf32>
    %1488 = vector.broadcast %1485 : f32 to vector<2x196xf32>
    %1489 = arith.mulf %1488, %1487 : vector<2x196xf32>
    %1490 = arith.addf %1484, %1489 : vector<2x196xf32>
    %c14_1204 = arith.constant 14 : index
    %c3_1205 = arith.constant 3 : index
    %1491 = memref.load %arg2[%c14_1204, %c3_1205] : memref<16x16xf32, #tpu.memory_space<smem>>
    %c3_1206 = arith.constant 3 : index
    %c0_1207 = arith.constant 0 : index
    %c0_1208 = arith.constant 0 : index
    %1492 = vector.load %arg1[%c3_1206, %c0_1207, %c0_1208] : memref<16x2x196xf32, #tpu.memory_space<vmem>>, vector<1x2x196xf32>
    %1493 = vector.shape_cast %1492 : vector<1x2x196xf32> to vector<2x196xf32>
    %1494 = vector.broadcast %1491 : f32 to vector<2x196xf32>
    %1495 = arith.mulf %1494, %1493 : vector<2x196xf32>
    %1496 = arith.addf %1490, %1495 : vector<2x196xf32>
    %c14_1209 = arith.constant 14 : index
    %c4_1210 = arith.constant 4 : index
    %1497 = memref.load %arg2[%c14_1209, %c4_1210] : memref<16x16xf32, #tpu.memory_space<smem>>
    %c4_1211 = arith.constant 4 : index
    %c0_1212 = arith.constant 0 : index
    %c0_1213 = arith.constant 0 : index
    %1498 = vector.load %arg1[%c4_1211, %c0_1212, %c0_1213] : memref<16x2x196xf32, #tpu.memory_space<vmem>>, vector<1x2x196xf32>
    %1499 = vector.shape_cast %1498 : vector<1x2x196xf32> to vector<2x196xf32>
    %1500 = vector.broadcast %1497 : f32 to vector<2x196xf32>
    %1501 = arith.mulf %1500, %1499 : vector<2x196xf32>
    %1502 = arith.addf %1496, %1501 : vector<2x196xf32>
    %c14_1214 = arith.constant 14 : index
    %c5_1215 = arith.constant 5 : index
    %1503 = memref.load %arg2[%c14_1214, %c5_1215] : memref<16x16xf32, #tpu.memory_space<smem>>
    %c5_1216 = arith.constant 5 : index
    %c0_1217 = arith.constant 0 : index
    %c0_1218 = arith.constant 0 : index
    %1504 = vector.load %arg1[%c5_1216, %c0_1217, %c0_1218] : memref<16x2x196xf32, #tpu.memory_space<vmem>>, vector<1x2x196xf32>
    %1505 = vector.shape_cast %1504 : vector<1x2x196xf32> to vector<2x196xf32>
    %1506 = vector.broadcast %1503 : f32 to vector<2x196xf32>
    %1507 = arith.mulf %1506, %1505 : vector<2x196xf32>
    %1508 = arith.addf %1502, %1507 : vector<2x196xf32>
    %c14_1219 = arith.constant 14 : index
    %c6_1220 = arith.constant 6 : index
    %1509 = memref.load %arg2[%c14_1219, %c6_1220] : memref<16x16xf32, #tpu.memory_space<smem>>
    %c6_1221 = arith.constant 6 : index
    %c0_1222 = arith.constant 0 : index
    %c0_1223 = arith.constant 0 : index
    %1510 = vector.load %arg1[%c6_1221, %c0_1222, %c0_1223] : memref<16x2x196xf32, #tpu.memory_space<vmem>>, vector<1x2x196xf32>
    %1511 = vector.shape_cast %1510 : vector<1x2x196xf32> to vector<2x196xf32>
    %1512 = vector.broadcast %1509 : f32 to vector<2x196xf32>
    %1513 = arith.mulf %1512, %1511 : vector<2x196xf32>
    %1514 = arith.addf %1508, %1513 : vector<2x196xf32>
    %c14_1224 = arith.constant 14 : index
    %c7_1225 = arith.constant 7 : index
    %1515 = memref.load %arg2[%c14_1224, %c7_1225] : memref<16x16xf32, #tpu.memory_space<smem>>
    %c7_1226 = arith.constant 7 : index
    %c0_1227 = arith.constant 0 : index
    %c0_1228 = arith.constant 0 : index
    %1516 = vector.load %arg1[%c7_1226, %c0_1227, %c0_1228] : memref<16x2x196xf32, #tpu.memory_space<vmem>>, vector<1x2x196xf32>
    %1517 = vector.shape_cast %1516 : vector<1x2x196xf32> to vector<2x196xf32>
    %1518 = vector.broadcast %1515 : f32 to vector<2x196xf32>
    %1519 = arith.mulf %1518, %1517 : vector<2x196xf32>
    %1520 = arith.addf %1514, %1519 : vector<2x196xf32>
    %c14_1229 = arith.constant 14 : index
    %c8_1230 = arith.constant 8 : index
    %1521 = memref.load %arg2[%c14_1229, %c8_1230] : memref<16x16xf32, #tpu.memory_space<smem>>
    %c8_1231 = arith.constant 8 : index
    %c0_1232 = arith.constant 0 : index
    %c0_1233 = arith.constant 0 : index
    %1522 = vector.load %arg1[%c8_1231, %c0_1232, %c0_1233] : memref<16x2x196xf32, #tpu.memory_space<vmem>>, vector<1x2x196xf32>
    %1523 = vector.shape_cast %1522 : vector<1x2x196xf32> to vector<2x196xf32>
    %1524 = vector.broadcast %1521 : f32 to vector<2x196xf32>
    %1525 = arith.mulf %1524, %1523 : vector<2x196xf32>
    %1526 = arith.addf %1520, %1525 : vector<2x196xf32>
    %c14_1234 = arith.constant 14 : index
    %c9_1235 = arith.constant 9 : index
    %1527 = memref.load %arg2[%c14_1234, %c9_1235] : memref<16x16xf32, #tpu.memory_space<smem>>
    %c9_1236 = arith.constant 9 : index
    %c0_1237 = arith.constant 0 : index
    %c0_1238 = arith.constant 0 : index
    %1528 = vector.load %arg1[%c9_1236, %c0_1237, %c0_1238] : memref<16x2x196xf32, #tpu.memory_space<vmem>>, vector<1x2x196xf32>
    %1529 = vector.shape_cast %1528 : vector<1x2x196xf32> to vector<2x196xf32>
    %1530 = vector.broadcast %1527 : f32 to vector<2x196xf32>
    %1531 = arith.mulf %1530, %1529 : vector<2x196xf32>
    %1532 = arith.addf %1526, %1531 : vector<2x196xf32>
    %c14_1239 = arith.constant 14 : index
    %c10_1240 = arith.constant 10 : index
    %1533 = memref.load %arg2[%c14_1239, %c10_1240] : memref<16x16xf32, #tpu.memory_space<smem>>
    %c10_1241 = arith.constant 10 : index
    %c0_1242 = arith.constant 0 : index
    %c0_1243 = arith.constant 0 : index
    %1534 = vector.load %arg1[%c10_1241, %c0_1242, %c0_1243] : memref<16x2x196xf32, #tpu.memory_space<vmem>>, vector<1x2x196xf32>
    %1535 = vector.shape_cast %1534 : vector<1x2x196xf32> to vector<2x196xf32>
    %1536 = vector.broadcast %1533 : f32 to vector<2x196xf32>
    %1537 = arith.mulf %1536, %1535 : vector<2x196xf32>
    %1538 = arith.addf %1532, %1537 : vector<2x196xf32>
    %c14_1244 = arith.constant 14 : index
    %c11_1245 = arith.constant 11 : index
    %1539 = memref.load %arg2[%c14_1244, %c11_1245] : memref<16x16xf32, #tpu.memory_space<smem>>
    %c11_1246 = arith.constant 11 : index
    %c0_1247 = arith.constant 0 : index
    %c0_1248 = arith.constant 0 : index
    %1540 = vector.load %arg1[%c11_1246, %c0_1247, %c0_1248] : memref<16x2x196xf32, #tpu.memory_space<vmem>>, vector<1x2x196xf32>
    %1541 = vector.shape_cast %1540 : vector<1x2x196xf32> to vector<2x196xf32>
    %1542 = vector.broadcast %1539 : f32 to vector<2x196xf32>
    %1543 = arith.mulf %1542, %1541 : vector<2x196xf32>
    %1544 = arith.addf %1538, %1543 : vector<2x196xf32>
    %c14_1249 = arith.constant 14 : index
    %c12_1250 = arith.constant 12 : index
    %1545 = memref.load %arg2[%c14_1249, %c12_1250] : memref<16x16xf32, #tpu.memory_space<smem>>
    %c12_1251 = arith.constant 12 : index
    %c0_1252 = arith.constant 0 : index
    %c0_1253 = arith.constant 0 : index
    %1546 = vector.load %arg1[%c12_1251, %c0_1252, %c0_1253] : memref<16x2x196xf32, #tpu.memory_space<vmem>>, vector<1x2x196xf32>
    %1547 = vector.shape_cast %1546 : vector<1x2x196xf32> to vector<2x196xf32>
    %1548 = vector.broadcast %1545 : f32 to vector<2x196xf32>
    %1549 = arith.mulf %1548, %1547 : vector<2x196xf32>
    %1550 = arith.addf %1544, %1549 : vector<2x196xf32>
    %c14_1254 = arith.constant 14 : index
    %c13_1255 = arith.constant 13 : index
    %1551 = memref.load %arg2[%c14_1254, %c13_1255] : memref<16x16xf32, #tpu.memory_space<smem>>
    %c13_1256 = arith.constant 13 : index
    %c0_1257 = arith.constant 0 : index
    %c0_1258 = arith.constant 0 : index
    %1552 = vector.load %arg1[%c13_1256, %c0_1257, %c0_1258] : memref<16x2x196xf32, #tpu.memory_space<vmem>>, vector<1x2x196xf32>
    %1553 = vector.shape_cast %1552 : vector<1x2x196xf32> to vector<2x196xf32>
    %1554 = vector.broadcast %1551 : f32 to vector<2x196xf32>
    %1555 = arith.mulf %1554, %1553 : vector<2x196xf32>
    %1556 = arith.addf %1550, %1555 : vector<2x196xf32>
    %c14_1259 = arith.constant 14 : index
    %c14_1260 = arith.constant 14 : index
    %1557 = memref.load %arg2[%c14_1259, %c14_1260] : memref<16x16xf32, #tpu.memory_space<smem>>
    %c14_1261 = arith.constant 14 : index
    %c0_1262 = arith.constant 0 : index
    %c0_1263 = arith.constant 0 : index
    %1558 = vector.load %arg1[%c14_1261, %c0_1262, %c0_1263] : memref<16x2x196xf32, #tpu.memory_space<vmem>>, vector<1x2x196xf32>
    %1559 = vector.shape_cast %1558 : vector<1x2x196xf32> to vector<2x196xf32>
    %1560 = vector.broadcast %1557 : f32 to vector<2x196xf32>
    %1561 = arith.mulf %1560, %1559 : vector<2x196xf32>
    %1562 = arith.addf %1556, %1561 : vector<2x196xf32>
    %c14_1264 = arith.constant 14 : index
    %c15_1265 = arith.constant 15 : index
    %1563 = memref.load %arg2[%c14_1264, %c15_1265] : memref<16x16xf32, #tpu.memory_space<smem>>
    %c15_1266 = arith.constant 15 : index
    %c0_1267 = arith.constant 0 : index
    %c0_1268 = arith.constant 0 : index
    %1564 = vector.load %arg1[%c15_1266, %c0_1267, %c0_1268] : memref<16x2x196xf32, #tpu.memory_space<vmem>>, vector<1x2x196xf32>
    %1565 = vector.shape_cast %1564 : vector<1x2x196xf32> to vector<2x196xf32>
    %1566 = vector.broadcast %1563 : f32 to vector<2x196xf32>
    %1567 = arith.mulf %1566, %1565 : vector<2x196xf32>
    %1568 = arith.addf %1562, %1567 : vector<2x196xf32>
    %cst_1269 = arith.constant 0.000000e+00 : f32
    %1569 = vector.broadcast %cst_1269 : f32 to vector<2x196xf32>
    %1570 = arith.maximumf %1568, %1569 : vector<2x196xf32>
    %1571 = arith.truncf %1570 : vector<2x196xf32> to vector<2x196xbf16>
    %c14_1270 = arith.constant 14 : index
    %c0_1271 = arith.constant 0 : index
    %c0_1272 = arith.constant 0 : index
    %1572 = vector.load %arg4[%c14_1270, %c0_1271, %c0_1272] : memref<16x196x128xbf16, #tpu.memory_space<vmem>>, vector<1x196x128xbf16>
    %1573 = vector.shape_cast %1572 : vector<1x196x128xbf16> to vector<196x128xbf16>
    %cst_1273 = arith.constant dense<0.000000e+00> : vector<2x128xf32>
    %1574 = tpu.matmul %1571, %1573, %cst_1273 {dimension_numbers = #tpu.dot_dimension_numbers<[1], [0], [0], [1], [0, 0, 1, 1], [], []>} : vector<2x196xbf16>, vector<196x128xbf16>, vector<2x128xf32> -> vector<2x128xf32>
    %1575 = arith.addf %1470, %1574 : vector<2x128xf32>
    %c15_1274 = arith.constant 15 : index
    %1576 = memref.load %arg3[%c15_1274] : memref<16xf32, #tpu.memory_space<smem>>
    %1577 = vector.broadcast %1576 : f32 to vector<2x196xf32>
    %c15_1275 = arith.constant 15 : index
    %c0_1276 = arith.constant 0 : index
    %1578 = memref.load %arg2[%c15_1275, %c0_1276] : memref<16x16xf32, #tpu.memory_space<smem>>
    %c0_1277 = arith.constant 0 : index
    %c0_1278 = arith.constant 0 : index
    %c0_1279 = arith.constant 0 : index
    %1579 = vector.load %arg1[%c0_1277, %c0_1278, %c0_1279] : memref<16x2x196xf32, #tpu.memory_space<vmem>>, vector<1x2x196xf32>
    %1580 = vector.shape_cast %1579 : vector<1x2x196xf32> to vector<2x196xf32>
    %1581 = vector.broadcast %1578 : f32 to vector<2x196xf32>
    %1582 = arith.mulf %1581, %1580 : vector<2x196xf32>
    %1583 = arith.addf %1577, %1582 : vector<2x196xf32>
    %c15_1280 = arith.constant 15 : index
    %c1_1281 = arith.constant 1 : index
    %1584 = memref.load %arg2[%c15_1280, %c1_1281] : memref<16x16xf32, #tpu.memory_space<smem>>
    %c1_1282 = arith.constant 1 : index
    %c0_1283 = arith.constant 0 : index
    %c0_1284 = arith.constant 0 : index
    %1585 = vector.load %arg1[%c1_1282, %c0_1283, %c0_1284] : memref<16x2x196xf32, #tpu.memory_space<vmem>>, vector<1x2x196xf32>
    %1586 = vector.shape_cast %1585 : vector<1x2x196xf32> to vector<2x196xf32>
    %1587 = vector.broadcast %1584 : f32 to vector<2x196xf32>
    %1588 = arith.mulf %1587, %1586 : vector<2x196xf32>
    %1589 = arith.addf %1583, %1588 : vector<2x196xf32>
    %c15_1285 = arith.constant 15 : index
    %c2_1286 = arith.constant 2 : index
    %1590 = memref.load %arg2[%c15_1285, %c2_1286] : memref<16x16xf32, #tpu.memory_space<smem>>
    %c2_1287 = arith.constant 2 : index
    %c0_1288 = arith.constant 0 : index
    %c0_1289 = arith.constant 0 : index
    %1591 = vector.load %arg1[%c2_1287, %c0_1288, %c0_1289] : memref<16x2x196xf32, #tpu.memory_space<vmem>>, vector<1x2x196xf32>
    %1592 = vector.shape_cast %1591 : vector<1x2x196xf32> to vector<2x196xf32>
    %1593 = vector.broadcast %1590 : f32 to vector<2x196xf32>
    %1594 = arith.mulf %1593, %1592 : vector<2x196xf32>
    %1595 = arith.addf %1589, %1594 : vector<2x196xf32>
    %c15_1290 = arith.constant 15 : index
    %c3_1291 = arith.constant 3 : index
    %1596 = memref.load %arg2[%c15_1290, %c3_1291] : memref<16x16xf32, #tpu.memory_space<smem>>
    %c3_1292 = arith.constant 3 : index
    %c0_1293 = arith.constant 0 : index
    %c0_1294 = arith.constant 0 : index
    %1597 = vector.load %arg1[%c3_1292, %c0_1293, %c0_1294] : memref<16x2x196xf32, #tpu.memory_space<vmem>>, vector<1x2x196xf32>
    %1598 = vector.shape_cast %1597 : vector<1x2x196xf32> to vector<2x196xf32>
    %1599 = vector.broadcast %1596 : f32 to vector<2x196xf32>
    %1600 = arith.mulf %1599, %1598 : vector<2x196xf32>
    %1601 = arith.addf %1595, %1600 : vector<2x196xf32>
    %c15_1295 = arith.constant 15 : index
    %c4_1296 = arith.constant 4 : index
    %1602 = memref.load %arg2[%c15_1295, %c4_1296] : memref<16x16xf32, #tpu.memory_space<smem>>
    %c4_1297 = arith.constant 4 : index
    %c0_1298 = arith.constant 0 : index
    %c0_1299 = arith.constant 0 : index
    %1603 = vector.load %arg1[%c4_1297, %c0_1298, %c0_1299] : memref<16x2x196xf32, #tpu.memory_space<vmem>>, vector<1x2x196xf32>
    %1604 = vector.shape_cast %1603 : vector<1x2x196xf32> to vector<2x196xf32>
    %1605 = vector.broadcast %1602 : f32 to vector<2x196xf32>
    %1606 = arith.mulf %1605, %1604 : vector<2x196xf32>
    %1607 = arith.addf %1601, %1606 : vector<2x196xf32>
    %c15_1300 = arith.constant 15 : index
    %c5_1301 = arith.constant 5 : index
    %1608 = memref.load %arg2[%c15_1300, %c5_1301] : memref<16x16xf32, #tpu.memory_space<smem>>
    %c5_1302 = arith.constant 5 : index
    %c0_1303 = arith.constant 0 : index
    %c0_1304 = arith.constant 0 : index
    %1609 = vector.load %arg1[%c5_1302, %c0_1303, %c0_1304] : memref<16x2x196xf32, #tpu.memory_space<vmem>>, vector<1x2x196xf32>
    %1610 = vector.shape_cast %1609 : vector<1x2x196xf32> to vector<2x196xf32>
    %1611 = vector.broadcast %1608 : f32 to vector<2x196xf32>
    %1612 = arith.mulf %1611, %1610 : vector<2x196xf32>
    %1613 = arith.addf %1607, %1612 : vector<2x196xf32>
    %c15_1305 = arith.constant 15 : index
    %c6_1306 = arith.constant 6 : index
    %1614 = memref.load %arg2[%c15_1305, %c6_1306] : memref<16x16xf32, #tpu.memory_space<smem>>
    %c6_1307 = arith.constant 6 : index
    %c0_1308 = arith.constant 0 : index
    %c0_1309 = arith.constant 0 : index
    %1615 = vector.load %arg1[%c6_1307, %c0_1308, %c0_1309] : memref<16x2x196xf32, #tpu.memory_space<vmem>>, vector<1x2x196xf32>
    %1616 = vector.shape_cast %1615 : vector<1x2x196xf32> to vector<2x196xf32>
    %1617 = vector.broadcast %1614 : f32 to vector<2x196xf32>
    %1618 = arith.mulf %1617, %1616 : vector<2x196xf32>
    %1619 = arith.addf %1613, %1618 : vector<2x196xf32>
    %c15_1310 = arith.constant 15 : index
    %c7_1311 = arith.constant 7 : index
    %1620 = memref.load %arg2[%c15_1310, %c7_1311] : memref<16x16xf32, #tpu.memory_space<smem>>
    %c7_1312 = arith.constant 7 : index
    %c0_1313 = arith.constant 0 : index
    %c0_1314 = arith.constant 0 : index
    %1621 = vector.load %arg1[%c7_1312, %c0_1313, %c0_1314] : memref<16x2x196xf32, #tpu.memory_space<vmem>>, vector<1x2x196xf32>
    %1622 = vector.shape_cast %1621 : vector<1x2x196xf32> to vector<2x196xf32>
    %1623 = vector.broadcast %1620 : f32 to vector<2x196xf32>
    %1624 = arith.mulf %1623, %1622 : vector<2x196xf32>
    %1625 = arith.addf %1619, %1624 : vector<2x196xf32>
    %c15_1315 = arith.constant 15 : index
    %c8_1316 = arith.constant 8 : index
    %1626 = memref.load %arg2[%c15_1315, %c8_1316] : memref<16x16xf32, #tpu.memory_space<smem>>
    %c8_1317 = arith.constant 8 : index
    %c0_1318 = arith.constant 0 : index
    %c0_1319 = arith.constant 0 : index
    %1627 = vector.load %arg1[%c8_1317, %c0_1318, %c0_1319] : memref<16x2x196xf32, #tpu.memory_space<vmem>>, vector<1x2x196xf32>
    %1628 = vector.shape_cast %1627 : vector<1x2x196xf32> to vector<2x196xf32>
    %1629 = vector.broadcast %1626 : f32 to vector<2x196xf32>
    %1630 = arith.mulf %1629, %1628 : vector<2x196xf32>
    %1631 = arith.addf %1625, %1630 : vector<2x196xf32>
    %c15_1320 = arith.constant 15 : index
    %c9_1321 = arith.constant 9 : index
    %1632 = memref.load %arg2[%c15_1320, %c9_1321] : memref<16x16xf32, #tpu.memory_space<smem>>
    %c9_1322 = arith.constant 9 : index
    %c0_1323 = arith.constant 0 : index
    %c0_1324 = arith.constant 0 : index
    %1633 = vector.load %arg1[%c9_1322, %c0_1323, %c0_1324] : memref<16x2x196xf32, #tpu.memory_space<vmem>>, vector<1x2x196xf32>
    %1634 = vector.shape_cast %1633 : vector<1x2x196xf32> to vector<2x196xf32>
    %1635 = vector.broadcast %1632 : f32 to vector<2x196xf32>
    %1636 = arith.mulf %1635, %1634 : vector<2x196xf32>
    %1637 = arith.addf %1631, %1636 : vector<2x196xf32>
    %c15_1325 = arith.constant 15 : index
    %c10_1326 = arith.constant 10 : index
    %1638 = memref.load %arg2[%c15_1325, %c10_1326] : memref<16x16xf32, #tpu.memory_space<smem>>
    %c10_1327 = arith.constant 10 : index
    %c0_1328 = arith.constant 0 : index
    %c0_1329 = arith.constant 0 : index
    %1639 = vector.load %arg1[%c10_1327, %c0_1328, %c0_1329] : memref<16x2x196xf32, #tpu.memory_space<vmem>>, vector<1x2x196xf32>
    %1640 = vector.shape_cast %1639 : vector<1x2x196xf32> to vector<2x196xf32>
    %1641 = vector.broadcast %1638 : f32 to vector<2x196xf32>
    %1642 = arith.mulf %1641, %1640 : vector<2x196xf32>
    %1643 = arith.addf %1637, %1642 : vector<2x196xf32>
    %c15_1330 = arith.constant 15 : index
    %c11_1331 = arith.constant 11 : index
    %1644 = memref.load %arg2[%c15_1330, %c11_1331] : memref<16x16xf32, #tpu.memory_space<smem>>
    %c11_1332 = arith.constant 11 : index
    %c0_1333 = arith.constant 0 : index
    %c0_1334 = arith.constant 0 : index
    %1645 = vector.load %arg1[%c11_1332, %c0_1333, %c0_1334] : memref<16x2x196xf32, #tpu.memory_space<vmem>>, vector<1x2x196xf32>
    %1646 = vector.shape_cast %1645 : vector<1x2x196xf32> to vector<2x196xf32>
    %1647 = vector.broadcast %1644 : f32 to vector<2x196xf32>
    %1648 = arith.mulf %1647, %1646 : vector<2x196xf32>
    %1649 = arith.addf %1643, %1648 : vector<2x196xf32>
    %c15_1335 = arith.constant 15 : index
    %c12_1336 = arith.constant 12 : index
    %1650 = memref.load %arg2[%c15_1335, %c12_1336] : memref<16x16xf32, #tpu.memory_space<smem>>
    %c12_1337 = arith.constant 12 : index
    %c0_1338 = arith.constant 0 : index
    %c0_1339 = arith.constant 0 : index
    %1651 = vector.load %arg1[%c12_1337, %c0_1338, %c0_1339] : memref<16x2x196xf32, #tpu.memory_space<vmem>>, vector<1x2x196xf32>
    %1652 = vector.shape_cast %1651 : vector<1x2x196xf32> to vector<2x196xf32>
    %1653 = vector.broadcast %1650 : f32 to vector<2x196xf32>
    %1654 = arith.mulf %1653, %1652 : vector<2x196xf32>
    %1655 = arith.addf %1649, %1654 : vector<2x196xf32>
    %c15_1340 = arith.constant 15 : index
    %c13_1341 = arith.constant 13 : index
    %1656 = memref.load %arg2[%c15_1340, %c13_1341] : memref<16x16xf32, #tpu.memory_space<smem>>
    %c13_1342 = arith.constant 13 : index
    %c0_1343 = arith.constant 0 : index
    %c0_1344 = arith.constant 0 : index
    %1657 = vector.load %arg1[%c13_1342, %c0_1343, %c0_1344] : memref<16x2x196xf32, #tpu.memory_space<vmem>>, vector<1x2x196xf32>
    %1658 = vector.shape_cast %1657 : vector<1x2x196xf32> to vector<2x196xf32>
    %1659 = vector.broadcast %1656 : f32 to vector<2x196xf32>
    %1660 = arith.mulf %1659, %1658 : vector<2x196xf32>
    %1661 = arith.addf %1655, %1660 : vector<2x196xf32>
    %c15_1345 = arith.constant 15 : index
    %c14_1346 = arith.constant 14 : index
    %1662 = memref.load %arg2[%c15_1345, %c14_1346] : memref<16x16xf32, #tpu.memory_space<smem>>
    %c14_1347 = arith.constant 14 : index
    %c0_1348 = arith.constant 0 : index
    %c0_1349 = arith.constant 0 : index
    %1663 = vector.load %arg1[%c14_1347, %c0_1348, %c0_1349] : memref<16x2x196xf32, #tpu.memory_space<vmem>>, vector<1x2x196xf32>
    %1664 = vector.shape_cast %1663 : vector<1x2x196xf32> to vector<2x196xf32>
    %1665 = vector.broadcast %1662 : f32 to vector<2x196xf32>
    %1666 = arith.mulf %1665, %1664 : vector<2x196xf32>
    %1667 = arith.addf %1661, %1666 : vector<2x196xf32>
    %c15_1350 = arith.constant 15 : index
    %c15_1351 = arith.constant 15 : index
    %1668 = memref.load %arg2[%c15_1350, %c15_1351] : memref<16x16xf32, #tpu.memory_space<smem>>
    %c15_1352 = arith.constant 15 : index
    %c0_1353 = arith.constant 0 : index
    %c0_1354 = arith.constant 0 : index
    %1669 = vector.load %arg1[%c15_1352, %c0_1353, %c0_1354] : memref<16x2x196xf32, #tpu.memory_space<vmem>>, vector<1x2x196xf32>
    %1670 = vector.shape_cast %1669 : vector<1x2x196xf32> to vector<2x196xf32>
    %1671 = vector.broadcast %1668 : f32 to vector<2x196xf32>
    %1672 = arith.mulf %1671, %1670 : vector<2x196xf32>
    %1673 = arith.addf %1667, %1672 : vector<2x196xf32>
    %cst_1355 = arith.constant 0.000000e+00 : f32
    %1674 = vector.broadcast %cst_1355 : f32 to vector<2x196xf32>
    %1675 = arith.maximumf %1673, %1674 : vector<2x196xf32>
    %1676 = arith.truncf %1675 : vector<2x196xf32> to vector<2x196xbf16>
    %c15_1356 = arith.constant 15 : index
    %c0_1357 = arith.constant 0 : index
    %c0_1358 = arith.constant 0 : index
    %1677 = vector.load %arg4[%c15_1356, %c0_1357, %c0_1358] : memref<16x196x128xbf16, #tpu.memory_space<vmem>>, vector<1x196x128xbf16>
    %1678 = vector.shape_cast %1677 : vector<1x196x128xbf16> to vector<196x128xbf16>
    %cst_1359 = arith.constant dense<0.000000e+00> : vector<2x128xf32>
    %1679 = tpu.matmul %1676, %1678, %cst_1359 {dimension_numbers = #tpu.dot_dimension_numbers<[1], [0], [0], [1], [0, 0, 1, 1], [], []>} : vector<2x196xbf16>, vector<196x128xbf16>, vector<2x128xf32> -> vector<2x128xf32>
    %1680 = arith.addf %1575, %1679 : vector<2x128xf32>
    %c0_1360 = arith.constant 0 : index
    %c0_1361 = arith.constant 0 : index
    %1681 = vector.load %arg5[%c0_1360, %c0_1361] : memref<1x128xf32, #tpu.memory_space<vmem>>, vector<1x128xf32>
    %1682 = vector.broadcast %1681 : vector<1x128xf32> to vector<2x128xf32>
    %1683 = arith.addf %1680, %1682 : vector<2x128xf32>
    %cst_1362 = arith.constant 0.000000e+00 : f32
    %1684 = vector.broadcast %cst_1362 : f32 to vector<2x128xf32>
    %1685 = arith.maximumf %1683, %1684 : vector<2x128xf32>
    %1686 = arith.truncf %1685 : vector<2x128xf32> to vector<2x128xbf16>
    %c0_1363 = arith.constant 0 : index
    %c0_1364 = arith.constant 0 : index
    %1687 = vector.load %arg6[%c0_1363, %c0_1364] : memref<128x128xbf16, #tpu.memory_space<vmem>>, vector<128x128xbf16>
    %cst_1365 = arith.constant dense<0.000000e+00> : vector<2x128xf32>
    %1688 = tpu.matmul %1686, %1687, %cst_1365 {dimension_numbers = #tpu.dot_dimension_numbers<[1], [0], [0], [1], [0, 0, 1, 1], [], []>} : vector<2x128xbf16>, vector<128x128xbf16>, vector<2x128xf32> -> vector<2x128xf32>
    %c0_1366 = arith.constant 0 : index
    %c0_1367 = arith.constant 0 : index
    %1689 = vector.load %arg7[%c0_1366, %c0_1367] : memref<1x128xf32, #tpu.memory_space<vmem>>, vector<1x128xf32>
    %1690 = vector.broadcast %1689 : vector<1x128xf32> to vector<2x128xf32>
    %1691 = arith.addf %1688, %1690 : vector<2x128xf32>
    %c0_1368 = arith.constant 0 : index
    %c0_1369 = arith.constant 0 : index
    %1692 = vector.load %arg8[%c0_1368, %c0_1369] : memref<2x128xf32, #tpu.memory_space<vmem>>, vector<2x128xf32>
    tpu.vector_store %arg8[%c0_1368, %c0_1369], %1691 {strides = array<i32>} : memref<2x128xf32, #tpu.memory_space<vmem>>, vector<2x128xf32>,
    return
  }
  func.func @transform_0(%arg0: i32) -> (i32, i32, i32) {
    %c0_i32 = arith.constant 0 : i32
    %c0_i32_0 = arith.constant 0 : i32
    %c0_i32_1 = arith.constant 0 : i32
    return %c0_i32, %arg0, %c0_i32_0 : i32, i32, i32
  }
  func.func @transform_1(%arg0: i32) -> (i32, i32) {
    %c0_i32 = arith.constant 0 : i32
    %c0_i32_0 = arith.constant 0 : i32
    %c0_i32_1 = arith.constant 0 : i32
    return %c0_i32, %c0_i32_0 : i32, i32
  }
  func.func @transform_2(%arg0: i32) -> i32 {
    %c0_i32 = arith.constant 0 : i32
    %c0_i32_0 = arith.constant 0 : i32
    return %c0_i32 : i32
  }
  func.func @transform_3(%arg0: i32) -> (i32, i32, i32) {
    %c0_i32 = arith.constant 0 : i32
    %c0_i32_0 = arith.constant 0 : i32
    %c0_i32_1 = arith.constant 0 : i32
    %c0_i32_2 = arith.constant 0 : i32
    return %c0_i32, %c0_i32_0, %c0_i32_1 : i32, i32, i32
  }
  func.func @transform_4(%arg0: i32) -> (i32, i32) {
    %c0_i32 = arith.constant 0 : i32
    %c0_i32_0 = arith.constant 0 : i32
    %c0_i32_1 = arith.constant 0 : i32
    return %c0_i32, %c0_i32_0 : i32, i32
  }
  func.func @transform_5(%arg0: i32) -> (i32, i32) {
    %c0_i32 = arith.constant 0 : i32
    %c0_i32_0 = arith.constant 0 : i32
    %c0_i32_1 = arith.constant 0 : i32
    return %c0_i32, %c0_i32_0 : i32, i32
  }
  func.func @transform_6(%arg0: i32) -> (i32, i32) {
    %c0_i32 = arith.constant 0 : i32
    %c0_i32_0 = arith.constant 0 : i32
    %c0_i32_1 = arith.constant 0 : i32
    return %c0_i32, %c0_i32_0 : i32, i32
  }
  func.func @transform_7(%arg0: i32) -> (i32, i32) {
    %c0_i32 = arith.constant 0 : i32
    %c0_i32_0 = arith.constant 0 : i32
    return %arg0, %c0_i32 : i32, i32
  }
}

</mosaic_0001>

<bundles_post_ra>
// kernel: mnist_cnn_forward.1
= control target key start
LH: loop header
LB: loop body
LE: loop exit
PB: predicated region body
PF: predicated region fallthrough
CT: control target
= control target key end

     0   :  { %12 = vsyncpa [#allocation4], 0  ;;  %s7545_s0 = inlined_call_operand.vmem [shape: f32[16,2,196], index: 0, kind: input, shape index: {}]   ;;  %s7546_s1 = inlined_call_operand.vmem [shape: f32[16,16], index: 1, kind: input, shape index: {}]   ;;  %s7547_s2 = inlined_call_operand.vmem [shape: f32[16], index: 2, kind: input, shape index: {}]   ;;  %s7548_s3 = inlined_call_operand.vmem [shape: bf16[16,196,128], index: 3, kind: input, shape index: {}]   ;;  %s7549_s4 = inlined_call_operand.vmem [shape: f32[1,128], index: 4, kind: input, shape index: {}]   ;;  %s7550_s5 = inlined_call_operand.vmem [shape: bf16[128,128], index: 5, kind: input, shape index: {}]   ;;  %s7551_s6 = inlined_call_operand.vmem [shape: f32[1,128], index: 6, kind: input, shape index: {}]   ;;  %s7552_s7 = inlined_call_operand.hbm [shape: f32[2,128], index: 7, kind: output, shape index: {}]  }
   0x1   :  { %13 = vsyncpa [#allocation6], 0 }
   0x2   :  { %14 = vsyncpa [#allocation3], 0  ;;  %s22_s26 = sshll.u32 %s7546_s1, 4  ;;  %s35_s29 = sshll.u32 %s7547_s2, 4  ;;  %s23_s26 = int_to_ptr.vmem [resolvable:$true] %s22_s26  ;;  %s36_s29 = int_to_ptr.vmem [resolvable:$true] %s35_s29 }
   0x3   :  { %s5067_s30 = scalar_lea.vmem %s23_s26, 256  ;;  %p5072_p1 = scmp.lt.s32.totalorder %s23_s26, %s23_s26 }
   0x4   :  { %p5068_p0 = scmp.ne.s32.totalorder %s23_s26, %s5067_s30  ;;  %p5073_p2 = scmp.lt.s32.totalorder %s5067_s30, %s5067_s30 }
   0x6   :  { %p5074_p3 = por %p5073_p2, %p5072_p1 }
   0x8   :  { %p5075_p4 = pnand %p5074_p3, %p5068_p0 }
   0xa   :  { %5078 = shalt.err (!%p5075_p4)
}
   0xb   :  { %s5117_s8 = smov [#allocation2]   ;;  %s5118_s9 = smov 128  }
   0xc   :  { %s5119_s10 = smov 8   ;;  %s5079_s11 = scalar_lea.vmem %s36_s29, 16 }
   0xd   :  { %28 = dma.vmem_to_smem %s23_s26, 256, %s5117_s8, [#allocation4], %s5118_s9, %s5118_s9, %s5119_s10  }
   0xe   :  { %p5080_p5 = scmp.ne.s32.totalorder %s36_s29, %s5079_s11  ;;  %p5084_p6 = scmp.lt.s32.totalorder %s36_s29, %s36_s29 }
   0xf   :  { %p5085_p7 = scmp.lt.s32.totalorder %s5079_s11, %s5079_s11 }
  0x11   :  { %p5086_p8 = por %p5085_p7, %p5084_p6 }
  0x13   :  { %p5087_p9 = pnand %p5086_p8, %p5080_p5 }
  0x15   :  { %5090 = shalt.err (!%p5087_p9)
}
  0x16   :  { %s5120_s1 = smov [#allocation5]  }
  0x17   :  { %38 = dma.vmem_to_smem %s36_s29, 16, %s5120_s1, [#allocation6]  }
  0x18   :  { %5111 = dma.done.wait [#allocation4], 256  }
  0x19   :  { %5112 = vsyncadd [#allocation4], 4294967040 }
  0x1a   :  { %5113 = dma.done.wait [#allocation6], 16  }
  0x1b   :  { %5114 = vsyncadd [#allocation6], 4294967280 }
  0x1c   :  { %53 = sfence }
  0x1d   :  { %v4803_v0 = vld [vmem:[%s7548_s3 + $0x9c] sm:$0xff]   ;;  %v5121_v1 = vmov 0   ;;  %v4805_v3 = vld [vmem:[%s7548_s3 + $0x94] sm:$0xff]   ;;  %v4807_v5 = vld [vmem:[%s7548_s3 + $0x8c] sm:$0xff]   ;;  %vm376_vm0 = vcmask 1041408   ;;  %s5244_s22 = sld [smem:[#allocation5 + $0x1]] }
  0x1e   :  { %380 = vmatprep.subr.bf16.mxu0 %v5121_v1  ;;  %501 = vmatprep.subr.bf16.mxu1 %v5121_v1  ;;  %v4804_v2 = vld [vmem:[%s7548_s3 + $0x38] sm:$0xff]   ;;  %v4806_v4 = vld [vmem:[%s7548_s3 + $0x30] sm:$0xff]   ;;  %v4808_v6 = vld [vmem:[%s7548_s3 + $0x28] sm:$0xff]   ;;  %s3902_s25 = sld [smem:[#allocation2 + $0x80]]  ;;  %vm372_vm1 = vcmask 556032   ;;  %vm5124_vm2 = vmmov 0  }
  0x1f   :  { %381 = vmatpush1.bf16.msra.mxu0 %v4803_v0  ;;  %502 = vmatpush1.bf16.msra.mxu1 %v4804_v2  ;;  %v4809_v7 = vld [vmem:[%s7548_s3 + $0x84] sm:$0xff]   ;;  %v4811_v9 = vld [vmem:[%s7548_s3 + $0x7c] sm:$0xff]   ;;  %v4813_v11 = vld [vmem:[%s7548_s3 + $0x74] sm:$0xff]   ;;  %s3903_s28 = sld [smem:[#allocation2 + $0x81]] }
  0x20   :  { %382 = vmatprep.subr.bf16.mxu0 %v5121_v1  ;;  %503 = vmatprep.subr.bf16.mxu1 %v5121_v1  ;;  %v4810_v8 = vld [vmem:[%s7548_s3 + $0x20] sm:$0xff]   ;;  %v4812_v10 = vld [vmem:[%s7548_s3 + $0x18] sm:$0xff]   ;;  %v4814_v12 = vld [vmem:[%s7548_s3 + $0x10] sm:$0xff]   ;;  %s3904_s8 = sld [smem:[#allocation2 + $0x82]] }
  0x21   :  { %v4815_v13 = vld [vmem:[%s7548_s3 + $0x6c] sm:$0xff]   ;;  %v4817_v15 = vld [vmem:[%s7548_s3 + $0x64] sm:$0xff]   ;;  %v4820_v18 = vld [vmem:[%s7548_s3 + $0x60] ss:$0 sps:$4 sm:$0x33]   ;;  %s5265_s11 = sld [smem:[#allocation2 + $0x83]] }
  0x22   :  { %v4816_v14 = vld [vmem:[%s7548_s3 + $0x8] sm:$0xff]   ;;  %v4819_v16 = vld [vmem:[%s7548_s3 + $0xc4] ss:$0 sps:$4 sm:$0x33]   ;;  %v499_v20 = vsel %vm376_vm0, %v4820_v18, 0  ;;  %v4821_v21 = vld [vmem:[%s7548_s3 + $0xbc] sm:$0xff]  }
  0x23   :  { %383 = vmatpush1.bf16.msra.mxu0 %v4805_v3  ;;  %504 = vmatpush1.bf16.msra.mxu1 %v4806_v4  ;;  %v4818_v17 = vld [vmem:[%s7548_s3] sm:$0xff]   ;;  %v378_v19 = vsel %vm376_vm0, %v4819_v16, 0  ;;  %v4822_v22 = vld [vmem:[%s7548_s3 + $0x58] sm:$0xff]   ;;  %s5271_s12 = sld [smem:[#allocation2 + $0x84]]  ;;  %v5276_v26 = vld [vmem:[%s7545_s0 + $0x8] sm:$0xf]  ;;  %v192_v27 = vstv %s5244_s22 }
  0x24   :  { %384 = vmatprep.subr.bf16.mxu0 %v5121_v1  ;;  %505 = vmatprep.subr.bf16.mxu1 %v5121_v1  ;;  %v5257_v23 = vld [vmem:[%s7545_s0] sm:$0xf]  ;;  %v5263_v24 = vld [vmem:[%s7545_s0 + $0x4] sm:$0xf]  ;;  %v4823_v25 = vld [vmem:[%s7548_s3 + $0xb4] sm:$0xff]   ;;  %s5278_s15 = sld [smem:[#allocation2 + $0x85]]  ;;  %v194_v28 = vstv %s3902_s25 }
  0x25   :  { %s5281_s16 = sld [smem:[#allocation2 + $0x86]]  ;;  %v4824_v29 = vld [vmem:[%s7548_s3 + $0x50] sm:$0xff]   ;;  %v5290_v30 = vld [vmem:[%s7545_s0 + $0xc] sm:$0xf]  ;;  %v195_v31 = vmul.f32 %v194_v28, %v5257_v23  ;;  %v198_v32 = vstv %s3903_s28  ;;  %v4827_v45 = vld [vmem:[%s7548_s3 + $0xa4] sm:$0xff]  }
  0x26   :  { %v4825_v33 = vld [vmem:[%s7548_s3 + $0xac] sm:$0xff]   ;;  %v199_v35 = vmul.f32 %v5263_v24, %v198_v32  ;;  %v202_v36 = vstv %s3904_s8  ;;  %s5303_s25 = sld [smem:[#allocation2 + $0x87]]  ;;  %v5315_v41 = vld [vmem:[%s7545_s0 + $0x14] sm:$0xf]  ;;  %v5331_v46 = vld [vmem:[%s7545_s0 + $0x18] sm:$0xf] }
  0x27   :  { %385 = vmatpush1.bf16.msra.mxu0 %v4807_v5  ;;  %506 = vmatpush1.bf16.msra.mxu1 %v4808_v6  ;;  %v5300_v34 = vld [vmem:[%s7545_s0 + $0x10] sm:$0xf]  ;;  %v4826_v37 = vld [vmem:[%s7548_s3 + $0x48] sm:$0xff]   ;;  %v196_v38 = vadd.f32 %v195_v31, %v192_v27  ;;  %v203_v39 = vmul.f32 %v5276_v26, %v202_v36  ;;  %v206_v40 = vstv %s5265_s11  ;;  %s5310_s28 = sld [smem:[#allocation2 + $0x88]]  ;;  %v4828_v48 = vld [vmem:[%s7548_s3 + $0x40] sm:$0xff]  }
  0x28   :  { %386 = vmatprep.subr.bf16.mxu0 %v5121_v1  ;;  %507 = vmatprep.subr.bf16.mxu1 %v5121_v1  ;;  %s5318_s8 = sld [smem:[#allocation2 + $0x89]]  ;;  %v207_v44 = vmul.f32 %v5290_v30, %v206_v40  ;;  %v5349_v52 = vld [vmem:[%s7545_s0 + $0x1c] sm:$0xf]  ;;  %v5361_v56 = vld [vmem:[%s7545_s0 + $0x20] sm:$0xf] }
  0x29   :  { %v210_v42 = vstv %s5271_s12  ;;  %v200_v43 = vadd.f32 %v199_v35, %v196_v38  ;;  %s5322_s9 = sld [smem:[#allocation2 + $0x8a]]  ;;  %v5372_v62 = vld [vmem:[%s7545_s0 + $0x24] sm:$0xf]  ;;  %v5384_v3 = vld [vmem:[%s7545_s0 + $0x28] sm:$0xf]  ;;  %v157_v35 = vlaneseq }
  0x2a   :  { %v214_v47 = vstv %s5278_s15  ;;  %s5334_s12 = sld [smem:[#allocation2 + $0x8b]]  ;;  %v211_v50 = vmul.f32 %v5300_v34, %v210_v42  ;;  %v5392_v5 = vld [vmem:[%s7545_s0 + $0x2c] sm:$0xf]  ;;  %v5415_v18 = vld [vmem:[%s7545_s0 + $0x34] sm:$0xf] }
  0x2b   :  { %387 = vmatpush1.bf16.msra.mxu0 %v4809_v7  ;;  %508 = vmatpush1.bf16.msra.mxu1 %v4810_v8  ;;  %v204_v49 = vadd.f32 %v203_v39, %v200_v43  ;;  %s5340_s17 = sld [smem:[#allocation2 + $0x8c]]  ;;  %v218_v51 = vstv %s5281_s16  ;;  %v215_v54 = vmul.f32 %v5315_v41, %v214_v47  ;;  %v5442_v39 = vld [vmem:[%s7545_s0 + $0x3c] sm:$0xf] }
  0x2c   :  { %388 = vmatprep.subr.bf16.mxu0 %v5121_v1  ;;  %509 = vmatprep.subr.bf16.mxu1 %v5121_v1  ;;  %s5343_s18 = sld [smem:[#allocation2 + $0x8d]]  ;;  %v222_v55 = vstv %s5303_s25  ;;  %v219_v58 = vmul.f32 %v5331_v46, %v218_v51 }
  0x2d   :  { %v208_v53 = vadd.f32 %v207_v44, %v204_v49  ;;  %s5352_s20 = sld [smem:[#allocation2 + $0x8e]]  ;;  %v226_v59 = vstv %s5310_s28  ;;  %v223_v61 = vmul.f32 %v5349_v52, %v222_v55  ;;  %v5122_v44 = vmov 1983009808  }
  0x2e   :  { %s5356_s16 = sld [smem:[#allocation5]]  ;;  %v230_v63 = vstv %s5318_s8  ;;  %v227_v2 = vmul.f32 %v5361_v56, %v226_v59 }
  0x2f   :  { %389 = vmatpush1.bf16.msra.mxu0 %v4811_v9  ;;  %510 = vmatpush1.bf16.msra.mxu1 %v4812_v10  ;;  %v212_v57 = vadd.f32 %v211_v50, %v208_v53  ;;  %s57_s23 = sld [smem:[#allocation2]]  ;;  %v234_v4 = vstv %s5322_s9  ;;  %v231_v7 = vmul.f32 %v5372_v62, %v230_v63  ;;  %v5401_v10 = vld [vmem:[%s7545_s0 + $0x30] sm:$0xf] }
  0x30   :  { %390 = vmatprep.subr.bf16.mxu0 %v5121_v1  ;;  %511 = vmatprep.subr.bf16.mxu1 %v5121_v1  ;;  %s3871_s24 = sld [smem:[#allocation2 + $0x1]] }
  0x31   :  { %v216_v60 = vadd.f32 %v215_v54, %v212_v57  ;;  %s5366_s25 = sld [smem:[#allocation2 + $0x2]]  ;;  %v158_v54 = vshrl.u32 %v157_v35, 7 }
  0x32   :  { %s5375_s29 = sld [smem:[#allocation2 + $0x3]]  ;;  %v246_v31 = vstv %s5343_s18 }
  0x33   :  { %391 = vmatpush1.bf16.msra.mxu0 %v4813_v11  ;;  %512 = vmatpush1.bf16.msra.mxu1 %v4814_v12  ;;  %v220_v0 = vadd.f32 %v219_v58, %v216_v60  ;;  %s5379_s28 = sld [smem:[#allocation2 + $0x4]]  ;;  %v238_v11 = vstv %s5334_s12  ;;  %v250_v40 = vstv %s5352_s20 }
  0x34   :  { %392 = vmatprep.subr.bf16.mxu0 %v5121_v1  ;;  %513 = vmatprep.subr.bf16.mxu1 %v5121_v1  ;;  %s5387_s11 = sld [smem:[#allocation2 + $0x5]]  ;;  %v56_v8 = vstv %s5356_s16  ;;  %v239_v27 = vmul.f32 %v5392_v5, %v238_v11 }
  0x35   :  { %v224_v6 = vadd.f32 %v223_v61, %v220_v0  ;;  %v59_v9 = vstv %s57_s23  ;;  %s5396_s2 = sld [smem:[#allocation2 + $0x6]] }
  0x36   :  { %s5404_s9 = sld [smem:[#allocation2 + $0x8f]]  ;;  %v60_v12 = vmul.f32 %v59_v9, %v5257_v23 }
  0x37   :  { %393 = vmatpush1.bf16.msra.mxu0 %v4815_v13  ;;  %514 = vmatpush1.bf16.msra.mxu1 %v4816_v14  ;;  %v65_v13 = vstv %s3871_s24  ;;  %v228_v14 = vadd.f32 %v227_v2, %v224_v6  ;;  %s5410_s15 = sld [smem:[#allocation2 + $0x7]] }
  0x38   :  { %394 = vmatprep.subr.bf16.mxu0 %v5121_v1  ;;  %515 = vmatprep.subr.bf16.mxu1 %v5121_v1  ;;  %v66_v16 = vmul.f32 %v5263_v24, %v65_v13  ;;  %s5420_s12 = sld [smem:[#allocation2 + $0x8]] }
  0x39   :  { %v83_v28 = vstv %s5379_s28  ;;  %s5424_s21 = sld [smem:[#allocation2 + $0x9]] }
  0x3a   :  { %v89_v38 = vstv %s5387_s11  ;;  %s5437_s24 = sld [smem:[#allocation2 + $0xb]]  ;;  %v84_v43 = vmul.f32 %v5300_v34, %v83_v28 }
  0x3b   :  { %395 = vmatpush1.bf16.msra.mxu0 %v4817_v15  ;;  %516 = vmatpush1.bf16.msra.mxu1 %v4818_v17  ;;  %v235_v15 = vmul.f32 %v5384_v3, %v234_v4  ;;  %v71_v17 = vstv %s5366_s25  ;;  %s5446_s18 = sld [smem:[#allocation2 + $0xc]]  ;;  %v95_v49 = vstv %s5396_s2  ;;  %v90_v53 = vmul.f32 %v5315_v41, %v89_v38 }
  0x3c   :  { %402 = vmatprep.subr.bf16.mxu0 %v5121_v1  ;;  %523 = vmatprep.subr.bf16.mxu1 %v5121_v1  ;;  %s5450_s27 = sld [smem:[#allocation2 + $0xd]]  ;;  %v254_v50 = vstv %s5404_s9  ;;  %v96_v60 = vmul.f32 %v5331_v46, %v95_v49 }
  0x3d   :  { %s5454_s20 = sld [smem:[#allocation2 + $0xe]]  ;;  %v101_v58 = vstv %s5410_s15  ;;  %v255_v0 = vmul.f32 %v5442_v39, %v254_v50 }
  0x3e   :  { %s3972_s28 = sld [smem:[#allocation2 + $0x100]]  ;;  %v107_v2 = vstv %s5420_s12  ;;  %v102_v6 = vmul.f32 %v5349_v52, %v101_v58 }
  0x3f   :  { %403 = vmatpush2.bf16.msra.mxu0 %v378_v19  ;;  %524 = vmatpush2.bf16.msra.mxu1 %v499_v20  ;;  %v242_v19 = vstv %s5340_s17  ;;  %v61_v20 = vadd.f32 %v60_v12, %v56_v8  ;;  %s5433_s17 = sld [smem:[#allocation2 + $0xa]]  ;;  %v108_v12 = vmul.f32 %v5361_v56, %v107_v2  ;;  %v4831_v2 = vld [vmem:[%s7548_s3 + $0xf8] sm:$0xff]  }
  0x40   :  { %404 = vmatprep.subr.bf16.mxu0 %v5121_v1  ;;  %525 = vmatprep.subr.bf16.mxu1 %v5121_v1  ;;  %s3973_s30 = sld [smem:[#allocation2 + $0x101]] }
  0x41   :  { %v67_v32 = vadd.f32 %v66_v16, %v61_v20  ;;  %s3974_s10 = sld [smem:[#allocation2 + $0x102]] }
  0x42   :  { %s5466_s11 = sld [smem:[#allocation2 + $0x103]] }
  0x43   :  { %405 = vmatpush2.bf16.msra.mxu0 %v4821_v21  ;;  %526 = vmatpush2.bf16.msra.mxu1 %v4822_v22  ;;  %v72_v21 = vmul.f32 %v5276_v26, %v71_v17  ;;  %v77_v22 = vstv %s5375_s29  ;;  %s5458_s29 = sld [smem:[#allocation5 + $0x2]] }
  0x44   :  { %406 = vmatprep.subr.bf16.mxu0 %v5121_v1  ;;  %527 = vmatprep.subr.bf16.mxu1 %v5121_v1  ;;  %s5469_s8 = sld [smem:[#allocation2 + $0x104]]  ;;  %v544_v20 = vstv %s3972_s28 }
  0x45   :  { %v73_v42 = vadd.f32 %v72_v21, %v67_v32  ;;  %v119_v9 = vstv %s5433_s17  ;;  %s5474_s1 = sld [smem:[#allocation2 + $0x105]] }
  0x46   :  { %v120_v17 = vmul.f32 %v5384_v3, %v119_v9  ;;  %s5478_s2 = sld [smem:[#allocation2 + $0x106]] }
  0x47   :  { %407 = vmatpush2.bf16.msra.mxu0 %v4823_v25  ;;  %528 = vmatpush2.bf16.msra.mxu1 %v4824_v29  ;;  %v232_v25 = vadd.f32 %v231_v7, %v228_v14  ;;  %v5429_v29 = vld [vmem:[%s7545_s0 + $0x38] sm:$0xf]  ;;  %v113_v7 = vstv %s5424_s21  ;;  %s5481_s13 = sld [smem:[#allocation2 + $0xf]] }
  0x48   :  { %408 = vmatprep.subr.bf16.mxu0 %v5121_v1  ;;  %529 = vmatprep.subr.bf16.mxu1 %v5121_v1  ;;  %v251_v57 = vmul.f32 %v5429_v29, %v250_v40  ;;  %s5486_s14 = sld [smem:[#allocation2 + $0x107]]  ;;  %v556_v38 = vstv %s5466_s11 }
  0x49   :  { %v236_v36 = vadd.f32 %v235_v15, %v232_v25  ;;  %v114_v15 = vmul.f32 %v5372_v62, %v113_v7  ;;  %v545_v25 = vmul.f32 %v544_v20, %v5257_v23  ;;  %s5491_s9 = sld [smem:[#allocation2 + $0x108]] }
  0x4a   :  { %s5495_s15 = sld [smem:[#allocation2 + $0x109]] }
  0x4b   :  { %409 = vmatpush2.bf16.msra.mxu0 %v4825_v33  ;;  %530 = vmatpush2.bf16.msra.mxu1 %v4826_v37  ;;  %v78_v33 = vmul.f32 %v5290_v30, %v77_v22  ;;  %v243_v37 = vmul.f32 %v5401_v10, %v242_v19  ;;  %v240_v47 = vadd.f32 %v239_v27, %v236_v36  ;;  %v542_v19 = vstv %s5458_s29  ;;  %s5499_s19 = sld [smem:[#allocation2 + $0x10a]] }
  0x4c   :  { %410 = vmatprep.subr.bf16.mxu0 %v5121_v1  ;;  %531 = vmatprep.subr.bf16.mxu1 %v5121_v1  ;;  %v125_v22 = vstv %s5437_s24  ;;  %v548_v27 = vstv %s3973_s30  ;;  %v546_v36 = vadd.f32 %v545_v25, %v542_v19  ;;  %s5503_s16 = sld [smem:[#allocation2 + $0x10b]]  ;;  %v4833_v25 = vld [vmem:[%s7548_s3 + $0xf0] sm:$0xff]  }
  0x4d   :  { %v79_v51 = vadd.f32 %v78_v33, %v73_v42  ;;  %v244_v55 = vadd.f32 %v243_v37, %v240_v47  ;;  %v549_v32 = vmul.f32 %v5263_v24, %v548_v27  ;;  %v552_v33 = vstv %s3974_s10  ;;  %s5510_s22 = sld [smem:[#allocation2 + $0x10c]] }
  0x4e   :  { %v553_v37 = vmul.f32 %v5276_v26, %v552_v33  ;;  %v126_v42 = vmul.f32 %v5392_v5, %v125_v22  ;;  %s5514_s23 = sld [smem:[#allocation2 + $0x10d]]  ;;  %v572_v9 = vstv %s5486_s14 }
  0x4f   :  { %411 = vmatpush2.bf16.msra.mxu0 %v4827_v45  ;;  %532 = vmatpush2.bf16.msra.mxu1 %v4828_v48  ;;  %v155_v45 = vunpack.c.l.s4 %v5122_v44  ;;  %v247_v48 = vmul.f32 %v5415_v18, %v246_v31  ;;  %v85_v59 = vadd.f32 %v84_v43, %v79_v51  ;;  %v131_v31 = vstv %s5446_s18  ;;  %s5522_s25 = sld [smem:[#allocation2 + $0x10e]] }
  0x50   :  { %728 = vmatprep.subr.bf16.mxu0 %v5121_v1  ;;  %956 = vmatprep.subr.bf16.mxu1 %v5121_v1  ;;  %v560_v43 = vstv %s5469_s8  ;;  %v550_v47 = vadd.f32 %v549_v32, %v546_v36  ;;  %v132_v50 = vmul.f32 %v5401_v10, %v131_v31  ;;  %s5526_s26 = sld [smem:[#allocation5 + $0x3]]  ;;  %v573_v19 = vmul.f32 %v5349_v52, %v572_v9  ;;  %v4830_v9 = vld [vmem:[%s7548_s3 + $0x164] sm:$0xff]  }
  0x51   :  { %v156_v61 = vunpack.c.0.s8 %v155_v45  ;;  %v248_v63 = vadd.f32 %v247_v48, %v244_v55  ;;  %v91_v4 = vadd.f32 %v90_v53, %v85_v59  ;;  %v137_v45 = vstv %s5450_s27  ;;  %s5529_s18 = sld [smem:[#allocation2 + $0x180]] }
  0x52   :  { %v557_v48 = vmul.f32 %v5290_v30, %v556_v38  ;;  %v564_v53 = vstv %s5474_s1  ;;  %v143_v55 = vstv %s5454_s20  ;;  %v554_v58 = vadd.f32 %v553_v37, %v550_v47  ;;  %s5534_s27 = sld [smem:[#allocation2 + $0x181]] }
  0x53   :  { %v252_v8 = vadd.f32 %v251_v57, %v248_v63  ;;  %v97_v11 = vadd.f32 %v96_v60, %v91_v4  ;;  %v5471_v13 = vsub.s32 %v156_v61, %v158_v54  ;;  %v4829_v57 = vld [vmem:[%s7548_s3 + $0x100] sm:$0xff]   ;;  %v561_v59 = vmul.f32 %v5300_v34, %v560_v43  ;;  %s5538_s20 = sld [smem:[#allocation2 + $0x182]] }
  0x54   :  { %v138_v61 = vmul.f32 %v5415_v18, %v137_v45  ;;  %v568_v63 = vstv %s5478_s2  ;;  %v558_v4 = vadd.f32 %v557_v48, %v554_v58  ;;  %v580_v20 = vstv %s5495_s15  ;;  %s5541_s29 = sld [smem:[#allocation2 + $0x183]] }
  0x55   :  { %v256_v14 = vadd.f32 %v255_v0, %v252_v8  ;;  %v103_v16 = vadd.f32 %v102_v6, %v97_v11  ;;  %v149_v0 = vstv %s5481_s13  ;;  %v565_v6 = vmul.f32 %v5315_v41, %v564_v53  ;;  %s5547_s10 = sld [smem:[#allocation2 + $0x184]] }
  0x56   :  { %v144_v8 = vmul.f32 %v5429_v29, %v143_v55  ;;  %v562_v11 = vadd.f32 %v561_v59, %v558_v4  ;;  %v584_v22 = vstv %s5499_s19  ;;  %v581_v32 = vmul.f32 %v5372_v62, %v580_v20  ;;  %s5551_s11 = sld [smem:[#allocation2 + $0x185]]  ;;  %v4837_v55 = vld [vmem:[%s7548_s3 + $0xe0] sm:$0xff]   ;;  %v4839_v20 = vld [vmem:[%s7548_s3 + $0xd8] sm:$0xff]  }
  0x57   :  { %v257_v21 = vmax.f32 %v256_v14, 0.0  ;;  %v109_v28 = vadd.f32 %v108_v12, %v103_v16  ;;  %v569_v12 = vmul.f32 %v5331_v46, %v568_v63  ;;  %v576_v16 = vstv %s5491_s9  ;;  %s5556_s8 = sld [smem:[#allocation2 + $0x186]] }
  0x58   :  { %v770_v36 = vstv %s5526_s26  ;;  %v772_v37 = vstv %s5529_s18  ;;  %s5562_s13 = sld [smem:[#allocation2 + $0x10f]]  ;;  %v592_v47 = vstv %s5510_s22 }
  0x59   :  { %v265_v35 = vrot.slane %v257_v21, %v5471_v13  ;;  %v115_v40 = vadd.f32 %v114_v15, %v109_v28  ;;  %v150_v15 = vmul.f32 %v5442_v39, %v149_v0  ;;  %v577_v28 = vmul.f32 %v5361_v56, %v576_v16  ;;  %s5569_s14 = sld [smem:[#allocation2 + $0x187]] }
  0x5a   :  { %v773_v43 = vmul.f32 %v772_v37, %v5257_v23  ;;  %s5575_s9 = sld [smem:[#allocation2 + $0x188]] }
  0x5b   :  { %v266_v44 = vcombine.high %v265_v35, %v265_v35  ;;  %v121_v49 = vadd.f32 %v120_v17, %v115_v40  ;;  %v269_v51 = vpack.c.bf16 %v265_v35, %v265_v35  ;;  %v566_v17 = vadd.f32 %v565_v6, %v562_v11  ;;  %v4835_v40 = vld [vmem:[%s7548_s3 + $0xe8] sm:$0xff]   ;;  %s5586_s12 = sld [smem:[#allocation2 + $0x18a]] }
  0x5c   :  { %v585_v35 = vmul.f32 %v5384_v3, %v584_v22  ;;  %v788_v59 = vstv %s5547_s10  ;;  %v593_v6 = vmul.f32 %v5401_v10, %v592_v47  ;;  %s5590_s21 = sld [smem:[#allocation2 + $0x18b]]  ;;  %v600_v11 = vstv %s5522_s25 }
  0x5d   :  { %v270_v54 = vpack.c.bf16 %v266_v44, %v266_v44  ;;  %v127_v60 = vadd.f32 %v126_v42, %v121_v49  ;;  %v570_v27 = vadd.f32 %v569_v12, %v566_v17  ;;  %v588_v42 = vstv %s5503_s16  ;;  %s5582_s16 = sld [smem:[#allocation2 + $0x189]] }
  0x5e   :  { %v776_v44 = vstv %s5534_s27  ;;  %v780_v49 = vstv %s5538_s20  ;;  %v589_v58 = vmul.f32 %v5392_v5, %v588_v42  ;;  %v796_v17 = vstv %s5556_s8  ;;  %s5602_s24 = sld [smem:[#allocation2 + $0x18d]] }
  0x5f   :  { %3956 = vmatprep.mubr.msk.bf16.mxu0 %vm372_vm1, %v270_v54  ;;  %v133_v7 = vadd.f32 %v132_v50, %v127_v60  ;;  %v574_v33 = vadd.f32 %v573_v19, %v570_v27  ;;  %v777_v48 = vmul.f32 %v5263_v24, %v776_v44  ;;  %v781_v53 = vmul.f32 %v5276_v26, %v780_v49  ;;  %v4832_v19 = vld [vmem:[%s7548_s3 + $0x15c] sm:$0xff]   ;;  %s5613_s20 = sld [smem:[#allocation2 + $0x18e]]  ;;  %v4841_v44 = vld [vmem:[%s7548_s3 + $0xd0] sm:$0xff]  }
  0x60   :  { %413 = vmatmul.mubr.bf16.vlgmr.msra.gmra.mxu0 %v269_v51  ;;  %v774_v51 = vadd.f32 %v773_v43, %v770_v36  ;;  %v784_v54 = vstv %s5541_s29  ;;  %s5617_s29 = sld [smem:[#allocation5 + $0x4]]  ;;  %v804_v37 = vstv %s5575_s9  ;;  %v4834_v43 = vld [vmem:[%s7548_s3 + $0x154] sm:$0xff]  }
  0x61   :  { %729 = vmatpush1.bf16.msra.mxu0 %v4829_v57  ;;  %v139_v14 = vadd.f32 %v138_v61, %v133_v7  ;;  %v578_v45 = vadd.f32 %v577_v28, %v574_v33  ;;  %v596_v61 = vstv %s5514_s23  ;;  %v785_v0 = vmul.f32 %v5290_v30, %v784_v54  ;;  %s5598_s23 = sld [smem:[#allocation2 + $0x18c]]  ;;  %v4845_v54 = vld [vmem:[%s7548_s3 + $0x128] ss:$0 sps:$4 sm:$0x33]  }
  0x62   :  { %730 = vmatprep.subr.bf16.mxu0 %v5121_v1  ;;  %v778_v63 = vadd.f32 %v777_v48, %v774_v51  ;;  %v792_v7 = vstv %s5551_s11  ;;  %v597_v16 = vmul.f32 %v5415_v18, %v596_v61  ;;  %v601_v28 = vmul.f32 %v5429_v29, %v600_v11  ;;  %s5621_s28 = sld [smem:[#allocation2 + $0x200]] }
  0x63   :  { %v145_v21 = vadd.f32 %v144_v8, %v139_v14  ;;  %v582_v57 = vadd.f32 %v581_v32, %v578_v45  ;;  %v789_v14 = vmul.f32 %v5300_v34, %v788_v59  ;;  %v797_v33 = vmul.f32 %v5331_v46, %v796_v17  ;;  %s5626_s30 = sld [smem:[#allocation2 + $0x201]] }
  0x64   :  { %v782_v12 = vadd.f32 %v781_v53, %v778_v63  ;;  %v808_v42 = vstv %s5582_s16  ;;  %s5630_s10 = sld [smem:[#allocation2 + $0x202]]  ;;  %v812_v47 = vstv %s5586_s12  ;;  %v805_v49 = vmul.f32 %v5361_v56, %v804_v37  ;;  %v4836_v53 = vld [vmem:[%s7548_s3 + $0x14c] sm:$0xff]   ;;  %v4840_v37 = vld [vmem:[%s7548_s3 + $0x13c] sm:$0xff]  }
  0x65   :  { %731 = vmatpush1.bf16.msra.mxu0 %v4831_v2  ;;  %v151_v31 = vadd.f32 %v150_v15, %v145_v21  ;;  %v586_v4 = vadd.f32 %v585_v35, %v582_v57  ;;  %v604_v21 = vstv %s5562_s13  ;;  %s5639_s13 = sld [smem:[#allocation2 + $0x203]]  ;;  %v809_v51 = vmul.f32 %v5372_v62, %v808_v42 }
  0x66   :  { %732 = vmatprep.subr.bf16.mxu0 %v5121_v1  ;;  %v786_v22 = vadd.f32 %v785_v0, %v782_v12  ;;  %v605_v36 = vmul.f32 %v5442_v39, %v604_v21  ;;  %s5647_s9 = sld [smem:[#allocation2 + $0x205]]  ;;  %v813_v57 = vmul.f32 %v5384_v3, %v812_v47  ;;  %v816_v63 = vstv %s5590_s21 }
  0x67   :  { %v152_v38 = vmax.f32 %v151_v31, 0.0  ;;  %v590_v15 = vadd.f32 %v589_v58, %v586_v4  ;;  %v800_v31 = vstv %s5569_s14  ;;  %s5643_s14 = sld [smem:[#allocation2 + $0x204]]  ;;  %v998_v58 = vstv %s5617_s29 }
  0x68   :  { %v790_v32 = vadd.f32 %v789_v14, %v786_v22  ;;  %v1000_v59 = vstv %s5621_s28  ;;  %s5658_s22 = sld [smem:[#allocation2 + $0x206]]  ;;  %v824_v17 = vstv %s5602_s24  ;;  %v726_v21 = vsel %vm376_vm0, %v4845_v54, 0 }
  0x69   :  { %733 = vmatpush1.bf16.msra.mxu0 %v4833_v25  ;;  %v160_v50 = vrot.slane %v152_v38, %v5471_v13  ;;  %v793_v25 = vmul.f32 %v5315_v41, %v792_v7  ;;  %v594_v27 = vadd.f32 %v593_v6, %v590_v15  ;;  %s5664_s18 = sld [smem:[#allocation2 + $0x18f]]  ;;  %v1001_v0 = vmul.f32 %v1000_v59, %v5257_v23  ;;  %v4846_v59 = vld [vmem:[%s7548_s3 + $0x18c] ss:$0 sps:$4 sm:$0x33]  }
  0x6a   :  { %734 = vmatprep.subr.bf16.mxu0 %v5121_v1  ;;  %v820_v6 = vstv %s5598_s23  ;;  %s5672_s27 = sld [smem:[#allocation2 + $0x207]]  ;;  %v817_v15 = vmul.f32 %v5392_v5, %v816_v63 }
  0x6b   :  { %v161_v60 = vcombine.high %v160_v50, %v160_v50  ;;  %v164_v2 = vpack.c.bf16 %v160_v50, %v160_v50  ;;  %v598_v35 = vadd.f32 %v597_v16, %v594_v27  ;;  %v794_v38 = vadd.f32 %v793_v25, %v790_v32  ;;  %s5680_s21 = sld [smem:[#allocation2 + $0x208]] }
  0x6c   :  { %v1002_v11 = vadd.f32 %v1001_v0, %v998_v58  ;;  %v1012_v12 = vstv %s5639_s13  ;;  %s5684_s23 = sld [smem:[#allocation2 + $0x209]]  ;;  %v821_v25 = vmul.f32 %v5401_v10, %v820_v6  ;;  %v1020_v27 = vstv %s5647_s9  ;;  %v4851_v0 = vld [vmem:[%s7548_s3 + $0x110] sm:$0xff]  }
  0x6d   :  { %735 = vmatpush1.bf16.msra.mxu0 %v4835_v40  ;;  %v165_v8 = vpack.c.bf16 %v161_v60, %v161_v60  ;;  %v801_v40 = vmul.f32 %v5349_v52, %v800_v31  ;;  %v602_v45 = vadd.f32 %v601_v28, %v598_v35  ;;  %v798_v48 = vadd.f32 %v797_v33, %v794_v38  ;;  %v4843_v60 = vld [vmem:[%s7548_s3 + $0xc8] sm:$0xff]   ;;  %s5690_s25 = sld [smem:[#allocation2 + $0x20a]]  ;;  %v4847_v38 = vld [vmem:[%s7548_s3 + $0x120] sm:$0xff]  }
  0x6e   :  { %736 = vmatprep.subr.bf16.mxu0 %v5121_v1  ;;  %v1016_v16 = vstv %s5643_s14  ;;  %s5699_s24 = sld [smem:[#allocation2 + $0x20b]]  ;;  %v828_v28 = vstv %s5613_s20  ;;  %v825_v35 = vmul.f32 %v5415_v18, %v824_v17  ;;  %v1021_v42 = vmul.f32 %v5315_v41, %v1020_v27 }
  0x6f   :  { %3970 = vmatprep.mubr.msk.bf16.mxu1 %vm372_vm1, %v165_v8  ;;  %v606_v50 = vadd.f32 %v605_v36, %v602_v45  ;;  %v1008_v8 = vstv %s5630_s10  ;;  %v1017_v32 = vmul.f32 %v5300_v34, %v1016_v16  ;;  %v1024_v36 = vstv %s5658_s22  ;;  %s5708_s10 = sld [smem:[#allocation2 + $0x20d]] }
  0x70   :  { %534 = vmatmul.mubr.bf16.vlgmr.msra.gmra.mxu1 %v164_v2  ;;  %v1004_v2 = vstv %s5626_s30  ;;  %v1009_v23 = vmul.f32 %v5276_v26, %v1008_v8  ;;  %v4838_v26 = vld [vmem:[%s7548_s3 + $0x144] sm:$0xff]   ;;  %s5704_s30 = sld [smem:[#allocation2 + $0x20c]]  ;;  %v832_v34 = vstv %s5664_s18  ;;  %v1028_v45 = vstv %s5672_s27 }
  0x71   :  { %737 = vmatpush1.bf16.msra.mxu0 %v4837_v55  ;;  %957 = vmatpush1.bf16.msra.mxu1 %v4830_v9  ;;  %v802_v55 = vadd.f32 %v801_v40, %v798_v48  ;;  %v607_v61 = vmax.f32 %v606_v50, 0.0  ;;  %v1005_v7 = vmul.f32 %v5263_v24, %v1004_v2  ;;  %s5719_s20 = sld [smem:[#allocation2 + $0x20e]]  ;;  %v1025_v48 = vmul.f32 %v5331_v46, %v1024_v36 }
  0x72   :  { %738 = vmatprep.subr.bf16.mxu0 %v5121_v1  ;;  %958 = vmatprep.subr.bf16.mxu1 %v5121_v1  ;;  %s5724_s13 = sld [smem:[#allocation5 + $0x5]]  ;;  %v1032_v50 = vstv %s5680_s21  ;;  %v1029_v46 = vmul.f32 %v5349_v52, %v1028_v45  ;;  %v5837_v45 = vld [vmem:[%s7545_s0 + $0x10] sm:$0xf] }
  0x73   :  { %v806_v4 = vadd.f32 %v805_v49, %v802_v55  ;;  %v5676_v9 = vrot.slane %v607_v61, %v5471_v13  ;;  %s5728_s14 = sld [smem:[#allocation2 + $0x280]]  ;;  %v833_v49 = vmul.f32 %v5442_v39, %v832_v34  ;;  %v1036_v55 = vstv %s5684_s23 }
  0x74   :  { %s5732_s9 = sld [smem:[#allocation2 + $0x281]]  ;;  %v1040_v58 = vstv %s5690_s25  ;;  %v1033_v52 = vmul.f32 %v5361_v56, %v1032_v50  ;;  %v1037_v63 = vmul.f32 %v5372_v62, %v1036_v55  ;;  %v4844_v62 = vld [vmem:[%s7548_s3 + $0x12c] sm:$0xff]   ;;  %v1044_v8 = vstv %s5699_s24 }
  0x75   :  { %739 = vmatpush1.bf16.msra.mxu0 %v4839_v20  ;;  %959 = vmatpush1.bf16.msra.mxu1 %v4832_v19  ;;  %v810_v14 = vadd.f32 %v809_v51, %v806_v4  ;;  %v616_v24 = vcombine.high %v5676_v9, %v5676_v9  ;;  %v1006_v19 = vadd.f32 %v1005_v7, %v1002_v11  ;;  %v4842_v51 = vld [vmem:[%s7548_s3 + $0x134] sm:$0xff]   ;;  %s5742_s22 = sld [smem:[#allocation2 + $0x282]] }
  0x76   :  { %740 = vmatprep.subr.bf16.mxu0 %v5121_v1  ;;  %960 = vmatprep.subr.bf16.mxu1 %v5121_v1  ;;  %v1013_v20 = vmul.f32 %v5290_v30, %v1012_v12  ;;  %s5746_s17 = sld [smem:[#allocation2 + $0x283]]  ;;  %v1041_v4 = vmul.f32 %v5384_v3, %v1040_v58  ;;  %v5776_v3 = vld [vmem:[%s7545_s0] sm:$0xf] }
  0x77   :  { %v814_v22 = vadd.f32 %v813_v57, %v810_v14  ;;  %v620_v30 = vpack.c.bf16 %v616_v24, %v616_v24  ;;  %v1010_v31 = vadd.f32 %v1009_v23, %v1006_v19  ;;  %s5753_s27 = sld [smem:[#allocation2 + $0x284]]  ;;  %v1048_v14 = vstv %s5704_s30 }
  0x78   :  { %s5756_s21 = sld [smem:[#allocation2 + $0x285]]  ;;  %v1226_v6 = vstv %s5724_s13 }
  0x79   :  { %741 = vmatpush1.bf16.msra.mxu0 %v4841_v44  ;;  %961 = vmatpush1.bf16.msra.mxu1 %v4834_v43  ;;  %v818_v33 = vadd.f32 %v817_v15, %v814_v22  ;;  %v1014_v40 = vadd.f32 %v1013_v20, %v1010_v31  ;;  %v829_v44 = vmul.f32 %v5429_v29, %v828_v28  ;;  %v1228_v56 = vstv %s5728_s14  ;;  %s5764_s29 = sld [smem:[#allocation2 + $0x286]]  ;;  %v5785_v15 = vld [vmem:[%s7545_s0 + $0x4] sm:$0xf]  ;;  %v5797_v20 = vld [vmem:[%s7545_s0 + $0x8] sm:$0xf] }
  0x7a   :  { %742 = vmatprep.subr.bf16.mxu0 %v5121_v1  ;;  %962 = vmatprep.subr.bf16.mxu1 %v5121_v1  ;;  %s5771_s8 = sld [smem:[#allocation2 + $0x20f]]  ;;  %v1229_v11 = vmul.f32 %v5776_v3, %v1228_v56  ;;  %v1232_v23 = vstv %s5732_s9  ;;  %v954_v22 = vsel %vm376_vm0, %v4846_v59, 0  ;;  %v4850_v59 = vld [vmem:[%s7548_s3 + $0x17c] sm:$0xff]  }
  0x7b   :  { %4026 = vmatprep.mubr.msk.bf16.mxu0 %vm372_vm1, %v620_v30  ;;  %v822_v43 = vadd.f32 %v821_v25, %v818_v33  ;;  %v1018_v47 = vadd.f32 %v1017_v32, %v1014_v40  ;;  %v1233_v16 = vmul.f32 %v5785_v15, %v1232_v23  ;;  %v1236_v24 = vstv %s5742_s22  ;;  %s5789_s24 = sld [smem:[#allocation2 + $0x287]]  ;;  %v4853_v25 = vld [vmem:[%s7548_s3 + $0x108] sm:$0xff]   ;;  %v5911_v23 = vld [vmem:[%s7545_s0 + $0x24] sm:$0xf] }
  0x7c   :  { %v1230_v19 = vadd.f32 %v1229_v11, %v1226_v6  ;;  %s5801_s30 = sld [smem:[#allocation2 + $0x288]]  ;;  %v1045_v30 = vmul.f32 %v5392_v5, %v1044_v8  ;;  %v1052_v32 = vstv %s5708_s10  ;;  %v619_v5 = vpack.c.bf16 %v5676_v9, %v5676_v9 }
  0x7d   :  { %743 = vmatpush1.bf16.msra.mxu0 %v4843_v60  ;;  %963 = vmatpush1.bf16.msra.mxu1 %v4836_v53  ;;  %v826_v41 = vadd.f32 %v825_v35, %v822_v43  ;;  %v4849_v53 = vld [vmem:[%s7548_s3 + $0x118] sm:$0xff]   ;;  %v1022_v54 = vadd.f32 %v1021_v42, %v1018_v47  ;;  %v1244_v28 = vstv %s5753_s27  ;;  %s5809_s12 = sld [smem:[#allocation2 + $0x289]]  ;;  %v5818_v35 = vld [vmem:[%s7545_s0 + $0xc] sm:$0xf]  ;;  %v1056_v43 = vstv %s5719_s20 }
  0x7e   :  { %750 = vmatprep.subr.bf16.mxu0 %v5121_v1  ;;  %964 = vmatprep.subr.bf16.mxu1 %v5121_v1  ;;  %v1234_v33 = vadd.f32 %v1233_v16, %v1230_v19  ;;  %s5821_s26 = sld [smem:[#allocation2 + $0x28a]]  ;;  %v1248_v34 = vstv %s5756_s21  ;;  %v4855_v42 = vld [vmem:[%s7548_s3 + $0x1c8] sm:$0xff]   ;;  %v1245_v9 = vmul.f32 %v5837_v45, %v1244_v28  ;;  %v1053_v47 = vmul.f32 %v5415_v18, %v1052_v32 }
  0x7f   :  { %v830_v57 = vadd.f32 %v829_v44, %v826_v41  ;;  %v1026_v60 = vadd.f32 %v1025_v48, %v1022_v54  ;;  %s5828_s10 = sld [smem:[#allocation2 + $0x28b]]  ;;  %v1252_v48 = vstv %s5764_s29  ;;  %v4848_v41 = vld [vmem:[%s7548_s3 + $0x184] sm:$0xff]   ;;  %v1057_v54 = vmul.f32 %v5429_v29, %v1056_v43  ;;  %v5958_v43 = vld [vmem:[%s7545_s0 + $0x2c] sm:$0xf] }
  0x80   :  { %s5840_s28 = sld [smem:[#allocation2 + $0x28c]]  ;;  %v4857_v29 = vld [vmem:[%s7548_s3 + $0x1c0] sm:$0xff]  }
  0x81   :  { %751 = vmatpush2.bf16.msra.mxu0 %v726_v21  ;;  %965 = vmatpush1.bf16.msra.mxu1 %v4838_v26  ;;  %v834_v61 = vadd.f32 %v833_v49, %v830_v57  ;;  %v1030_v2 = vadd.f32 %v1029_v46, %v1026_v60  ;;  %v1237_v26 = vmul.f32 %v5797_v20, %v1236_v24  ;;  %v1240_v21 = vstv %s5746_s17  ;;  %s5844_s21 = sld [smem:[#allocation2 + $0x28d]]  ;;  %v5868_v57 = vld [vmem:[%s7545_s0 + $0x18] sm:$0xf]  ;;  %v5923_v24 = vld [vmem:[%s7545_s0 + $0x28] sm:$0xf] }
  0x82   :  { %752 = vmatprep.subr.bf16.mxu0 %v5121_v1  ;;  %966 = vmatprep.subr.bf16.mxu1 %v5121_v1  ;;  %v1241_v36 = vmul.f32 %v5818_v35, %v1240_v21  ;;  %v1060_v49 = vstv %s5771_s8  ;;  %s5857_s13 = sld [smem:[#allocation2 + $0x28e]]  ;;  %v1256_v46 = vstv %s5789_s24  ;;  %v1253_v58 = vmul.f32 %v5868_v57, %v1252_v48 }
  0x83   :  { %v835_v7 = vmax.f32 %v834_v61, 0.0  ;;  %v1034_v12 = vadd.f32 %v1033_v52, %v1030_v2  ;;  %v1238_v44 = vadd.f32 %v1237_v26, %v1234_v33  ;;  %s5863_s29 = sld [smem:[#allocation5 + $0x6]]  ;;  %v1061_v52 = vmul.f32 %v5442_v39, %v1060_v49  ;;  %v4859_v39 = vld [vmem:[%s7548_s3 + $0x1b8] sm:$0xff]  }
  0x84   :  { %s5871_s9 = sld [smem:[#allocation2 + $0x300]]  ;;  %v1260_v61 = vstv %s5801_s30  ;;  %v1268_v56 = vstv %s5821_s26 }
  0x85   :  { %753 = vmatpush2.bf16.msra.mxu0 %v4847_v38  ;;  %967 = vmatpush1.bf16.msra.mxu1 %v4840_v37  ;;  %v5792_v17 = vrot.slane %v835_v7, %v5471_v13  ;;  %v1038_v27 = vadd.f32 %v1037_v63, %v1034_v12  ;;  %v1049_v38 = vmul.f32 %v5401_v10, %v1048_v14  ;;  %s5881_s22 = sld [smem:[#allocation2 + $0x301]]  ;;  %v5903_v7 = vld [vmem:[%s7545_s0 + $0x20] sm:$0xf]  ;;  %v4852_v14 = vld [vmem:[%s7548_s3 + $0x174] sm:$0xff]  }
  0x86   :  { %754 = vmatprep.subr.bf16.mxu0 %v5121_v1  ;;  %968 = vmatprep.subr.bf16.mxu1 %v5121_v1  ;;  %v1242_v50 = vadd.f32 %v1241_v36, %v1238_v44  ;;  %s5891_s27 = sld [smem:[#allocation2 + $0x302]]  ;;  %v1261_v8 = vmul.f32 %v5903_v7, %v1260_v61  ;;  %v1269_v19 = vmul.f32 %v5923_v24, %v1268_v56  ;;  %v1276_v32 = vstv %s5840_s28  ;;  %v4858_v56 = vld [vmem:[%s7548_s3 + $0x224] sm:$0xff]  }
  0x87   :  { %v844_v31 = vcombine.high %v5792_v17, %v5792_v17  ;;  %v1042_v37 = vadd.f32 %v1041_v4, %v1038_v27  ;;  %v1264_v4 = vstv %s5809_s12  ;;  %s5898_s25 = sld [smem:[#allocation2 + $0x303]]  ;;  %v1272_v27 = vstv %s5828_s10 }
  0x88   :  { %v1246_v55 = vadd.f32 %v1245_v9, %v1242_v50  ;;  %s5906_s12 = sld [smem:[#allocation2 + $0x304]]  ;;  %v1265_v12 = vmul.f32 %v5911_v23, %v1264_v4  ;;  %v1273_v44 = vmul.f32 %v5958_v43, %v1272_v27  ;;  %v1280_v48 = vstv %s5844_s21 }
  0x89   :  { %755 = vmatpush2.bf16.msra.mxu0 %v4849_v53  ;;  %969 = vmatpush1.bf16.msra.mxu1 %v4842_v51  ;;  %v848_v40 = vpack.c.bf16 %v844_v31, %v844_v31  ;;  %v1046_v10 = vadd.f32 %v1045_v30, %v1042_v37  ;;  %v5854_v51 = vld [vmem:[%s7545_s0 + $0x14] sm:$0xf]  ;;  %s5914_s26 = sld [smem:[#allocation2 + $0x305]]  ;;  %v1454_v26 = vstv %s5863_s29  ;;  %v847_v50 = vpack.c.bf16 %v5792_v17, %v5792_v17 }
  0x8a   :  { %756 = vmatprep.subr.bf16.mxu0 %v5121_v1  ;;  %970 = vmatprep.subr.bf16.mxu1 %v5121_v1  ;;  %v1249_v53 = vmul.f32 %v5854_v51, %v1248_v34  ;;  %v1456_v21 = vstv %s5871_s9  ;;  %s5928_s24 = sld [smem:[#allocation2 + $0x306]]  ;;  %v1284_v17 = vstv %s5857_s13 }
  0x8b   :  { %4082 = vmatprep.mubr.msk.bf16.mxu1 %vm372_vm1, %v848_v40  ;;  %v1050_v18 = vadd.f32 %v1049_v38, %v1046_v10  ;;  %s5935_s18 = sld [smem:[#allocation2 + $0x28f]]  ;;  %v1457_v30 = vmul.f32 %v5776_v3, %v1456_v21  ;;  %v1460_v28 = vstv %s5881_s22  ;;  %v4854_v40 = vld [vmem:[%s7548_s3 + $0x16c] sm:$0xff]  }
  0x8c   :  { %v1250_v63 = vadd.f32 %v1249_v53, %v1246_v55  ;;  %v1461_v33 = vmul.f32 %v5785_v15, %v1460_v28  ;;  %v1464_v36 = vstv %s5891_s27  ;;  %s5942_s29 = sld [smem:[#allocation2 + $0x307]]  ;;  %v4863_v10 = vld [vmem:[%s7548_s3 + $0x1a8] sm:$0xff]  }
  0x8d   :  { %757 = vmatpush2.bf16.msra.mxu0 %v4851_v0  ;;  %971 = vmatpush1.bf16.msra.mxu1 %v4844_v62  ;;  %v1054_v60 = vadd.f32 %v1053_v47, %v1050_v18  ;;  %v5887_v0 = vld [vmem:[%s7545_s0 + $0x1c] sm:$0xf]  ;;  %v1458_v37 = vadd.f32 %v1457_v30, %v1454_v26  ;;  %v1465_v38 = vmul.f32 %v5797_v20, %v1464_v36  ;;  %v1468_v34 = vstv %s5898_s25  ;;  %s5949_s10 = sld [smem:[#allocation2 + $0x308]]  ;;  %v4856_v53 = vld [vmem:[%s7548_s3 + $0x22c] sm:$0xff]  }
  0x8e   :  { %758 = vmatprep.subr.bf16.mxu0 %v5121_v1  ;;  %978 = vmatprep.subr.bf16.mxu1 %v5121_v1  ;;  %v1257_v2 = vmul.f32 %v5887_v0, %v1256_v46  ;;  %v1254_v62 = vadd.f32 %v1253_v58, %v1250_v63  ;;  %v1472_v9 = vstv %s5906_s12  ;;  %s5962_s23 = sld [smem:[#allocation2 + $0x309]]  ;;  %v1469_v49 = vmul.f32 %v5818_v35, %v1468_v34  ;;  %v6030_v26 = vld [vmem:[%s7545_s0 + $0x3c] sm:$0xf] }
  0x8f   :  { %v1058_v6 = vadd.f32 %v1057_v54, %v1054_v60  ;;  %s5972_s20 = sld [smem:[#allocation2 + $0x30a]]  ;;  %v5982_v54 = vld [vmem:[%s7545_s0 + $0x30] sm:$0xf]  ;;  %v1476_v55 = vstv %s5914_s26 }
  0x90   :  { %v1258_v16 = vadd.f32 %v1257_v2, %v1254_v62  ;;  %v1277_v46 = vmul.f32 %v5982_v54, %v1276_v32  ;;  %s5986_s21 = sld [smem:[#allocation2 + $0x30b]]  ;;  %v1480_v63 = vstv %s5928_s24  ;;  %v4865_v2 = vld [vmem:[%s7548_s3 + $0x1a0] sm:$0xff]  }
  0x91   :  { %759 = vmatpush2.bf16.msra.mxu0 %v4853_v25  ;;  %979 = vmatpush2.bf16.msra.mxu1 %v954_v22  ;;  %v1062_v11 = vadd.f32 %v1061_v52, %v1058_v6  ;;  %v4861_v22 = vld [vmem:[%s7548_s3 + $0x1b0] sm:$0xff]   ;;  %s5990_s8 = sld [smem:[#allocation2 + $0x30c]]  ;;  %v1288_v4 = vstv %s5935_s18  ;;  %v1477_v6 = vmul.f32 %v5854_v51, %v1476_v55 }
  0x92   :  { %980 = vmatprep.subr.bf16.mxu1 %v5121_v1  ;;  %1184 = vmatprep.subr.bf16.mxu0 %v5121_v1  ;;  %v1262_v31 = vadd.f32 %v1261_v8, %v1258_v16  ;;  %v5996_v52 = vld [vmem:[%s7545_s0 + $0x34] sm:$0xf]  ;;  %s6000_s26 = sld [smem:[#allocation2 + $0x30d]]  ;;  %v6017_v8 = vld [vmem:[%s7545_s0 + $0x38] sm:$0xf]  ;;  %v1481_v16 = vmul.f32 %v5868_v57, %v1480_v63  ;;  %v1289_v21 = vmul.f32 %v6030_v26, %v1288_v4 }
  0x93   :  { %v1063_v25 = vmax.f32 %v1062_v11, 0.0  ;;  %v1281_v61 = vmul.f32 %v5996_v52, %v1280_v48  ;;  %s6009_s16 = sld [smem:[#allocation2 + $0x30e]]  ;;  %v1285_v11 = vmul.f32 %v6017_v8, %v1284_v17 }
  0x94   :  { %761 = vmatmul.mubr.bf16.vlgmr.msra.gmra.mxu0 %v619_v5  ;;  %s6021_s18 = sld [smem:[#allocation5 + $0x7]]  ;;  %v1492_v28 = vstv %s5962_s23 }
  0x95   :  { %1185 = vmatpush1.bf16.msra.mxu0 %v4855_v42  ;;  %981 = vmatpush2.bf16.msra.mxu1 %v4848_v41  ;;  %v5945_v5 = vrot.slane %v1063_v25, %v5471_v13  ;;  %v1266_v42 = vadd.f32 %v1265_v12, %v1262_v31  ;;  %v1462_v41 = vadd.f32 %v1461_v33, %v1458_v37  ;;  %v1484_v12 = vstv %s5942_s29  ;;  %s6024_s22 = sld [smem:[#allocation2 + $0x380]]  ;;  %v4867_v25 = vld [vmem:[%s7548_s3 + $0x198] sm:$0xff]  }
  0x96   :  { %1186 = vmatprep.subr.bf16.mxu0 %v5121_v1  ;;  %982 = vmatprep.subr.bf16.mxu1 %v5121_v1  ;;  %s6034_s29 = sld [smem:[#allocation2 + $0x381]]  ;;  %v1485_v30 = vmul.f32 %v5887_v0, %v1484_v12  ;;  %v4860_v31 = vld [vmem:[%s7548_s3 + $0x21c] sm:$0xff]   ;;  %v1496_v33 = vstv %s5972_s20  ;;  %v1493_v34 = vmul.f32 %v5911_v23, %v1492_v28 }
  0x97   :  { %v1072_v47 = vcombine.high %v5945_v5, %v5945_v5  ;;  %v1270_v18 = vadd.f32 %v1269_v19, %v1266_v42  ;;  %s6042_s12 = sld [smem:[#allocation2 + $0x382]] }
  0x98   :  { %s6051_s14 = sld [smem:[#allocation2 + $0x384]] }
  0x99   :  { %1187 = vmatpush1.bf16.msra.mxu0 %v4857_v29  ;;  %983 = vmatpush2.bf16.msra.mxu1 %v4850_v59  ;;  %v1076_v58 = vpack.c.bf16 %v1072_v47, %v1072_v47  ;;  %v1466_v59 = vadd.f32 %v1465_v38, %v1462_v41  ;;  %v1473_v29 = vmul.f32 %v5837_v45, %v1472_v9  ;;  %s6055_s23 = sld [smem:[#allocation2 + $0x385]]  ;;  %v4862_v47 = vld [vmem:[%s7548_s3 + $0x214] sm:$0xff]   ;;  %v1500_v41 = vstv %s5986_s21 }
  0x9a   :  { %1188 = vmatprep.subr.bf16.mxu0 %v5121_v1  ;;  %984 = vmatprep.subr.bf16.mxu1 %v5121_v1  ;;  %v1274_v60 = vadd.f32 %v1273_v44, %v1270_v18  ;;  %v1497_v44 = vmul.f32 %v5923_v24, %v1496_v33  ;;  %v1682_v9 = vstv %s6021_s18  ;;  %s6064_s13 = sld [smem:[#allocation2 + $0x386]] }
  0x9b   :  { %4138 = vmatprep.mubr.msk.bf16.mxu0 %vm372_vm1, %v1076_v58  ;;  %s6070_s9 = sld [smem:[#allocation2 + $0x30f]] }
  0x9c   :  { %v1278_v62 = vadd.f32 %v1277_v46, %v1274_v60  ;;  %v1504_v46 = vstv %s5990_s8  ;;  %s6080_s18 = sld [smem:[#allocation2 + $0x387]] }
  0x9d   :  { %1189 = vmatpush1.bf16.msra.mxu0 %v4859_v39  ;;  %985 = vmatpush2.bf16.msra.mxu1 %v4852_v14  ;;  %v1470_v39 = vadd.f32 %v1469_v49, %v1466_v59  ;;  %v1692_v58 = vstv %s6042_s12  ;;  %s6088_s21 = sld [smem:[#allocation2 + $0x388]] }
  0x9e   :  { %1190 = vmatprep.subr.bf16.mxu0 %v5121_v1  ;;  %986 = vmatprep.subr.bf16.mxu1 %v5121_v1  ;;  %v1282_v19 = vadd.f32 %v1281_v61, %v1278_v62  ;;  %v1700_v4 = vstv %s6051_s14  ;;  %s6094_s8 = sld [smem:[#allocation2 + $0x389]] }
  0x9f   :  { %v1474_v14 = vadd.f32 %v1473_v29, %v1470_v39  ;;  %v1693_v29 = vmul.f32 %v5797_v20, %v1692_v58  ;;  %v4864_v39 = vld [vmem:[%s7548_s3 + $0x20c] sm:$0xff]   ;;  %s6103_s30 = sld [smem:[#allocation2 + $0x38a]] }
  0xa0   :  { %v1286_v32 = vadd.f32 %v1285_v11, %v1282_v19  ;;  %v1708_v28 = vstv %s6064_s13  ;;  %s6117_s25 = sld [smem:[#allocation2 + $0x38d]] }
  0xa1   :  { %1191 = vmatpush1.bf16.msra.mxu0 %v4861_v22  ;;  %987 = vmatpush2.bf16.msra.mxu1 %v4854_v40  ;;  %v1488_v22 = vstv %s5949_s10  ;;  %v1478_v27 = vadd.f32 %v1477_v6, %v1474_v14  ;;  %s6048_s10 = sld [smem:[#allocation2 + $0x383]]  ;;  %v4871_v40 = vld [vmem:[%s7548_s3 + $0x1f0] ss:$0 sps:$4 sm:$0x33]   ;;  %v1505_v14 = vmul.f32 %v5982_v54, %v1504_v46  ;;  %v1516_v33 = vstv %s6070_s9 }
  0xa2   :  { %1192 = vmatprep.subr.bf16.mxu0 %v5121_v1  ;;  %1412 = vmatprep.subr.bf16.mxu1 %v5121_v1  ;;  %v1489_v37 = vmul.f32 %v5903_v7, %v1488_v22  ;;  %v1290_v38 = vadd.f32 %v1289_v21, %v1286_v32  ;;  %v1182_v61 = vsel %vm376_vm0, %v4871_v40, 0  ;;  %v1512_v21 = vstv %s6009_s16  ;;  %v4873_v32 = vld [vmem:[%s7548_s3 + $0x1e8] sm:$0xff]   ;;  %s6128_s2 = sld [smem:[#allocation2 + $0x38e]] }
  0xa3   :  { %v1482_v36 = vadd.f32 %v1481_v16, %v1478_v27  ;;  %v1704_v16 = vstv %s6055_s23  ;;  %v1712_v40 = vstv %s6080_s18  ;;  %s6136_s14 = sld [smem:[#allocation2 + $0x400]] }
  0xa4   :  { %989 = vmatmul.mubr.bf16.vlgmr.msra.gmra.mxu1 %v847_v50  ;;  %v1291_v48 = vmax.f32 %v1290_v38, 0.0  ;;  %v1688_v50 = vstv %s6034_s29  ;;  %s6107_s29 = sld [smem:[#allocation2 + $0x38b]] }
  0xa5   :  { %1193 = vmatpush1.bf16.msra.mxu0 %v4863_v10  ;;  %1413 = vmatpush1.bf16.msra.mxu1 %v4856_v53  ;;  %v1486_v42 = vadd.f32 %v1485_v30, %v1482_v36  ;;  %v1684_v10 = vstv %s6024_s22  ;;  %v4869_v53 = vld [vmem:[%s7548_s3 + $0x190] sm:$0xff]   ;;  %v1689_v55 = vmul.f32 %v5785_v15, %v1688_v50  ;;  %s6144_s15 = sld [smem:[#allocation2 + $0x401]]  ;;  %v1713_v50 = vmul.f32 %v5887_v0, %v1712_v40 }
  0xa6   :  { %1194 = vmatprep.subr.bf16.mxu0 %v5121_v1  ;;  %1414 = vmatprep.subr.bf16.mxu1 %v5121_v1  ;;  %v1685_v49 = vmul.f32 %v5776_v3, %v1684_v10  ;;  %v6084_v17 = vrot.slane %v1291_v48, %v5471_v13  ;;  %v1716_v48 = vstv %s6088_s21  ;;  %s6151_s17 = sld [smem:[#allocation2 + $0x402]]  ;;  %v1724_v46 = vstv %s6103_s30 }
  0xa7   :  { %v1490_v18 = vadd.f32 %v1489_v37, %v1486_v42  ;;  %v1696_v60 = vstv %s6048_s10  ;;  %v1705_v37 = vmul.f32 %v5854_v51, %v1704_v16  ;;  %s6132_s10 = sld [smem:[#allocation5 + $0x8]]  ;;  %v1717_v58 = vmul.f32 %v5903_v7, %v1716_v48 }
  0xa8   :  { %v1686_v59 = vadd.f32 %v1685_v49, %v1682_v9  ;;  %v1300_v6 = vcombine.high %v6084_v17, %v6084_v17  ;;  %v1697_v11 = vmul.f32 %v5818_v35, %v1696_v60  ;;  %v4875_v9 = vld [vmem:[%s7548_s3 + $0x1e0] sm:$0xff]   ;;  %s6154_s9 = sld [smem:[#allocation2 + $0x403]]  ;;  %v4870_v60 = vld [vmem:[%s7548_s3 + $0x1f4] sm:$0xff]  }
  0xa9   :  { %1195 = vmatpush1.bf16.msra.mxu0 %v4865_v2  ;;  %1415 = vmatpush1.bf16.msra.mxu1 %v4858_v56  ;;  %v1494_v63 = vadd.f32 %v1493_v34, %v1490_v18  ;;  %v1501_v2 = vmul.f32 %v5958_v43, %v1500_v41  ;;  %v1508_v56 = vstv %s6000_s26  ;;  %s6112_s26 = sld [smem:[#allocation2 + $0x38c]]  ;;  %v1513_v34 = vmul.f32 %v6017_v8, %v1512_v21  ;;  %v4868_v41 = vld [vmem:[%s7548_s3 + $0x1fc] sm:$0xff]  }
  0xaa   :  { %1196 = vmatprep.subr.bf16.mxu0 %v5121_v1  ;;  %1416 = vmatprep.subr.bf16.mxu1 %v5121_v1  ;;  %v1690_v62 = vadd.f32 %v1689_v55, %v1686_v59  ;;  %v1304_v19 = vpack.c.bf16 %v1300_v6, %v1300_v6  ;;  %v1509_v30 = vmul.f32 %v5996_v52, %v1508_v56  ;;  %s6158_s24 = sld [smem:[#allocation2 + $0x404]]  ;;  %v4877_v6 = vld [vmem:[%s7548_s3 + $0x1d8] sm:$0xff]  }
  0xab   :  { %v1498_v12 = vadd.f32 %v1497_v44, %v1494_v63  ;;  %v1709_v44 = vmul.f32 %v5868_v57, %v1708_v28  ;;  %s6162_s28 = sld [smem:[#allocation2 + $0x405]]  ;;  %v1725_v63 = vmul.f32 %v5923_v24, %v1724_v46 }
  0xac   :  { %v1694_v22 = vadd.f32 %v1693_v29, %v1690_v62  ;;  %4194 = vmatprep.mubr.msk.bf16.mxu1 %vm372_vm1, %v1304_v19  ;;  %v1728_v62 = vstv %s6107_s29  ;;  %s6179_s12 = sld [smem:[#allocation2 + $0x38f]]  ;;  %v1920_v21 = vstv %s6151_s17 }
  0xad   :  { %1197 = vmatpush1.bf16.msra.mxu0 %v4867_v25  ;;  %1417 = vmatpush1.bf16.msra.mxu1 %v4860_v31  ;;  %v1701_v25 = vmul.f32 %v5837_v45, %v1700_v4  ;;  %v1502_v27 = vadd.f32 %v1501_v2, %v1498_v12  ;;  %v4866_v31 = vld [vmem:[%s7548_s3 + $0x204] sm:$0xff]   ;;  %v1910_v2 = vstv %s6132_s10  ;;  %v1912_v4 = vstv %s6136_s14  ;;  %s6187_s1 = sld [smem:[#allocation2 + $0x407]] }
  0xae   :  { %1198 = vmatprep.subr.bf16.mxu0 %v5121_v1  ;;  %1418 = vmatprep.subr.bf16.mxu1 %v5121_v1  ;;  %v1698_v36 = vadd.f32 %v1697_v11, %v1694_v22  ;;  %v1913_v11 = vmul.f32 %v5776_v3, %v1912_v4  ;;  %v1916_v12 = vstv %s6144_s15  ;;  %s6197_s29 = sld [smem:[#allocation2 + $0x408]] }
  0xaf   :  { %v1506_v38 = vadd.f32 %v1505_v14, %v1502_v27  ;;  %v1732_v16 = vstv %s6112_s26  ;;  %v1917_v19 = vmul.f32 %v5785_v15, %v1916_v12  ;;  %v1921_v27 = vmul.f32 %v5797_v20, %v1920_v21  ;;  %s6209_s10 = sld [smem:[#allocation2 + $0x409]] }
  0xb0   :  { %v1702_v42 = vadd.f32 %v1701_v25, %v1698_v36  ;;  %v1914_v25 = vadd.f32 %v1913_v11, %v1910_v2  ;;  %s6225_s15 = sld [smem:[#allocation2 + $0x40a]] }
  0xb1   :  { %1199 = vmatpush1.bf16.msra.mxu0 %v4869_v53  ;;  %1419 = vmatpush1.bf16.msra.mxu1 %v4862_v47  ;;  %v1510_v10 = vadd.f32 %v1509_v30, %v1506_v38  ;;  %v1517_v47 = vmul.f32 %v6030_v26, %v1516_v33  ;;  %v1720_v53 = vstv %s6094_s8  ;;  %s6170_s8 = sld [smem:[#allocation2 + $0x406]]  ;;  %v1924_v30 = vstv %s6154_s9  ;;  %v4879_v33 = vld [vmem:[%s7548_s3 + $0x1d0] sm:$0xff]  }
  0xb2   :  { %1206 = vmatprep.subr.bf16.mxu0 %v5121_v1  ;;  %1420 = vmatprep.subr.bf16.mxu1 %v5121_v1  ;;  %v1706_v49 = vadd.f32 %v1705_v37, %v1702_v42  ;;  %v1721_v29 = vmul.f32 %v5911_v23, %v1720_v53  ;;  %v1736_v37 = vstv %s6117_s25  ;;  %v1918_v38 = vadd.f32 %v1917_v19, %v1914_v25  ;;  %s6234_s13 = sld [smem:[#allocation5 + $0x9]]  ;;  %v4885_v19 = vld [vmem:[%s7548_s3 + $0x280] sm:$0xff]  }
  0xb3   :  { %v1514_v18 = vadd.f32 %v1513_v34, %v1510_v10  ;;  %v1925_v34 = vmul.f32 %v5818_v35, %v1924_v30  ;;  %v1733_v42 = vmul.f32 %v5982_v54, %v1732_v16  ;;  %v4881_v10 = vld [vmem:[%s7548_s3 + $0x290] sm:$0xff]   ;;  %s6241_s9 = sld [smem:[#allocation2 + $0x480]] }
  0xb4   :  { %v1710_v55 = vadd.f32 %v1709_v44, %v1706_v49  ;;  %v1932_v44 = vstv %s6162_s28  ;;  %v1922_v48 = vadd.f32 %v1921_v27, %v1918_v38  ;;  %v4874_v49 = vld [vmem:[%s7548_s3 + $0x24c] sm:$0xff]   ;;  %s6248_s18 = sld [smem:[#allocation2 + $0x481]] }
  0xb5   :  { %1207 = vmatpush2.bf16.msra.mxu0 %v1182_v61  ;;  %1421 = vmatpush1.bf16.msra.mxu1 %v4864_v39  ;;  %v1518_v59 = vadd.f32 %v1517_v47, %v1514_v18  ;;  %v4872_v39 = vld [vmem:[%s7548_s3 + $0x254] ss:$0 sps:$4 sm:$0x33]   ;;  %v1740_v47 = vstv %s6128_s2  ;;  %v1737_v18 = vmul.f32 %v5996_v52, %v1736_v37  ;;  %s6229_s2 = sld [smem:[#allocation2 + $0x40b]]  ;;  %v1948_v16 = vstv %s6209_s10 }
  0xb6   :  { %1208 = vmatprep.subr.bf16.mxu0 %v5121_v1  ;;  %1422 = vmatprep.subr.bf16.mxu1 %v5121_v1  ;;  %v1714_v61 = vadd.f32 %v1713_v50, %v1710_v55  ;;  %v1075_v50 = vpack.c.bf16 %v5945_v5, %v5945_v5  ;;  %v1741_v5 = vmul.f32 %v6017_v8, %v1740_v47  ;;  %s6252_s21 = sld [smem:[#allocation2 + $0x482]]  ;;  %v1952_v37 = vstv %s6225_s15 }
  0xb7   :  { %v1519_v56 = vmax.f32 %v1518_v59, 0.0  ;;  %v1936_v46 = vstv %s6170_s8  ;;  %v1926_v59 = vadd.f32 %v1925_v34, %v1922_v48  ;;  %s6256_s8 = sld [smem:[#allocation2 + $0x483]] }
  0xb8   :  { %v1718_v14 = vadd.f32 %v1717_v58, %v1714_v61  ;;  %v1744_v58 = vstv %s6179_s12  ;;  %v1940_v61 = vstv %s6187_s1  ;;  %v1937_v4 = vmul.f32 %v5868_v57, %v1936_v46  ;;  %s6263_s30 = sld [smem:[#allocation2 + $0x484]] }
  0xb9   :  { %1209 = vmatpush2.bf16.msra.mxu0 %v4873_v32  ;;  %1423 = vmatpush1.bf16.msra.mxu1 %v4866_v31  ;;  %v6191_v22 = vrot.slane %v1519_v56, %v5471_v13  ;;  %v1729_v31 = vmul.f32 %v5958_v43, %v1728_v62  ;;  %v1928_v32 = vstv %s6158_s24  ;;  %v1745_v56 = vmul.f32 %v6030_v26, %v1744_v58  ;;  %s6265_s11 = sld [smem:[#allocation2 + $0x485]]  ;;  %v4882_v58 = vld [vmem:[%s7548_s3 + $0x2f4] sm:$0xff]  }
  0xba   :  { %1210 = vmatprep.subr.bf16.mxu0 %v5121_v1  ;;  %1424 = vmatprep.subr.bf16.mxu1 %v5121_v1  ;;  %v1722_v28 = vadd.f32 %v1721_v29, %v1718_v14  ;;  %v1933_v29 = vmul.f32 %v5854_v51, %v1932_v44  ;;  %v1944_v62 = vstv %s6197_s29  ;;  %v1941_v12 = vmul.f32 %v5887_v0, %v1940_v61  ;;  %s6270_s12 = sld [smem:[#allocation2 + $0x486]] }
  0xbb   :  { %v1528_v36 = vcombine.high %v6191_v22, %v6191_v22  ;;  %v1945_v25 = vmul.f32 %v5903_v7, %v1944_v62  ;;  %s6277_s26 = sld [smem:[#allocation2 + $0x40c]]  ;;  %v2144_v34 = vstv %s6248_s18 }
  0xbc   :  { %v1726_v40 = vadd.f32 %v1725_v63, %v1722_v28  ;;  %v4883_v63 = vld [vmem:[%s7548_s3 + $0x288] sm:$0xff]   ;;  %v1949_v28 = vmul.f32 %v5911_v23, %v1948_v16  ;;  %v2148_v44 = vstv %s6252_s21  ;;  %s6284_s16 = sld [smem:[#allocation2 + $0x487]] }
  0xbd   :  { %1211 = vmatpush2.bf16.msra.mxu0 %v4875_v9  ;;  %1425 = vmatpush1.bf16.msra.mxu1 %v4868_v41  ;;  %v1410_v9 = vsel %vm376_vm0, %v4872_v39, 0  ;;  %v1929_v41 = vmul.f32 %v5837_v45, %v1928_v32  ;;  %v1532_v55 = vpack.c.bf16 %v1528_v36, %v1528_v36  ;;  %v4876_v39 = vld [vmem:[%s7548_s3 + $0x244] sm:$0xff]   ;;  %v2140_v32 = vstv %s6241_s9  ;;  %s6299_s20 = sld [smem:[#allocation2 + $0x488]] }
  0xbe   :  { %1212 = vmatprep.subr.bf16.mxu0 %v5121_v1  ;;  %1426 = vmatprep.subr.bf16.mxu1 %v5121_v1  ;;  %v1730_v53 = vadd.f32 %v1729_v31, %v1726_v40  ;;  %v2138_v31 = vstv %s6234_s13  ;;  %v2141_v38 = vmul.f32 %v5776_v3, %v2140_v32  ;;  %v2149_v48 = vmul.f32 %v5797_v20, %v2148_v44  ;;  %s6303_s15 = sld [smem:[#allocation2 + $0x40d]]  ;;  %v4889_v20 = vld [vmem:[%s7548_s3 + $0x270] sm:$0xff]  }
  0xbf   :  { %v1930_v2 = vadd.f32 %v1929_v41, %v1926_v59  ;;  %v2152_v41 = vstv %s6256_s8  ;;  %s6312_s17 = sld [smem:[#allocation2 + $0x40e]] }
  0xc0   :  { %v2142_v47 = vadd.f32 %v2141_v38, %v2138_v31  ;;  %v2153_v46 = vmul.f32 %v5818_v35, %v2152_v41  ;;  %s6319_s24 = sld [smem:[#allocation2 + $0x489]]  ;;  %v2164_v61 = vstv %s6270_s12  ;;  %v4897_v38 = vld [vmem:[%s7548_s3 + $0x2b8] ss:$0 sps:$4 sm:$0x33]  }
  0xc1   :  { %1213 = vmatpush2.bf16.msra.mxu0 %v4877_v6  ;;  %1427 = vmatpush1.bf16.msra.mxu1 %v4870_v60  ;;  %v1734_v60 = vadd.f32 %v1733_v42, %v1730_v53  ;;  %v1934_v11 = vadd.f32 %v1933_v29, %v1930_v2  ;;  %v2145_v42 = vmul.f32 %v5785_v15, %v2144_v34  ;;  %v1956_v53 = vstv %s6229_s2  ;;  %s6324_s28 = sld [smem:[#allocation2 + $0x40f]] }
  0xc2   :  { %1214 = vmatprep.subr.bf16.mxu0 %v5121_v1  ;;  %1434 = vmatprep.subr.bf16.mxu1 %v5121_v1  ;;  %v1303_v29 = vpack.c.bf16 %v6084_v17, %v6084_v17  ;;  %s6330_s18 = sld [smem:[#allocation2 + $0x48a]]  ;;  %v4891_v17 = vld [vmem:[%s7548_s3 + $0x268] sm:$0xff]  }
  0xc3   :  { %v1738_v6 = vadd.f32 %v1737_v18, %v1734_v60  ;;  %v1938_v21 = vadd.f32 %v1937_v4, %v1934_v11  ;;  %v2146_v18 = vadd.f32 %v2145_v42, %v2142_v47  ;;  %s6337_s22 = sld [smem:[#allocation5 + $0xa]] }
  0xc4   :  { %s6347_s12 = sld [smem:[#allocation2 + $0x501]] }
  0xc5   :  { %1215 = vmatpush2.bf16.msra.mxu0 %v4879_v33  ;;  %1435 = vmatpush2.bf16.msra.mxu1 %v1410_v9  ;;  %v1742_v14 = vadd.f32 %v1741_v5, %v1738_v6  ;;  %v1942_v30 = vadd.f32 %v1941_v12, %v1938_v21  ;;  %v4878_v33 = vld [vmem:[%s7548_s3 + $0x23c] sm:$0xff]   ;;  %v4880_v9 = vld [vmem:[%s7548_s3 + $0x234] sm:$0xff]   ;;  %v2150_v59 = vadd.f32 %v2149_v48, %v2146_v18  ;;  %v4884_v6 = vld [vmem:[%s7548_s3 + $0x2ec] sm:$0xff]   ;;  %v2172_v12 = vstv %s6299_s20  ;;  %s6352_s1 = sld [smem:[#allocation2 + $0x502]] }
  0xc6   :  { %1640 = vmatprep.subr.bf16.mxu0 %v5121_v1  ;;  %1436 = vmatprep.subr.bf16.mxu1 %v5121_v1  ;;  %v1957_v5 = vmul.f32 %v5958_v43, %v1956_v53  ;;  %v2173_v21 = vmul.f32 %v5903_v7, %v2172_v12  ;;  %s6371_s25 = sld [smem:[#allocation2 + $0x503]]  ;;  %v4888_v48 = vld [vmem:[%s7548_s3 + $0x2dc] sm:$0xff]   ;;  %v4890_v53 = vld [vmem:[%s7548_s3 + $0x2d4] sm:$0xff]   ;;  %v1638_v18 = vsel %vm376_vm0, %v4897_v38, 0 }
  0xc7   :  { %v1746_v27 = vadd.f32 %v1745_v56, %v1742_v14  ;;  %v1946_v40 = vadd.f32 %v1945_v25, %v1942_v30  ;;  %v2154_v2 = vadd.f32 %v2153_v46, %v2150_v59  ;;  %v1964_v14 = vstv %s6303_s15  ;;  %s6386_s19 = sld [smem:[#allocation2 + $0x48c]] }
  0xc8   :  { %1217 = vmatmul.mubr.bf16.vlgmr.msra.gmra.mxu0 %v1075_v50  ;;  %v2156_v50 = vstv %s6263_s30  ;;  %v2176_v25 = vstv %s6319_s24  ;;  %v1965_v30 = vmul.f32 %v5996_v52, %v1964_v14  ;;  %v1972_v41 = vstv %s6324_s28  ;;  %s6404_s8 = sld [smem:[#allocation2 + $0x504]]  ;;  %v6479_v14 = vld [vmem:[%s7545_s0 + $0x10] sm:$0xf] }
  0xc9   :  { %1641 = vmatpush1.bf16.msra.mxu0 %v4881_v10  ;;  %4250 = vmatprep.mubr.msk.bf16.mxu0 %vm372_vm1, %v1532_v55  ;;  %v1747_v36 = vmax.f32 %v1746_v27, 0.0  ;;  %v4887_v10 = vld [vmem:[%s7548_s3 + $0x278] sm:$0xff]   ;;  %v1950_v15 = vadd.f32 %v1949_v28, %v1946_v40  ;;  %v2160_v55 = vstv %s6265_s11  ;;  %v2157_v35 = vmul.f32 %v5837_v45, %v2156_v50  ;;  %s6343_s11 = sld [smem:[#allocation2 + $0x500]] }
  0xca   :  { %1437 = vmatpush2.bf16.msra.mxu1 %v4874_v49  ;;  %1642 = vmatprep.subr.bf16.mxu0 %v5121_v1  ;;  %v1953_v49 = vmul.f32 %v5923_v24, %v1952_v37  ;;  %v2161_v45 = vmul.f32 %v5854_v51, %v2160_v55  ;;  %v2165_v51 = vmul.f32 %v5868_v57, %v2164_v61  ;;  %v4886_v57 = vld [vmem:[%s7548_s3 + $0x2e4] sm:$0xff]   ;;  %v1968_v28 = vstv %s6312_s17  ;;  %s6418_s28 = sld [smem:[#allocation2 + $0x48d]] }
  0xcb   :  { %1438 = vmatprep.subr.bf16.mxu1 %v5121_v1  ;;  %v6293_v3 = vrot.slane %v1747_v36, %v5471_v13  ;;  %v2158_v56 = vadd.f32 %v2157_v35, %v2154_v2  ;;  %v2366_v32 = vstv %s6337_s22  ;;  %v6378_v36 = vld [vmem:[%s7545_s0] sm:$0xf]  ;;  %v2372_v37 = vstv %s6347_s12  ;;  %s6421_s12 = sld [smem:[#allocation2 + $0x48e]] }
  0xcc   :  { %v1954_v60 = vadd.f32 %v1953_v49, %v1950_v15  ;;  %v2180_v40 = vstv %s6330_s18  ;;  %v1969_v44 = vmul.f32 %v6017_v8, %v1968_v28  ;;  %v2376_v15 = vstv %s6352_s1  ;;  %v6410_v49 = vld [vmem:[%s7545_s0 + $0x28] sm:$0xf]  ;;  %s6452_s17 = sld [smem:[#allocation2 + $0x580]] }
  0xcd   :  { %1643 = vmatpush1.bf16.msra.mxu0 %v4883_v63  ;;  %v1756_v24 = vcombine.high %v6293_v3, %v6293_v3  ;;  %v1960_v63 = vstv %s6277_s26  ;;  %v2162_v16 = vadd.f32 %v2161_v45, %v2158_v56  ;;  %v2181_v50 = vmul.f32 %v6410_v49, %v2180_v40  ;;  %s6431_s26 = sld [smem:[#allocation2 + $0x505]]  ;;  %v4894_v56 = vld [vmem:[%s7548_s3 + $0x2c4] sm:$0xff]  }
  0xce   :  { %1439 = vmatpush2.bf16.msra.mxu1 %v4876_v39  ;;  %1644 = vmatprep.subr.bf16.mxu0 %v5121_v1  ;;  %v2168_v39 = vstv %s6284_s16  ;;  %v1958_v62 = vadd.f32 %v1957_v5, %v1954_v60  ;;  %v1961_v11 = vmul.f32 %v5982_v54, %v1960_v63  ;;  %s6361_s16 = sld [smem:[#allocation2 + $0x48b]]  ;;  %v2380_v35 = vstv %s6371_s25  ;;  %v4892_v60 = vld [vmem:[%s7548_s3 + $0x2cc] sm:$0xff]  }
  0xcf   :  { %1440 = vmatprep.subr.bf16.mxu1 %v5121_v1  ;;  %v1760_v4 = vpack.c.bf16 %v1756_v24, %v1756_v24  ;;  %v2166_v54 = vadd.f32 %v2165_v51, %v2162_v16  ;;  %v2368_v7 = vstv %s6343_s11  ;;  %v1973_v24 = vmul.f32 %v6030_v26, %v1972_v41  ;;  %v4899_v5 = vld [vmem:[%s7548_s3 + $0x2b0] sm:$0xff]   ;;  %s6444_s25 = sld [smem:[#allocation5 + $0xb]] }
  0xd0   :  { %v1962_v27 = vadd.f32 %v1961_v11, %v1958_v62  ;;  %v2369_v52 = vmul.f32 %v6378_v36, %v2368_v7  ;;  %v2188_v61 = vstv %s6386_s19  ;;  %s6456_s19 = sld [smem:[#allocation2 + $0x581]]  ;;  %v2192_v51 = vstv %s6418_s28  ;;  %v4901_v62 = vld [vmem:[%s7548_s3 + $0x2a8] sm:$0xff]   ;;  %v4903_v7 = vld [vmem:[%s7548_s3 + $0x2a0] sm:$0xff]  }
  0xd1   :  { %1645 = vmatpush1.bf16.msra.mxu0 %v4885_v19  ;;  %v2169_v19 = vmul.f32 %v5887_v0, %v2168_v39  ;;  %v4893_v0 = vld [vmem:[%s7548_s3 + $0x260] sm:$0xff]   ;;  %v6462_v39 = vld [vmem:[%s7545_s0 + $0x30] sm:$0xf]  ;;  %s6465_s24 = sld [smem:[#allocation2 + $0x48f]] }
  0xd2   :  { %1441 = vmatpush2.bf16.msra.mxu1 %v4878_v33  ;;  %1646 = vmatprep.subr.bf16.mxu0 %v5121_v1  ;;  %v2177_v33 = vmul.f32 %v5911_v23, %v2176_v25  ;;  %v4895_v23 = vld [vmem:[%s7548_s3 + $0x258] sm:$0xff]   ;;  %v1966_v42 = vadd.f32 %v1965_v30, %v1962_v27  ;;  %s6484_s28 = sld [smem:[#allocation2 + $0x507]]  ;;  %v2196_v30 = vstv %s6421_s12 }
  0xd3   :  { %1442 = vmatprep.subr.bf16.mxu1 %v5121_v1  ;;  %v2170_v31 = vadd.f32 %v2169_v19, %v2166_v54  ;;  %v2388_v19 = vstv %s6431_s26  ;;  %v4896_v27 = vld [vmem:[%s7548_s3 + $0x2bc] sm:$0xff]   ;;  %s6504_s20 = sld [smem:[#allocation2 + $0x583]] }
  0xd4   :  { %v2184_v46 = vstv %s6361_s16  ;;  %s6435_s16 = sld [smem:[#allocation2 + $0x506]] }
  0xd5   :  { %1647 = vmatpush1.bf16.msra.mxu0 %v4887_v10  ;;  %v2174_v34 = vadd.f32 %v2173_v21, %v2170_v31  ;;  %v6395_v10 = vld [vmem:[%s7545_s0 + $0x4] sm:$0xf]  ;;  %v6493_v21 = vld [vmem:[%s7545_s0 + $0x34] sm:$0xf]  ;;  %v2594_v28 = vstv %s6444_s25  ;;  %s6520_s12 = sld [smem:[#allocation2 + $0x508]] }
  0xd6   :  { %1443 = vmatpush2.bf16.msra.mxu1 %v4880_v9  ;;  %1648 = vmatprep.subr.bf16.mxu0 %v5121_v1  ;;  %v2370_v9 = vadd.f32 %v2369_v52, %v2366_v32  ;;  %v2373_v47 = vmul.f32 %v6395_v10, %v2372_v37  ;;  %v2193_v25 = vmul.f32 %v6493_v21, %v2192_v51  ;;  %v2600_v32 = vstv %s6456_s19  ;;  %v6515_v37 = vld [vmem:[%s7545_s0 + $0x14] sm:$0xf]  ;;  %s6532_s9 = sld [smem:[#allocation2 + $0x584]] }
  0xd7   :  { %1868 = vmatprep.subr.bf16.mxu1 %v5121_v1  ;;  %v2178_v8 = vadd.f32 %v2177_v33, %v2174_v34  ;;  %v2389_v38 = vmul.f32 %v6515_v37, %v2388_v19  ;;  %s6577_s23 = sld [smem:[#allocation2 + $0x50a]] }
  0xd8   :  { %v2374_v55 = vadd.f32 %v2373_v47, %v2370_v9  ;;  %v2601_v9 = vmul.f32 %v6395_v10, %v2600_v32  ;;  %v2200_v47 = vstv %s6465_s24  ;;  %s6548_s24 = sld [smem:[#allocation2 + $0x509]] }
  0xd9   :  { %1445 = vmatmul.mubr.bf16.vlgmr.msra.gmra.mxu1 %v1303_v29  ;;  %1649 = vmatpush1.bf16.msra.mxu0 %v4889_v20  ;;  %v1970_v20 = vadd.f32 %v1969_v44, %v1966_v42  ;;  %v2182_v26 = vadd.f32 %v2181_v50, %v2178_v8  ;;  %v2185_v29 = vmul.f32 %v5958_v43, %v2184_v46  ;;  %v6449_v43 = vld [vmem:[%s7545_s0 + $0xc] sm:$0xf]  ;;  %v2396_v46 = vstv %s6484_s28  ;;  %s6564_s28 = sld [smem:[#allocation2 + $0x585]] }
  0xda   :  { %1869 = vmatpush1.bf16.msra.mxu1 %v4882_v58  ;;  %1650 = vmatprep.subr.bf16.mxu0 %v5121_v1  ;;  %v6426_v58 = vld [vmem:[%s7545_s0 + $0x8] sm:$0xf]  ;;  %v2381_v45 = vmul.f32 %v6449_v43, %v2380_v35  ;;  %v2392_v34 = vstv %s6435_s16  ;;  %s6585_s15 = sld [smem:[#allocation2 + $0x586]] }
  0xdb   :  { %1870 = vmatprep.subr.bf16.mxu1 %v5121_v1  ;;  %4306 = vmatprep.mubr.msk.bf16.mxu1 %vm372_vm1, %v1760_v4  ;;  %v2377_v59 = vmul.f32 %v6426_v58, %v2376_v15  ;;  %v1974_v63 = vadd.f32 %v1973_v24, %v1970_v20  ;;  %v2186_v4 = vadd.f32 %v2185_v29, %v2182_v26  ;;  %v4905_v15 = vld [vmem:[%s7548_s3 + $0x298] sm:$0xff]   ;;  %s6599_s25 = sld [smem:[#allocation2 + $0x50b]] }
  0xdc   :  { %v6554_v24 = vld [vmem:[%s7545_s0 + $0x3c] sm:$0xf]  ;;  %v4900_v26 = vld [vmem:[%s7548_s3 + $0x314] sm:$0xff]   ;;  %v1531_v29 = vpack.c.bf16 %v6191_v22, %v6191_v22  ;;  %v2400_v22 = vstv %s6520_s12  ;;  %v2612_v51 = vstv %s6532_s9  ;;  %s6604_s19 = sld [smem:[#allocation2 + $0x587]] }
  0xdd   :  { %1651 = vmatpush1.bf16.msra.mxu0 %v4891_v17  ;;  %v2378_v2 = vadd.f32 %v2377_v59, %v2374_v55  ;;  %v2384_v17 = vstv %s6404_s8  ;;  %s6471_s8 = sld [smem:[#allocation2 + $0x582]]  ;;  %v1975_v11 = vmax.f32 %v1974_v63, 0.0  ;;  %v2201_v55 = vmul.f32 %v6554_v24, %v2200_v47 }
  0xde   :  { %1871 = vmatpush1.bf16.msra.mxu1 %v4884_v6  ;;  %1652 = vmatprep.subr.bf16.mxu0 %v5121_v1  ;;  %v2189_v6 = vmul.f32 %v6462_v39, %v2188_v61  ;;  %v2385_v16 = vmul.f32 %v6479_v14, %v2384_v17  ;;  %v2404_v19 = vstv %s6548_s24  ;;  %s6634_s1 = sld [smem:[#allocation2 + $0x588]] }
  0xdf   :  { %1872 = vmatprep.subr.bf16.mxu1 %v5121_v1  ;;  %v2382_v12 = vadd.f32 %v2381_v45, %v2378_v2  ;;  %v6510_v33 = vrot.slane %v1975_v11, %v5471_v13  ;;  %v6572_v2 = vld [vmem:[%s7545_s0 + $0x1c] sm:$0xf]  ;;  %s6637_s29 = sld [smem:[#allocation2 + $0x50d]] }
  0xe0   :  { %v2190_v54 = vadd.f32 %v2189_v6, %v2186_v4  ;;  %v2397_v45 = vmul.f32 %v6572_v2, %v2396_v46  ;;  %s6641_s10 = sld [smem:[#allocation2 + $0x600]] }
  0xe1   :  { %1653 = vmatpush1.bf16.msra.mxu0 %v4893_v0  ;;  %v2596_v0 = vstv %s6452_s17  ;;  %v2386_v52 = vadd.f32 %v2385_v16, %v2382_v12  ;;  %v1984_v8 = vcombine.high %v6510_v33, %v6510_v33  ;;  %v6594_v12 = vld [vmem:[%s7545_s0 + $0x20] sm:$0xf]  ;;  %s6649_s26 = sld [smem:[#allocation2 + $0x50e]] }
  0xe2   :  { %1873 = vmatpush1.bf16.msra.mxu1 %v4886_v57  ;;  %1654 = vmatprep.subr.bf16.mxu0 %v5121_v1  ;;  %v4898_v57 = vld [vmem:[%s7548_s3 + $0x31c] ss:$0 sps:$4 sm:$0x33]   ;;  %v2597_v31 = vmul.f32 %v6378_v36, %v2596_v0  ;;  %v2194_v40 = vadd.f32 %v2193_v25, %v2190_v54  ;;  %v2401_v16 = vmul.f32 %v6594_v12, %v2400_v22  ;;  %v2616_v0 = vstv %s6564_s28  ;;  %s6656_s13 = sld [smem:[#allocation2 + $0x589]] }
  0xe3   :  { %1874 = vmatprep.subr.bf16.mxu1 %v5121_v1  ;;  %v1866_v41 = vsel %vm376_vm0, %v4898_v57, 0  ;;  %v2390_v50 = vadd.f32 %v2389_v38, %v2386_v52  ;;  %v1988_v61 = vpack.c.bf16 %v1984_v8, %v1984_v8  ;;  %v2613_v25 = vmul.f32 %v6479_v14, %v2612_v51  ;;  %v4913_v52 = vld [vmem:[%s7548_s3 + $0x340] sm:$0xff]   ;;  %s6666_s12 = sld [smem:[#allocation5 + $0xc]]  ;;  %v4912_v51 = vld [vmem:[%s7548_s3 + $0x3ac] sm:$0xff]  }
  0xe4   :  { %v2598_v44 = vadd.f32 %v2597_v31, %v2594_v28  ;;  %v6615_v31 = vld [vmem:[%s7545_s0 + $0x24] sm:$0xf]  ;;  %v2624_v46 = vstv %s6604_s19  ;;  %s6681_s21 = sld [smem:[#allocation2 + $0x58a]] }
  0xe5   :  { %1655 = vmatpush1.bf16.msra.mxu0 %v4895_v23  ;;  %v6526_v23 = vld [vmem:[%s7545_s0 + $0x38] sm:$0xf]  ;;  %v2405_v32 = vmul.f32 %v6615_v31, %v2404_v19  ;;  %s6684_s22 = sld [smem:[#allocation2 + $0x50f]] }
  0xe6   :  { %1875 = vmatpush1.bf16.msra.mxu1 %v4888_v48  ;;  %1662 = vmatprep.subr.bf16.mxu0 %v5121_v1  ;;  %v2197_v42 = vmul.f32 %v6526_v23, %v2196_v30  ;;  %v2604_v48 = vstv %s6471_s8  ;;  %v2602_v59 = vadd.f32 %v2601_v9, %v2598_v44  ;;  %v4911_v30 = vld [vmem:[%s7548_s3 + $0x348] sm:$0xff]   ;;  %s6620_s8 = sld [smem:[#allocation2 + $0x50c]]  ;;  %v2620_v44 = vstv %s6585_s15 }
  0xe7   :  { %1876 = vmatprep.subr.bf16.mxu1 %v5121_v1  ;;  %v2605_v35 = vmul.f32 %v6426_v58, %v2604_v48  ;;  %v2412_v48 = vstv %s6599_s25  ;;  %s6670_s25 = sld [smem:[#allocation2 + $0x601]] }
  0xe8   :  { %v2198_v20 = vadd.f32 %v2197_v42, %v2194_v40  ;;  %v2617_v40 = vmul.f32 %v6515_v37, %v2616_v0  ;;  %v4906_v42 = vld [vmem:[%s7548_s3 + $0x2fc] sm:$0xff]   ;;  %s6689_s24 = sld [smem:[#allocation2 + $0x602]] }
  0xe9   :  { %1663 = vmatpush2.bf16.msra.mxu0 %v1638_v18  ;;  %v2606_v4 = vadd.f32 %v2605_v35, %v2602_v59  ;;  %v6663_v59 = vld [vmem:[%s7545_s0 + $0x2c] sm:$0xf]  ;;  %s6698_s30 = sld [smem:[#allocation2 + $0x58b]] }
  0xea   :  { %1877 = vmatpush1.bf16.msra.mxu1 %v4890_v53  ;;  %1664 = vmatprep.subr.bf16.mxu0 %v5121_v1  ;;  %v6543_v53 = vld [vmem:[%s7545_s0 + $0x18] sm:$0xf]  ;;  %v2202_v17 = vadd.f32 %v2201_v55, %v2198_v20  ;;  %v1759_v20 = vpack.c.bf16 %v6293_v3, %v6293_v3  ;;  %v2413_v35 = vmul.f32 %v6663_v59, %v2412_v48  ;;  %v4917_v3 = vld [vmem:[%s7548_s3 + $0x330] sm:$0xff]   ;;  %s6717_s14 = sld [smem:[#allocation2 + $0x58c]] }
  0xeb   :  { %1878 = vmatprep.subr.bf16.mxu1 %v5121_v1  ;;  %v2393_v18 = vmul.f32 %v6543_v53, %v2392_v34  ;;  %s6734_s17 = sld [smem:[#allocation2 + $0x58d]] }
  0xec   :  { %v2203_v57 = vmax.f32 %v2202_v17, 0.0  ;;  %v2420_v17 = vstv %s6637_s29  ;;  %s6737_s2 = sld [smem:[#allocation2 + $0x680]] }
  0xed   :  { %1665 = vmatpush2.bf16.msra.mxu0 %v4899_v5  ;;  %v4907_v5 = vld [vmem:[%s7548_s3 + $0x358] sm:$0xff]   ;;  %v2394_v63 = vadd.f32 %v2393_v18, %v2390_v50  ;;  %v2621_v50 = vmul.f32 %v6543_v53, %v2620_v44  ;;  %v2421_v19 = vmul.f32 %v6493_v21, %v2420_v17  ;;  %v2828_v0 = vstv %s6670_s25  ;;  %s6749_s9 = sld [smem:[#allocation2 + $0x605]] }
  0xee   :  { %1879 = vmatpush1.bf16.msra.mxu1 %v4892_v60  ;;  %1666 = vmatprep.subr.bf16.mxu0 %v5121_v1  ;;  %v2608_v60 = vstv %s6504_s20  ;;  %v6627_v38 = vrot.slane %v2203_v57, %v5471_v13  ;;  %v4908_v18 = vld [vmem:[%s7548_s3 + $0x3bc] sm:$0xff]   ;;  %v2829_v44 = vmul.f32 %v6395_v10, %v2828_v0  ;;  %s6753_s16 = sld [smem:[#allocation5 + $0xd]] }
  0xef   :  { %1880 = vmatprep.subr.bf16.mxu1 %v5121_v1  ;;  %v2609_v6 = vmul.f32 %v6449_v43, %v2608_v60  ;;  %v2398_v11 = vadd.f32 %v2397_v45, %v2394_v63  ;;  %v2628_v63 = vstv %s6634_s1  ;;  %s6709_s1 = sld [smem:[#allocation2 + $0x603]] }
  0xf0   :  { %s6756_s18 = sld [smem:[#allocation2 + $0x681]] }
  0xf1   :  { %1667 = vmatpush2.bf16.msra.mxu0 %v4901_v62  ;;  %v4909_v62 = vld [vmem:[%s7548_s3 + $0x350] sm:$0xff]   ;;  %v2610_v54 = vadd.f32 %v2609_v6, %v2606_v4  ;;  %v2402_v28 = vadd.f32 %v2401_v16, %v2398_v11  ;;  %v2824_v4 = vstv %s6641_s10  ;;  %v4919_v11 = vld [vmem:[%s7548_s3 + $0x328] sm:$0xff]   ;;  %s6767_s27 = sld [smem:[#allocation2 + $0x606]] }
  0xf2   :  { %1881 = vmatpush1.bf16.msra.mxu1 %v4894_v56  ;;  %1668 = vmatprep.subr.bf16.mxu0 %v5121_v1  ;;  %v4902_v56 = vld [vmem:[%s7548_s3 + $0x30c] sm:$0xff]   ;;  %v2825_v57 = vmul.f32 %v6378_v36, %v2824_v4  ;;  %s6777_s11 = sld [smem:[#allocation2 + $0x682]] }
  0xf3   :  { %1882 = vmatprep.subr.bf16.mxu1 %v5121_v1  ;;  %v2614_v34 = vadd.f32 %v2613_v25, %v2610_v54  ;;  %v2406_v9 = vadd.f32 %v2405_v32, %v2402_v28  ;;  %v2424_v54 = vstv %s6649_s26  ;;  %v2822_v25 = vstv %s6666_s12  ;;  %v4914_v28 = vld [vmem:[%s7548_s3 + $0x3a4] sm:$0xff]   ;;  %s6740_s12 = sld [smem:[#allocation2 + $0x58e]] }
  0xf4   :  { %v2636_v32 = vstv %s6681_s21  ;;  %s6820_s25 = sld [smem:[#allocation2 + $0x684]] }
  0xf5   :  { %1669 = vmatpush2.bf16.msra.mxu0 %v4903_v7  ;;  %v2408_v7 = vstv %s6577_s23  ;;  %v2618_v8 = vadd.f32 %v2617_v40, %v2614_v34  ;;  %v2425_v40 = vmul.f32 %v6526_v23, %v2424_v54  ;;  %s6796_s23 = sld [smem:[#allocation2 + $0x683]] }
  0xf6   :  { %1883 = vmatpush1.bf16.msra.mxu1 %v4896_v27  ;;  %1670 = vmatprep.subr.bf16.mxu0 %v5121_v1  ;;  %v4904_v27 = vld [vmem:[%s7548_s3 + $0x304] sm:$0xff]   ;;  %v2409_v47 = vmul.f32 %v6410_v49, %v2408_v7  ;;  %s6870_s10 = sld [smem:[#allocation2 + $0x60b]] }
  0xf7   :  { %1890 = vmatprep.subr.bf16.mxu1 %v5121_v1  ;;  %v2622_v60 = vadd.f32 %v2621_v50, %v2618_v8  ;;  %v4921_v7 = vld [vmem:[%s7548_s3 + $0x320] sm:$0xff]   ;;  %s6915_s21 = sld [smem:[#allocation2 + $0x60e]] }
  0xf8   :  { %v2410_v55 = vadd.f32 %v2409_v47, %v2406_v9  ;;  %v2428_v9 = vstv %s6684_s22  ;;  %v2832_v47 = vstv %s6689_s24  ;;  %s6936_s28 = sld [smem:[#allocation2 + $0x68a]] }
  0xf9   :  { %1671 = vmatpush2.bf16.msra.mxu0 %v4905_v15  ;;  %v2212_v15 = vcombine.high %v6627_v38, %v6627_v38  ;;  %v2429_v50 = vmul.f32 %v6554_v24, %v2428_v9  ;;  %v4924_v9 = vld [vmem:[%s7548_s3 + $0x3e4] ss:$0 sps:$4 sm:$0x33]   ;;  %s6950_s26 = sld [smem:[#allocation2 + $0x702]] }
  0xfa   :  { %1891 = vmatpush2.bf16.msra.mxu1 %v1866_v41  ;;  %2096 = vmatprep.subr.bf16.mxu0 %v5121_v1  ;;  %v4915_v41 = vld [vmem:[%s7548_s3 + $0x338] sm:$0xff]   ;;  %v2414_v45 = vadd.f32 %v2413_v35, %v2410_v55  ;;  %v2836_v35 = vstv %s6709_s1  ;;  %s6956_s20 = sld [smem:[#allocation2 + $0x68b]] }
  0xfb   :  { %1892 = vmatprep.subr.bf16.mxu1 %v5121_v1  ;;  %s6975_s19 = sld [smem:[#allocation2 + $0x703]] }
  0xfc   :  { %1673 = vmatmul.mubr.bf16.vlgmr.msra.gmra.mxu0 %v1531_v29  ;;  %v2216_v29 = vpack.c.bf16 %v2212_v15, %v2212_v15  ;;  %v2640_v15 = vstv %s6698_s30  ;;  %s6771_s30 = sld [smem:[#allocation2 + $0x58f]] }
  0xfd   :  { %2097 = vmatpush1.bf16.msra.mxu0 %v4907_v5  ;;  %4362 = vmatprep.mubr.msk.bf16.mxu0 %vm372_vm1, %v1988_v61  ;;  %v2625_v5 = vmul.f32 %v6572_v2, %v2624_v46  ;;  %v4910_v61 = vld [vmem:[%s7548_s3 + $0x3b4] sm:$0xff]   ;;  %v2833_v46 = vmul.f32 %v6426_v58, %v2832_v47  ;;  %s7010_s29 = sld [smem:[#allocation2 + $0x68d]] }
  0xfe   :  { %1893 = vmatpush2.bf16.msra.mxu1 %v4900_v26  ;;  %2098 = vmatprep.subr.bf16.mxu0 %v5121_v1  ;;  %v2416_v26 = vstv %s6620_s8  ;;  %s6924_s8 = sld [smem:[#allocation5 + $0xe]] }
  0xff   :  { %1894 = vmatprep.subr.bf16.mxu1 %v5121_v1  ;;  %v2417_v22 = vmul.f32 %v6462_v39, %v2416_v26  ;;  %v2626_v6 = vadd.f32 %v2625_v5, %v2622_v60  ;;  %v4925_v60 = vld [vmem:[%s7548_s3 + $0x378] sm:$0xff]   ;;  %s7132_s24 = sld [smem:[#allocation2 + $0x784]] }
 0x100   :  { %s7309_s15 = sld [smem:[#allocation2 + $0x78d]] }
 0x101   :  { %2099 = vmatpush1.bf16.msra.mxu0 %v4909_v62  ;;  %v2632_v62 = vstv %s6656_s13  ;;  %v2418_v16 = vadd.f32 %v2417_v22, %v2414_v45  ;;  %s6730_s13 = sld [smem:[#allocation2 + $0x604]]  ;;  %v4918_v45 = vld [vmem:[%s7548_s3 + $0x394] sm:$0xff]  }
 0x102   :  { %1895 = vmatpush2.bf16.msra.mxu1 %v4902_v56  ;;  %2100 = vmatprep.subr.bf16.mxu0 %v5121_v1  ;;  %v2629_v56 = vmul.f32 %v6594_v12, %v2628_v63  ;;  %v2837_v63 = vmul.f32 %v6449_v43, %v2836_v35 }
 0x103   :  { %1896 = vmatprep.subr.bf16.mxu1 %v5121_v1  ;;  %v2422_v34 = vadd.f32 %v2421_v19, %v2418_v16 }
 0x105   :  { %2101 = vmatpush1.bf16.msra.mxu0 %v4911_v30  ;;  %v2633_v30 = vmul.f32 %v6615_v31, %v2632_v62  ;;  %v2426_v8 = vadd.f32 %v2425_v40, %v2422_v34  ;;  %v4927_v62 = vld [vmem:[%s7548_s3 + $0x370] sm:$0xff]   ;;  %v4929_v34 = vld [vmem:[%s7548_s3 + $0x368] sm:$0xff]  }
 0x106   :  { %1897 = vmatpush2.bf16.msra.mxu1 %v4904_v27  ;;  %2102 = vmatprep.subr.bf16.mxu0 %v5121_v1  ;;  %v2630_v27 = vadd.f32 %v2629_v56, %v2626_v6  ;;  %v2648_v56 = vstv %s6734_s17  ;;  %s6894_s17 = sld [smem:[#allocation2 + $0x688]] }
 0x107   :  { %1898 = vmatprep.subr.bf16.mxu1 %v5121_v1  ;;  %v2430_v5 = vadd.f32 %v2429_v50, %v2426_v8  ;;  %v2840_v22 = vstv %s6730_s13  ;;  %s6886_s13 = sld [smem:[#allocation2 + $0x60c]] }
 0x108   :  { %v2634_v48 = vadd.f32 %v2633_v30, %v2630_v27  ;;  %v2841_v19 = vmul.f32 %v6479_v14, %v2840_v22  ;;  %v2649_v27 = vmul.f32 %v6493_v21, %v2648_v56  ;;  %v4933_v22 = vld [vmem:[%s7548_s3 + $0x420] sm:$0xff]  }
 0x109   :  { %2103 = vmatpush1.bf16.msra.mxu0 %v4913_v52  ;;  %v4923_v52 = vld [vmem:[%s7548_s3 + $0x380] ss:$0 sps:$4 sm:$0x33]  }
 0x10a   :  { %1899 = vmatpush2.bf16.msra.mxu1 %v4906_v42  ;;  %2104 = vmatprep.subr.bf16.mxu0 %v5121_v1  ;;  %v2826_v42 = vadd.f32 %v2825_v57, %v2822_v25  ;;  %v2094_v55 = vsel %vm376_vm0, %v4923_v52, 0  ;;  %v4920_v57 = vld [vmem:[%s7548_s3 + $0x38c] sm:$0xff]   ;;  %v2844_v25 = vstv %s6749_s9  ;;  %v3056_v52 = vstv %s6756_s18  ;;  %s6839_s18 = sld [smem:[#allocation2 + $0x685]] }
 0x10b   :  { %2324 = vmatprep.subr.bf16.mxu1 %v5121_v1  ;;  %v3057_v50 = vmul.f32 %v6395_v10, %v3056_v52  ;;  %s6980_s9 = sld [smem:[#allocation2 + $0x68c]] }
 0x10d   :  { %1901 = vmatmul.mubr.bf16.vlgmr.msra.gmra.mxu1 %v1759_v20  ;;  %2105 = vmatpush1.bf16.msra.mxu0 %v4915_v41  ;;  %v2637_v41 = vmul.f32 %v6410_v49, %v2636_v32  ;;  %v4916_v20 = vld [vmem:[%s7548_s3 + $0x39c] sm:$0xff]   ;;  %v2652_v32 = vstv %s6740_s12  ;;  %s6813_s12 = sld [smem:[#allocation2 + $0x608]] }
 0x10e   :  { %2325 = vmatpush1.bf16.msra.mxu1 %v4908_v18  ;;  %2106 = vmatprep.subr.bf16.mxu0 %v5121_v1  ;;  %v2830_v18 = vadd.f32 %v2829_v44, %v2826_v42  ;;  %v4922_v44 = vld [vmem:[%s7548_s3 + $0x384] sm:$0xff]  }
 0x10f   :  { %2326 = vmatprep.subr.bf16.mxu1 %v5121_v1  ;;  %4418 = vmatprep.mubr.msk.bf16.mxu1 %vm372_vm1, %v2216_v29  ;;  %v2638_v26 = vadd.f32 %v2637_v41, %v2634_v48  ;;  %v2644_v29 = vstv %s6717_s14  ;;  %s6788_s14 = sld [smem:[#allocation2 + $0x607]]  ;;  %v2848_v48 = vstv %s6767_s27 }
 0x110   :  { %v2645_v4 = vmul.f32 %v6462_v39, %v2644_v29  ;;  %s6850_s27 = sld [smem:[#allocation2 + $0x60a]] }
 0x111   :  { %2107 = vmatpush1.bf16.msra.mxu0 %v4917_v3  ;;  %v2641_v3 = vmul.f32 %v6663_v59, %v2640_v15  ;;  %v2653_v15 = vmul.f32 %v6526_v23, %v2652_v32 }
 0x112   :  { %2327 = vmatpush1.bf16.msra.mxu1 %v4910_v61  ;;  %2108 = vmatprep.subr.bf16.mxu0 %v5121_v1  ;;  %v2834_v61 = vadd.f32 %v2833_v46, %v2830_v18  ;;  %v2656_v18 = vstv %s6771_s30  ;;  %v3060_v46 = vstv %s6777_s11  ;;  %s6855_s30 = sld [smem:[#allocation2 + $0x686]] }
 0x113   :  { %2328 = vmatprep.subr.bf16.mxu1 %v5121_v1  ;;  %v2642_v17 = vadd.f32 %v2641_v3, %v2638_v26  ;;  %v2849_v26 = vmul.f32 %v6543_v53, %v2848_v48  ;;  %v2322_v3 = vsel %vm376_vm0, %v4924_v9, 0  ;;  %s6931_s11 = sld [smem:[#allocation2 + $0x701]] }
 0x114   :  { %v2838_v16 = vadd.f32 %v2837_v63, %v2834_v61  ;;  %v3061_v61 = vmul.f32 %v6426_v58, %v3060_v46  ;;  %v1987_v63 = vpack.c.bf16 %v6510_v33, %v6510_v33  ;;  %v4926_v58 = vld [vmem:[%s7548_s3 + $0x3dc] sm:$0xff]   ;;  %v2856_v33 = vstv %s6813_s12  ;;  %v4932_v46 = vld [vmem:[%s7548_s3 + $0x3c4] sm:$0xff]   ;;  %s7177_s12 = sld [smem:[#allocation2 + $0x70a]] }
 0x115   :  { %2109 = vmatpush1.bf16.msra.mxu0 %v4919_v11  ;;  %v2431_v11 = vmax.f32 %v2430_v5, 0.0  ;;  %v2646_v0 = vadd.f32 %v2645_v4, %v2642_v17  ;;  %v2852_v10 = vstv %s6788_s14  ;;  %s6875_s14 = sld [smem:[#allocation2 + $0x687]] }
 0x116   :  { %2329 = vmatpush1.bf16.msra.mxu1 %v4912_v51  ;;  %2110 = vmatprep.subr.bf16.mxu0 %v5121_v1  ;;  %v3052_v51 = vstv %s6737_s2  ;;  %v2842_v42 = vadd.f32 %v2841_v19, %v2838_v16  ;;  %v2853_v56 = vmul.f32 %v6572_v2, %v2852_v10  ;;  %v3068_v16 = vstv %s6820_s25  ;;  %s6900_s25 = sld [smem:[#allocation2 + $0x60d]] }
 0x117   :  { %2330 = vmatprep.subr.bf16.mxu1 %v5121_v1  ;;  %v3053_v30 = vmul.f32 %v6378_v36, %v3052_v51  ;;  %v6802_v40 = vrot.slane %v2431_v11, %v5471_v13  ;;  %v2845_v36 = vmul.f32 %v6515_v37, %v2844_v25  ;;  %v2650_v41 = vadd.f32 %v2649_v27, %v2646_v0  ;;  %s7037_s2 = sld [smem:[#allocation2 + $0x781]] }
 0x118   :  { %v2857_v25 = vmul.f32 %v6594_v12, %v2856_v33 }
 0x119   :  { %2111 = vmatpush1.bf16.msra.mxu0 %v4921_v7  ;;  %v3050_v7 = vstv %s6753_s16  ;;  %v2846_v35 = vadd.f32 %v2845_v36, %v2842_v42  ;;  %s6831_s16 = sld [smem:[#allocation2 + $0x609]]  ;;  %v2654_v29 = vadd.f32 %v2653_v15, %v2650_v41  ;;  %v3076_v15 = vstv %s6855_s30 }
 0x11a   :  { %2331 = vmatpush1.bf16.msra.mxu1 %v4914_v28  ;;  %2118 = vmatprep.subr.bf16.mxu0 %v5121_v1  ;;  %v3054_v8 = vadd.f32 %v3053_v30, %v3050_v7  ;;  %v3069_v7 = vmul.f32 %v6479_v14, %v3068_v16  ;;  %v2864_v14 = vstv %s6850_s27  ;;  %v6965_v16 = vld [vmem:[%s7545_s0] sm:$0xf]  ;;  %s7066_s27 = sld [smem:[#allocation2 + $0x782]] }
 0x11b   :  { %2332 = vmatprep.subr.bf16.mxu1 %v5121_v1  ;;  %v2850_v4 = vadd.f32 %v2849_v26, %v2846_v35  ;;  %v3080_v35 = vstv %s6875_s14  ;;  %v2215_v26 = vpack.c.bf16 %v6627_v38, %v6627_v38  ;;  %s7013_s14 = sld [smem:[#allocation2 + $0x780]] }
 0x11c   :  { %v3058_v5 = vadd.f32 %v3057_v50, %v3054_v8  ;;  %v4939_v8 = vld [vmem:[%s7548_s3 + $0x408] sm:$0xff]   ;;  %s7213_s30 = sld [smem:[#allocation2 + $0x70c]] }
 0x11d   :  { %2119 = vmatpush2.bf16.msra.mxu0 %v2094_v55  ;;  %v2440_v55 = vcombine.high %v6802_v40, %v6802_v40 }
 0x11e   :  { %2333 = vmatpush1.bf16.msra.mxu1 %v4916_v20  ;;  %2120 = vmatprep.subr.bf16.mxu0 %v5121_v1  ;;  %v4931_v20 = vld [vmem:[%s7548_s3 + $0x360] sm:$0xff]  }
 0x11f   :  { %2334 = vmatprep.subr.bf16.mxu1 %v5121_v1  ;;  %v2444_v17 = vpack.c.bf16 %v2440_v55, %v2440_v55  ;;  %v2860_v27 = vstv %s6831_s16  ;;  %s6907_s16 = sld [smem:[#allocation2 + $0x700]] }
 0x120   :  { %v6773_v6 = vpop.f32.mrf.mxu0  ;;  %v2861_v36 = vmul.f32 %v6615_v31, %v2860_v27 }
 0x121   :  { %2121 = vmatpush2.bf16.msra.mxu0 %v4925_v60  ;;  %v2657_v60 = vmul.f32 %v6554_v24, %v2656_v18  ;;  %v2865_v18 = vmul.f32 %v6410_v49, %v2864_v14  ;;  %v3077_v49 = vmul.f32 %v6543_v53, %v3076_v15  ;;  %v4934_v53 = vld [vmem:[%s7548_s3 + $0x484] sm:$0xff]  }
 0x122   :  { %2335 = vmatpush1.bf16.msra.mxu1 %v4918_v45  ;;  %v416_v54 = vpop.f32.mrf.mxu0  ;;  %2122 = vmatprep.subr.bf16.mxu0 %v5121_v1  ;;  %v3064_v45 = vstv %s6796_s23  ;;  %s7085_s23 = sld [smem:[#allocation2 + $0x707]] }
 0x123   :  { %2336 = vmatprep.subr.bf16.mxu1 %v5121_v1  ;;  %v2658_v51 = vadd.f32 %v2657_v60, %v2654_v29  ;;  %v3065_v11 = vmul.f32 %v6449_v43, %v3064_v45  ;;  %v2854_v54 = vadd.f32 %v2853_v56, %v2850_v4  ;;  %v4928_v43 = vld [vmem:[%s7548_s3 + $0x3d4] sm:$0xff]   ;;  %v2872_v60 = vstv %s6886_s13  ;;  %s7030_s13 = sld [smem:[#allocation2 + $0x705]] }
 0x124   :  { %v417_v28 = vpop.f32.mrf.mxu0  ;;  %v4943_v45 = vld [vmem:[%s7548_s3 + $0x3f8] sm:$0xff]   ;;  %v2876_v4 = vstv %s6900_s25  ;;  %s7182_s25 = sld [smem:[#allocation2 + $0x786]] }
 0x125   :  { %2123 = vmatpush2.bf16.msra.mxu0 %v4927_v62  ;;  %v3062_v62 = vadd.f32 %v3061_v61, %v3058_v5  ;;  %v2659_v28 = vmax.f32 %v2658_v51, 0.0  ;;  %v2858_v42 = vadd.f32 %v2857_v25, %v2854_v54  ;;  %v3081_v61 = vmul.f32 %v6572_v2, %v3080_v35  ;;  %v4936_v2 = vld [vmem:[%s7548_s3 + $0x47c] sm:$0xff]   ;;  %v4945_v51 = vld [vmem:[%s7548_s3 + $0x3f0] sm:$0xff]  }
 0x126   :  { %2337 = vmatpush1.bf16.msra.mxu1 %v4920_v57  ;;  %v418_v47 = vpop.f32.mrf.mxu0  ;;  %2124 = vmatprep.subr.bf16.mxu0 %v5121_v1  ;;  %v4935_v57 = vld [vmem:[%s7548_s3 + $0x418] sm:$0xff]   ;;  %v3280_v56 = vstv %s6907_s16  ;;  %v2880_v54 = vstv %s6915_s21  ;;  %v3278_v25 = vstv %s6924_s8  ;;  %s7053_s21 = sld [smem:[#allocation2 + $0x706]] }
 0x127   :  { %2338 = vmatprep.subr.bf16.mxu1 %v5121_v1  ;;  %v3066_v32 = vadd.f32 %v3065_v11, %v3062_v62  ;;  %v6890_v47 = vrot.slane %v2659_v28, %v5471_v13  ;;  %v2862_v50 = vadd.f32 %v2861_v36, %v2858_v42  ;;  %v2877_v11 = vmul.f32 %v6493_v21, %v2876_v4  ;;  %v4947_v28 = vld [vmem:[%s7548_s3 + $0x3e8] sm:$0xff]   ;;  %s7062_s8 = sld [smem:[#allocation2 + $0x68f]]  ;;  %v4953_v4 = vld [vmem:[%s7548_s3 + $0x438] sm:$0xff]  }
 0x128   :  { %v4940_v42 = vld [vmem:[%s7548_s3 + $0x46c] sm:$0xff]   ;;  %v3100_v35 = vstv %s6980_s9  ;;  %s7120_s9 = sld [smem:[#allocation2 + $0x708]] }
 0x129   :  { %2125 = vmatpush2.bf16.msra.mxu0 %v4929_v34  ;;  %v4937_v34 = vld [vmem:[%s7548_s3 + $0x410] sm:$0xff]   ;;  %v3070_v48 = vadd.f32 %v3069_v7, %v3066_v32  ;;  %v2866_v10 = vadd.f32 %v2865_v18, %v2862_v50  ;;  %v2881_v7 = vmul.f32 %v6526_v23, %v2880_v54  ;;  %v4949_v23 = vld [vmem:[%s7548_s3 + $0x448] ss:$0 sps:$4 sm:$0x33]   ;;  %s7197_s16 = sld [smem:[#allocation2 + $0x70b]] }
 0x12a   :  { %2339 = vmatpush1.bf16.msra.mxu1 %v4922_v44  ;;  %2126 = vmatprep.subr.bf16.mxu0 %v5121_v1  ;;  %v4930_v44 = vld [vmem:[%s7548_s3 + $0x3cc] sm:$0xff]   ;;  %v7021_v18 = vld [vmem:[%s7545_s0 + $0x8] sm:$0xf] }
 0x12b   :  { %2346 = vmatprep.subr.bf16.mxu1 %v5121_v1 }
 0x12d   :  { %2127 = vmatpush2.bf16.msra.mxu0 %v4931_v20  ;;  %v2668_v20 = vcombine.high %v6890_v47, %v6890_v47 }
 0x12e   :  { %2347 = vmatpush2.bf16.msra.mxu1 %v2322_v3  ;;  %2552 = vmatprep.subr.bf16.mxu0 %v5121_v1  ;;  %v4941_v3 = vld [vmem:[%s7548_s3 + $0x400] sm:$0xff]  }
 0x12f   :  { %2348 = vmatprep.subr.bf16.mxu1 %v5121_v1  ;;  %v2672_v38 = vpack.c.bf16 %v2668_v20, %v2668_v20  ;;  %v2550_v20 = vsel %vm376_vm0, %v4949_v23, 0  ;;  %v3304_v23 = vstv %s7053_s21 }
 0x130   :  { %2129 = vmatmul.mubr.bf16.vlgmr.msra.gmra.mxu0 %v1987_v63  ;;  %v535_v19 = vpop.f32.mrf.mxu1  ;;  %v3084_v63 = vstv %s6894_s17  ;;  %s7034_s17 = sld [smem:[#allocation5 + $0xf]] }
 0x131   :  { %2553 = vmatpush1.bf16.msra.mxu0 %v4933_v22  ;;  %4474 = vmatprep.mubr.msk.bf16.mxu0 %vm372_vm1, %v2444_v17  ;;  %v6863_v0 = vadd.f32 %v535_v19, %v6773_v6  ;;  %v3072_v6 = vstv %s6839_s18  ;;  %s6913_s18 = sld [smem:[#allocation2 + $0x689]]  ;;  %v2873_v17 = vmul.f32 %v6462_v39, %v2872_v60  ;;  %v3281_v19 = vmul.f32 %v6965_v16, %v3280_v56  ;;  %v4944_v60 = vld [vmem:[%s7548_s3 + $0x45c] sm:$0xff]  }
 0x132   :  { %2349 = vmatpush2.bf16.msra.mxu1 %v4926_v58  ;;  %2554 = vmatprep.subr.bf16.mxu0 %v5121_v1  ;;  %v537_v30 = vpop.f32.mrf.mxu1  ;;  %v3073_v41 = vmul.f32 %v6515_v37, %v3072_v6  ;;  %v2868_v37 = vstv %s6870_s10  ;;  %s6942_s10 = sld [smem:[#allocation2 + $0x60f]]  ;;  %v3085_v58 = vmul.f32 %v6594_v12, %v3084_v63 }
 0x133   :  { %2350 = vmatprep.subr.bf16.mxu1 %v5121_v1  ;;  %v2869_v29 = vmul.f32 %v6663_v59, %v2868_v37  ;;  %v3092_v30 = vstv %s6936_s28  ;;  %v3282_v6 = vadd.f32 %v3281_v19, %v3278_v25  ;;  %v4942_v37 = vld [vmem:[%s7548_s3 + $0x464] sm:$0xff]   ;;  %v7091_v19 = vld [vmem:[%s7545_s0 + $0x34] sm:$0xf] }
 0x134   :  { %v538_v52 = vpop.f32.mrf.mxu1  ;;  %v3074_v55 = vadd.f32 %v3073_v41, %v3070_v48  ;;  %v3096_v41 = vstv %s6956_s20  ;;  %s7098_s20 = sld [smem:[#allocation2 + $0x783]] }
 0x135   :  { %2555 = vmatpush1.bf16.msra.mxu0 %v4935_v57  ;;  %v2870_v22 = vadd.f32 %v2869_v29, %v2866_v10  ;;  %v4938_v57 = vld [vmem:[%s7548_s3 + $0x474] sm:$0xff]   ;;  %v6989_v52 = vld [vmem:[%s7545_s0 + $0x4] sm:$0xf]  ;;  %v7045_v29 = vld [vmem:[%s7545_s0 + $0xc] sm:$0xf] }
 0x136   :  { %2351 = vmatpush2.bf16.msra.mxu1 %v4928_v43  ;;  %2556 = vmatprep.subr.bf16.mxu0 %v5121_v1  ;;  %v539_v9 = vpop.f32.mrf.mxu1  ;;  %v3078_v5 = vadd.f32 %v3077_v49, %v3074_v55  ;;  %v3284_v43 = vstv %s6931_s11  ;;  %s7001_s11 = sld [smem:[#allocation2 + $0x704]]  ;;  %v3097_v49 = vmul.f32 %v6663_v59, %v3096_v41 }
 0x137   :  { %2352 = vmatprep.subr.bf16.mxu1 %v5121_v1  ;;  %v3088_v33 = vstv %s6913_s18  ;;  %v2874_v62 = vadd.f32 %v2873_v17, %v2870_v22  ;;  %v7007_v9 = vld [vmem:[%s7545_s0 + $0x28] sm:$0xf]  ;;  %v3104_v22 = vstv %s7010_s29  ;;  %v3508_v17 = vstv %s7013_s14  ;;  %s7161_s29 = sld [smem:[#allocation2 + $0x785]] }
 0x138   :  { %v3082_v39 = vadd.f32 %v3081_v61, %v3078_v5  ;;  %v3089_v27 = vmul.f32 %v6615_v31, %v3088_v33  ;;  %v2884_v36 = vstv %s6942_s10  ;;  %v3093_v48 = vmul.f32 %v7007_v9, %v3092_v30  ;;  %s7016_s10 = sld [smem:[#allocation2 + $0x68e]]  ;;  %v7059_v61 = vld [vmem:[%s7545_s0 + $0x30] sm:$0xf] }
 0x139   :  { %2557 = vmatpush1.bf16.msra.mxu0 %v4937_v34  ;;  %v2878_v32 = vadd.f32 %v2877_v11, %v2874_v62  ;;  %v3285_v34 = vmul.f32 %v6989_v52, %v3284_v43  ;;  %v3101_v63 = vmul.f32 %v7059_v61, %v3100_v35  ;;  %v3300_v62 = vstv %s7030_s13  ;;  %v4955_v30 = vld [vmem:[%s7548_s3 + $0x430] sm:$0xff]   ;;  %v7154_v35 = vld [vmem:[%s7545_s0 + $0x3c] sm:$0xf]  ;;  %s7239_s14 = sld [smem:[#allocation2 + $0x789]] }
 0x13a   :  { %2353 = vmatpush2.bf16.msra.mxu1 %v4930_v44  ;;  %2558 = vmatprep.subr.bf16.mxu0 %v5121_v1  ;;  %v3086_v21 = vadd.f32 %v3085_v58, %v3082_v39  ;;  %v3288_v44 = vstv %s6950_s26  ;;  %v7077_v58 = vld [vmem:[%s7545_s0 + $0x10] sm:$0xf]  ;;  %v3509_v54 = vmul.f32 %v6965_v16, %v3508_v17  ;;  %v7109_v16 = vld [vmem:[%s7545_s0 + $0x14] sm:$0xf]  ;;  %s7276_s18 = sld [smem:[#allocation2 + $0x78b]] }
 0x13b   :  { %2354 = vmatprep.subr.bf16.mxu1 %v5121_v1  ;;  %v2882_v15 = vadd.f32 %v2881_v7, %v2878_v32  ;;  %v3286_v50 = vadd.f32 %v3285_v34, %v3282_v6  ;;  %v3301_v7 = vmul.f32 %v7109_v16, %v3300_v62  ;;  %v4948_v6 = vld [vmem:[%s7548_s3 + $0x44c] sm:$0xff]  }
 0x13c   :  { %v3090_v14 = vadd.f32 %v3089_v27, %v3086_v21  ;;  %v3506_v21 = vstv %s7034_s17  ;;  %v3512_v27 = vstv %s7037_s2  ;;  %v4950_v34 = vld [vmem:[%s7548_s3 + $0x4ac] ss:$0 sps:$4 sm:$0x33]   ;;  %s7268_s2 = sld [smem:[#allocation2 + $0x70f]] }
 0x13d   :  { %2559 = vmatpush1.bf16.msra.mxu0 %v4939_v8  ;;  %v2885_v8 = vmul.f32 %v6554_v24, %v2884_v36  ;;  %v3292_v24 = vstv %s6975_s19  ;;  %v3513_v41 = vmul.f32 %v6989_v52, %v3512_v27  ;;  %v4963_v27 = vld [vmem:[%s7548_s3 + $0x4d8] sm:$0xff]   ;;  %s7322_s19 = sld [smem:[#allocation2 + $0x78e]] }
 0x13e   :  { %2355 = vmatpush2.bf16.msra.mxu1 %v4932_v46  ;;  %2560 = vmatprep.subr.bf16.mxu0 %v5121_v1  ;;  %v3289_v46 = vmul.f32 %v7021_v18, %v3288_v44  ;;  %v3094_v55 = vadd.f32 %v3093_v48, %v3090_v14  ;;  %v3108_v43 = vstv %s7016_s10  ;;  %v7126_v44 = vld [vmem:[%s7545_s0 + $0x38] sm:$0xf]  ;;  %v3510_v48 = vadd.f32 %v3509_v54, %v3506_v21 }
 0x13f   :  { %2780 = vmatprep.subr.bf16.mxu1 %v5121_v1  ;;  %v3109_v14 = vmul.f32 %v7126_v44, %v3108_v43 }
 0x140   :  { %v3290_v10 = vadd.f32 %v3289_v46, %v3286_v50  ;;  %v3098_v5 = vadd.f32 %v3097_v49, %v3094_v55  ;;  %v4957_v50 = vld [vmem:[%s7548_s3 + $0x428] sm:$0xff]   ;;  %v3308_v55 = vstv %s7085_s23 }
 0x141   :  { %2357 = vmatmul.mubr.bf16.vlgmr.msra.gmra.mxu1 %v2215_v26  ;;  %2561 = vmatpush1.bf16.msra.mxu0 %v4941_v3  ;;  %v4951_v26 = vld [vmem:[%s7548_s3 + $0x440] sm:$0xff]   ;;  %v2886_v3 = vadd.f32 %v2885_v8, %v2882_v15  ;;  %v3112_v15 = vstv %s7062_s8  ;;  %v3516_v8 = vstv %s7066_s27  ;;  %s7148_s8 = sld [smem:[#allocation2 + $0x709]] }
 0x142   :  { %2781 = vmatpush1.bf16.msra.mxu1 %v4934_v53  ;;  %2562 = vmatprep.subr.bf16.mxu0 %v5121_v1  ;;  %v3293_v53 = vmul.f32 %v7045_v29, %v3292_v24  ;;  %v3102_v11 = vadd.f32 %v3101_v63, %v3098_v5  ;;  %v2778_v24 = vsel %vm376_vm0, %v4950_v34, 0 }
 0x143   :  { %2782 = vmatprep.subr.bf16.mxu1 %v5121_v1  ;;  %4530 = vmatprep.mubr.msk.bf16.mxu1 %vm372_vm1, %v2672_v38  ;;  %v3296_v38 = vstv %s7001_s11  ;;  %v2887_v56 = vmax.f32 %v2886_v3, 0.0  ;;  %v3514_v3 = vadd.f32 %v3513_v41, %v3510_v48  ;;  %s7221_s11 = sld [smem:[#allocation2 + $0x788]]  ;;  %v4958_v41 = vld [vmem:[%s7548_s3 + $0x48c] sm:$0xff]  }
 0x144   :  { %v3294_v39 = vadd.f32 %v3293_v53, %v3290_v10  ;;  %v3297_v33 = vmul.f32 %v7077_v58, %v3296_v38  ;;  %v3517_v10 = vmul.f32 %v7021_v18, %v3516_v8  ;;  %v2443_v53 = vpack.c.bf16 %v6802_v40, %v6802_v40  ;;  %v4959_v38 = vld [vmem:[%s7548_s3 + $0x4e8] sm:$0xff]  }
 0x145   :  { %2563 = vmatpush1.bf16.msra.mxu0 %v4943_v45  ;;  %v4952_v40 = vld [vmem:[%s7548_s3 + $0x4a4] sm:$0xff]  }
 0x146   :  { %2783 = vmatpush1.bf16.msra.mxu1 %v4936_v2  ;;  %2564 = vmatprep.subr.bf16.mxu0 %v5121_v1  ;;  %v3298_v32 = vadd.f32 %v3297_v33, %v3294_v39  ;;  %v3524_v39 = vstv %s7132_s24 }
 0x147   :  { %2784 = vmatprep.subr.bf16.mxu1 %v5121_v1 }
 0x149   :  { %2565 = vmatpush1.bf16.msra.mxu0 %v4945_v51 }
 0x14a   :  { %2785 = vmatpush1.bf16.msra.mxu1 %v4938_v57  ;;  %2566 = vmatprep.subr.bf16.mxu0 %v5121_v1  ;;  %v3105_v57 = vmul.f32 %v7091_v19, %v3104_v22  ;;  %v3312_v22 = vstv %s7120_s9  ;;  %s7202_s9 = sld [smem:[#allocation2 + $0x787]] }
 0x14b   :  { %2786 = vmatprep.subr.bf16.mxu1 %v5121_v1  ;;  %v3313_v62 = vmul.f32 %v6594_v12, %v3312_v22  ;;  %v3525_v12 = vmul.f32 %v7077_v58, %v3524_v39  ;;  %v3320_v58 = vstv %s7177_s12  ;;  %s7257_s12 = sld [smem:[#allocation2 + $0x78a]]  ;;  %v4971_v22 = vld [vmem:[%s7548_s3 + $0x4b8] sm:$0xff]  }
 0x14c   :  { %v3106_v36 = vadd.f32 %v3105_v57, %v3102_v11  ;;  %v3316_v57 = vstv %s7148_s8  ;;  %v3321_v48 = vmul.f32 %v7007_v9, %v3320_v58  ;;  %s7292_s8 = sld [smem:[#allocation2 + $0x78c]] }
 0x14d   :  { %2567 = vmatpush1.bf16.msra.mxu0 %v4947_v28  ;;  %v7104_v28 = vrot.slane %v2887_v56, %v5471_v13 }
 0x14e   :  { %2787 = vmatpush1.bf16.msra.mxu1 %v4940_v42  ;;  %2574 = vmatprep.subr.bf16.mxu0 %v5121_v1  ;;  %v3110_v49 = vadd.f32 %v3109_v14, %v3106_v36  ;;  %v4965_v36 = vld [vmem:[%s7548_s3 + $0x4d0] sm:$0xff]  }
 0x14f   :  { %2788 = vmatprep.subr.bf16.mxu1 %v5121_v1  ;;  %v2896_v46 = vcombine.high %v7104_v28, %v7104_v28 }
 0x151   :  { %2575 = vmatpush2.bf16.msra.mxu0 %v2550_v20  ;;  %v7142_v20 = vld [vmem:[%s7545_s0 + $0x18] sm:$0xf]  ;;  %v2900_v5 = vpack.c.bf16 %v2896_v46, %v2896_v46  ;;  %v3536_v46 = vstv %s7202_s9 }
 0x152   :  { %2789 = vmatpush1.bf16.msra.mxu1 %v4942_v37  ;;  %2576 = vmatprep.subr.bf16.mxu0 %v5121_v1  ;;  %v3302_v37 = vadd.f32 %v3301_v7, %v3298_v32  ;;  %v3305_v52 = vmul.f32 %v7142_v20, %v3304_v23  ;;  %v3317_v32 = vmul.f32 %v6615_v31, %v3316_v57  ;;  %v4956_v7 = vld [vmem:[%s7548_s3 + $0x494] sm:$0xff]   ;;  %v3532_v23 = vstv %s7182_s25 }
 0x153   :  { %2790 = vmatprep.subr.bf16.mxu1 %v5121_v1 }
 0x154   :  { %v762_v45 = vpop.f32.mrf.mxu0  ;;  %v3306_v63 = vadd.f32 %v3305_v52, %v3302_v37  ;;  %v2671_v37 = vpack.c.bf16 %v6890_v47, %v6890_v47  ;;  %v4967_v52 = vld [vmem:[%s7548_s3 + $0x4c8] sm:$0xff]  }
 0x155   :  { %v7069_v2 = vadd.f32 %v762_v45, %v6863_v0  ;;  %2577 = vmatpush2.bf16.msra.mxu0 %v4951_v26  ;;  %v4946_v0 = vld [vmem:[%s7548_s3 + $0x454] sm:$0xff]   ;;  %v3113_v26 = vmul.f32 %v7154_v35, %v3112_v15  ;;  %v7169_v45 = vld [vmem:[%s7545_s0 + $0x1c] sm:$0xf] }
 0x156   :  { %2791 = vmatpush1.bf16.msra.mxu1 %v4944_v60  ;;  %v764_v51 = vpop.f32.mrf.mxu0  ;;  %2578 = vmatprep.subr.bf16.mxu0 %v5121_v1  ;;  %v3520_v60 = vstv %s7098_s20  ;;  %v3309_v18 = vmul.f32 %v7169_v45, %v3308_v55  ;;  %s7252_s20 = sld [smem:[#allocation2 + $0x70e]] }
 0x157   :  { %2792 = vmatprep.subr.bf16.mxu1 %v5121_v1  ;;  %v3114_v17 = vadd.f32 %v3113_v26, %v3110_v49  ;;  %v3521_v56 = vmul.f32 %v7045_v29, %v3520_v60  ;;  %v4954_v29 = vld [vmem:[%s7548_s3 + $0x49c] sm:$0xff]   ;;  %v3328_v49 = vstv %s7213_s30 }
 0x158   :  { %v765_v25 = vpop.f32.mrf.mxu0  ;;  %v3310_v51 = vadd.f32 %v3309_v18, %v3306_v63  ;;  %v3329_v60 = vmul.f32 %v7059_v61, %v3328_v49 }
 0x159   :  { %2579 = vmatpush2.bf16.msra.mxu0 %v4953_v4  ;;  %v3518_v4 = vadd.f32 %v3517_v10, %v3514_v3  ;;  %v3115_v25 = vmax.f32 %v3114_v17, 0.0  ;;  %v3537_v3 = vmul.f32 %v7169_v45, %v3536_v46  ;;  %v3540_v10 = vstv %s7221_s11  ;;  %v5064_v45 = vld [vmem:[%s7545_s0 + $0x20] sm:$0xf] }
 0x15a   :  { %2793 = vmatpush1.bf16.msra.mxu1 %v4946_v0  ;;  %v766_v42 = vpop.f32.mrf.mxu0  ;;  %2580 = vmatprep.subr.bf16.mxu0 %v5121_v1  ;;  %v4961_v0 = vld [vmem:[%s7548_s3 + $0x4e0] sm:$0xff]   ;;  %v3541_v18 = vmul.f32 %v5064_v45, %v3540_v10  ;;  %v4985_v45 = vld [vmem:[%s7548_s3 + $0x5b0] sm:$0xff]  }
 0x15b   :  { %2794 = vmatprep.subr.bf16.mxu1 %v5121_v1  ;;  %v3522_v43 = vadd.f32 %v3521_v56, %v3518_v4  ;;  %v7217_v34 = vrot.slane %v3115_v25, %v5471_v13  ;;  %v4964_v56 = vld [vmem:[%s7548_s3 + $0x53c] sm:$0xff]   ;;  %v4966_v25 = vld [vmem:[%s7548_s3 + $0x534] sm:$0xff]  }
 0x15c   :  { %v3336_v39 = vstv %s7252_s20 }
 0x15d   :  { %2581 = vmatpush2.bf16.msra.mxu0 %v4955_v30  ;;  %v3314_v30 = vadd.f32 %v3313_v62, %v3310_v51  ;;  %v3526_v42 = vadd.f32 %v3525_v12, %v3522_v43  ;;  %v3124_v15 = vcombine.high %v7217_v34, %v7217_v34  ;;  %v3548_v62 = vstv %s7257_s12  ;;  %v4975_v43 = vld [vmem:[%s7548_s3 + $0x510] ss:$0 sps:$4 sm:$0x33]  }
 0x15e   :  { %2795 = vmatpush1.bf16.msra.mxu1 %v4948_v6  ;;  %2582 = vmatprep.subr.bf16.mxu0 %v5121_v1  ;;  %v3340_v12 = vstv %s7268_s2  ;;  %v3006_v58 = vsel %vm376_vm0, %v4975_v43, 0  ;;  %v4993_v43 = vld [vmem:[%s7548_s3 + $0x590] sm:$0xff]  }
 0x15f   :  { %2802 = vmatprep.subr.bf16.mxu1 %v5121_v1  ;;  %v3318_v14 = vadd.f32 %v3317_v32, %v3314_v30  ;;  %v3128_v47 = vpack.c.bf16 %v3124_v15, %v3124_v15  ;;  %v3341_v32 = vmul.f32 %v7154_v35, %v3340_v12  ;;  %v3560_v15 = vstv %s7309_s15  ;;  %v4986_v12 = vld [vmem:[%s7548_s3 + $0x614] sm:$0xff]  }
 0x161   :  { %2583 = vmatpush2.bf16.msra.mxu0 %v4957_v50  ;;  %v3533_v50 = vmul.f32 %v7142_v20, %v3532_v23  ;;  %v4960_v20 = vld [vmem:[%s7548_s3 + $0x54c] sm:$0xff]  }
 0x162   :  { %2803 = vmatpush2.bf16.msra.mxu1 %v2778_v24  ;;  %3008 = vmatprep.subr.bf16.mxu0 %v5121_v1  ;;  %v3322_v24 = vadd.f32 %v3321_v48, %v3318_v14  ;;  %v4977_v23 = vld [vmem:[%s7548_s3 + $0x508] sm:$0xff]  }
 0x163   :  { %2804 = vmatprep.subr.bf16.mxu1 %v5121_v1  ;;  %v4970_v14 = vld [vmem:[%s7548_s3 + $0x524] sm:$0xff]  }
 0x164   :  { %2585 = vmatmul.mubr.bf16.vlgmr.msra.gmra.mxu0 %v2443_v53  ;;  %v990_v33 = vpop.f32.mrf.mxu1 }
 0x165   :  { %3009 = vmatpush1.bf16.msra.mxu0 %v4959_v38  ;;  %4586 = vmatprep.mubr.msk.bf16.mxu0 %vm372_vm1, %v2900_v5  ;;  %v7190_v11 = vadd.f32 %v990_v33, %v7069_v2  ;;  %v3528_v2 = vstv %s7161_s29  ;;  %s7232_s29 = sld [smem:[#allocation2 + $0x70d]]  ;;  %v4962_v38 = vld [vmem:[%s7548_s3 + $0x544] sm:$0xff]  }
 0x166   :  { %2805 = vmatpush2.bf16.msra.mxu1 %v4952_v40  ;;  %3010 = vmatprep.subr.bf16.mxu0 %v5121_v1  ;;  %v992_v54 = vpop.f32.mrf.mxu1  ;;  %v3529_v31 = vmul.f32 %v7109_v16, %v3528_v2  ;;  %v3324_v16 = vstv %s7197_s16  ;;  %v3544_v40 = vstv %s7239_s14  ;;  %s5125_s14 = smov [#allocation7]  }
 0x167   :  { %2806 = vmatprep.subr.bf16.mxu1 %v5121_v1  ;;  %v3325_v55 = vmul.f32 %v6663_v59, %v3324_v16  ;;  %v4969_v59 = vld [vmem:[%s7548_s3 + $0x4c0] sm:$0xff]   ;;  %v3337_v54 = vmul.f32 %v7126_v44, %v3336_v39  ;;  %s3861_s23 = sshll.u32 %s5125_s14, 4  ;;  %s3862_s23 = int_to_ptr.vmem [resolvable:$true] %s3861_s23 }
 0x168   :  { %v993_v21 = vpop.f32.mrf.mxu1  ;;  %v3530_v8 = vadd.f32 %v3529_v31, %v3526_v42  ;;  %v3556_v31 = vstv %s7292_s8  ;;  %p5096_p11 = scmp.lt.s32.totalorder %s3862_s23, %s3862_s23 }
 0x169   :  { %3011 = vmatpush1.bf16.msra.mxu0 %v4961_v0  ;;  %v3326_v53 = vadd.f32 %v3325_v55, %v3322_v24  ;;  %v5065_v0 = vld [vmem:[%s7545_s0 + $0x24] sm:$0xf]  ;;  %v3549_v21 = vmul.f32 %v7007_v9, %v3548_v62  ;;  %v3564_v55 = vstv %s7322_s19 }
 0x16a   :  { %2807 = vmatpush2.bf16.msra.mxu1 %v4954_v29  ;;  %3012 = vmatprep.subr.bf16.mxu0 %v5121_v1  ;;  %v994_v6 = vpop.f32.mrf.mxu1  ;;  %v3534_v26 = vadd.f32 %v3533_v50, %v3530_v8  ;;  %v3545_v51 = vmul.f32 %v5065_v0, %v3544_v40  ;;  %v4973_v29 = vld [vmem:[%s7548_s3 + $0x4b0] sm:$0xff]   ;;  %v4979_v50 = vld [vmem:[%s7548_s3 + $0x500] sm:$0xff]   ;;  %v3565_v10 = vmul.f32 %v7126_v44, %v3564_v55 }
 0x16b   :  { %2808 = vmatprep.subr.bf16.mxu1 %v5121_v1  ;;  %v3332_v5 = vstv %s7232_s29  ;;  %v3330_v17 = vadd.f32 %v3329_v60, %v3326_v53  ;;  %v5066_v6 = vld [vmem:[%s7545_s0 + $0x2c] sm:$0xf]  ;;  %s7334_s0 = sld [smem:[#allocation2 + $0x78f]]  ;;  %v4983_v53 = vld [vmem:[%s7548_s3 + $0x4f0] sm:$0xff]   ;;  %v2899_v44 = vpack.c.bf16 %v7104_v28, %v7104_v28  ;;  %v4989_v0 = vld [vmem:[%s7548_s3 + $0x5a0] sm:$0xff]  }
 0x16c   :  { %v3538_v63 = vadd.f32 %v3537_v3, %v3534_v26  ;;  %v3333_v4 = vmul.f32 %v7091_v19, %v3332_v5  ;;  %v4978_v40 = vld [vmem:[%s7548_s3 + $0x56c] sm:$0xff]  }
 0x16d   :  { %3013 = vmatpush1.bf16.msra.mxu0 %v4963_v27  ;;  %v3552_v27 = vstv %s7276_s18  ;;  %v4987_v28 = vld [vmem:[%s7548_s3 + $0x5a8] sm:$0xff]  }
 0x16e   :  { %2809 = vmatpush2.bf16.msra.mxu1 %v4956_v7  ;;  %3014 = vmatprep.subr.bf16.mxu0 %v5121_v1  ;;  %v3542_v33 = vadd.f32 %v3541_v18, %v3538_v63  ;;  %v3334_v57 = vadd.f32 %v3333_v4, %v3330_v17  ;;  %v4968_v7 = vld [vmem:[%s7548_s3 + $0x52c] sm:$0xff]   ;;  %v3553_v42 = vmul.f32 %v5066_v6, %v3552_v27  ;;  %v4980_v4 = vld [vmem:[%s7548_s3 + $0x564] sm:$0xff]  }
 0x16f   :  { %2810 = vmatprep.subr.bf16.mxu1 %v5121_v1  ;;  %v4997_v27 = vld [vmem:[%s7548_s3 + $0x580] sm:$0xff]  }
 0x170   :  { %v3546_v2 = vadd.f32 %v3545_v51, %v3542_v33  ;;  %v3338_v30 = vadd.f32 %v3337_v54, %v3334_v57  ;;  %v4982_v51 = vld [vmem:[%s7548_s3 + $0x55c] sm:$0xff]   ;;  %v4984_v54 = vld [vmem:[%s7548_s3 + $0x554] sm:$0xff]  }
 0x171   :  { %3015 = vmatpush1.bf16.msra.mxu0 %v4965_v36  ;;  %v4991_v57 = vld [vmem:[%s7548_s3 + $0x598] sm:$0xff]  }
 0x172   :  { %2811 = vmatpush2.bf16.msra.mxu1 %v4958_v41  ;;  %3016 = vmatprep.subr.bf16.mxu0 %v5121_v1  ;;  %v3550_v9 = vadd.f32 %v3549_v21, %v3546_v2  ;;  %v3342_v36 = vadd.f32 %v3341_v32, %v3338_v30  ;;  %v3557_v41 = vmul.f32 %v7059_v61, %v3556_v31  ;;  %v4988_v21 = vld [vmem:[%s7548_s3 + $0x60c] sm:$0xff]   ;;  %v4990_v30 = vld [vmem:[%s7548_s3 + $0x604] sm:$0xff]   ;;  %v4999_v32 = vld [vmem:[%s7548_s3 + $0x578] sm:$0xff]  }
 0x173   :  { %3236 = vmatprep.subr.bf16.mxu1 %v5121_v1  ;;  %v4996_v31 = vld [vmem:[%s7548_s3 + $0x5ec] sm:$0xff]  }
 0x174   :  { %v3554_v48 = vadd.f32 %v3553_v42, %v3550_v9  ;;  %v3343_v46 = vmax.f32 %v3342_v36, 0.0  ;;  %v4994_v9 = vld [vmem:[%s7548_s3 + $0x5f4] sm:$0xff]  }
 0x175   :  { %2813 = vmatmul.mubr.bf16.vlgmr.msra.gmra.mxu1 %v2671_v37  ;;  %3017 = vmatpush1.bf16.msra.mxu0 %v4967_v52  ;;  %v4972_v37 = vld [vmem:[%s7548_s3 + $0x51c] sm:$0xff]   ;;  %v5003_v42 = vld [vmem:[%s7548_s3 + $0x5d0] sm:$0xff]  }
 0x176   :  { %3237 = vmatpush1.bf16.msra.mxu1 %v4960_v20  ;;  %3018 = vmatprep.subr.bf16.mxu0 %v5121_v1  ;;  %v3558_v61 = vadd.f32 %v3557_v41, %v3554_v48  ;;  %v4981_v20 = vld [vmem:[%s7548_s3 + $0x4f8] sm:$0xff]   ;;  %v7351_v49 = vrot.slane %v3343_v46, %v5471_v13  ;;  %v4998_v48 = vld [vmem:[%s7548_s3 + $0x5e4] sm:$0xff]  }
 0x177   :  { %3238 = vmatprep.subr.bf16.mxu1 %v5121_v1  ;;  %4642 = vmatprep.mubr.msk.bf16.mxu1 %vm372_vm1, %v3128_v47  ;;  %v4974_v47 = vld [vmem:[%s7548_s3 + $0x514] sm:$0xff]   ;;  %v5002_v46 = vld [vmem:[%s7548_s3 + $0x63c] ss:$0 sps:$4 sm:$0x33]  }
 0x178   :  { %v3352_v60 = vcombine.high %v7351_v49, %v7351_v49 }
 0x179   :  { %3019 = vmatpush1.bf16.msra.mxu0 %v4969_v59  ;;  %v3568_v59 = vstv %s7334_s0 }
 0x17a   :  { %3239 = vmatpush1.bf16.msra.mxu1 %v4962_v38  ;;  %3020 = vmatprep.subr.bf16.mxu0 %v5121_v1  ;;  %v3569_v63 = vmul.f32 %v7154_v35, %v3568_v59  ;;  %v3356_v18 = vpack.c.bf16 %v3352_v60, %v3352_v60  ;;  %v5011_v59 = vld [vmem:[%s7550_s5 + $0x38] sm:$0xff]   ;;  %v5123_v60 = vmov 0.0  }
 0x17b   :  { %3240 = vmatprep.subr.bf16.mxu1 %v5121_v1 }
 0x17d   :  { %3021 = vmatpush1.bf16.msra.mxu0 %v4971_v22 }
 0x17e   :  { %3241 = vmatpush1.bf16.msra.mxu1 %v4964_v56  ;;  %3022 = vmatprep.subr.bf16.mxu0 %v5121_v1 }
 0x17f   :  { %3242 = vmatprep.subr.bf16.mxu1 %v5121_v1 }
 0x181   :  { %3023 = vmatpush1.bf16.msra.mxu0 %v4973_v29 }
 0x182   :  { %3243 = vmatpush1.bf16.msra.mxu1 %v4966_v25  ;;  %3030 = vmatprep.subr.bf16.mxu0 %v5121_v1 }
 0x183   :  { %3244 = vmatprep.subr.bf16.mxu1 %v5121_v1 }
 0x185   :  { %3031 = vmatpush2.bf16.msra.mxu0 %v3006_v58  ;;  %v5001_v58 = vld [vmem:[%s7548_s3 + $0x5d8] ss:$0 sps:$4 sm:$0x33]  }
 0x186   :  { %3245 = vmatpush1.bf16.msra.mxu1 %v4968_v7  ;;  %3032 = vmatprep.subr.bf16.mxu0 %v5121_v1  ;;  %v4992_v7 = vld [vmem:[%s7548_s3 + $0x5fc] sm:$0xff]   ;;  %v3462_v6 = vsel %vm376_vm0, %v5001_v58, 0 }
 0x187   :  { %3246 = vmatprep.subr.bf16.mxu1 %v5121_v1 }
 0x188   :  { %v1218_v16 = vpop.f32.mrf.mxu0 }
 0x189   :  { %v1224_v8 = vadd.f32 %v1218_v16, %v7190_v11  ;;  %3033 = vmatpush2.bf16.msra.mxu0 %v4977_v23  ;;  %v3561_v11 = vmul.f32 %v7091_v19, %v3560_v15  ;;  %v4976_v19 = vld [vmem:[%s7548_s3 + $0x574] ss:$0 sps:$4 sm:$0x33]   ;;  %v5007_v15 = vld [vmem:[%s7548_s3 + $0x5c0] sm:$0xff]  }
 0x18a   :  { %3247 = vmatpush1.bf16.msra.mxu1 %v4970_v14  ;;  %v1220_v52 = vpop.f32.mrf.mxu0  ;;  %3034 = vmatprep.subr.bf16.mxu0 %v5121_v1  ;;  %v3234_v38 = vsel %vm376_vm0, %v4976_v19, 0  ;;  %v5005_v14 = vld [vmem:[%s7548_s3 + $0x5c8] sm:$0xff]  }
 0x18b   :  { %3248 = vmatprep.subr.bf16.mxu1 %v5121_v1  ;;  %v3562_v3 = vadd.f32 %v3561_v11, %v3558_v61  ;;  %v3690_v52 = vsel %vm376_vm0, %v5002_v46, 0  ;;  %v3355_v61 = vpack.c.bf16 %v7351_v49, %v7351_v49  ;;  %v5004_v11 = vld [vmem:[%s7548_s3 + $0x634] sm:$0xff]  }
 0x18c   :  { %v1221_v24 = vpop.f32.mrf.mxu0 }
 0x18d   :  { %3035 = vmatpush2.bf16.msra.mxu0 %v4979_v50  ;;  %v3566_v5 = vadd.f32 %v3565_v10, %v3562_v3  ;;  %v5010_v3 = vld [vmem:[%s7548_s3 + $0x61c] sm:$0xff]  }
 0x18e   :  { %3249 = vmatpush1.bf16.msra.mxu1 %v4972_v37  ;;  %v1222_v26 = vpop.f32.mrf.mxu0  ;;  %3036 = vmatprep.subr.bf16.mxu0 %v5121_v1  ;;  %v5009_v37 = vld [vmem:[%s7548_s3 + $0x5b8] sm:$0xff]  }
 0x18f   :  { %3250 = vmatprep.subr.bf16.mxu1 %v5121_v1  ;;  %v3570_v22 = vadd.f32 %v3569_v63, %v3566_v5  ;;  %v5008_v26 = vld [vmem:[%s7548_s3 + $0x624] sm:$0xff]   ;;  %v5012_v5 = vld [vmem:[%s7550_s5 + $0x30] sm:$0xff]  }
 0x191   :  { %3037 = vmatpush2.bf16.msra.mxu0 %v4981_v20  ;;  %v3571_v39 = vmax.f32 %v3570_v22, 0.0  ;;  %v5006_v20 = vld [vmem:[%s7548_s3 + $0x62c] sm:$0xff]  }
 0x192   :  { %3251 = vmatpush1.bf16.msra.mxu1 %v4974_v47  ;;  %3038 = vmatprep.subr.bf16.mxu0 %v5121_v1 }
 0x193   :  { %3258 = vmatprep.subr.bf16.mxu1 %v5121_v1  ;;  %v7402_v29 = vrot.slane %v3571_v39, %v5471_v13  ;;  %v3127_v13 = vpack.c.bf16 %v7217_v34, %v7217_v34  ;;  %v4995_v34 = vld [vmem:[%s7548_s3 + $0x588] sm:$0xff]  }
 0x194   :  { %v5017_v39 = vld [vmem:[%s7550_s5 + $0x8] sm:$0xff]  }
 0x195   :  { %3039 = vmatpush2.bf16.msra.mxu0 %v4983_v53  ;;  %v3580_v25 = vcombine.high %v7402_v29, %v7402_v29  ;;  %v3583_v10 = vpack.c.bf16 %v7402_v29, %v7402_v29 }
 0x196   :  { %3259 = vmatpush2.bf16.msra.mxu1 %v3234_v38  ;;  %3464 = vmatprep.subr.bf16.mxu0 %v5121_v1 }
 0x197   :  { %3260 = vmatprep.subr.bf16.mxu1 %v5121_v1  ;;  %v3584_v2 = vpack.c.bf16 %v3580_v25, %v3580_v25 }
 0x198   :  { %3041 = vmatmul.mubr.bf16.vlgmr.msra.gmra.mxu0 %v2899_v44  ;;  %v5013_v44 = vld [vmem:[%s7550_s5 + $0x28] sm:$0xff]  }
 0x199   :  { %v1446_v35 = vpop.f32.mrf.mxu1  ;;  %3465 = vmatpush1.bf16.msra.mxu0 %v4985_v45  ;;  %4698 = vmatprep.mubr.msk.bf16.mxu0 %vm372_vm1, %v3356_v18  ;;  %v5014_v18 = vld [vmem:[%s7550_s5 + $0x20] sm:$0xff]  }
 0x19a   :  { %v7386_v17 = vadd.f32 %v1446_v35, %v1224_v8  ;;  %3261 = vmatpush2.bf16.msra.mxu1 %v4978_v40  ;;  %3466 = vmatprep.subr.bf16.mxu0 %v5121_v1  ;;  %v5000_v8 = vld [vmem:[%s7548_s3 + $0x5dc] sm:$0xff]  }
 0x19b   :  { %v1448_v56 = vpop.f32.mrf.mxu1  ;;  %3262 = vmatprep.subr.bf16.mxu1 %v5121_v1  ;;  %v5015_v40 = vld [vmem:[%s7550_s5 + $0x18] sm:$0xff]  }
 0x19c   :  { %v5016_v56 = vld [vmem:[%s7550_s5 + $0x10] sm:$0xff]  }
 0x19d   :  { %v1449_v33 = vpop.f32.mrf.mxu1  ;;  %3467 = vmatpush1.bf16.msra.mxu0 %v4987_v28 }
 0x19e   :  { %3263 = vmatpush2.bf16.msra.mxu1 %v4980_v4  ;;  %3468 = vmatprep.subr.bf16.mxu0 %v5121_v1  ;;  %v5018_v33 = vld [vmem:[%s7550_s5] sm:$0xff]  }
 0x19f   :  { %v1450_v62 = vpop.f32.mrf.mxu1  ;;  %3264 = vmatprep.subr.bf16.mxu1 %v5121_v1 }
 0x1a1   :  { %3469 = vmatpush1.bf16.msra.mxu0 %v4989_v0 }
 0x1a2   :  { %3265 = vmatpush2.bf16.msra.mxu1 %v4982_v51  ;;  %3470 = vmatprep.subr.bf16.mxu0 %v5121_v1 }
 0x1a3   :  { %3266 = vmatprep.subr.bf16.mxu1 %v5121_v1 }
 0x1a5   :  { %3471 = vmatpush1.bf16.msra.mxu0 %v4991_v57 }
 0x1a6   :  { %3267 = vmatpush2.bf16.msra.mxu1 %v4984_v54  ;;  %3472 = vmatprep.subr.bf16.mxu0 %v5121_v1 }
 0x1a7   :  { %3692 = vmatprep.subr.bf16.mxu1 %v5121_v1 }
 0x1a9   :  { %3269 = vmatmul.mubr.bf16.vlgmr.msra.gmra.mxu1 %v3127_v13  ;;  %3473 = vmatpush1.bf16.msra.mxu0 %v4993_v43 }
 0x1aa   :  { %3693 = vmatpush1.bf16.msra.mxu1 %v4986_v12  ;;  %3474 = vmatprep.subr.bf16.mxu0 %v5121_v1 }
 0x1ab   :  { %3694 = vmatprep.subr.bf16.mxu1 %v5121_v1  ;;  %4754 = vmatprep.mubr.msk.bf16.mxu1 %vm372_vm1, %v3584_v2 }
 0x1ad   :  { %3475 = vmatpush1.bf16.msra.mxu0 %v4995_v34 }
 0x1ae   :  { %3695 = vmatpush1.bf16.msra.mxu1 %v4988_v21  ;;  %3476 = vmatprep.subr.bf16.mxu0 %v5121_v1 }
 0x1af   :  { %3696 = vmatprep.subr.bf16.mxu1 %v5121_v1 }
 0x1b1   :  { %3477 = vmatpush1.bf16.msra.mxu0 %v4997_v27 }
 0x1b2   :  { %3697 = vmatpush1.bf16.msra.mxu1 %v4990_v30  ;;  %3478 = vmatprep.subr.bf16.mxu0 %v5121_v1 }
 0x1b3   :  { %3698 = vmatprep.subr.bf16.mxu1 %v5121_v1 }
 0x1b5   :  { %3479 = vmatpush1.bf16.msra.mxu0 %v4999_v32 }
 0x1b6   :  { %3699 = vmatpush1.bf16.msra.mxu1 %v4992_v7  ;;  %3486 = vmatprep.subr.bf16.mxu0 %v5121_v1 }
 0x1b7   :  { %3700 = vmatprep.subr.bf16.mxu1 %v5121_v1 }
 0x1b9   :  { %3487 = vmatpush2.bf16.msra.mxu0 %v3462_v6 }
 0x1ba   :  { %3701 = vmatpush1.bf16.msra.mxu1 %v4994_v9  ;;  %3488 = vmatprep.subr.bf16.mxu0 %v5121_v1 }
 0x1bb   :  { %3702 = vmatprep.subr.bf16.mxu1 %v5121_v1 }
 0x1bc   :  { %v1674_v23 = vpop.f32.mrf.mxu0 }
 0x1bd   :  { %v1680_v36 = vadd.f32 %v1674_v23, %v7386_v17  ;;  %3489 = vmatpush2.bf16.msra.mxu0 %v5003_v42 }
 0x1be   :  { %3703 = vmatpush1.bf16.msra.mxu1 %v4996_v31  ;;  %v1676_v41 = vpop.f32.mrf.mxu0  ;;  %3490 = vmatprep.subr.bf16.mxu0 %v5121_v1 }
 0x1bf   :  { %3704 = vmatprep.subr.bf16.mxu1 %v5121_v1  ;;  %v4755_v41 = vld [vmem:[%s7549_s4] ss:$0 sm:$0xff]  ;;  %s5091_s4 = scalar_lea.vmem %s3862_s23, 32 }
 0x1c0   :  { %v1677_v16 = vpop.f32.mrf.mxu0  ;;  %p5092_p10 = scmp.ne.s32.totalorder %s3862_s23, %s5091_s4  ;;  %p5097_p12 = scmp.lt.s32.totalorder %s5091_s4, %s5091_s4 }
 0x1c1   :  { %3491 = vmatpush2.bf16.msra.mxu0 %v5005_v14 }
 0x1c2   :  { %3705 = vmatpush1.bf16.msra.mxu1 %v4998_v48  ;;  %v1678_v50 = vpop.f32.mrf.mxu0  ;;  %3492 = vmatprep.subr.bf16.mxu0 %v5121_v1  ;;  %p5098_p13 = por %p5097_p12, %p5096_p11 }
 0x1c3   :  { %3706 = vmatprep.subr.bf16.mxu1 %v5121_v1 }
 0x1c4   :  { %p5099_p0 = pnand %p5098_p13, %p5092_p10 }
 0x1c5   :  { %3493 = vmatpush2.bf16.msra.mxu0 %v5007_v15 }
 0x1c6   :  { %3707 = vmatpush1.bf16.msra.mxu1 %v5000_v8  ;;  %3494 = vmatprep.subr.bf16.mxu0 %v5121_v1 }
 0x1c7   :  { %3714 = vmatprep.subr.bf16.mxu1 %v5121_v1 }
 0x1c9   :  { %3495 = vmatpush2.bf16.msra.mxu0 %v5009_v37 }
 0x1ca   :  { %3715 = vmatpush2.bf16.msra.mxu1 %v3690_v52  ;;  %4774 = vmatprep.subr.bf16.mxu0 %v5123_v60 }
 0x1cb   :  { %3716 = vmatprep.subr.bf16.mxu1 %v5121_v1 }
 0x1cc   :  { %3497 = vmatmul.mubr.bf16.vlgmr.msra.gmra.mxu0 %v3355_v61  ;;  %v4756_v61 = vld [vmem:[%s7551_s6] ss:$0 sm:$0xff] }
 0x1cd   :  { %v1902_v24 = vpop.f32.mrf.mxu1  ;;  %4775 = vmatpush3.bf16.msra.mxu0 %v5011_v59  ;;  %4790 = vmatprep.mubr.msk.bf16.mxu0 %vm5124_vm2, %v5123_v60 }
 0x1ce   :  { %v1908_v55 = vadd.f32 %v1902_v24, %v1680_v36  ;;  %3717 = vmatpush2.bf16.msra.mxu1 %v5004_v11  ;;  %4776 = vmatprep.subr.bf16.mxu0 %v5123_v60 }
 0x1cf   :  { %v1904_v47 = vpop.f32.mrf.mxu1  ;;  %3718 = vmatprep.subr.bf16.mxu1 %v5121_v1 }
 0x1d1   :  { %v1905_v49 = vpop.f32.mrf.mxu1  ;;  %4777 = vmatpush3.bf16.msra.mxu0 %v5012_v5 }
 0x1d2   :  { %3719 = vmatpush2.bf16.msra.mxu1 %v5006_v20  ;;  %4778 = vmatprep.subr.bf16.mxu0 %v5123_v60 }
 0x1d3   :  { %v1906_v19 = vpop.f32.mrf.mxu1  ;;  %3720 = vmatprep.subr.bf16.mxu1 %v5121_v1 }
 0x1d5   :  { %4779 = vmatpush3.bf16.msra.mxu0 %v5013_v44 }
 0x1d6   :  { %3721 = vmatpush2.bf16.msra.mxu1 %v5008_v26  ;;  %4780 = vmatprep.subr.bf16.mxu0 %v5123_v60 }
 0x1d7   :  { %3722 = vmatprep.subr.bf16.mxu1 %v5121_v1 }
 0x1d9   :  { %4781 = vmatpush3.bf16.msra.mxu0 %v5014_v18 }
 0x1da   :  { %3723 = vmatpush2.bf16.msra.mxu1 %v5010_v3  ;;  %4782 = vmatprep.subr.bf16.mxu0 %v5123_v60 }
 0x1dd   :  { %3725 = vmatmul.mubr.bf16.vlgmr.msra.gmra.mxu1 %v3583_v10  ;;  %4783 = vmatpush3.bf16.msra.mxu0 %v5015_v40 }
 0x1de   :  { %4784 = vmatprep.subr.bf16.mxu0 %v5123_v60 }
 0x1e1   :  { %4785 = vmatpush3.bf16.msra.mxu0 %v5016_v56 }
 0x1e2   :  { %4786 = vmatprep.subr.bf16.mxu0 %v5123_v60 }
 0x1e5   :  { %4787 = vmatpush3.bf16.msra.mxu0 %v5017_v39 }
 0x1e6   :  { %4788 = vmatprep.subr.bf16.mxu0 %v5123_v60 }
 0x1e9   :  { %4789 = vmatpush3.bf16.msra.mxu0 %v5018_v33 }
 0x1f0   :  { %v2130_v53 = vpop.f32.mrf.mxu0 }
 0x1f1   :  { %v2136_v38 = vadd.f32 %v2130_v53, %v1908_v55 }
 0x1f2   :  { %v2132_v63 = vpop.f32.mrf.mxu0 }
 0x1f4   :  { %v2133_v1 = vpop.f32.mrf.mxu0 }
 0x1f6   :  { %v2134_v45 = vpop.f32.mrf.mxu0 }
 0x201   :  { %v2358_v22 = vpop.f32.mrf.mxu1 }
 0x202   :  { %v2364_v35 = vadd.f32 %v2358_v22, %v2136_v38 }
 0x203   :  { %v2360_v28 = vpop.f32.mrf.mxu1 }
 0x205   :  { %v2361_v17 = vpop.f32.mrf.mxu1 }
 0x207   :  { %v2362_v4 = vpop.f32.mrf.mxu1 }
 0x224   :  { %v2586_v0 = vpop.f32.mrf.mxu0 }
 0x225   :  { %v2592_v51 = vadd.f32 %v2586_v0, %v2364_v35 }
 0x226   :  { %v2588_v62 = vpop.f32.mrf.mxu0 }
 0x228   :  { %v2589_v29 = vpop.f32.mrf.mxu0 }
 0x22a   :  { %v2590_v57 = vpop.f32.mrf.mxu0 }
 0x235   :  { %v2814_v54 = vpop.f32.mrf.mxu1 }
 0x236   :  { %v2820_v25 = vadd.f32 %v2814_v54, %v2592_v51 }
 0x237   :  { %v2816_v13 = vpop.f32.mrf.mxu1 }
 0x239   :  { %v2817_v43 = vpop.f32.mrf.mxu1 }
 0x23b   :  { %v2818_v12 = vpop.f32.mrf.mxu1 }
 0x258   :  { %v3042_v2 = vpop.f32.mrf.mxu0 }
 0x259   :  { %v3048_v23 = vadd.f32 %v3042_v2, %v2820_v25 }
 0x25a   :  { %v3044_v34 = vpop.f32.mrf.mxu0 }
 0x25c   :  { %v3045_v21 = vpop.f32.mrf.mxu0 }
 0x25e   :  { %v3046_v27 = vpop.f32.mrf.mxu0 }
 0x269   :  { %v3270_v30 = vpop.f32.mrf.mxu1 }
 0x26a   :  { %v3276_v36 = vadd.f32 %v3270_v30, %v3048_v23 }
 0x26b   :  { %v3272_v32 = vpop.f32.mrf.mxu1 }
 0x26d   :  { %v3273_v7 = vpop.f32.mrf.mxu1 }
 0x26f   :  { %v3274_v58 = vpop.f32.mrf.mxu1 }
 0x28c   :  { %v3498_v9 = vpop.f32.mrf.mxu0 }
 0x28d   :  { %v3504_v14 = vadd.f32 %v3498_v9, %v3276_v36 }
 0x28e   :  { %v3500_v6 = vpop.f32.mrf.mxu0 }
 0x290   :  { %v3501_v42 = vpop.f32.mrf.mxu0 }
 0x292   :  { %v3502_v31 = vpop.f32.mrf.mxu0 }
 0x29d   :  { %v3726_v48 = vpop.f32.mrf.mxu1 }
 0x29e   :  { %v3732_v16 = vadd.f32 %v3726_v48, %v3504_v14 }
 0x29f   :  { %v3728_v15 = vpop.f32.mrf.mxu1 }
 0x2a0   :  { %v3740_v8 = vadd.f32 %v4755_v41, %v3732_v16 }
 0x2a1   :  { %v3729_v50 = vpop.f32.mrf.mxu1 }
 0x2a2   :  { %v3741_v46 = vmax.f32 %v3740_v8, 0.0 }
 0x2a3   :  { %v3730_v37 = vpop.f32.mrf.mxu1 }
 0x2a4   :  { %v3742_v52 = vpack.c.bf16 %v3741_v46, %v3741_v46 }
 0x2a6   :  { %4791 = vmatmul.mubr.bf16.vlgmr.msra.gmra.mxu0 %v3742_v52 }
 0x366   :  { %v3848_v11 = vpop.f32.mrf.mxu0 }
 0x367   :  { %v3849_v24 = vadd.f32 %v4756_v61, %v3848_v11 }
 0x368   :  { %v4792_v55 = vpop.f32.mrf.mxu0 }
 0x369   :  { %3854 = vst [vmem:[#allocation7] sm:$0x3] %v3849_v24 }
 0x36a   :  { %v3851_v20 = vpop.f32.mrf.mxu0 }
 0x36b   :  { %5102 = shalt.err (!%p5099_p0)
}
 0x36c   :  { %3864 = dma.vmem_to_hbm [thread:$0]  %s3862_s23, 32, %s7552_s7, [#allocation3]   ;;  %v4793_v47 = vpop.f32.mrf.mxu0 }
 0x36d   :  { %5115 = dma.done.wait [#allocation3], 32  }
 0x36e   :  { %5116 = vsyncadd [#allocation3], 4294967264 }
 0x36f   :  { %3868 = vsyncpa [#allocation3], 1 }
 0x370   :  { %3869 = vsyncpa [#allocation4], 1 }
 0x371   :  { %3870 = vsyncpa [#allocation6], 1 }

</bundles_post_ra>
